<compile_context>
chip_gen: v6e
topology: v6e:2x2x1
jax: 0.10.0
libtpu: 0.0.40
codegen_flags: <defaults>
</compile_context>

<pallas_src>
import math
import functools

import jax
import jax.numpy as jnp
from jax.experimental import pallas as pl
from jax.experimental.pallas import tpu as pltpu

MATMUL_DTYPE = jnp.float32   # set to jnp.bfloat16 on v6e/v7x for full-rate MXU
USE_TANH_GELU = False        # set True on v5e (tanh GELU uses the EUP, slightly different numerics)


# ----------------------------- in-kernel helpers -----------------------------

def _layernorm(x, w, b, eps=1e-5):
    mu = jnp.mean(x, axis=-1, keepdims=True)
    var = jnp.mean((x - mu) ** 2, axis=-1, keepdims=True)
    return (x - mu) * jax.lax.rsqrt(var + eps) * w + b


def _erf(x):
    # Abramowitz & Stegun 7.1.26 rational approximation (~float32 precision),
    # built only from Mosaic-supported elementwise ops.
    a1, a2, a3, a4, a5 = 0.254829592, -0.284496736, 1.421413741, -1.453152027, 1.061405429
    p = 0.3275911
    s = jnp.where(x >= 0.0, 1.0, -1.0)
    ax = jnp.abs(x)
    t = pl.reciprocal(1.0 + p * ax, approx=True)        # EUP, off the VALU
    poly = ((((a5 * t + a4) * t + a3) * t + a2) * t + a1) * t
    return s * (1.0 - poly * jnp.exp(-ax * ax))


def _gelu_exact(x):
    # matches torch.nn.GELU() (erf form)
    return 0.5 * x * (1.0 + _erf(x * 0.7071067811865476))


def _gelu_tanh(x):
    c = 0.7978845608028654  # sqrt(2/pi)
    return 0.5 * x * (1.0 + jnp.tanh(c * (x + 0.044715 * x * x * x)))


def _gelu(x):
    return _gelu_tanh(x) if USE_TANH_GELU else _gelu_exact(x)


# ----------------------------- fused GPT kernel -----------------------------

def gpt_fused_kernel(n_head, n_layer,
                     x_ref,
                     ln1_w_ref, ln1_b_ref,
                     wqkv_ref, bqkv_ref,
                     wp_ref, bp_ref,
                     ln2_w_ref, ln2_b_ref,
                     w1_ref, b1_ref, w2_ref, b2_ref,
                     lnf_w_ref, lnf_b_ref, dec_w_ref, dec_b_ref,
                     head_w_ref, head_b_ref,
                     o_ref):
    NB, T, C = x_ref.shape
    H = n_head
    Dh = C // H
    scale = 1.0 / math.sqrt(Dh)
    N = NB * T

    def dense(h, w, b):
        # bias is (1, out) and added exactly once per layer/call (QKV fusion already
        # collapsed what used to be 3 bias broadcasts into 1).
        return jnp.dot(h.astype(MATMUL_DTYPE), w.astype(MATMUL_DTYPE),
                       preferred_element_type=jnp.float32) + b

    def split_heads(m):
        # (N, C) -> (H*NB, T, Dh), head-major along the leading batch axis so one
        # rank-3 einsum and ONE softmax pass cover every head.
        return jnp.concatenate(
            [m[:, hd * Dh:(hd + 1) * Dh].reshape(NB, T, Dh) for hd in range(H)],
            axis=0)

    # Activation stays resident for the whole network; flattened (NB*T, C) for matmuls.
    x = x_ref[...].reshape(N, C)

    for l in range(n_layer):                           # static unroll over layers
        # ---- attention (NO causal mask: faithful to the given PyTorch forward) ----
        h = _layernorm(x, ln1_w_ref[l], ln1_b_ref[l])
        qkv = dense(h, wqkv_ref[l], bqkv_ref[l])       # (N, 3C): fused Q | K | V
        qh = split_heads(qkv[:, 0 * C:1 * C])          # (H*NB, T, Dh)
        kh = split_heads(qkv[:, 1 * C:2 * C])
        vh = split_heads(qkv[:, 2 * C:3 * C])

        att = jnp.einsum('bqd,bkd->bqk',
                         qh.astype(MATMUL_DTYPE), kh.astype(MATMUL_DTYPE),
                         preferred_element_type=jnp.float32) * scale    # (H*NB, T, T)
        att = att - jnp.max(att, axis=-1, keepdims=True)                # one softmax pass
        e = jnp.exp(att)
        p = e * pl.reciprocal(jnp.sum(e, axis=-1, keepdims=True), approx=True)
        yh = jnp.einsum('bqk,bkd->bqd',
                        p.astype(MATMUL_DTYPE), vh.astype(MATMUL_DTYPE),
                        preferred_element_type=jnp.float32)             # (H*NB, T, Dh)
        # merge heads back to (N, C) in original head order
        y = jnp.concatenate(
            [yh[hd * NB:(hd + 1) * NB].reshape(N, Dh) for hd in range(H)], axis=-1)
        x = x + dense(y, wp_ref[l], bp_ref[l])

        # ---- MLP ----
        h2 = _layernorm(x, ln2_w_ref[l], ln2_b_ref[l])
        m = _gelu(dense(h2, w1_ref[l], b1_ref[l]))
        x = x + dense(m, w2_ref[l], b2_ref[l])

    # ---- fused head: ln_f -> max over seq -> decoder -> ReLU -> Linear(C, 1) ----
    xf = _layernorm(x, lnf_w_ref[...], lnf_b_ref[...])
    xmax = jnp.max(xf.reshape(NB, T, C), axis=1)                       # (NB, C)
    d = jnp.maximum(dense(xmax, dec_w_ref[...], dec_b_ref[...]), 0.0)  # ReLU
    logit = jnp.sum(d * head_w_ref[...], axis=-1, keepdims=True) + head_b_ref[...]  # (NB, 1)
    # Lane-dense store: broadcast each scalar logit across a full (8, 128) tile.
    o_ref[...] = jnp.broadcast_to(logit.reshape(NB, 1, 1), (NB, 8, 128))


_BLOCK_WEIGHT_ORDER = ('ln1_w', 'ln1_b', 'wqkv', 'bqkv', 'wp', 'bp',
                       'ln2_w', 'ln2_b', 'w1', 'b1', 'w2', 'b2')


def _stack_blocks(blocks):
    fused = []
    for blk in blocks:
        f = dict(blk)
        # fuse Q/K/V projection weights & biases: (C, 3C) / (1, 3C)
        f['wqkv'] = jnp.concatenate([blk['wq'], blk['wk'], blk['wv']], axis=1)
        f['bqkv'] = jnp.concatenate([blk['bq'], blk['bk'], blk['bv']], axis=1)
        fused.append(f)
    return [jnp.stack([blk[name] for blk in fused], axis=0)
            for name in _BLOCK_WEIGHT_ORDER]


def _default_batch_chunk(B):
    """One grid step per TensorCore: v7x has 2 TCs/chip, v5e/v6e have 1."""
    try:
        kind = jax.devices()[0].device_kind.lower()
    except Exception:
        kind = ''
    if 'v7' in kind and B >= 2 and B % 2 == 0:
        return B // 2          # 2 grid steps, one per TensorCore (parallel axis)
    return B                   # single-TC chip: one grid step, no per-step overhead


def run_gpt_fused(x, params, cfg, batch_chunk=None):
    """x: (B, T, C) embedded activations.  Returns (B,) regression logits."""
    B, T, C = x.shape
    if batch_chunk is None:
        batch_chunk = _default_batch_chunk(B)
    assert B % batch_chunk == 0
    num_steps = B // batch_chunk

    args = [x] + _stack_blocks(params['blocks']) + [
        params['lnf_w'], params['lnf_b'],
        params['dec_w'], params['dec_b'],
        params['head_w'], params['head_b'],
    ]

    # Explicit scoped-VMEM budget: weights are fully resident, so size it from the
    # operands (with headroom) instead of relying on the 16/32 MiB default.
    arg_bytes = sum(int(a.size) * a.dtype.itemsize for a in args)
    vmem_limit = int(min(max(2 * arg_bytes + (16 << 20), 32 << 20), 48 << 20))

    def build_in_specs(single_buffer_weights):
        specs = [pl.BlockSpec((batch_chunk, T, C), lambda i: (i, 0, 0))]
        for w in args[1:]:
            # whole (stacked) weight arrays stay resident in VMEM across all grid steps
            if single_buffer_weights:
                specs.append(pl.BlockSpec(w.shape, lambda i, n=w.ndim: (0,) * n,
                                          pipeline_mode=pl.Buffered(1)))
            else:
                specs.append(pl.BlockSpec(w.shape, lambda i, n=w.ndim: (0,) * n))
        return specs

    def call(in_specs):
        return pl.pallas_call(
            functools.partial(gpt_fused_kernel, cfg['num_heads'], cfg['num_layers']),
            grid=(num_steps,),
            in_specs=in_specs,
            out_specs=pl.BlockSpec((batch_chunk, 8, 128), lambda i: (i, 0, 0)),
            out_shape=jax.ShapeDtypeStruct((B, 8, 128), jnp.float32),
            compiler_params=pltpu.CompilerParams(
                dimension_semantics=("parallel",),
                vmem_limit_bytes=vmem_limit),
        )(*args)

    # TODO(synk): for large embed_size/num_layers on v7x (64 MiB VMEM), replace the
    # static layer unroll with an "arbitrary" layer grid axis (weights indexed by l,
    # activation carried in VMEM scratch) instead of keeping all layers resident.
    if num_steps > 1:
        # Weight block indices never change -> single-buffer them (halves their VMEM
        # footprint on v7x); fall back to default buffering if unsupported.
        try:
            return call(build_in_specs(True))[:, 0, 0]
        except Exception:
            pass
    return call(build_in_specs(False))[:, 0, 0]


# ----------------------------- params / forward (glue in plain JAX) -----------------------------

def init_params(key, cfg):
    C = cfg['embed_size']
    V = cfg['vocab_size']
    L = cfg['num_layers']
    Hf = cfg['hidden_factor']
    Tmax = cfg['block_size'] + cfg['xT']
    ks = jax.random.split(key, 8 + L)

    def lin(k, fi, fo):
        return 0.02 * jax.random.normal(k, (fi, fo), jnp.float32)

    params = {
        'tok_emb': 0.02 * jax.random.normal(ks[0], (V, C), jnp.float32),
        'pos_emb': 0.02 * jax.random.normal(ks[1], (1, Tmax, C), jnp.float32),
        'xT_w': lin(ks[2], 2, C), 'xT_b': jnp.zeros((1, C), jnp.float32),
        'lnf_w': jnp.ones((1, C), jnp.float32), 'lnf_b': jnp.zeros((1, C), jnp.float32),
        'dec_w': lin(ks[3], C, C), 'dec_b': jnp.zeros((1, C), jnp.float32),
        'head_w': 0.02 * jax.random.normal(ks[4], (1, C), jnp.float32),  # PyTorch shape (out=1,in=C)
        'head_b': jnp.zeros((1, 1), jnp.float32),
        'blocks': [],
    }
    for l in range(L):
        bk = jax.random.split(ks[5 + l], 6)
        params['blocks'].append({
            'ln1_w': jnp.ones((1, C), jnp.float32), 'ln1_b': jnp.zeros((1, C), jnp.float32),
            'wq': lin(bk[0], C, C), 'bq': jnp.zeros((1, C), jnp.float32),
            'wk': lin(bk[1], C, C), 'bk': jnp.zeros((1, C), jnp.float32),
            'wv': lin(bk[2], C, C), 'bv': jnp.zeros((1, C), jnp.float32),
            'wp': lin(bk[3], C, C), 'bp': jnp.zeros((1, C), jnp.float32),
            'ln2_w': jnp.ones((1, C), jnp.float32), 'ln2_b': jnp.zeros((1, C), jnp.float32),
            'w1': lin(bk[4], C, Hf * C), 'b1': jnp.zeros((1, Hf * C), jnp.float32),
            'w2': lin(bk[5], Hf * C, C), 'b2': jnp.zeros((1, C), jnp.float32),
        })
    return params


def gpt_forward(params, idx, xT_in, cfg):
    # glue: embedding gather, xT projection, concat + pos emb  (dropout = identity)
    b, t = idx.shape
    tok = params['tok_emb'][idx]                                    # (b, t, C)
    xT_proj = xT_in[:, None, :] @ params['xT_w'] + params['xT_b']   # (b, 1, C)
    x = jnp.concatenate([tok, xT_proj], axis=1) + params['pos_emb'][:, :t + 1, :]
    logits = run_gpt_fused(x, params, cfg)                          # (b,)
    # PyTorch does logits.squeeze(): this also drops the batch dim when b == 1.
    return jnp.squeeze(logits)


# ----------------------------- pure-JAX reference (for sanity check) -----------------------------

def _ln_ref(x, w, b, eps=1e-5):
    mu = x.mean(-1, keepdims=True)
    var = ((x - mu) ** 2).mean(-1, keepdims=True)
    return (x - mu) / jnp.sqrt(var + eps) * w + b


def _block_ref(x, p, n_head):
    B, T, C = x.shape
    Dh = C // n_head
    h = _ln_ref(x, p['ln1_w'], p['ln1_b'])
    q = (h @ p['wq'] + p['bq']).reshape(B, T, n_head, Dh).transpose(0, 2, 1, 3)
    k = (h @ p['wk'] + p['bk']).reshape(B, T, n_head, Dh).transpose(0, 2, 1, 3)
    v = (h @ p['wv'] + p['bv']).reshape(B, T, n_head, Dh).transpose(0, 2, 1, 3)
    att = (q @ jnp.swapaxes(k, -1, -2)) / jnp.sqrt(Dh)
    att = jax.nn.softmax(att, axis=-1)
    y = (att @ v).transpose(0, 2, 1, 3).reshape(B, T, C)
    x = x + y @ p['wp'] + p['bp']
    h2 = _ln_ref(x, p['ln2_w'], p['ln2_b'])
    m = jax.nn.gelu(h2 @ p['w1'] + p['b1'], approximate=False)
    return x + m @ p['w2'] + p['b2']


def gpt_ref(params, idx, xT_in, cfg):
    b, t = idx.shape
    tok = params['tok_emb'][idx]
    xT_proj = xT_in[:, None, :] @ params['xT_w'] + params['xT_b']
    x = jnp.concatenate([tok, xT_proj], axis=1) + params['pos_emb'][:, :t + 1, :]
    for blk in params['blocks']:
        x = _block_ref(x, blk, cfg['num_heads'])
    x = _ln_ref(x, params['lnf_w'], params['lnf_b'])
    x = x.max(axis=1)
    x = jnp.maximum(x @ params['dec_w'] + params['dec_b'], 0.0)
    return jnp.squeeze(x @ params['head_w'].T + params['head_b'])


# ----------------------------- main -----------------------------

if __name__ == "__main__":
    cfg = dict(vocab_size=16, embed_size=32, num_heads=4, block_size=8,
               xT=1, mode='reg', hidden_factor=4, num_layers=2, dropout=0.0)

    key = jax.random.PRNGKey(0)
    kp, ki, kx = jax.random.split(key, 3)
    params = init_params(kp, cfg)

    B, T = 2, cfg['block_size']
    idx = jax.random.randint(ki, (B, T), 0, cfg['vocab_size'], dtype=jnp.int32)
    xT_in = jax.random.normal(kx, (B, 2), jnp.float32)

    logits = gpt_forward(params, idx, xT_in, cfg)
    logits = jax.block_until_ready(logits)

    ref = jax.block_until_ready(gpt_ref(params, idx, xT_in, cfg))
    assert logits.shape == (B,)
    assert jnp.allclose(logits, ref, atol=1e-3, rtol=1e-2), (logits, ref)

    print("KERNEL_OK")
</pallas_src>

<mosaic_0001>
module attributes {stable_mosaic.version = 11 : i64} {
  func.func @gpt_fused_kernel(%arg0: i32, %arg1: memref<2x9x32xf32, #tpu.memory_space<vmem>>, %arg2: memref<2x1x32xf32, #tpu.memory_space<vmem>>, %arg3: memref<2x1x32xf32, #tpu.memory_space<vmem>>, %arg4: memref<2x32x96xf32, #tpu.memory_space<vmem>>, %arg5: memref<2x1x96xf32, #tpu.memory_space<vmem>>, %arg6: memref<2x32x32xf32, #tpu.memory_space<vmem>>, %arg7: memref<2x1x32xf32, #tpu.memory_space<vmem>>, %arg8: memref<2x1x32xf32, #tpu.memory_space<vmem>>, %arg9: memref<2x1x32xf32, #tpu.memory_space<vmem>>, %arg10: memref<2x32x128xf32, #tpu.memory_space<vmem>>, %arg11: memref<2x1x128xf32, #tpu.memory_space<vmem>>, %arg12: memref<2x128x32xf32, #tpu.memory_space<vmem>>, %arg13: memref<2x1x32xf32, #tpu.memory_space<vmem>>, %arg14: memref<1x32xf32, #tpu.memory_space<vmem>>, %arg15: memref<1x32xf32, #tpu.memory_space<vmem>>, %arg16: memref<32x32xf32, #tpu.memory_space<vmem>>, %arg17: memref<1x32xf32, #tpu.memory_space<vmem>>, %arg18: memref<1x32xf32, #tpu.memory_space<vmem>>, %arg19: memref<1x1xf32, #tpu.memory_space<vmem>>, %arg20: memref<2x8x128xf32, #tpu.memory_space<vmem>>) attributes {dimension_semantics = [#tpu.dimension_semantics<parallel>], iteration_bounds = array<i64: 1>, scalar_prefetch = 0 : i64, scratch_operands = 0 : i64, tpu.core_type = #tpu.core_type<tc>, window_params = [{transform_indices = @transform_0, window_bounds = array<i64: 2, 9, 32>}, {pipeline_mode = #tpu.pipeline_mode<synchronous>, transform_indices = @transform_1, window_bounds = array<i64: 2, 1, 32>}, {pipeline_mode = #tpu.pipeline_mode<synchronous>, transform_indices = @transform_2, window_bounds = array<i64: 2, 1, 32>}, {pipeline_mode = #tpu.pipeline_mode<synchronous>, transform_indices = @transform_3, window_bounds = array<i64: 2, 32, 96>}, {pipeline_mode = #tpu.pipeline_mode<synchronous>, transform_indices = @transform_4, window_bounds = array<i64: 2, 1, 96>}, {pipeline_mode = #tpu.pipeline_mode<synchronous>, transform_indices = @transform_5, window_bounds = array<i64: 2, 32, 32>}, {pipeline_mode = #tpu.pipeline_mode<synchronous>, transform_indices = @transform_6, window_bounds = array<i64: 2, 1, 32>}, {pipeline_mode = #tpu.pipeline_mode<synchronous>, transform_indices = @transform_7, window_bounds = array<i64: 2, 1, 32>}, {pipeline_mode = #tpu.pipeline_mode<synchronous>, transform_indices = @transform_8, window_bounds = array<i64: 2, 1, 32>}, {pipeline_mode = #tpu.pipeline_mode<synchronous>, transform_indices = @transform_9, window_bounds = array<i64: 2, 32, 128>}, {pipeline_mode = #tpu.pipeline_mode<synchronous>, transform_indices = @transform_10, window_bounds = array<i64: 2, 1, 128>}, {pipeline_mode = #tpu.pipeline_mode<synchronous>, transform_indices = @transform_11, window_bounds = array<i64: 2, 128, 32>}, {pipeline_mode = #tpu.pipeline_mode<synchronous>, transform_indices = @transform_12, window_bounds = array<i64: 2, 1, 32>}, {pipeline_mode = #tpu.pipeline_mode<synchronous>, transform_indices = @transform_13, window_bounds = array<i64: 1, 32>}, {pipeline_mode = #tpu.pipeline_mode<synchronous>, transform_indices = @transform_14, window_bounds = array<i64: 1, 32>}, {pipeline_mode = #tpu.pipeline_mode<synchronous>, transform_indices = @transform_15, window_bounds = array<i64: 32, 32>}, {pipeline_mode = #tpu.pipeline_mode<synchronous>, transform_indices = @transform_16, window_bounds = array<i64: 1, 32>}, {pipeline_mode = #tpu.pipeline_mode<synchronous>, transform_indices = @transform_17, window_bounds = array<i64: 1, 32>}, {pipeline_mode = #tpu.pipeline_mode<synchronous>, transform_indices = @transform_18, window_bounds = array<i64: 1, 1>}, {transform_indices = @transform_19, window_bounds = array<i64: 2, 8, 128>}]} {
    %c0 = arith.constant 0 : index
    %c0_0 = arith.constant 0 : index
    %c0_1 = arith.constant 0 : index
    %0 = vector.load %arg1[%c0, %c0_0, %c0_1] : memref<2x9x32xf32, #tpu.memory_space<vmem>>, vector<2x9x32xf32>
    %1 = vector.shape_cast %0 : vector<2x9x32xf32> to vector<18x32xf32>
    %c0_2 = arith.constant 0 : index
    %c0_3 = arith.constant 0 : index
    %c0_4 = arith.constant 0 : index
    %2 = vector.load %arg2[%c0_2, %c0_3, %c0_4] : memref<2x1x32xf32, #tpu.memory_space<vmem>>, vector<1x1x32xf32>
    %3 = vector.shape_cast %2 : vector<1x1x32xf32> to vector<1x32xf32>
    %c0_5 = arith.constant 0 : index
    %c0_6 = arith.constant 0 : index
    %c0_7 = arith.constant 0 : index
    %4 = vector.load %arg3[%c0_5, %c0_6, %c0_7] : memref<2x1x32xf32, #tpu.memory_space<vmem>>, vector<1x1x32xf32>
    %5 = vector.shape_cast %4 : vector<1x1x32xf32> to vector<1x32xf32>
    %cst = arith.constant dense<0.000000e+00> : vector<18xf32>
    %6 = vector.multi_reduction <add>, %1, %cst [1] : vector<18x32xf32> to vector<18xf32>
    %7 = vector.shape_cast %6 : vector<18xf32> to vector<18x1xf32>
    %cst_8 = arith.constant 3.200000e+01 : f32
    %8 = vector.broadcast %cst_8 : f32 to vector<18x1xf32>
    %9 = arith.divf %7, %8 : vector<18x1xf32>
    %10 = vector.broadcast %9 : vector<18x1xf32> to vector<18x32xf32>
    %11 = arith.subf %1, %10 : vector<18x32xf32>
    %12 = arith.mulf %11, %11 : vector<18x32xf32>
    %cst_9 = arith.constant dense<0.000000e+00> : vector<18xf32>
    %13 = vector.multi_reduction <add>, %12, %cst_9 [1] : vector<18x32xf32> to vector<18xf32>
    %14 = vector.shape_cast %13 : vector<18xf32> to vector<18x1xf32>
    %cst_10 = arith.constant 3.200000e+01 : f32
    %15 = vector.broadcast %cst_10 : f32 to vector<18x1xf32>
    %16 = arith.divf %14, %15 : vector<18x1xf32>
    %17 = vector.broadcast %9 : vector<18x1xf32> to vector<18x32xf32>
    %18 = arith.subf %1, %17 : vector<18x32xf32>
    %cst_11 = arith.constant 9.99999974E-6 : f32
    %19 = vector.broadcast %cst_11 : f32 to vector<18x1xf32>
    %20 = arith.addf %16, %19 : vector<18x1xf32>
    %21 = math.rsqrt %20 : vector<18x1xf32>
    %22 = vector.broadcast %21 : vector<18x1xf32> to vector<18x32xf32>
    %23 = arith.mulf %18, %22 : vector<18x32xf32>
    %24 = vector.broadcast %3 : vector<1x32xf32> to vector<18x32xf32>
    %25 = arith.mulf %23, %24 : vector<18x32xf32>
    %26 = vector.broadcast %5 : vector<1x32xf32> to vector<18x32xf32>
    %27 = arith.addf %25, %26 : vector<18x32xf32>
    %c0_12 = arith.constant 0 : index
    %c0_13 = arith.constant 0 : index
    %c0_14 = arith.constant 0 : index
    %28 = vector.load %arg4[%c0_12, %c0_13, %c0_14] : memref<2x32x96xf32, #tpu.memory_space<vmem>>, vector<1x32x96xf32>
    %29 = vector.shape_cast %28 : vector<1x32x96xf32> to vector<32x96xf32>
    %c0_15 = arith.constant 0 : index
    %c0_16 = arith.constant 0 : index
    %c0_17 = arith.constant 0 : index
    %30 = vector.load %arg5[%c0_15, %c0_16, %c0_17] : memref<2x1x96xf32, #tpu.memory_space<vmem>>, vector<1x1x96xf32>
    %31 = vector.shape_cast %30 : vector<1x1x96xf32> to vector<1x96xf32>
    %cst_18 = arith.constant dense<0.000000e+00> : vector<18x96xf32>
    %32 = tpu.matmul %27, %29, %cst_18 {dimension_numbers = #tpu.dot_dimension_numbers<[1], [0], [0], [1], [0, 0, 1, 1], [], []>} : vector<18x32xf32>, vector<32x96xf32>, vector<18x96xf32> -> vector<18x96xf32>
    %33 = vector.broadcast %31 : vector<1x96xf32> to vector<18x96xf32>
    %34 = arith.addf %32, %33 : vector<18x96xf32>
    %35 = vector.extract_strided_slice %34 {offsets = [0, 0], sizes = [18, 32], strides = [1, 1]} : vector<18x96xf32> to vector<18x32xf32>
    %36 = vector.extract_strided_slice %35 {offsets = [0, 0], sizes = [18, 8], strides = [1, 1]} : vector<18x32xf32> to vector<18x8xf32>
    %37 = vector.shape_cast %36 : vector<18x8xf32> to vector<2x9x8xf32>
    %38 = vector.extract_strided_slice %35 {offsets = [0, 8], sizes = [18, 8], strides = [1, 1]} : vector<18x32xf32> to vector<18x8xf32>
    %39 = vector.shape_cast %38 : vector<18x8xf32> to vector<2x9x8xf32>
    %40 = vector.extract_strided_slice %35 {offsets = [0, 16], sizes = [18, 8], strides = [1, 1]} : vector<18x32xf32> to vector<18x8xf32>
    %41 = vector.shape_cast %40 : vector<18x8xf32> to vector<2x9x8xf32>
    %42 = vector.extract_strided_slice %35 {offsets = [0, 24], sizes = [18, 8], strides = [1, 1]} : vector<18x32xf32> to vector<18x8xf32>
    %43 = vector.shape_cast %42 : vector<18x8xf32> to vector<2x9x8xf32>
    %44 = tpu.concatenate %37, %39, %41, %43 in 0 : vector<2x9x8xf32>, vector<2x9x8xf32>, vector<2x9x8xf32>, vector<2x9x8xf32> -> vector<8x9x8xf32>
    %45 = vector.extract_strided_slice %34 {offsets = [0, 32], sizes = [18, 32], strides = [1, 1]} : vector<18x96xf32> to vector<18x32xf32>
    %46 = vector.extract_strided_slice %45 {offsets = [0, 0], sizes = [18, 8], strides = [1, 1]} : vector<18x32xf32> to vector<18x8xf32>
    %47 = vector.shape_cast %46 : vector<18x8xf32> to vector<2x9x8xf32>
    %48 = vector.extract_strided_slice %45 {offsets = [0, 8], sizes = [18, 8], strides = [1, 1]} : vector<18x32xf32> to vector<18x8xf32>
    %49 = vector.shape_cast %48 : vector<18x8xf32> to vector<2x9x8xf32>
    %50 = vector.extract_strided_slice %45 {offsets = [0, 16], sizes = [18, 8], strides = [1, 1]} : vector<18x32xf32> to vector<18x8xf32>
    %51 = vector.shape_cast %50 : vector<18x8xf32> to vector<2x9x8xf32>
    %52 = vector.extract_strided_slice %45 {offsets = [0, 24], sizes = [18, 8], strides = [1, 1]} : vector<18x32xf32> to vector<18x8xf32>
    %53 = vector.shape_cast %52 : vector<18x8xf32> to vector<2x9x8xf32>
    %54 = tpu.concatenate %47, %49, %51, %53 in 0 : vector<2x9x8xf32>, vector<2x9x8xf32>, vector<2x9x8xf32>, vector<2x9x8xf32> -> vector<8x9x8xf32>
    %55 = vector.extract_strided_slice %34 {offsets = [0, 64], sizes = [18, 32], strides = [1, 1]} : vector<18x96xf32> to vector<18x32xf32>
    %56 = vector.extract_strided_slice %55 {offsets = [0, 0], sizes = [18, 8], strides = [1, 1]} : vector<18x32xf32> to vector<18x8xf32>
    %57 = vector.shape_cast %56 : vector<18x8xf32> to vector<2x9x8xf32>
    %58 = vector.extract_strided_slice %55 {offsets = [0, 8], sizes = [18, 8], strides = [1, 1]} : vector<18x32xf32> to vector<18x8xf32>
    %59 = vector.shape_cast %58 : vector<18x8xf32> to vector<2x9x8xf32>
    %60 = vector.extract_strided_slice %55 {offsets = [0, 16], sizes = [18, 8], strides = [1, 1]} : vector<18x32xf32> to vector<18x8xf32>
    %61 = vector.shape_cast %60 : vector<18x8xf32> to vector<2x9x8xf32>
    %62 = vector.extract_strided_slice %55 {offsets = [0, 24], sizes = [18, 8], strides = [1, 1]} : vector<18x32xf32> to vector<18x8xf32>
    %63 = vector.shape_cast %62 : vector<18x8xf32> to vector<2x9x8xf32>
    %64 = tpu.concatenate %57, %59, %61, %63 in 0 : vector<2x9x8xf32>, vector<2x9x8xf32>, vector<2x9x8xf32>, vector<2x9x8xf32> -> vector<8x9x8xf32>
    "tpu.trace_start"() <{level = 10 : i32, message = "bqd,bkd->bqk"}> : () -> ()
    %cst_19 = arith.constant dense<0.000000e+00> : vector<8x9x9xf32>
    %65 = tpu.matmul %44, %54, %cst_19 {dimension_numbers = #tpu.dot_dimension_numbers<[2], [2], [1], [1], [0, 0, 0, 1, 1, 1], [0], [0]>} : vector<8x9x8xf32>, vector<8x9x8xf32>, vector<8x9x9xf32> -> vector<8x9x9xf32>
    "tpu.trace_stop"() : () -> ()
    %cst_20 = arith.constant 0.353553385 : f32
    %66 = vector.broadcast %cst_20 : f32 to vector<8x9x9xf32>
    %67 = arith.mulf %65, %66 : vector<8x9x9xf32>
    %cst_21 = arith.constant dense<0xFF800000> : vector<8x9xf32>
    %68 = vector.multi_reduction <maximumf>, %67, %cst_21 [2] : vector<8x9x9xf32> to vector<8x9xf32>
    %69 = vector.shape_cast %68 : vector<8x9xf32> to vector<8x9x1xf32>
    %70 = vector.broadcast %69 : vector<8x9x1xf32> to vector<8x9x9xf32>
    %71 = arith.subf %67, %70 : vector<8x9x9xf32>
    %72 = math.exp %71 : vector<8x9x9xf32>
    %cst_22 = arith.constant dense<0.000000e+00> : vector<8x9xf32>
    %73 = vector.multi_reduction <add>, %72, %cst_22 [2] : vector<8x9x9xf32> to vector<8x9xf32>
    %74 = vector.shape_cast %73 : vector<8x9xf32> to vector<8x9x1xf32>
    %75 = tpu.reciprocal %74 {approx = true} : vector<8x9x1xf32> -> vector<8x9x1xf32>
    %76 = vector.broadcast %75 : vector<8x9x1xf32> to vector<8x9x9xf32>
    %77 = arith.mulf %72, %76 : vector<8x9x9xf32>
    "tpu.trace_start"() <{level = 10 : i32, message = "bqk,bkd->bqd"}> : () -> ()
    %cst_23 = arith.constant dense<0.000000e+00> : vector<8x9x8xf32>
    %78 = tpu.matmul %77, %64, %cst_23 {dimension_numbers = #tpu.dot_dimension_numbers<[2], [1], [1], [2], [0, 0, 0, 1, 1, 2], [0], [0]>} : vector<8x9x9xf32>, vector<8x9x8xf32>, vector<8x9x8xf32> -> vector<8x9x8xf32>
    "tpu.trace_stop"() : () -> ()
    %79 = vector.extract_strided_slice %78 {offsets = [0, 0, 0], sizes = [2, 9, 8], strides = [1, 1, 1]} : vector<8x9x8xf32> to vector<2x9x8xf32>
    %80 = vector.shape_cast %79 : vector<2x9x8xf32> to vector<18x8xf32>
    %81 = vector.extract_strided_slice %78 {offsets = [2, 0, 0], sizes = [2, 9, 8], strides = [1, 1, 1]} : vector<8x9x8xf32> to vector<2x9x8xf32>
    %82 = vector.shape_cast %81 : vector<2x9x8xf32> to vector<18x8xf32>
    %83 = vector.extract_strided_slice %78 {offsets = [4, 0, 0], sizes = [2, 9, 8], strides = [1, 1, 1]} : vector<8x9x8xf32> to vector<2x9x8xf32>
    %84 = vector.shape_cast %83 : vector<2x9x8xf32> to vector<18x8xf32>
    %85 = vector.extract_strided_slice %78 {offsets = [6, 0, 0], sizes = [2, 9, 8], strides = [1, 1, 1]} : vector<8x9x8xf32> to vector<2x9x8xf32>
    %86 = vector.shape_cast %85 : vector<2x9x8xf32> to vector<18x8xf32>
    %87 = tpu.concatenate %80, %82, %84, %86 in 1 : vector<18x8xf32>, vector<18x8xf32>, vector<18x8xf32>, vector<18x8xf32> -> vector<18x32xf32>
    %c0_24 = arith.constant 0 : index
    %c0_25 = arith.constant 0 : index
    %c0_26 = arith.constant 0 : index
    %88 = vector.load %arg6[%c0_24, %c0_25, %c0_26] : memref<2x32x32xf32, #tpu.memory_space<vmem>>, vector<1x32x32xf32>
    %89 = vector.shape_cast %88 : vector<1x32x32xf32> to vector<32x32xf32>
    %c0_27 = arith.constant 0 : index
    %c0_28 = arith.constant 0 : index
    %c0_29 = arith.constant 0 : index
    %90 = vector.load %arg7[%c0_27, %c0_28, %c0_29] : memref<2x1x32xf32, #tpu.memory_space<vmem>>, vector<1x1x32xf32>
    %91 = vector.shape_cast %90 : vector<1x1x32xf32> to vector<1x32xf32>
    %cst_30 = arith.constant dense<0.000000e+00> : vector<18x32xf32>
    %92 = tpu.matmul %87, %89, %cst_30 {dimension_numbers = #tpu.dot_dimension_numbers<[1], [0], [0], [1], [0, 0, 1, 1], [], []>} : vector<18x32xf32>, vector<32x32xf32>, vector<18x32xf32> -> vector<18x32xf32>
    %93 = vector.broadcast %91 : vector<1x32xf32> to vector<18x32xf32>
    %94 = arith.addf %92, %93 : vector<18x32xf32>
    %95 = arith.addf %1, %94 : vector<18x32xf32>
    %c0_31 = arith.constant 0 : index
    %c0_32 = arith.constant 0 : index
    %c0_33 = arith.constant 0 : index
    %96 = vector.load %arg8[%c0_31, %c0_32, %c0_33] : memref<2x1x32xf32, #tpu.memory_space<vmem>>, vector<1x1x32xf32>
    %97 = vector.shape_cast %96 : vector<1x1x32xf32> to vector<1x32xf32>
    %c0_34 = arith.constant 0 : index
    %c0_35 = arith.constant 0 : index
    %c0_36 = arith.constant 0 : index
    %98 = vector.load %arg9[%c0_34, %c0_35, %c0_36] : memref<2x1x32xf32, #tpu.memory_space<vmem>>, vector<1x1x32xf32>
    %99 = vector.shape_cast %98 : vector<1x1x32xf32> to vector<1x32xf32>
    %cst_37 = arith.constant dense<0.000000e+00> : vector<18xf32>
    %100 = vector.multi_reduction <add>, %95, %cst_37 [1] : vector<18x32xf32> to vector<18xf32>
    %101 = vector.shape_cast %100 : vector<18xf32> to vector<18x1xf32>
    %cst_38 = arith.constant 3.200000e+01 : f32
    %102 = vector.broadcast %cst_38 : f32 to vector<18x1xf32>
    %103 = arith.divf %101, %102 : vector<18x1xf32>
    %104 = vector.broadcast %103 : vector<18x1xf32> to vector<18x32xf32>
    %105 = arith.subf %95, %104 : vector<18x32xf32>
    %106 = arith.mulf %105, %105 : vector<18x32xf32>
    %cst_39 = arith.constant dense<0.000000e+00> : vector<18xf32>
    %107 = vector.multi_reduction <add>, %106, %cst_39 [1] : vector<18x32xf32> to vector<18xf32>
    %108 = vector.shape_cast %107 : vector<18xf32> to vector<18x1xf32>
    %cst_40 = arith.constant 3.200000e+01 : f32
    %109 = vector.broadcast %cst_40 : f32 to vector<18x1xf32>
    %110 = arith.divf %108, %109 : vector<18x1xf32>
    %111 = vector.broadcast %103 : vector<18x1xf32> to vector<18x32xf32>
    %112 = arith.subf %95, %111 : vector<18x32xf32>
    %cst_41 = arith.constant 9.99999974E-6 : f32
    %113 = vector.broadcast %cst_41 : f32 to vector<18x1xf32>
    %114 = arith.addf %110, %113 : vector<18x1xf32>
    %115 = math.rsqrt %114 : vector<18x1xf32>
    %116 = vector.broadcast %115 : vector<18x1xf32> to vector<18x32xf32>
    %117 = arith.mulf %112, %116 : vector<18x32xf32>
    %118 = vector.broadcast %97 : vector<1x32xf32> to vector<18x32xf32>
    %119 = arith.mulf %117, %118 : vector<18x32xf32>
    %120 = vector.broadcast %99 : vector<1x32xf32> to vector<18x32xf32>
    %121 = arith.addf %119, %120 : vector<18x32xf32>
    %c0_42 = arith.constant 0 : index
    %c0_43 = arith.constant 0 : index
    %c0_44 = arith.constant 0 : index
    %122 = vector.load %arg10[%c0_42, %c0_43, %c0_44] : memref<2x32x128xf32, #tpu.memory_space<vmem>>, vector<1x32x128xf32>
    %123 = vector.shape_cast %122 : vector<1x32x128xf32> to vector<32x128xf32>
    %c0_45 = arith.constant 0 : index
    %c0_46 = arith.constant 0 : index
    %c0_47 = arith.constant 0 : index
    %124 = vector.load %arg11[%c0_45, %c0_46, %c0_47] : memref<2x1x128xf32, #tpu.memory_space<vmem>>, vector<1x1x128xf32>
    %125 = vector.shape_cast %124 : vector<1x1x128xf32> to vector<1x128xf32>
    %cst_48 = arith.constant dense<0.000000e+00> : vector<18x128xf32>
    %126 = tpu.matmul %121, %123, %cst_48 {dimension_numbers = #tpu.dot_dimension_numbers<[1], [0], [0], [1], [0, 0, 1, 1], [], []>} : vector<18x32xf32>, vector<32x128xf32>, vector<18x128xf32> -> vector<18x128xf32>
    %127 = vector.broadcast %125 : vector<1x128xf32> to vector<18x128xf32>
    %128 = arith.addf %126, %127 : vector<18x128xf32>
    %cst_49 = arith.constant 5.000000e-01 : f32
    %129 = vector.broadcast %cst_49 : f32 to vector<18x128xf32>
    %130 = arith.mulf %129, %128 : vector<18x128xf32>
    %cst_50 = arith.constant 0.707106769 : f32
    %131 = vector.broadcast %cst_50 : f32 to vector<18x128xf32>
    %132 = arith.mulf %128, %131 : vector<18x128xf32>
    %cst_51 = arith.constant 0.000000e+00 : f32
    %133 = vector.broadcast %cst_51 : f32 to vector<18x128xf32>
    %134 = arith.cmpf oge, %132, %133 : vector<18x128xf32>
    %cst_52 = arith.constant 1.000000e+00 : f32
    %cst_53 = arith.constant -1.000000e+00 : f32
    %135 = vector.broadcast %cst_52 : f32 to vector<18x128xf32>
    %136 = vector.broadcast %cst_53 : f32 to vector<18x128xf32>
    %137 = arith.select %134, %135, %136 : vector<18x128xi1>, vector<18x128xf32>
    %138 = math.absf %132 : vector<18x128xf32>
    %cst_54 = arith.constant 0.327591091 : f32
    %139 = vector.broadcast %cst_54 : f32 to vector<18x128xf32>
    %140 = arith.mulf %139, %138 : vector<18x128xf32>
    %cst_55 = arith.constant 1.000000e+00 : f32
    %141 = vector.broadcast %cst_55 : f32 to vector<18x128xf32>
    %142 = arith.addf %141, %140 : vector<18x128xf32>
    %143 = tpu.reciprocal %142 {approx = true} : vector<18x128xf32> -> vector<18x128xf32>
    %cst_56 = arith.constant 1.06140542 : f32
    %144 = vector.broadcast %cst_56 : f32 to vector<18x128xf32>
    %145 = arith.mulf %144, %143 : vector<18x128xf32>
    %cst_57 = arith.constant -1.45315206 : f32
    %146 = vector.broadcast %cst_57 : f32 to vector<18x128xf32>
    %147 = arith.addf %145, %146 : vector<18x128xf32>
    %148 = arith.mulf %147, %143 : vector<18x128xf32>
    %cst_58 = arith.constant 1.42141378 : f32
    %149 = vector.broadcast %cst_58 : f32 to vector<18x128xf32>
    %150 = arith.addf %148, %149 : vector<18x128xf32>
    %151 = arith.mulf %150, %143 : vector<18x128xf32>
    %cst_59 = arith.constant -0.284496725 : f32
    %152 = vector.broadcast %cst_59 : f32 to vector<18x128xf32>
    %153 = arith.addf %151, %152 : vector<18x128xf32>
    %154 = arith.mulf %153, %143 : vector<18x128xf32>
    %cst_60 = arith.constant 0.254829586 : f32
    %155 = vector.broadcast %cst_60 : f32 to vector<18x128xf32>
    %156 = arith.addf %154, %155 : vector<18x128xf32>
    %157 = arith.mulf %156, %143 : vector<18x128xf32>
    %cst_61 = arith.constant 0.000000e+00 : f32
    %158 = vector.broadcast %cst_61 : f32 to vector<18x128xf32>
    %159 = arith.subf %158, %138 : vector<18x128xf32>
    %160 = arith.mulf %159, %138 : vector<18x128xf32>
    %161 = math.exp %160 : vector<18x128xf32>
    %162 = arith.mulf %157, %161 : vector<18x128xf32>
    %cst_62 = arith.constant 1.000000e+00 : f32
    %163 = vector.broadcast %cst_62 : f32 to vector<18x128xf32>
    %164 = arith.subf %163, %162 : vector<18x128xf32>
    %165 = arith.mulf %137, %164 : vector<18x128xf32>
    %cst_63 = arith.constant 1.000000e+00 : f32
    %166 = vector.broadcast %cst_63 : f32 to vector<18x128xf32>
    %167 = arith.addf %166, %165 : vector<18x128xf32>
    %168 = arith.mulf %130, %167 : vector<18x128xf32>
    %c0_64 = arith.constant 0 : index
    %c0_65 = arith.constant 0 : index
    %c0_66 = arith.constant 0 : index
    %169 = vector.load %arg12[%c0_64, %c0_65, %c0_66] : memref<2x128x32xf32, #tpu.memory_space<vmem>>, vector<1x128x32xf32>
    %170 = vector.shape_cast %169 : vector<1x128x32xf32> to vector<128x32xf32>
    %c0_67 = arith.constant 0 : index
    %c0_68 = arith.constant 0 : index
    %c0_69 = arith.constant 0 : index
    %171 = vector.load %arg13[%c0_67, %c0_68, %c0_69] : memref<2x1x32xf32, #tpu.memory_space<vmem>>, vector<1x1x32xf32>
    %172 = vector.shape_cast %171 : vector<1x1x32xf32> to vector<1x32xf32>
    %cst_70 = arith.constant dense<0.000000e+00> : vector<18x32xf32>
    %173 = tpu.matmul %168, %170, %cst_70 {dimension_numbers = #tpu.dot_dimension_numbers<[1], [0], [0], [1], [0, 0, 1, 1], [], []>} : vector<18x128xf32>, vector<128x32xf32>, vector<18x32xf32> -> vector<18x32xf32>
    %174 = vector.broadcast %172 : vector<1x32xf32> to vector<18x32xf32>
    %175 = arith.addf %173, %174 : vector<18x32xf32>
    %176 = arith.addf %95, %175 : vector<18x32xf32>
    %c1 = arith.constant 1 : index
    %c0_71 = arith.constant 0 : index
    %c0_72 = arith.constant 0 : index
    %177 = vector.load %arg2[%c1, %c0_71, %c0_72] : memref<2x1x32xf32, #tpu.memory_space<vmem>>, vector<1x1x32xf32>
    %178 = vector.shape_cast %177 : vector<1x1x32xf32> to vector<1x32xf32>
    %c1_73 = arith.constant 1 : index
    %c0_74 = arith.constant 0 : index
    %c0_75 = arith.constant 0 : index
    %179 = vector.load %arg3[%c1_73, %c0_74, %c0_75] : memref<2x1x32xf32, #tpu.memory_space<vmem>>, vector<1x1x32xf32>
    %180 = vector.shape_cast %179 : vector<1x1x32xf32> to vector<1x32xf32>
    %cst_76 = arith.constant dense<0.000000e+00> : vector<18xf32>
    %181 = vector.multi_reduction <add>, %176, %cst_76 [1] : vector<18x32xf32> to vector<18xf32>
    %182 = vector.shape_cast %181 : vector<18xf32> to vector<18x1xf32>
    %cst_77 = arith.constant 3.200000e+01 : f32
    %183 = vector.broadcast %cst_77 : f32 to vector<18x1xf32>
    %184 = arith.divf %182, %183 : vector<18x1xf32>
    %185 = vector.broadcast %184 : vector<18x1xf32> to vector<18x32xf32>
    %186 = arith.subf %176, %185 : vector<18x32xf32>
    %187 = arith.mulf %186, %186 : vector<18x32xf32>
    %cst_78 = arith.constant dense<0.000000e+00> : vector<18xf32>
    %188 = vector.multi_reduction <add>, %187, %cst_78 [1] : vector<18x32xf32> to vector<18xf32>
    %189 = vector.shape_cast %188 : vector<18xf32> to vector<18x1xf32>
    %cst_79 = arith.constant 3.200000e+01 : f32
    %190 = vector.broadcast %cst_79 : f32 to vector<18x1xf32>
    %191 = arith.divf %189, %190 : vector<18x1xf32>
    %192 = vector.broadcast %184 : vector<18x1xf32> to vector<18x32xf32>
    %193 = arith.subf %176, %192 : vector<18x32xf32>
    %cst_80 = arith.constant 9.99999974E-6 : f32
    %194 = vector.broadcast %cst_80 : f32 to vector<18x1xf32>
    %195 = arith.addf %191, %194 : vector<18x1xf32>
    %196 = math.rsqrt %195 : vector<18x1xf32>
    %197 = vector.broadcast %196 : vector<18x1xf32> to vector<18x32xf32>
    %198 = arith.mulf %193, %197 : vector<18x32xf32>
    %199 = vector.broadcast %178 : vector<1x32xf32> to vector<18x32xf32>
    %200 = arith.mulf %198, %199 : vector<18x32xf32>
    %201 = vector.broadcast %180 : vector<1x32xf32> to vector<18x32xf32>
    %202 = arith.addf %200, %201 : vector<18x32xf32>
    %c1_81 = arith.constant 1 : index
    %c0_82 = arith.constant 0 : index
    %c0_83 = arith.constant 0 : index
    %203 = vector.load %arg4[%c1_81, %c0_82, %c0_83] : memref<2x32x96xf32, #tpu.memory_space<vmem>>, vector<1x32x96xf32>
    %204 = vector.shape_cast %203 : vector<1x32x96xf32> to vector<32x96xf32>
    %c1_84 = arith.constant 1 : index
    %c0_85 = arith.constant 0 : index
    %c0_86 = arith.constant 0 : index
    %205 = vector.load %arg5[%c1_84, %c0_85, %c0_86] : memref<2x1x96xf32, #tpu.memory_space<vmem>>, vector<1x1x96xf32>
    %206 = vector.shape_cast %205 : vector<1x1x96xf32> to vector<1x96xf32>
    %cst_87 = arith.constant dense<0.000000e+00> : vector<18x96xf32>
    %207 = tpu.matmul %202, %204, %cst_87 {dimension_numbers = #tpu.dot_dimension_numbers<[1], [0], [0], [1], [0, 0, 1, 1], [], []>} : vector<18x32xf32>, vector<32x96xf32>, vector<18x96xf32> -> vector<18x96xf32>
    %208 = vector.broadcast %206 : vector<1x96xf32> to vector<18x96xf32>
    %209 = arith.addf %207, %208 : vector<18x96xf32>
    %210 = vector.extract_strided_slice %209 {offsets = [0, 0], sizes = [18, 32], strides = [1, 1]} : vector<18x96xf32> to vector<18x32xf32>
    %211 = vector.extract_strided_slice %210 {offsets = [0, 0], sizes = [18, 8], strides = [1, 1]} : vector<18x32xf32> to vector<18x8xf32>
    %212 = vector.shape_cast %211 : vector<18x8xf32> to vector<2x9x8xf32>
    %213 = vector.extract_strided_slice %210 {offsets = [0, 8], sizes = [18, 8], strides = [1, 1]} : vector<18x32xf32> to vector<18x8xf32>
    %214 = vector.shape_cast %213 : vector<18x8xf32> to vector<2x9x8xf32>
    %215 = vector.extract_strided_slice %210 {offsets = [0, 16], sizes = [18, 8], strides = [1, 1]} : vector<18x32xf32> to vector<18x8xf32>
    %216 = vector.shape_cast %215 : vector<18x8xf32> to vector<2x9x8xf32>
    %217 = vector.extract_strided_slice %210 {offsets = [0, 24], sizes = [18, 8], strides = [1, 1]} : vector<18x32xf32> to vector<18x8xf32>
    %218 = vector.shape_cast %217 : vector<18x8xf32> to vector<2x9x8xf32>
    %219 = tpu.concatenate %212, %214, %216, %218 in 0 : vector<2x9x8xf32>, vector<2x9x8xf32>, vector<2x9x8xf32>, vector<2x9x8xf32> -> vector<8x9x8xf32>
    %220 = vector.extract_strided_slice %209 {offsets = [0, 32], sizes = [18, 32], strides = [1, 1]} : vector<18x96xf32> to vector<18x32xf32>
    %221 = vector.extract_strided_slice %220 {offsets = [0, 0], sizes = [18, 8], strides = [1, 1]} : vector<18x32xf32> to vector<18x8xf32>
    %222 = vector.shape_cast %221 : vector<18x8xf32> to vector<2x9x8xf32>
    %223 = vector.extract_strided_slice %220 {offsets = [0, 8], sizes = [18, 8], strides = [1, 1]} : vector<18x32xf32> to vector<18x8xf32>
    %224 = vector.shape_cast %223 : vector<18x8xf32> to vector<2x9x8xf32>
    %225 = vector.extract_strided_slice %220 {offsets = [0, 16], sizes = [18, 8], strides = [1, 1]} : vector<18x32xf32> to vector<18x8xf32>
    %226 = vector.shape_cast %225 : vector<18x8xf32> to vector<2x9x8xf32>
    %227 = vector.extract_strided_slice %220 {offsets = [0, 24], sizes = [18, 8], strides = [1, 1]} : vector<18x32xf32> to vector<18x8xf32>
    %228 = vector.shape_cast %227 : vector<18x8xf32> to vector<2x9x8xf32>
    %229 = tpu.concatenate %222, %224, %226, %228 in 0 : vector<2x9x8xf32>, vector<2x9x8xf32>, vector<2x9x8xf32>, vector<2x9x8xf32> -> vector<8x9x8xf32>
    %230 = vector.extract_strided_slice %209 {offsets = [0, 64], sizes = [18, 32], strides = [1, 1]} : vector<18x96xf32> to vector<18x32xf32>
    %231 = vector.extract_strided_slice %230 {offsets = [0, 0], sizes = [18, 8], strides = [1, 1]} : vector<18x32xf32> to vector<18x8xf32>
    %232 = vector.shape_cast %231 : vector<18x8xf32> to vector<2x9x8xf32>
    %233 = vector.extract_strided_slice %230 {offsets = [0, 8], sizes = [18, 8], strides = [1, 1]} : vector<18x32xf32> to vector<18x8xf32>
    %234 = vector.shape_cast %233 : vector<18x8xf32> to vector<2x9x8xf32>
    %235 = vector.extract_strided_slice %230 {offsets = [0, 16], sizes = [18, 8], strides = [1, 1]} : vector<18x32xf32> to vector<18x8xf32>
    %236 = vector.shape_cast %235 : vector<18x8xf32> to vector<2x9x8xf32>
    %237 = vector.extract_strided_slice %230 {offsets = [0, 24], sizes = [18, 8], strides = [1, 1]} : vector<18x32xf32> to vector<18x8xf32>
    %238 = vector.shape_cast %237 : vector<18x8xf32> to vector<2x9x8xf32>
    %239 = tpu.concatenate %232, %234, %236, %238 in 0 : vector<2x9x8xf32>, vector<2x9x8xf32>, vector<2x9x8xf32>, vector<2x9x8xf32> -> vector<8x9x8xf32>
    "tpu.trace_start"() <{level = 10 : i32, message = "bqd,bkd->bqk"}> : () -> ()
    %cst_88 = arith.constant dense<0.000000e+00> : vector<8x9x9xf32>
    %240 = tpu.matmul %219, %229, %cst_88 {dimension_numbers = #tpu.dot_dimension_numbers<[2], [2], [1], [1], [0, 0, 0, 1, 1, 1], [0], [0]>} : vector<8x9x8xf32>, vector<8x9x8xf32>, vector<8x9x9xf32> -> vector<8x9x9xf32>
    "tpu.trace_stop"() : () -> ()
    %cst_89 = arith.constant 0.353553385 : f32
    %241 = vector.broadcast %cst_89 : f32 to vector<8x9x9xf32>
    %242 = arith.mulf %240, %241 : vector<8x9x9xf32>
    %cst_90 = arith.constant dense<0xFF800000> : vector<8x9xf32>
    %243 = vector.multi_reduction <maximumf>, %242, %cst_90 [2] : vector<8x9x9xf32> to vector<8x9xf32>
    %244 = vector.shape_cast %243 : vector<8x9xf32> to vector<8x9x1xf32>
    %245 = vector.broadcast %244 : vector<8x9x1xf32> to vector<8x9x9xf32>
    %246 = arith.subf %242, %245 : vector<8x9x9xf32>
    %247 = math.exp %246 : vector<8x9x9xf32>
    %cst_91 = arith.constant dense<0.000000e+00> : vector<8x9xf32>
    %248 = vector.multi_reduction <add>, %247, %cst_91 [2] : vector<8x9x9xf32> to vector<8x9xf32>
    %249 = vector.shape_cast %248 : vector<8x9xf32> to vector<8x9x1xf32>
    %250 = tpu.reciprocal %249 {approx = true} : vector<8x9x1xf32> -> vector<8x9x1xf32>
    %251 = vector.broadcast %250 : vector<8x9x1xf32> to vector<8x9x9xf32>
    %252 = arith.mulf %247, %251 : vector<8x9x9xf32>
    "tpu.trace_start"() <{level = 10 : i32, message = "bqk,bkd->bqd"}> : () -> ()
    %cst_92 = arith.constant dense<0.000000e+00> : vector<8x9x8xf32>
    %253 = tpu.matmul %252, %239, %cst_92 {dimension_numbers = #tpu.dot_dimension_numbers<[2], [1], [1], [2], [0, 0, 0, 1, 1, 2], [0], [0]>} : vector<8x9x9xf32>, vector<8x9x8xf32>, vector<8x9x8xf32> -> vector<8x9x8xf32>
    "tpu.trace_stop"() : () -> ()
    %254 = vector.extract_strided_slice %253 {offsets = [0, 0, 0], sizes = [2, 9, 8], strides = [1, 1, 1]} : vector<8x9x8xf32> to vector<2x9x8xf32>
    %255 = vector.shape_cast %254 : vector<2x9x8xf32> to vector<18x8xf32>
    %256 = vector.extract_strided_slice %253 {offsets = [2, 0, 0], sizes = [2, 9, 8], strides = [1, 1, 1]} : vector<8x9x8xf32> to vector<2x9x8xf32>
    %257 = vector.shape_cast %256 : vector<2x9x8xf32> to vector<18x8xf32>
    %258 = vector.extract_strided_slice %253 {offsets = [4, 0, 0], sizes = [2, 9, 8], strides = [1, 1, 1]} : vector<8x9x8xf32> to vector<2x9x8xf32>
    %259 = vector.shape_cast %258 : vector<2x9x8xf32> to vector<18x8xf32>
    %260 = vector.extract_strided_slice %253 {offsets = [6, 0, 0], sizes = [2, 9, 8], strides = [1, 1, 1]} : vector<8x9x8xf32> to vector<2x9x8xf32>
    %261 = vector.shape_cast %260 : vector<2x9x8xf32> to vector<18x8xf32>
    %262 = tpu.concatenate %255, %257, %259, %261 in 1 : vector<18x8xf32>, vector<18x8xf32>, vector<18x8xf32>, vector<18x8xf32> -> vector<18x32xf32>
    %c1_93 = arith.constant 1 : index
    %c0_94 = arith.constant 0 : index
    %c0_95 = arith.constant 0 : index
    %263 = vector.load %arg6[%c1_93, %c0_94, %c0_95] : memref<2x32x32xf32, #tpu.memory_space<vmem>>, vector<1x32x32xf32>
    %264 = vector.shape_cast %263 : vector<1x32x32xf32> to vector<32x32xf32>
    %c1_96 = arith.constant 1 : index
    %c0_97 = arith.constant 0 : index
    %c0_98 = arith.constant 0 : index
    %265 = vector.load %arg7[%c1_96, %c0_97, %c0_98] : memref<2x1x32xf32, #tpu.memory_space<vmem>>, vector<1x1x32xf32>
    %266 = vector.shape_cast %265 : vector<1x1x32xf32> to vector<1x32xf32>
    %cst_99 = arith.constant dense<0.000000e+00> : vector<18x32xf32>
    %267 = tpu.matmul %262, %264, %cst_99 {dimension_numbers = #tpu.dot_dimension_numbers<[1], [0], [0], [1], [0, 0, 1, 1], [], []>} : vector<18x32xf32>, vector<32x32xf32>, vector<18x32xf32> -> vector<18x32xf32>
    %268 = vector.broadcast %266 : vector<1x32xf32> to vector<18x32xf32>
    %269 = arith.addf %267, %268 : vector<18x32xf32>
    %270 = arith.addf %176, %269 : vector<18x32xf32>
    %c1_100 = arith.constant 1 : index
    %c0_101 = arith.constant 0 : index
    %c0_102 = arith.constant 0 : index
    %271 = vector.load %arg8[%c1_100, %c0_101, %c0_102] : memref<2x1x32xf32, #tpu.memory_space<vmem>>, vector<1x1x32xf32>
    %272 = vector.shape_cast %271 : vector<1x1x32xf32> to vector<1x32xf32>
    %c1_103 = arith.constant 1 : index
    %c0_104 = arith.constant 0 : index
    %c0_105 = arith.constant 0 : index
    %273 = vector.load %arg9[%c1_103, %c0_104, %c0_105] : memref<2x1x32xf32, #tpu.memory_space<vmem>>, vector<1x1x32xf32>
    %274 = vector.shape_cast %273 : vector<1x1x32xf32> to vector<1x32xf32>
    %cst_106 = arith.constant dense<0.000000e+00> : vector<18xf32>
    %275 = vector.multi_reduction <add>, %270, %cst_106 [1] : vector<18x32xf32> to vector<18xf32>
    %276 = vector.shape_cast %275 : vector<18xf32> to vector<18x1xf32>
    %cst_107 = arith.constant 3.200000e+01 : f32
    %277 = vector.broadcast %cst_107 : f32 to vector<18x1xf32>
    %278 = arith.divf %276, %277 : vector<18x1xf32>
    %279 = vector.broadcast %278 : vector<18x1xf32> to vector<18x32xf32>
    %280 = arith.subf %270, %279 : vector<18x32xf32>
    %281 = arith.mulf %280, %280 : vector<18x32xf32>
    %cst_108 = arith.constant dense<0.000000e+00> : vector<18xf32>
    %282 = vector.multi_reduction <add>, %281, %cst_108 [1] : vector<18x32xf32> to vector<18xf32>
    %283 = vector.shape_cast %282 : vector<18xf32> to vector<18x1xf32>
    %cst_109 = arith.constant 3.200000e+01 : f32
    %284 = vector.broadcast %cst_109 : f32 to vector<18x1xf32>
    %285 = arith.divf %283, %284 : vector<18x1xf32>
    %286 = vector.broadcast %278 : vector<18x1xf32> to vector<18x32xf32>
    %287 = arith.subf %270, %286 : vector<18x32xf32>
    %cst_110 = arith.constant 9.99999974E-6 : f32
    %288 = vector.broadcast %cst_110 : f32 to vector<18x1xf32>
    %289 = arith.addf %285, %288 : vector<18x1xf32>
    %290 = math.rsqrt %289 : vector<18x1xf32>
    %291 = vector.broadcast %290 : vector<18x1xf32> to vector<18x32xf32>
    %292 = arith.mulf %287, %291 : vector<18x32xf32>
    %293 = vector.broadcast %272 : vector<1x32xf32> to vector<18x32xf32>
    %294 = arith.mulf %292, %293 : vector<18x32xf32>
    %295 = vector.broadcast %274 : vector<1x32xf32> to vector<18x32xf32>
    %296 = arith.addf %294, %295 : vector<18x32xf32>
    %c1_111 = arith.constant 1 : index
    %c0_112 = arith.constant 0 : index
    %c0_113 = arith.constant 0 : index
    %297 = vector.load %arg10[%c1_111, %c0_112, %c0_113] : memref<2x32x128xf32, #tpu.memory_space<vmem>>, vector<1x32x128xf32>
    %298 = vector.shape_cast %297 : vector<1x32x128xf32> to vector<32x128xf32>
    %c1_114 = arith.constant 1 : index
    %c0_115 = arith.constant 0 : index
    %c0_116 = arith.constant 0 : index
    %299 = vector.load %arg11[%c1_114, %c0_115, %c0_116] : memref<2x1x128xf32, #tpu.memory_space<vmem>>, vector<1x1x128xf32>
    %300 = vector.shape_cast %299 : vector<1x1x128xf32> to vector<1x128xf32>
    %cst_117 = arith.constant dense<0.000000e+00> : vector<18x128xf32>
    %301 = tpu.matmul %296, %298, %cst_117 {dimension_numbers = #tpu.dot_dimension_numbers<[1], [0], [0], [1], [0, 0, 1, 1], [], []>} : vector<18x32xf32>, vector<32x128xf32>, vector<18x128xf32> -> vector<18x128xf32>
    %302 = vector.broadcast %300 : vector<1x128xf32> to vector<18x128xf32>
    %303 = arith.addf %301, %302 : vector<18x128xf32>
    %cst_118 = arith.constant 5.000000e-01 : f32
    %304 = vector.broadcast %cst_118 : f32 to vector<18x128xf32>
    %305 = arith.mulf %304, %303 : vector<18x128xf32>
    %cst_119 = arith.constant 0.707106769 : f32
    %306 = vector.broadcast %cst_119 : f32 to vector<18x128xf32>
    %307 = arith.mulf %303, %306 : vector<18x128xf32>
    %cst_120 = arith.constant 0.000000e+00 : f32
    %308 = vector.broadcast %cst_120 : f32 to vector<18x128xf32>
    %309 = arith.cmpf oge, %307, %308 : vector<18x128xf32>
    %cst_121 = arith.constant 1.000000e+00 : f32
    %cst_122 = arith.constant -1.000000e+00 : f32
    %310 = vector.broadcast %cst_121 : f32 to vector<18x128xf32>
    %311 = vector.broadcast %cst_122 : f32 to vector<18x128xf32>
    %312 = arith.select %309, %310, %311 : vector<18x128xi1>, vector<18x128xf32>
    %313 = math.absf %307 : vector<18x128xf32>
    %cst_123 = arith.constant 0.327591091 : f32
    %314 = vector.broadcast %cst_123 : f32 to vector<18x128xf32>
    %315 = arith.mulf %314, %313 : vector<18x128xf32>
    %cst_124 = arith.constant 1.000000e+00 : f32
    %316 = vector.broadcast %cst_124 : f32 to vector<18x128xf32>
    %317 = arith.addf %316, %315 : vector<18x128xf32>
    %318 = tpu.reciprocal %317 {approx = true} : vector<18x128xf32> -> vector<18x128xf32>
    %cst_125 = arith.constant 1.06140542 : f32
    %319 = vector.broadcast %cst_125 : f32 to vector<18x128xf32>
    %320 = arith.mulf %319, %318 : vector<18x128xf32>
    %cst_126 = arith.constant -1.45315206 : f32
    %321 = vector.broadcast %cst_126 : f32 to vector<18x128xf32>
    %322 = arith.addf %320, %321 : vector<18x128xf32>
    %323 = arith.mulf %322, %318 : vector<18x128xf32>
    %cst_127 = arith.constant 1.42141378 : f32
    %324 = vector.broadcast %cst_127 : f32 to vector<18x128xf32>
    %325 = arith.addf %323, %324 : vector<18x128xf32>
    %326 = arith.mulf %325, %318 : vector<18x128xf32>
    %cst_128 = arith.constant -0.284496725 : f32
    %327 = vector.broadcast %cst_128 : f32 to vector<18x128xf32>
    %328 = arith.addf %326, %327 : vector<18x128xf32>
    %329 = arith.mulf %328, %318 : vector<18x128xf32>
    %cst_129 = arith.constant 0.254829586 : f32
    %330 = vector.broadcast %cst_129 : f32 to vector<18x128xf32>
    %331 = arith.addf %329, %330 : vector<18x128xf32>
    %332 = arith.mulf %331, %318 : vector<18x128xf32>
    %cst_130 = arith.constant 0.000000e+00 : f32
    %333 = vector.broadcast %cst_130 : f32 to vector<18x128xf32>
    %334 = arith.subf %333, %313 : vector<18x128xf32>
    %335 = arith.mulf %334, %313 : vector<18x128xf32>
    %336 = math.exp %335 : vector<18x128xf32>
    %337 = arith.mulf %332, %336 : vector<18x128xf32>
    %cst_131 = arith.constant 1.000000e+00 : f32
    %338 = vector.broadcast %cst_131 : f32 to vector<18x128xf32>
    %339 = arith.subf %338, %337 : vector<18x128xf32>
    %340 = arith.mulf %312, %339 : vector<18x128xf32>
    %cst_132 = arith.constant 1.000000e+00 : f32
    %341 = vector.broadcast %cst_132 : f32 to vector<18x128xf32>
    %342 = arith.addf %341, %340 : vector<18x128xf32>
    %343 = arith.mulf %305, %342 : vector<18x128xf32>
    %c1_133 = arith.constant 1 : index
    %c0_134 = arith.constant 0 : index
    %c0_135 = arith.constant 0 : index
    %344 = vector.load %arg12[%c1_133, %c0_134, %c0_135] : memref<2x128x32xf32, #tpu.memory_space<vmem>>, vector<1x128x32xf32>
    %345 = vector.shape_cast %344 : vector<1x128x32xf32> to vector<128x32xf32>
    %c1_136 = arith.constant 1 : index
    %c0_137 = arith.constant 0 : index
    %c0_138 = arith.constant 0 : index
    %346 = vector.load %arg13[%c1_136, %c0_137, %c0_138] : memref<2x1x32xf32, #tpu.memory_space<vmem>>, vector<1x1x32xf32>
    %347 = vector.shape_cast %346 : vector<1x1x32xf32> to vector<1x32xf32>
    %cst_139 = arith.constant dense<0.000000e+00> : vector<18x32xf32>
    %348 = tpu.matmul %343, %345, %cst_139 {dimension_numbers = #tpu.dot_dimension_numbers<[1], [0], [0], [1], [0, 0, 1, 1], [], []>} : vector<18x128xf32>, vector<128x32xf32>, vector<18x32xf32> -> vector<18x32xf32>
    %349 = vector.broadcast %347 : vector<1x32xf32> to vector<18x32xf32>
    %350 = arith.addf %348, %349 : vector<18x32xf32>
    %351 = arith.addf %270, %350 : vector<18x32xf32>
    %c0_140 = arith.constant 0 : index
    %c0_141 = arith.constant 0 : index
    %352 = vector.load %arg14[%c0_140, %c0_141] : memref<1x32xf32, #tpu.memory_space<vmem>>, vector<1x32xf32>
    %c0_142 = arith.constant 0 : index
    %c0_143 = arith.constant 0 : index
    %353 = vector.load %arg15[%c0_142, %c0_143] : memref<1x32xf32, #tpu.memory_space<vmem>>, vector<1x32xf32>
    %cst_144 = arith.constant dense<0.000000e+00> : vector<18xf32>
    %354 = vector.multi_reduction <add>, %351, %cst_144 [1] : vector<18x32xf32> to vector<18xf32>
    %355 = vector.shape_cast %354 : vector<18xf32> to vector<18x1xf32>
    %cst_145 = arith.constant 3.200000e+01 : f32
    %356 = vector.broadcast %cst_145 : f32 to vector<18x1xf32>
    %357 = arith.divf %355, %356 : vector<18x1xf32>
    %358 = vector.broadcast %357 : vector<18x1xf32> to vector<18x32xf32>
    %359 = arith.subf %351, %358 : vector<18x32xf32>
    %360 = arith.mulf %359, %359 : vector<18x32xf32>
    %cst_146 = arith.constant dense<0.000000e+00> : vector<18xf32>
    %361 = vector.multi_reduction <add>, %360, %cst_146 [1] : vector<18x32xf32> to vector<18xf32>
    %362 = vector.shape_cast %361 : vector<18xf32> to vector<18x1xf32>
    %cst_147 = arith.constant 3.200000e+01 : f32
    %363 = vector.broadcast %cst_147 : f32 to vector<18x1xf32>
    %364 = arith.divf %362, %363 : vector<18x1xf32>
    %365 = vector.broadcast %357 : vector<18x1xf32> to vector<18x32xf32>
    %366 = arith.subf %351, %365 : vector<18x32xf32>
    %cst_148 = arith.constant 9.99999974E-6 : f32
    %367 = vector.broadcast %cst_148 : f32 to vector<18x1xf32>
    %368 = arith.addf %364, %367 : vector<18x1xf32>
    %369 = math.rsqrt %368 : vector<18x1xf32>
    %370 = vector.broadcast %369 : vector<18x1xf32> to vector<18x32xf32>
    %371 = arith.mulf %366, %370 : vector<18x32xf32>
    %372 = vector.broadcast %352 : vector<1x32xf32> to vector<18x32xf32>
    %373 = arith.mulf %371, %372 : vector<18x32xf32>
    %374 = vector.broadcast %353 : vector<1x32xf32> to vector<18x32xf32>
    %375 = arith.addf %373, %374 : vector<18x32xf32>
    %376 = vector.shape_cast %375 : vector<18x32xf32> to vector<2x9x32xf32>
    %cst_149 = arith.constant dense<0xFF800000> : vector<2x32xf32>
    %377 = vector.multi_reduction <maximumf>, %376, %cst_149 [1] : vector<2x9x32xf32> to vector<2x32xf32>
    %c0_150 = arith.constant 0 : index
    %c0_151 = arith.constant 0 : index
    %378 = vector.load %arg16[%c0_150, %c0_151] : memref<32x32xf32, #tpu.memory_space<vmem>>, vector<32x32xf32>
    %c0_152 = arith.constant 0 : index
    %c0_153 = arith.constant 0 : index
    %379 = vector.load %arg17[%c0_152, %c0_153] : memref<1x32xf32, #tpu.memory_space<vmem>>, vector<1x32xf32>
    %cst_154 = arith.constant dense<0.000000e+00> : vector<2x32xf32>
    %380 = tpu.matmul %377, %378, %cst_154 {dimension_numbers = #tpu.dot_dimension_numbers<[1], [0], [0], [1], [0, 0, 1, 1], [], []>} : vector<2x32xf32>, vector<32x32xf32>, vector<2x32xf32> -> vector<2x32xf32>
    %381 = vector.broadcast %379 : vector<1x32xf32> to vector<2x32xf32>
    %382 = arith.addf %380, %381 : vector<2x32xf32>
    %cst_155 = arith.constant 0.000000e+00 : f32
    %383 = vector.broadcast %cst_155 : f32 to vector<2x32xf32>
    %384 = arith.maximumf %382, %383 : vector<2x32xf32>
    %c0_156 = arith.constant 0 : index
    %c0_157 = arith.constant 0 : index
    %385 = vector.load %arg18[%c0_156, %c0_157] : memref<1x32xf32, #tpu.memory_space<vmem>>, vector<1x32xf32>
    %386 = vector.broadcast %385 : vector<1x32xf32> to vector<2x32xf32>
    %387 = arith.mulf %384, %386 : vector<2x32xf32>
    %cst_158 = arith.constant dense<0.000000e+00> : vector<2xf32>
    %388 = vector.multi_reduction <add>, %387, %cst_158 [1] : vector<2x32xf32> to vector<2xf32>
    %389 = vector.shape_cast %388 : vector<2xf32> to vector<2x1xf32>
    %c0_159 = arith.constant 0 : index
    %c0_160 = arith.constant 0 : index
    %390 = vector.load %arg19[%c0_159, %c0_160] : memref<1x1xf32, #tpu.memory_space<vmem>>, vector<1x1xf32>
    %391 = vector.broadcast %390 : vector<1x1xf32> to vector<2x1xf32>
    %392 = arith.addf %389, %391 : vector<2x1xf32>
    %393 = vector.shape_cast %392 : vector<2x1xf32> to vector<2x1x1xf32>
    %394 = vector.shape_cast %393 : vector<2x1x1xf32> to vector<2x1x1xf32>
    %395 = vector.broadcast %394 : vector<2x1x1xf32> to vector<2x8x128xf32>
    %c0_161 = arith.constant 0 : index
    %c0_162 = arith.constant 0 : index
    %c0_163 = arith.constant 0 : index
    %396 = vector.load %arg20[%c0_161, %c0_162, %c0_163] : memref<2x8x128xf32, #tpu.memory_space<vmem>>, vector<2x8x128xf32>
    tpu.vector_store %arg20[%c0_161, %c0_162, %c0_163], %395 {strides = array<i32>} : memref<2x8x128xf32, #tpu.memory_space<vmem>>, vector<2x8x128xf32>,
    return
  }
  func.func @transform_0(%arg0: i32) -> (i32, i32, i32) {
    %c0_i32 = arith.constant 0 : i32
    %c0_i32_0 = arith.constant 0 : i32
    %c0_i32_1 = arith.constant 0 : i32
    return %arg0, %c0_i32, %c0_i32_0 : i32, i32, i32
  }
  func.func @transform_1(%arg0: i32) -> (i32, i32, i32) {
    %c0_i32 = arith.constant 0 : i32
    %c0_i32_0 = arith.constant 0 : i32
    %c0_i32_1 = arith.constant 0 : i32
    %c0_i32_2 = arith.constant 0 : i32
    return %c0_i32, %c0_i32_0, %c0_i32_1 : i32, i32, i32
  }
  func.func @transform_2(%arg0: i32) -> (i32, i32, i32) {
    %c0_i32 = arith.constant 0 : i32
    %c0_i32_0 = arith.constant 0 : i32
    %c0_i32_1 = arith.constant 0 : i32
    %c0_i32_2 = arith.constant 0 : i32
    return %c0_i32, %c0_i32_0, %c0_i32_1 : i32, i32, i32
  }
  func.func @transform_3(%arg0: i32) -> (i32, i32, i32) {
    %c0_i32 = arith.constant 0 : i32
    %c0_i32_0 = arith.constant 0 : i32
    %c0_i32_1 = arith.constant 0 : i32
    %c0_i32_2 = arith.constant 0 : i32
    return %c0_i32, %c0_i32_0, %c0_i32_1 : i32, i32, i32
  }
  func.func @transform_4(%arg0: i32) -> (i32, i32, i32) {
    %c0_i32 = arith.constant 0 : i32
    %c0_i32_0 = arith.constant 0 : i32
    %c0_i32_1 = arith.constant 0 : i32
    %c0_i32_2 = arith.constant 0 : i32
    return %c0_i32, %c0_i32_0, %c0_i32_1 : i32, i32, i32
  }
  func.func @transform_5(%arg0: i32) -> (i32, i32, i32) {
    %c0_i32 = arith.constant 0 : i32
    %c0_i32_0 = arith.constant 0 : i32
    %c0_i32_1 = arith.constant 0 : i32
    %c0_i32_2 = arith.constant 0 : i32
    return %c0_i32, %c0_i32_0, %c0_i32_1 : i32, i32, i32
  }
  func.func @transform_6(%arg0: i32) -> (i32, i32, i32) {
    %c0_i32 = arith.constant 0 : i32
    %c0_i32_0 = arith.constant 0 : i32
    %c0_i32_1 = arith.constant 0 : i32
    %c0_i32_2 = arith.constant 0 : i32
    return %c0_i32, %c0_i32_0, %c0_i32_1 : i32, i32, i32
  }
  func.func @transform_7(%arg0: i32) -> (i32, i32, i32) {
    %c0_i32 = arith.constant 0 : i32
    %c0_i32_0 = arith.constant 0 : i32
    %c0_i32_1 = arith.constant 0 : i32
    %c0_i32_2 = arith.constant 0 : i32
    return %c0_i32, %c0_i32_0, %c0_i32_1 : i32, i32, i32
  }
  func.func @transform_8(%arg0: i32) -> (i32, i32, i32) {
    %c0_i32 = arith.constant 0 : i32
    %c0_i32_0 = arith.constant 0 : i32
    %c0_i32_1 = arith.constant 0 : i32
    %c0_i32_2 = arith.constant 0 : i32
    return %c0_i32, %c0_i32_0, %c0_i32_1 : i32, i32, i32
  }
  func.func @transform_9(%arg0: i32) -> (i32, i32, i32) {
    %c0_i32 = arith.constant 0 : i32
    %c0_i32_0 = arith.constant 0 : i32
    %c0_i32_1 = arith.constant 0 : i32
    %c0_i32_2 = arith.constant 0 : i32
    return %c0_i32, %c0_i32_0, %c0_i32_1 : i32, i32, i32
  }
  func.func @transform_10(%arg0: i32) -> (i32, i32, i32) {
    %c0_i32 = arith.constant 0 : i32
    %c0_i32_0 = arith.constant 0 : i32
    %c0_i32_1 = arith.constant 0 : i32
    %c0_i32_2 = arith.constant 0 : i32
    return %c0_i32, %c0_i32_0, %c0_i32_1 : i32, i32, i32
  }
  func.func @transform_11(%arg0: i32) -> (i32, i32, i32) {
    %c0_i32 = arith.constant 0 : i32
    %c0_i32_0 = arith.constant 0 : i32
    %c0_i32_1 = arith.constant 0 : i32
    %c0_i32_2 = arith.constant 0 : i32
    return %c0_i32, %c0_i32_0, %c0_i32_1 : i32, i32, i32
  }
  func.func @transform_12(%arg0: i32) -> (i32, i32, i32) {
    %c0_i32 = arith.constant 0 : i32
    %c0_i32_0 = arith.constant 0 : i32
    %c0_i32_1 = arith.constant 0 : i32
    %c0_i32_2 = arith.constant 0 : i32
    return %c0_i32, %c0_i32_0, %c0_i32_1 : i32, i32, i32
  }
  func.func @transform_13(%arg0: i32) -> (i32, i32) {
    %c0_i32 = arith.constant 0 : i32
    %c0_i32_0 = arith.constant 0 : i32
    %c0_i32_1 = arith.constant 0 : i32
    return %c0_i32, %c0_i32_0 : i32, i32
  }
  func.func @transform_14(%arg0: i32) -> (i32, i32) {
    %c0_i32 = arith.constant 0 : i32
    %c0_i32_0 = arith.constant 0 : i32
    %c0_i32_1 = arith.constant 0 : i32
    return %c0_i32, %c0_i32_0 : i32, i32
  }
  func.func @transform_15(%arg0: i32) -> (i32, i32) {
    %c0_i32 = arith.constant 0 : i32
    %c0_i32_0 = arith.constant 0 : i32
    %c0_i32_1 = arith.constant 0 : i32
    return %c0_i32, %c0_i32_0 : i32, i32
  }
  func.func @transform_16(%arg0: i32) -> (i32, i32) {
    %c0_i32 = arith.constant 0 : i32
    %c0_i32_0 = arith.constant 0 : i32
    %c0_i32_1 = arith.constant 0 : i32
    return %c0_i32, %c0_i32_0 : i32, i32
  }
  func.func @transform_17(%arg0: i32) -> (i32, i32) {
    %c0_i32 = arith.constant 0 : i32
    %c0_i32_0 = arith.constant 0 : i32
    %c0_i32_1 = arith.constant 0 : i32
    return %c0_i32, %c0_i32_0 : i32, i32
  }
  func.func @transform_18(%arg0: i32) -> (i32, i32) {
    %c0_i32 = arith.constant 0 : i32
    %c0_i32_0 = arith.constant 0 : i32
    %c0_i32_1 = arith.constant 0 : i32
    return %c0_i32, %c0_i32_0 : i32, i32
  }
  func.func @transform_19(%arg0: i32) -> (i32, i32, i32) {
    %c0_i32 = arith.constant 0 : i32
    %c0_i32_0 = arith.constant 0 : i32
    %c0_i32_1 = arith.constant 0 : i32
    return %arg0, %c0_i32, %c0_i32_0 : i32, i32, i32
  }
}

</mosaic_0001>

<bundles_post_ra>
// kernel: tpu_custom_call.1
= control target key start
LH: loop header
LB: loop body
LE: loop exit
PB: predicated region body
PF: predicated region fallthrough
CT: control target
= control target key end

     0   :  { %s17956_s0 = inlined_call_operand.vmem [shape: f32[2,9,32], index: 0, kind: input, shape index: {}]   ;;  %s17957_s1 = inlined_call_operand.vmem [shape: f32[2,1,32], index: 1, kind: input, shape index: {}]   ;;  %s17958_s2 = inlined_call_operand.vmem [shape: f32[2,1,32], index: 2, kind: input, shape index: {}]   ;;  %s17959_s3 = inlined_call_operand.vmem [shape: f32[2,32,96], index: 3, kind: input, shape index: {}]   ;;  %s17960_s4 = inlined_call_operand.vmem [shape: f32[2,1,96], index: 4, kind: input, shape index: {}]   ;;  %s17961_s5 = inlined_call_operand.vmem [shape: f32[2,32,32], index: 5, kind: input, shape index: {}]   ;;  %s17962_s6 = inlined_call_operand.vmem [shape: f32[2,1,32], index: 6, kind: input, shape index: {}]   ;;  %s17963_s7 = inlined_call_operand.vmem [shape: f32[2,1,32], index: 7, kind: input, shape index: {}]   ;;  %s17964_s8 = inlined_call_operand.vmem [shape: f32[2,1,32], index: 8, kind: input, shape index: {}]   ;;  %s17965_s9 = inlined_call_operand.vmem [shape: f32[2,32,128], index: 9, kind: input, shape index: {}]   ;;  %s17966_s10 = inlined_call_operand.vmem [shape: f32[2,1,128], index: 10, kind: input, shape index: {}]   ;;  %s17967_s11 = inlined_call_operand.vmem [shape: f32[2,128,32], index: 11, kind: input, shape index: {}]   ;;  %s17968_s12 = inlined_call_operand.vmem [shape: f32[2,1,32], index: 12, kind: input, shape index: {}]   ;;  %s17969_s13 = inlined_call_operand.vmem [shape: f32[1,32], index: 13, kind: input, shape index: {}]   ;;  %s17970_s14 = inlined_call_operand.vmem [shape: f32[1,32], index: 14, kind: input, shape index: {}]   ;;  %s17971_s15 = inlined_call_operand.vmem [shape: f32[32,32], index: 15, kind: input, shape index: {}]   ;;  %s17972_s16 = inlined_call_operand.vmem [shape: f32[1,32], index: 16, kind: input, shape index: {}]   ;;  %s17973_s17 = inlined_call_operand.vmem [shape: f32[1,32], index: 17, kind: input, shape index: {}]   ;;  %s17974_s18 = inlined_call_operand.<no memory space> [shape: f32[1,1], index: 18, kind: input, shape index: {}]   ;;  %s17975_s19 = inlined_call_operand.hbm [shape: f32[2,8,128], index: 19, kind: output, shape index: {}]  }
   0x1   :  { %18057 = sst [smem:[#allocation24_spill]] %s17956_s0  ;;  %v24_v0 = vstv %s17974_s18 }
   0x2   :  { %18058 = sst [smem:[#allocation25_spill]] %s17957_s1  ;;  %25 = vst [vmem:[#allocation2] sm:$0x1] %v24_v0 }
   0x3   :  { %18059 = sst [smem:[#allocation26_spill]] %s17958_s2 }
   0x4   :  { %18060 = sst [smem:[#allocation27_spill]] %s17959_s3 }
   0x5   :  { %s18061_s1 = sld [smem:[#allocation24_spill]]  ;;  %v77_v2 = vlaneseq  ;;  %v13904_v3 = vmov 1966171168  }
   0x6   :  { %v75_v4 = vunpack.c.l.s4 %v13904_v3 }
   0xb   :  { %v65_v1 = vld [vmem:[%s18061_s1] sm:$0xff]  ;;  %v67_v5 = vld [vmem:[%s18061_s1 + $0x10] sm:$0xff] }
   0xc   :  { %26 = vsyncpa [#allocation4], 0  ;;  %v14028_v6 = vshrl.u32 %v77_v2, 7  ;;  %v73_v7 = vcombine.high %v65_v1, %v65_v1  ;;  %v76_v8 = vunpack.c.0.s8 %v75_v4  ;;  %v136_v9 = vcombine.high %v67_v5, %v67_v5  ;;  %s18078_s27 = sld [smem:[#allocation27_spill]]  ;;  %s13907_s26 = smov 120  }
   0xd   :  { %v12837_v11 = vld.sshfl [vmem:[%s18061_s1 + $0x8] sm:$0x1 pattern:$0x75316420]  ;;  %vm335_vm0 = vcmask 261120   ;;  %vm342_vm1 = vcmask 254976  }
   0xe   :  { %v14031_v10 = vsub.s32 %v76_v8, %v14028_v6  ;;  %v12838_v17 = vld.sshfl [vmem:[%s18061_s1 + $0x18] sm:$0x1 pattern:$0x75316420]  ;;  %v14125_v3 = vsub.s32 0, %v14028_v6  ;;  %v14128_v4 = vsub.s32 1, %v14028_v6 }
   0xf   :  { %v14134_v8 = vsub.s32 3, %v14028_v6  ;;  %vm13906_vm2 = vmmov 0   ;;  %s18079_s2 = sld [smem:[#allocation25_spill]]  ;;  %s13908_s28 = smov 112   ;;  %vm1428_vm3 = vcmask 64512   ;;  %vm2767_vm4 = vcmask 1040384  }
  0x10   :  { %v80_v12 = vrot.slane %v65_v1, %v14031_v10  ;;  %v87_v13 = vrot.slane %v73_v7, %v14031_v10  ;;  %v143_v14 = vrot.slane %v67_v5, %v14031_v10  ;;  %v14040_v15 = vrot.slane %v12837_v11, %v14031_v10  ;;  %s18080_s24 = sld [smem:[#allocation26_spill]]  ;;  %s13909_s29 = smov 104  }
  0x11   :  { %v150_v16 = vrot.slane %v136_v9, %v14031_v10  ;;  %v14065_v28 = vrot.slane %v12838_v17, %v14031_v10  ;;  %v14131_v5 = vsub.s32 2, %v14028_v6  ;;  %v14137_v9 = vsub.s32 4, %v14028_v6  ;;  %s13910_s0 = smov 96   ;;  %s13911_s30 = smov 64  }
  0x12   :  { %18062 = vst [vmem:[#allocation6_spill] sm:$0xff] %v14040_v15  ;;  %v88_v18 = vcombine.high %v80_v12, %v80_v12  ;;  %v89_v19 = vcombine.high %v87_v13, %v87_v13  ;;  %v14047_v20 = vrot.slane %v80_v12, %v14031_v10  ;;  %v14050_v21 = vrot.slane %v87_v13, %v14031_v10  ;;  %s18008_s20 = smov 8   ;;  %s18006_s1 = smov 16  }
  0x13   :  { %v151_v22 = vcombine.high %v143_v14, %v143_v14  ;;  %v152_v23 = vcombine.high %v150_v16, %v150_v16  ;;  %v14053_v24 = vrot.slane %v143_v14, %v14031_v10  ;;  %v14056_v25 = vrot.slane %v150_v16, %v14031_v10  ;;  %18067 = vst [vmem:[#allocation11_spill] sm:$0xff] %v14065_v28  ;;  %s18004_s22 = smov 24   ;;  %s18151_s18 = smov 24  }
  0x14   :  { %18063 = vst [vmem:[#allocation7_spill] sm:$0xff] %v14050_v21  ;;  %v14059_v26 = vrot.slane %v88_v18, %v14031_v10  ;;  %v14062_v27 = vrot.slane %v89_v19, %v14031_v10  ;;  %v14140_v11 = vsub.s32 5, %v14028_v6  ;;  %v14143_v12 = vsub.s32 6, %v14028_v6 }
  0x15   :  { %18064 = vst [vmem:[#allocation8_spill] sm:$0xff] %v14053_v24  ;;  %18065 = vst [vmem:[#allocation9_spill] sm:$0xff] %v14056_v25  ;;  %v14068_v29 = vrot.slane %v151_v22, %v14031_v10  ;;  %v14071_v30 = vrot.slane %v152_v23, %v14031_v10  ;;  %v14075_v31 = vcombine.high %v14053_v24, %v14053_v24  ;;  %v14146_v14 = vsub.s32 7, %v14028_v6 }
  0x16   :  { %18066 = vst [vmem:[#allocation10_spill] sm:$0xff] %v14062_v27  ;;  %v14079_v32 = vcombine.high %v14056_v25, %v14056_v25  ;;  %v219_v33 = vcombine.low %v14047_v20, %v14059_v26  ;;  %v12839_v34 = vcombine.high %v14047_v20, %v14059_v26  ;;  %v221_v35 = vcombine.low %v14050_v21, %v14062_v27 }
  0x17   :  { %18068 = vst [vmem:[#allocation12_spill] sm:$0xff] %v14068_v29  ;;  %18069 = vst [vmem:[#allocation13_spill] sm:$0xff] %v14071_v30  ;;  %v12840_v36 = vcombine.high %v14050_v21, %v14062_v27  ;;  %v14091_v37 = vcombine.high %v14068_v29, %v14068_v29  ;;  %v268_v38 = vcombine.low %v14040_v15, %v14053_v24  ;;  %vm2582_vm5 = vcmask 65536  }
  0x18   :  { %18070 = vst [vmem:[#allocation14_spill] sm:$0xff] %v14075_v31  ;;  %18071 = vst [vmem:[#allocation15_spill] sm:$0xff] %v14079_v32  ;;  %v269_v39 = vcombine.low %v14068_v29, %v14075_v31  ;;  %v271_v40 = vcombine.low %v14071_v30, %v14079_v32  ;;  %v229_v41 = vrot.slane %v219_v33, %v14031_v10  ;;  %vm2578_vm6 = vcmask 72704  }
  0x19   :  { %18072 = vst [vmem:[#allocation16_spill] sm:$0xff] %v14091_v37  ;;  %v236_v42 = vrot.slane %v12839_v34, %v14031_v10  ;;  %v243_v43 = vrot.slane %v221_v35, %v14031_v10  ;;  %v250_v44 = vrot.slane %v12840_v36, %v14031_v10  ;;  %v270_v45 = vcombine.low %v14091_v37, %v14056_v25 }
  0x1a   :  { %v278_v46 = vrot.slane %v268_v38, %v14031_v10  ;;  %v285_v47 = vrot.slane %v269_v39, %v14031_v10  ;;  %v299_v48 = vrot.slane %v271_v40, %v14031_v10  ;;  %v14110_v51 = vcombine.high %v14071_v30, %v14071_v30  ;;  %18074 = vst [vmem:[#allocation18_spill] sm:$0xff] %v14146_v14 }
  0x1b   :  { %v251_v49 = vcombine.low %v229_v41, %v236_v42  ;;  %v252_v50 = vcombine.low %v243_v43, %v250_v44  ;;  %v292_v52 = vrot.slane %v270_v45, %v14031_v10  ;;  %v14150_v17 = vcombine.high %v14047_v20, %v14047_v20 }
  0x1c   :  { %18073 = vst [vmem:[#allocation17_spill] sm:$0xff] %v14110_v51  ;;  %v300_v53 = vcombine.low %v278_v46, %v285_v47  ;;  %v317_v56 = vcombine.low %v14110_v51, %v14065_v28  ;;  %v14154_v18 = vcombine.high %v14050_v21, %v14050_v21  ;;  %v14158_v19 = vcombine.high %v14059_v26, %v14059_v26 }
  0x1d   :  { %v259_v54 = vrot.slane %v251_v49, %v14031_v10  ;;  %v266_v55 = vrot.slane %v252_v50, %v14031_v10  ;;  %v301_v57 = vcombine.low %v292_v52, %v299_v48  ;;  %v14162_v22 = vcombine.high %v14062_v27, %v14062_v27 }
  0x1e   :  { %v308_v58 = vrot.slane %v300_v53, %v14031_v10  ;;  %v324_v60 = vrot.slane %v317_v56, %v14031_v10  ;;  %18075 = vst [vmem:[#allocation19_spill] sm:$0xff] %v14154_v18  ;;  %18076 = vst [vmem:[#allocation20_spill] sm:$0xff] %v14158_v19  ;;  %vm4466_vm7 = vcmask 130048   ;;  %vm4470_vm8 = vcmask 195584  }
  0x1f   :  { %v267_v59 = vcombine.low %v259_v54, %v266_v55  ;;  %v315_v61 = vrot.slane %v301_v57, %v14031_v10  ;;  %18077 = vst [vmem:[#allocation21_spill] sm:$0xff] %v14162_v22  ;;  %vm12655_vm15 = vcmask 253952  }
  0x20   :  { %v331_v63 = vrot.slane %v324_v60, %v14031_v10 }
  0x21   :  { %v336_v62 = vsel %vm335_vm0, %v267_v59, 0.0  ;;  %v316_v0 = vcombine.low %v308_v58, %v315_v61 }
  0x22   :  { %337 = vadd.xlane.f32.xlu0 %v336_v62  ;;  %v343_v1 = vsel %vm342_vm1, %v331_v63, 0.0 }
  0x23   :  { %v339_v2 = vsel %vm335_vm0, %v316_v0, 0.0  ;;  %344 = vadd.xlane.f32.xlu1 %v343_v1 }
  0x26   :  { %340 = vadd.xlane.f32.xlu0 %v339_v2 }
  0xab   :  { %v338_v7 = vpop.xlane.xlu0 %337 }
  0xac   :  { %v347_v13 = vmul.f32 0.03125, %v338_v7  ;;  %v345_v16 = vpop.xlane.xlu1 %344 }
  0xad   :  { %v349_v23 = vmul.f32 0.03125, %v345_v16 }
  0xae   :  { %v356_v6 = vrot.slane %v347_v13, %v14125_v3  ;;  %v360_v33 = vrot.slane %v347_v13, %v14128_v4  ;;  %v364_v34 = vrot.slane %v347_v13, %v14131_v5  ;;  %v368_v36 = vrot.slane %v347_v13, %v14134_v8 }
  0xaf   :  { %v341_v35 = vpop.xlane.xlu0 %340  ;;  %v372_v38 = vrot.slane %v347_v13, %v14137_v9  ;;  %v376_v39 = vrot.slane %v347_v13, %v14140_v11  ;;  %v380_v40 = vrot.slane %v347_v13, %v14143_v12  ;;  %v420_v42 = vrot.slane %v349_v23, %v14125_v3 }
  0xb0   :  { %v348_v41 = vmul.f32 0.03125, %v341_v35  ;;  %v424_v43 = vrot.slane %v349_v23, %v14128_v4  ;;  %v384_v44 = vrot.slane %v347_v13, %v14146_v14  ;;  %v14175_v45 = vsub.f32 %v14047_v20, %v356_v6 }
  0xb1   :  { %v14178_v46 = vsub.f32 %v14059_v26, %v360_v33  ;;  %v14181_v47 = vsub.f32 %v14150_v17, %v364_v34  ;;  %v14184_v48 = vsub.f32 %v14158_v19, %v368_v36  ;;  %v14187_v49 = vsub.f32 %v14110_v51, %v420_v42 }
  0xb2   :  { %v14190_v50 = vsub.f32 %v14065_v28, %v424_v43  ;;  %v14193_v52 = vsub.f32 %v14050_v21, %v372_v38  ;;  %v14196_v53 = vsub.f32 %v14062_v27, %v376_v39  ;;  %v14199_v54 = vsub.f32 %v14154_v18, %v380_v40 }
  0xb3   :  { %v14202_v55 = vsub.f32 %v14162_v22, %v384_v44  ;;  %v461_v56 = vmul.f32 %v14175_v45, %v14175_v45  ;;  %v462_v57 = vmul.f32 %v14178_v46, %v14178_v46  ;;  %v477_v58 = vmul.f32 %v14187_v49, %v14187_v49 }
  0xb4   :  { %v478_v59 = vmul.f32 %v14190_v50, %v14190_v50  ;;  %v463_v60 = vmul.f32 %v14181_v47, %v14181_v47  ;;  %v464_v61 = vmul.f32 %v14184_v48, %v14184_v48  ;;  %v465_v62 = vmul.f32 %v14193_v52, %v14193_v52 }
  0xb5   :  { %v466_v63 = vmul.f32 %v14196_v53, %v14196_v53  ;;  %v467_v0 = vmul.f32 %v14199_v54, %v14199_v54  ;;  %v468_v1 = vmul.f32 %v14202_v55, %v14202_v55  ;;  %v497_v2 = vcombine.low %v461_v56, %v462_v57 }
  0xb6   :  { %v498_v7 = vcombine.low %v463_v60, %v464_v61  ;;  %v388_v13 = vrot.slane %v348_v41, %v14125_v3  ;;  %v392_v16 = vrot.slane %v348_v41, %v14128_v4  ;;  %v396_v33 = vrot.slane %v348_v41, %v14131_v5 }
  0xb7   :  { %v499_v23 = vcombine.low %v465_v62, %v466_v63  ;;  %v500_v6 = vcombine.low %v467_v0, %v468_v1  ;;  %v400_v34 = vrot.slane %v348_v41, %v14134_v8  ;;  %v507_v35 = vrot.slane %v497_v2, %v14031_v10 }
  0xb8   :  { %v514_v36 = vrot.slane %v498_v7, %v14031_v10  ;;  %v404_v38 = vrot.slane %v348_v41, %v14137_v9  ;;  %v408_v39 = vrot.slane %v348_v41, %v14140_v11  ;;  %v412_v43 = vrot.slane %v348_v41, %v14143_v12 }
  0xb9   :  { %v521_v40 = vrot.slane %v499_v23, %v14031_v10  ;;  %v528_v42 = vrot.slane %v500_v6, %v14031_v10  ;;  %v416_v44 = vrot.slane %v348_v41, %v14146_v14  ;;  %v14237_v57 = vsub.f32 %v14040_v15, %v388_v13 }
  0xba   :  { %v529_v56 = vcombine.low %v507_v35, %v514_v36  ;;  %v14240_v60 = vsub.f32 %v14053_v24, %v392_v16  ;;  %v14243_v61 = vsub.f32 %v14068_v29, %v396_v33  ;;  %v14246_v63 = vsub.f32 %v14075_v31, %v400_v34 }
  0xbb   :  { %v530_v62 = vcombine.low %v521_v40, %v528_v42  ;;  %v14249_v0 = vsub.f32 %v14091_v37, %v404_v38  ;;  %v14252_v1 = vsub.f32 %v14056_v25, %v408_v39  ;;  %v14256_v2 = vsub.f32 %v14071_v30, %v412_v43 }
  0xbc   :  { %v537_v41 = vrot.slane %v529_v56, %v14031_v10  ;;  %v14259_v7 = vsub.f32 %v14079_v32, %v416_v44  ;;  %v469_v13 = vmul.f32 %v14237_v57, %v14237_v57  ;;  %v470_v23 = vmul.f32 %v14240_v60, %v14240_v60 }
  0xbd   :  { %v544_v16 = vrot.slane %v530_v62, %v14031_v10  ;;  %v471_v6 = vmul.f32 %v14243_v61, %v14243_v61  ;;  %v472_v33 = vmul.f32 %v14246_v63, %v14246_v63  ;;  %v473_v34 = vmul.f32 %v14249_v0, %v14249_v0 }
  0xbe   :  { %v474_v35 = vmul.f32 %v14252_v1, %v14252_v1  ;;  %v475_v36 = vmul.f32 %v14256_v2, %v14256_v2  ;;  %v476_v38 = vmul.f32 %v14259_v7, %v14259_v7  ;;  %v546_v40 = vcombine.low %v469_v13, %v470_v23 }
  0xbf   :  { %v545_v39 = vcombine.low %v537_v41, %v544_v16  ;;  %v547_v42 = vcombine.low %v471_v6, %v472_v33  ;;  %v595_v43 = vcombine.low %v477_v58, %v478_v59  ;;  %v905_v33 = vld [vmem:[%s18078_s27 + $0x18] sm:$0xff] }
  0xc0   :  { %v548_v44 = vcombine.low %v473_v34, %v474_v35  ;;  %v549_v56 = vcombine.low %v475_v36, %v476_v38  ;;  %v556_v28 = vrot.slane %v546_v40, %v14031_v10  ;;  %v17986_v34 = vmov 0.0  }
  0xc1   :  { %v613_v62 = vsel %vm335_vm0, %v545_v39, 0.0  ;;  %v563_v51 = vrot.slane %v547_v42, %v14031_v10  ;;  %v602_v32 = vrot.slane %v595_v43, %v14031_v10  ;;  %13262 = vmatprep.subr.mxu1 %v17986_v34  ;;  %13270 = vmatprep.mubr.msk.f32.mxu1 %vm13906_vm2, %v17986_v34 }
  0xc2   :  { %614 = vadd.xlane.f32.xlu1 %v613_v62  ;;  %v570_v31 = vrot.slane %v548_v44, %v14031_v10  ;;  %v577_v30 = vrot.slane %v549_v56, %v14031_v10  ;;  %13263 = vmatpush3.msra.mxu1 %v905_v33 }
  0xc3   :  { %v578_v25 = vcombine.low %v556_v28, %v563_v51  ;;  %v609_v41 = vrot.slane %v602_v32, %v14031_v10  ;;  %13264 = vmatprep.subr.mxu1 %v17986_v34  ;;  %v903_v28 = vld [vmem:[%s18078_s27 + $0x8] sm:$0xff]  ;;  %v12842_v32 = vld [vmem:[%s18080_s24] ss:$0 sm:$0xff] }
  0xc4   :  { %v579_v13 = vcombine.low %v570_v31, %v577_v30  ;;  %v902_v30 = vld [vmem:[%s18078_s27] sm:$0xff]  ;;  %v827_v38 = vcombine.high %v12842_v32, %v12842_v32  ;;  %v834_v56 = vrot.slane %v12842_v32, %v14031_v10 }
  0xc5   :  { %v586_v58 = vrot.slane %v578_v25, %v14031_v10  ;;  %v619_v59 = vsel %vm342_vm1, %v609_v41, 0.0  ;;  %v904_v25 = vld [vmem:[%s18078_s27 + $0x10] sm:$0xff]  ;;  %v12841_v31 = vld [vmem:[%s18079_s2] ss:$0 sm:$0xff] }
  0xc6   :  { %v593_v16 = vrot.slane %v579_v13, %v14031_v10  ;;  %620 = vadd.xlane.f32.xlu1 %v619_v59  ;;  %13265 = vmatpush3.msra.mxu1 %v904_v25  ;;  %v747_v36 = vcombine.high %v12841_v31, %v12841_v31  ;;  %v754_v43 = vrot.slane %v12841_v31, %v14031_v10 }
  0xc7   :  { %13266 = vmatprep.subr.mxu1 %v17986_v34  ;;  %v841_v62 = vrot.slane %v827_v38, %v14031_v10  ;;  %v14330_v32 = vrot.slane %v834_v56, %v14031_v10 }
  0xc8   :  { %v594_v23 = vcombine.low %v586_v58, %v593_v16  ;;  %13267 = vmatpush3.msra.mxu1 %v903_v28  ;;  %v761_v44 = vrot.slane %v747_v36, %v14031_v10  ;;  %v762_v58 = vcombine.high %v754_v43, %v754_v43  ;;  %v14318_v25 = vrot.slane %v754_v43, %v14031_v10 }
  0xc9   :  { %13268 = vmatprep.subr.mxu1 %v17986_v34 }
  0xca   :  { %v616_v6 = vsel %vm335_vm0, %v594_v23, 0.0  ;;  %13269 = vmatpush3.msra.mxu1 %v902_v30  ;;  %v763_v59 = vcombine.high %v761_v44, %v761_v44  ;;  %v842_v23 = vcombine.high %v834_v56, %v834_v56  ;;  %v14321_v28 = vrot.slane %v761_v44, %v14031_v10 }
  0xcb   :  { %617 = vadd.xlane.f32.xlu0 %v616_v6  ;;  %v843_v6 = vcombine.high %v841_v62, %v841_v62  ;;  %v14324_v30 = vrot.slane %v762_v58, %v14031_v10  ;;  %v14343_v38 = vcombine.high %v14318_v25, %v14318_v25  ;;  %v14359_v44 = vcombine.high %v14330_v32, %v14330_v32 }
  0xcc   :  { %v14327_v31 = vrot.slane %v763_v59, %v14031_v10 }
  0xcd   :  { %v14339_v36 = vrot.slane %v843_v6, %v14031_v10 }
 0x14b   :  { %v615_v51 = vpop.xlane.xlu1 %614 }
 0x14c   :  { %v622_v35 = vmul.f32 0.03125, %v615_v51  ;;  %v14333_v51 = vrot.slane %v841_v62, %v14031_v10 }
 0x14e   :  { %v625_v39 = vadd.f32 1e-05, %v622_v35  ;;  %v14336_v35 = vrot.slane %v842_v23, %v14031_v10  ;;  %v14363_v56 = vcombine.high %v14333_v51, %v14333_v51 }
 0x14f   :  { %v621_v40 = vpop.xlane.xlu1 %620 }
 0x150   :  { %13700 = vrsqrt.f32 %v625_v39  ;;  %v624_v42 = vmul.f32 0.03125, %v621_v40  ;;  %v14347_v39 = vcombine.high %v14321_v28, %v14321_v28  ;;  %v14351_v40 = vcombine.high %v14324_v30, %v14324_v30 }
 0x151   :  { %v14367_v62 = vcombine.high %v14336_v35, %v14336_v35 }
 0x152   :  { %v627_v41 = vadd.f32 1e-05, %v624_v42  ;;  %v14355_v42 = vcombine.high %v14327_v31, %v14327_v31 }
 0x154   :  { %v618_v13 = vpop.xlane.xlu0 %617  ;;  %13702 = vrsqrt.f32 %v627_v41  ;;  %v14371_v41 = vcombine.high %v14339_v36, %v14339_v36 }
 0x155   :  { %v623_v16 = vmul.f32 0.03125, %v618_v13 }
 0x157   :  { %v626_v33 = vadd.f32 1e-05, %v623_v16 }
 0x159   :  { %13704 = vrsqrt.f32 %v626_v33 }
 0x15d   :  { %v13701_v43 = vpop.eup %13700 }
 0x15e   :  { %v637_v13 = vrot.slane %v13701_v43, %v14125_v3  ;;  %v641_v58 = vrot.slane %v13701_v43, %v14128_v4  ;;  %v645_v59 = vrot.slane %v13701_v43, %v14131_v5  ;;  %v649_v16 = vrot.slane %v13701_v43, %v14134_v8 }
 0x15f   :  { %v653_v23 = vrot.slane %v13701_v43, %v14137_v9  ;;  %v657_v6 = vrot.slane %v13701_v43, %v14140_v11  ;;  %v661_v33 = vrot.slane %v13701_v43, %v14143_v12  ;;  %v665_v34 = vrot.slane %v13701_v43, %v14146_v14 }
 0x160   :  { %v724_v29 = vmul.f32 %v637_v13, %v14175_v45  ;;  %v725_v37 = vmul.f32 %v641_v58, %v14178_v46  ;;  %v726_v24 = vmul.f32 %v645_v59, %v14181_v47  ;;  %v727_v15 = vmul.f32 %v649_v16, %v14184_v48 }
 0x161   :  { %v14385_v22 = vpop.eup %13702  ;;  %v728_v18 = vmul.f32 %v653_v23, %v14193_v52  ;;  %v729_v27 = vmul.f32 %v657_v6, %v14196_v53  ;;  %v730_v19 = vmul.f32 %v661_v33, %v14199_v54  ;;  %v731_v21 = vmul.f32 %v665_v34, %v14202_v55 }
 0x162   :  { %v701_v43 = vrot.slane %v14385_v22, %v14125_v3  ;;  %v705_v45 = vrot.slane %v14385_v22, %v14128_v4  ;;  %v804_v46 = vmul.f32 %v14318_v25, %v724_v29  ;;  %v805_v47 = vmul.f32 %v14324_v30, %v725_v37 }
 0x163   :  { %v806_v48 = vmul.f32 %v14343_v38, %v726_v24  ;;  %v807_v52 = vmul.f32 %v14351_v40, %v727_v15  ;;  %v808_v53 = vmul.f32 %v14321_v28, %v728_v18  ;;  %v809_v54 = vmul.f32 %v14327_v31, %v729_v27 }
 0x164   :  { %v810_v55 = vmul.f32 %v14347_v39, %v730_v19  ;;  %v811_v34 = vmul.f32 %v14355_v42, %v731_v21  ;;  %v884_v13 = vadd.f32 %v14330_v32, %v804_v46  ;;  %v885_v58 = vadd.f32 %v14336_v35, %v805_v47 }
 0x165   :  { %v886_v29 = vadd.f32 %v14359_v44, %v806_v48  ;;  %v887_v37 = vadd.f32 %v14367_v62, %v807_v52  ;;  %v888_v24 = vadd.f32 %v14333_v51, %v808_v53  ;;  %v889_v15 = vadd.f32 %v14339_v36, %v809_v54 }
 0x166   :  { %v13705_v59 = vpop.eup %13704  ;;  %v890_v18 = vadd.f32 %v14363_v56, %v810_v55  ;;  %v891_v27 = vadd.f32 %v14371_v41, %v811_v34  ;;  %v931_v19 = vcombine.low %v884_v13, %v885_v58  ;;  %v740_v21 = vmul.f32 %v701_v43, %v14187_v49 }
 0x167   :  { %v932_v16 = vcombine.low %v886_v29, %v887_v37  ;;  %v933_v23 = vcombine.low %v888_v24, %v889_v15  ;;  %v669_v6 = vrot.slane %v13705_v59, %v14125_v3  ;;  %v673_v33 = vrot.slane %v13705_v59, %v14128_v4 }
 0x168   :  { %v934_v46 = vcombine.low %v890_v18, %v891_v27  ;;  %v941_v47 = vrot.slane %v931_v19, %v14031_v10  ;;  %v677_v48 = vrot.slane %v13705_v59, %v14131_v5  ;;  %v681_v52 = vrot.slane %v13705_v59, %v14134_v8 }
 0x169   :  { %v948_v53 = vrot.slane %v932_v16, %v14031_v10  ;;  %v955_v54 = vrot.slane %v933_v23, %v14031_v10  ;;  %v685_v55 = vrot.slane %v13705_v59, %v14137_v9  ;;  %v689_v49 = vrot.slane %v13705_v59, %v14140_v11 }
 0x16a   :  { %v962_v43 = vrot.slane %v934_v46, %v14031_v10  ;;  %v693_v34 = vrot.slane %v13705_v59, %v14143_v12  ;;  %v697_v13 = vrot.slane %v13705_v59, %v14146_v14  ;;  %v732_v58 = vmul.f32 %v669_v6, %v14237_v57 }
 0x16b   :  { %v963_v29 = vcombine.low %v941_v47, %v948_v53  ;;  %v733_v37 = vmul.f32 %v673_v33, %v14240_v60  ;;  %v734_v24 = vmul.f32 %v677_v48, %v14243_v61  ;;  %v735_v15 = vmul.f32 %v681_v52, %v14246_v63 }
 0x16c   :  { %v964_v18 = vcombine.low %v955_v54, %v962_v43  ;;  %v736_v27 = vmul.f32 %v685_v55, %v14249_v0  ;;  %v737_v19 = vmul.f32 %v689_v49, %v14252_v1  ;;  %v738_v16 = vmul.f32 %v693_v34, %v14256_v2 }
 0x16d   :  { %v971_v23 = vrot.slane %v963_v29, %v14031_v10  ;;  %v739_v59 = vmul.f32 %v697_v13, %v14259_v7  ;;  %v812_v57 = vmul.f32 %v14318_v25, %v732_v58  ;;  %v813_v6 = vmul.f32 %v14324_v30, %v733_v37 }
 0x16e   :  { %v978_v60 = vrot.slane %v964_v18, %v14031_v10  ;;  %v814_v61 = vmul.f32 %v14343_v38, %v734_v24  ;;  %v815_v63 = vmul.f32 %v14351_v40, %v735_v15  ;;  %v816_v0 = vmul.f32 %v14321_v28, %v736_v27 }
 0x16f   :  { %v817_v1 = vmul.f32 %v14327_v31, %v737_v19  ;;  %v818_v2 = vmul.f32 %v14347_v39, %v738_v16  ;;  %v819_v33 = vmul.f32 %v14355_v42, %v739_v59  ;;  %v892_v7 = vadd.f32 %v14330_v32, %v812_v57 }
 0x170   :  { %v979_v46 = vcombine.low %v971_v23, %v978_v60  ;;  %v893_v47 = vadd.f32 %v14336_v35, %v813_v6  ;;  %v894_v48 = vadd.f32 %v14359_v44, %v814_v61  ;;  %v895_v52 = vadd.f32 %v14367_v62, %v815_v63 }
 0x171   :  { %v896_v38 = vadd.f32 %v14333_v51, %v816_v0  ;;  %v897_v40 = vadd.f32 %v14339_v36, %v817_v1  ;;  %v898_v28 = vadd.f32 %v14363_v56, %v818_v2  ;;  %v899_v31 = vadd.f32 %v14371_v41, %v819_v33 }
 0x172   :  { %13271 = vmatmul.mubr.msk.f32.vlgmr.msra.gmra.mxu1 %vm335_vm0, %v979_v46  ;;  %v980_v39 = vcombine.low %v892_v7, %v893_v47  ;;  %v981_v42 = vcombine.low %v894_v48, %v895_v52  ;;  %v741_v53 = vmul.f32 %v705_v45, %v14190_v50  ;;  %v820_v44 = vmul.f32 %v14318_v25, %v740_v21 }
 0x173   :  { %v18081_v62 = vmov 0.0   ;;  %v982_v51 = vcombine.low %v896_v38, %v897_v40  ;;  %v983_v36 = vcombine.low %v898_v28, %v899_v31 }
 0x174   :  { %13273 = vmatprep.mubr.msk.f32.mxu1 %vm13906_vm2, %v18081_v62  ;;  %v990_v56 = vrot.slane %v980_v39, %v14031_v10  ;;  %v997_v41 = vrot.slane %v981_v42, %v14031_v10  ;;  %v821_v54 = vmul.f32 %v14324_v30, %v741_v53  ;;  %v900_v55 = vadd.f32 %v14330_v32, %v820_v44  ;;  %v12843_v32 = vld [vmem:[%s17960_s4] ss:$0 sm:$0xff] }
 0x175   :  { %v1004_v49 = vrot.slane %v982_v51, %v14031_v10  ;;  %v1011_v22 = vrot.slane %v983_v36, %v14031_v10 }
 0x176   :  { %v1012_v50 = vcombine.low %v990_v56, %v997_v41  ;;  %v901_v25 = vadd.f32 %v14336_v35, %v821_v54 }
 0x177   :  { %v1013_v45 = vcombine.low %v1004_v49, %v1011_v22 }
 0x178   :  { %v1020_v21 = vrot.slane %v1012_v50, %v14031_v10  ;;  %v1029_v43 = vcombine.low %v900_v55, %v901_v25 }
 0x179   :  { %v1027_v34 = vrot.slane %v1013_v45, %v14031_v10 }
 0x17a   :  { %v1036_v58 = vrot.slane %v1029_v43, %v14031_v10 }
 0x17b   :  { %v1028_v13 = vcombine.low %v1020_v21, %v1027_v34 }
 0x17c   :  { %v1043_v30 = vrot.slane %v1036_v58, %v14031_v10 }
 0x17d   :  { %13274 = vmatmul.mubr.msk.f32.gmra.mxu1 %vm335_vm0, %v1028_v13 }
 0x17e   :  { %13276 = vmatprep.mubr.msk.f32.mxu1 %vm13906_vm2, %v18081_v62 }
 0x181   :  { %13277 = vmatmul.mubr.msk.f32.gmra.mxu1 %vm335_vm0, %v1043_v30 }
 0x232   :  { %v1116_v35 = vpop.f32.mrf.mxu1 }
 0x233   :  { %v1117_v29 = vadd.f32 %v12843_v32, %v1116_v35 }
 0x234   :  { %v13272_v37 = vpop.f32.mrf.mxu1 }
 0x235   :  { %v1133_v24 = vcombine.high %v1117_v29, %v1117_v29  ;;  %v1140_v15 = vrot.slane %v1117_v29, %v14031_v10 }
 0x237   :  { %v1147_v18 = vrot.slane %v1133_v24, %v14031_v10  ;;  %v1148_v27 = vcombine.high %v1140_v15, %v1140_v15  ;;  %v1156_v19 = vrot.slane %v1140_v15, %v14031_v10 }
 0x239   :  { %v1149_v16 = vcombine.high %v1147_v18, %v1147_v18  ;;  %v1170_v23 = vrot.slane %v1148_v27, %v14031_v10  ;;  %1253 = vrot.lane.b32.xlu0 %v1156_v19, %s13907_s26  ;;  %v1163_v59 = vrot.slane %v1147_v18, %v14031_v10  ;;  %v1178_v61 = vcombine.high %v1156_v19, %v1156_v19 }
 0x23b   :  { %v1177_v57 = vrot.slane %v1149_v16, %v14031_v10  ;;  %1255 = vrot.lane.b32.xlu1 %v1170_v23, %s13907_s26  ;;  %v1361_v6 = vcombine.low %v1156_v19, %v1170_v23  ;;  %v12847_v60 = vcombine.high %v1156_v19, %v1170_v23  ;;  %v1180_v53 = vcombine.high %v1170_v23, %v1170_v23 }
 0x23c   :  { %v1179_v36 = vcombine.high %v1163_v59, %v1163_v59 }
 0x23d   :  { %v1121_v63 = vpop.f32.mrf.mxu1  ;;  %1289 = vrot.lane.b32.xlu0 %v1156_v19, %s13908_s28  ;;  %v1363_v0 = vcombine.low %v1163_v59, %v1177_v57  ;;  %v12848_v1 = vcombine.high %v1163_v59, %v1177_v57  ;;  %v1371_v2 = vrot.slane %v1361_v6, %v14031_v10  ;;  %v1378_v33 = vrot.slane %v12847_v60, %v14031_v10 }
 0x23e   :  { %v1122_v44 = vadd.f32 %v12843_v32, %v1121_v63  ;;  %v1181_v54 = vcombine.high %v1177_v57, %v1177_v57 }
 0x23f   :  { %v13275_v7 = vpop.f32.mrf.mxu1  ;;  %1257 = vrot.lane.b32.xlu1 %v1178_v61, %s13907_s26  ;;  %v1385_v46 = vrot.slane %v1363_v0, %v14031_v10  ;;  %v1392_v47 = vrot.slane %v12848_v1, %v14031_v10  ;;  %v1393_v48 = vcombine.low %v1371_v2, %v1378_v33 }
 0x240   :  { %v1189_v51 = vrot.slane %v1122_v44, %v14031_v10  ;;  %v1182_v49 = vcombine.high %v1122_v44, %v1122_v44 }
 0x241   :  { %v1126_v52 = vpop.f32.mrf.mxu1  ;;  %1325 = vrot.lane.b32.xlu0 %v1156_v19, %s13909_s29  ;;  %v1394_v38 = vcombine.low %v1385_v46, %v1392_v47  ;;  %v1401_v31 = vrot.slane %v1393_v48, %v14031_v10 }
 0x242   :  { %v1127_v40 = vadd.f32 %v12843_v32, %v1126_v52  ;;  %v1205_v56 = vrot.slane %v1189_v51, %v14031_v10  ;;  %v1197_v41 = vcombine.high %v1189_v51, %v1189_v51  ;;  %v1196_v22 = vrot.slane %v1182_v49, %v14031_v10 }
 0x243   :  { %v13278_v28 = vpop.f32.mrf.mxu1  ;;  %1291 = vrot.lane.b32.xlu1 %v1170_v23, %s13908_s28  ;;  %v1408_v39 = vrot.slane %v1394_v38, %v14031_v10 }
 0x244   :  { %v1219_v55 = vrot.slane %v1197_v41, %v14031_v10  ;;  %v1227_v50 = vcombine.high %v1205_v56, %v1205_v56  ;;  %v1212_v25 = vrot.slane %v1196_v22, %v14031_v10  ;;  %v1198_v45 = vcombine.high %v1196_v22, %v1196_v22 }
 0x245   :  { %1261 = vrot.lane.b32.xlu0 %v1163_v59, %s13907_s26  ;;  %v14495_v42 = vcombine.low %v1401_v31, %v1408_v39  ;;  %v1237_v34 = vrot.slane %v1127_v40, %v14031_v10  ;;  %v1416_v29 = vrot.slane %v1205_v56, %v14031_v10 }
 0x246   :  { %v1229_v21 = vcombine.high %v1219_v55, %v1219_v55  ;;  %v1226_v43 = vrot.slane %v1198_v45, %v14031_v10  ;;  %v1228_v13 = vcombine.high %v1212_v25, %v1212_v25  ;;  %v1512_v19 = vcombine.low %v1219_v55, %v1227_v50 }
 0x247   :  { %1327 = vrot.lane.b32.xlu1 %v1170_v23, %s13909_s29  ;;  %13283 = vmatprep.mubr.msk.f32.mxu1 %vm1428_vm3, %v14495_v42  ;;  %v1245_v58 = vrot.slane %v1237_v34, %v14031_v10  ;;  %v1238_v30 = vcombine.high %v1237_v34, %v1237_v34  ;;  %v14555_v24 = vrot.slane %v1416_v29, %v14031_v10 }
 0x248   :  { %v1230_v32 = vcombine.high %v1226_v43, %v1226_v43  ;;  %v1513_v18 = vcombine.low %v1229_v21, %v1212_v25  ;;  %v1514_v27 = vcombine.low %v1226_v43, %v1228_v13  ;;  %v1522_v6 = vrot.slane %v1512_v19, %v14031_v10 }
 0x249   :  { %1293 = vrot.lane.b32.xlu0 %v1178_v61, %s13908_s28  ;;  %v1252_v35 = vrot.slane %v1238_v30, %v14031_v10 }
 0x24a   :  { %v1515_v37 = vcombine.low %v1230_v32, %v1245_v58 }
 0x24b   :  { %1259 = vrot.lane.b32.xlu1 %v1180_v53, %s13907_s26  ;;  %v1567_v15 = vrot.slane %v1252_v35, %v14031_v10 }
 0x24c   :  { %v1543_v16 = vrot.slane %v1515_v37, %v14031_v10 }
 0x24d   :  { %1297 = vrot.lane.b32.xlu0 %v1163_v59, %s13908_s28  ;;  %v14563_v23 = vrot.slane %v1567_v15, %v14031_v10 }
 0x24f   :  { %1263 = vrot.lane.b32.xlu1 %v1177_v57, %s13907_s26 }
 0x251   :  { %1329 = vrot.lane.b32.xlu0 %v1178_v61, %s13909_s29 }
 0x253   :  { %1295 = vrot.lane.b32.xlu1 %v1180_v53, %s13908_s28 }
 0x255   :  { %1333 = vrot.lane.b32.xlu0 %v1163_v59, %s13909_s29  ;;  %v1529_v59 = vrot.slane %v1513_v18, %v14031_v10 }
 0x257   :  { %1299 = vrot.lane.b32.xlu1 %v1177_v57, %s13908_s28  ;;  %v1544_v61 = vcombine.low %v1522_v6, %v1529_v59 }
 0x259   :  { %1265 = vrot.lane.b32.xlu0 %v1179_v36, %s13907_s26  ;;  %v1552_v1 = vrot.slane %v1544_v61, %v14031_v10 }
 0x25b   :  { %1331 = vrot.lane.b32.xlu1 %v1180_v53, %s13909_s29 }
 0x25d   :  { %1269 = vrot.lane.b32.xlu0 %v1205_v56, %s13907_s26 }
 0x25f   :  { %1335 = vrot.lane.b32.xlu1 %v1177_v57, %s13909_s29  ;;  %v1536_v57 = vrot.slane %v1514_v27, %v14031_v10 }
 0x261   :  { %1301 = vrot.lane.b32.xlu0 %v1179_v36, %s13908_s28  ;;  %v1545_v60 = vcombine.low %v1536_v57, %v1543_v16 }
 0x263   :  { %1267 = vrot.lane.b32.xlu1 %v1181_v54, %s13907_s26  ;;  %v1559_v63 = vrot.slane %v1545_v60, %v14031_v10 }
 0x265   :  { %1305 = vrot.lane.b32.xlu0 %v1205_v56, %s13908_s28  ;;  %v14575_v33 = vcombine.low %v1552_v1, %v1559_v63 }
 0x267   :  { %1271 = vrot.lane.b32.xlu1 %v1219_v55, %s13907_s26 }
 0x269   :  { %1337 = vrot.lane.b32.xlu0 %v1179_v36, %s13909_s29 }
 0x26b   :  { %1303 = vrot.lane.b32.xlu1 %v1181_v54, %s13908_s28 }
 0x26d   :  { %1341 = vrot.lane.b32.xlu0 %v1205_v56, %s13909_s29 }
 0x26f   :  { %1307 = vrot.lane.b32.xlu1 %v1219_v55, %s13908_s28 }
 0x271   :  { %1273 = vrot.lane.b32.xlu0 %v1227_v50, %s13907_s26 }
 0x273   :  { %1339 = vrot.lane.b32.xlu1 %v1181_v54, %s13909_s29 }
 0x275   :  { %1277 = vrot.lane.b32.xlu0 %v1212_v25, %s13907_s26 }
 0x277   :  { %1343 = vrot.lane.b32.xlu1 %v1219_v55, %s13909_s29 }
 0x279   :  { %1309 = vrot.lane.b32.xlu0 %v1227_v50, %s13908_s28 }
 0x27b   :  { %1275 = vrot.lane.b32.xlu1 %v1229_v21, %s13907_s26 }
 0x27d   :  { %1313 = vrot.lane.b32.xlu0 %v1212_v25, %s13908_s28 }
 0x27f   :  { %1279 = vrot.lane.b32.xlu1 %v1226_v43, %s13907_s26 }
 0x281   :  { %1345 = vrot.lane.b32.xlu0 %v1227_v50, %s13909_s29 }
 0x283   :  { %1311 = vrot.lane.b32.xlu1 %v1229_v21, %s13908_s28 }
 0x285   :  { %1349 = vrot.lane.b32.xlu0 %v1212_v25, %s13909_s29 }
 0x287   :  { %1315 = vrot.lane.b32.xlu1 %v1226_v43, %s13908_s28 }
 0x289   :  { %1281 = vrot.lane.b32.xlu0 %v1228_v13, %s13907_s26 }
 0x28b   :  { %1347 = vrot.lane.b32.xlu1 %v1229_v21, %s13909_s29 }
 0x28d   :  { %1285 = vrot.lane.b32.xlu0 %v1245_v58, %s13907_s26 }
 0x28f   :  { %1351 = vrot.lane.b32.xlu1 %v1226_v43, %s13909_s29 }
 0x291   :  { %1317 = vrot.lane.b32.xlu0 %v1228_v13, %s13908_s28 }
 0x293   :  { %1283 = vrot.lane.b32.xlu1 %v1230_v32, %s13907_s26 }
 0x295   :  { %1321 = vrot.lane.b32.xlu0 %v1245_v58, %s13908_s28 }
 0x297   :  { %1287 = vrot.lane.b32.xlu1 %v1252_v35, %s13907_s26 }
 0x299   :  { %1353 = vrot.lane.b32.xlu0 %v1228_v13, %s13909_s29 }
 0x29b   :  { %1319 = vrot.lane.b32.xlu1 %v1230_v32, %s13908_s28 }
 0x29d   :  { %1357 = vrot.lane.b32.xlu0 %v1245_v58, %s13909_s29 }
 0x29f   :  { %1323 = vrot.lane.b32.xlu1 %v1252_v35, %s13908_s28 }
 0x2a1   :  { %1426 = vrot.lane.b32.xlu0 %v14555_v24, %s13910_s0 }
 0x2a3   :  { %1355 = vrot.lane.b32.xlu1 %v1230_v32, %s13909_s29 }
 0x2a5   :  { %1577 = vrot.lane.b32.xlu0 %v14563_v23, %s13910_s0 }
 0x2a7   :  { %1359 = vrot.lane.b32.xlu1 %v1252_v35, %s13909_s29 }
 0x2ab   :  { %v1254_v0 = vpop.permute.xlu0 %1253  ;;  %1424 = vrot.lane.b32.xlu1 %v14495_v42, %s13910_s0 }
 0x2ad   :  { %v1256_v2 = vpop.permute.xlu1 %1255 }
 0x2ae   :  { %v1662_v50 = vcombine.low %v1254_v0, %v1256_v2 }
 0x2af   :  { %v14577_v7 = vpop.permute.xlu0 %1289  ;;  %1575 = vrot.lane.b32.xlu1 %v14575_v33, %s13910_s0 }
 0x2b0   :  { %v1672_v13 = vrot.slane %v1662_v50, %v14031_v10 }
 0x2b1   :  { %v1258_v46 = vpop.permute.xlu1 %1257 }
 0x2b3   :  { %v14581_v47 = vpop.permute.xlu0 %1325 }
 0x2b5   :  { %v14583_v48 = vpop.permute.xlu1 %1291 }
 0x2b7   :  { %v1262_v52 = vpop.permute.xlu0 %1261 }
 0x2b9   :  { %v14585_v38 = vpop.permute.xlu1 %1327 }
 0x2bb   :  { %v14587_v40 = vpop.permute.xlu0 %1293 }
 0x2bd   :  { %v1260_v28 = vpop.permute.xlu1 %1259 }
 0x2be   :  { %v1663_v55 = vcombine.low %v1258_v46, %v1260_v28 }
 0x2bf   :  { %v14589_v31 = vpop.permute.xlu0 %1297 }
 0x2c0   :  { %v1679_v21 = vrot.slane %v1663_v55, %v14031_v10 }
 0x2c1   :  { %v1264_v39 = vpop.permute.xlu1 %1263 }
 0x2c2   :  { %v1664_v43 = vcombine.low %v1262_v52, %v1264_v39  ;;  %v1694_v32 = vcombine.low %v1672_v13, %v1679_v21 }
 0x2c3   :  { %v14591_v53 = vpop.permute.xlu0 %1329 }
 0x2c4   :  { %v1686_v35 = vrot.slane %v1664_v43, %v14031_v10  ;;  %v1702_v27 = vrot.slane %v1694_v32, %v14031_v10 }
 0x2c5   :  { %v1296_v44 = vpop.permute.xlu1 %1295 }
 0x2c6   :  { %v1963_v13 = vcombine.low %v14587_v40, %v1296_v44 }
 0x2c7   :  { %v14593_v51 = vpop.permute.xlu0 %1333 }
 0x2c9   :  { %v1300_v36 = vpop.permute.xlu1 %1299 }
 0x2ca   :  { %v1964_v32 = vcombine.low %v14589_v31, %v1300_v36 }
 0x2cb   :  { %v1266_v56 = vpop.permute.xlu0 %1265 }
 0x2cc   :  { %v1986_v40 = vrot.slane %v1964_v32, %v14031_v10 }
 0x2cd   :  { %v14595_v41 = vpop.permute.xlu1 %1331 }
 0x2cf   :  { %v1270_v54 = vpop.permute.xlu0 %1269 }
 0x2d0   :  { %v1717_v49 = vrot.slane %v1270_v54, %v14031_v10 }
 0x2d1   :  { %v14598_v22 = vpop.permute.xlu1 %1335 }
 0x2d2   :  { %v14601_v25 = vrot.slane %v1717_v49, %v14031_v10 }
 0x2d3   :  { %v1302_v45 = vpop.permute.xlu0 %1301 }
 0x2d4   :  { %1727 = vrot.lane.b32.xlu0 %v14601_v25, %s13910_s0 }
 0x2d5   :  { %v1268_v34 = vpop.permute.xlu1 %1267 }
 0x2d6   :  { %v1665_v58 = vcombine.low %v1266_v56, %v1268_v34 }
 0x2d7   :  { %v14607_v30 = vpop.permute.xlu0 %1305 }
 0x2d8   :  { %v1693_v29 = vrot.slane %v1665_v58, %v14031_v10 }
 0x2d9   :  { %v1272_v37 = vpop.permute.xlu1 %1271 }
 0x2da   :  { %v1695_v15 = vcombine.low %v1686_v35, %v1693_v29  ;;  %v1962_v29 = vcombine.low %v14577_v7, %v14583_v48 }
 0x2db   :  { %v14611_v18 = vpop.permute.xlu0 %1337 }
 0x2dc   :  { %v1709_v19 = vrot.slane %v1695_v15, %v14031_v10  ;;  %v1972_v31 = vrot.slane %v1962_v29, %v14031_v10 }
 0x2dd   :  { %v1304_v16 = vpop.permute.xlu1 %1303 }
 0x2de   :  { %v14615_v59 = vcombine.low %v1702_v27, %v1709_v19  ;;  %v1965_v43 = vcombine.low %v1302_v45, %v1304_v16 }
 0x2df   :  { %v14617_v57 = vpop.permute.xlu0 %1341 }
 0x2e0   :  { %1725 = vrot.lane.b32.xlu1 %v14615_v59, %s13910_s0  ;;  %13297 = vmatprep.mubr.msk.f32.mxu0 %vm1428_vm3, %v14615_v59  ;;  %v1993_v19 = vrot.slane %v1965_v43, %v14031_v10 }
 0x2e1   :  { %v1308_v6 = vpop.permute.xlu1 %1307 }
 0x2e3   :  { %v1274_v60 = vpop.permute.xlu0 %1273 }
 0x2e4   :  { %v1812_v58 = vcombine.low %v1272_v37, %v1274_v60  ;;  %v1995_v60 = vcombine.low %v1986_v40, %v1993_v19 }
 0x2e5   :  { %v1340_v61 = vpop.permute.xlu1 %1339 }
 0x2e6   :  { %v1822_v45 = vrot.slane %v1812_v58, %v14031_v10 }
 0x2e7   :  { %v1278_v63 = vpop.permute.xlu0 %1277 }
 0x2e9   :  { %v14623_v0 = vpop.permute.xlu1 %1343 }
 0x2eb   :  { %v1310_v1 = vpop.permute.xlu0 %1309 }
 0x2ed   :  { %v1276_v2 = vpop.permute.xlu1 %1275 }
 0x2ee   :  { %v1813_v21 = vcombine.low %v1276_v2, %v1278_v63  ;;  %v1979_v63 = vrot.slane %v1963_v13, %v14031_v10  ;;  %v2112_v2 = vcombine.low %v1308_v6, %v1310_v1 }
 0x2ef   :  { %v1314_v46 = vpop.permute.xlu0 %1313 }
 0x2f0   :  { %v1829_v15 = vrot.slane %v1813_v21, %v14031_v10  ;;  %v2265_v21 = vcombine.low %v14611_v18, %v1340_v61 }
 0x2f1   :  { %v1280_v52 = vpop.permute.xlu1 %1279 }
 0x2f2   :  { %v1844_v36 = vcombine.low %v1822_v45, %v1829_v15 }
 0x2f3   :  { %v14625_v28 = vpop.permute.xlu0 %1345 }
 0x2f4   :  { %v1852_v18 = vrot.slane %v1844_v36, %v14031_v10 }
 0x2f5   :  { %v1312_v39 = vpop.permute.xlu1 %1311 }
 0x2f6   :  { %v2113_v44 = vcombine.low %v1312_v39, %v1314_v46  ;;  %v2263_v46 = vcombine.low %v14591_v53, %v14595_v41  ;;  %v2264_v39 = vcombine.low %v14593_v51, %v14598_v22  ;;  %v2262_v53 = vcombine.low %v14581_v47, %v14585_v38 }
 0x2f7   :  { %v14627_v56 = vpop.permute.xlu0 %1349  ;;  %v2122_v41 = vrot.slane %v2112_v2, %v14031_v10  ;;  %v2009_v22 = vrot.slane %v1995_v60, %v14031_v10 }
 0x2f8   :  { %v2129_v13 = vrot.slane %v2113_v44, %v14031_v10 }
 0x2f9   :  { %v1316_v54 = vpop.permute.xlu1 %1315 }
 0x2fa   :  { %v2144_v29 = vcombine.low %v2122_v41, %v2129_v13 }
 0x2fb   :  { %v1282_v55 = vpop.permute.xlu0 %1281 }
 0x2fc   :  { %v1814_v27 = vcombine.low %v1280_v52, %v1282_v55  ;;  %v1994_v55 = vcombine.low %v1972_v31, %v1979_v63  ;;  %v2152_v2 = vrot.slane %v2144_v29, %v14031_v10 }
 0x2fd   :  { %v14629_v49 = vpop.permute.xlu1 %1347 }
 0x2fe   :  { %v1836_v7 = vrot.slane %v1814_v27, %v14031_v10  ;;  %v2413_v15 = vcombine.low %v14629_v49, %v14627_v56  ;;  %v2002_v38 = vrot.slane %v1994_v55, %v14031_v10  ;;  %v2286_v27 = vrot.slane %v2264_v39, %v14031_v10 }
 0x2ff   :  { %v1286_v50 = vpop.permute.xlu0 %1285  ;;  %v2412_v49 = vcombine.low %v14623_v0, %v14625_v28 }
 0x300   :  { %v14681_v44 = vcombine.low %v2002_v38, %v2009_v22 }
 0x301   :  { %v14631_v34 = vpop.permute.xlu1 %1351  ;;  %v2422_v28 = vrot.slane %v2412_v49, %v14031_v10 }
 0x303   :  { %v1318_v35 = vpop.permute.xlu0 %1317 }
 0x304   :  { %v2114_v6 = vcombine.low %v1316_v54, %v1318_v35  ;;  %v2279_v35 = vrot.slane %v2263_v46, %v14031_v10 }
 0x305   :  { %v1284_v14 = vpop.permute.xlu1 %1283 }
 0x306   :  { %v1815_v16 = vcombine.low %v1284_v14, %v1286_v50  ;;  %v2017_v50 = vrot.slane %v14607_v30, %v14031_v10  ;;  %v2293_v30 = vrot.slane %v2265_v21, %v14031_v10  ;;  %v2136_v63 = vrot.slane %v2114_v6, %v14031_v10 }
 0x307   :  { %v1322_v37 = vpop.permute.xlu0 %1321 }
 0x308   :  { %v1843_v48 = vrot.slane %v1815_v16, %v14031_v10  ;;  %v14674_v19 = vrot.slane %v2017_v50, %v14031_v10  ;;  %v2272_v16 = vrot.slane %v2262_v53, %v14031_v10  ;;  %v2295_v56 = vcombine.low %v2286_v27, %v2293_v30 }
 0x309   :  { %v1288_v52 = vpop.permute.xlu1 %1287 }
 0x30a   :  { %v1845_v43 = vcombine.low %v1836_v7, %v1843_v48  ;;  %v1867_v14 = vrot.slane %v1288_v52, %v14031_v10  ;;  %v2294_v36 = vcombine.low %v2272_v16, %v2279_v35  ;;  %v2317_v7 = vrot.slane %v14617_v57, %v14031_v10 }
 0x30b   :  { %v1354_v58 = vpop.permute.xlu0 %1353  ;;  %v2429_v48 = vrot.slane %v2413_v15, %v14031_v10 }
 0x30c   :  { %v14655_v1 = vrot.slane %v1867_v14, %v14031_v10  ;;  %v1859_v61 = vrot.slane %v1845_v43, %v14031_v10  ;;  %v2414_v52 = vcombine.low %v14631_v34, %v1354_v58  ;;  %v2309_v43 = vrot.slane %v2295_v56, %v14031_v10 }
 0x30d   :  { %v1320_v51 = vpop.permute.xlu1 %1319  ;;  %v2302_v14 = vrot.slane %v2294_v36, %v14031_v10  ;;  %v14709_v46 = vrot.slane %v2317_v7, %v14031_v10  ;;  %v2444_v39 = vcombine.low %v2422_v28, %v2429_v48 }
 0x30e   :  { %v2115_v32 = vcombine.low %v1320_v51, %v1322_v37  ;;  %1877 = vrot.lane.b32.xlu0 %v14655_v1, %s13910_s0  ;;  %v14666_v54 = vcombine.low %v1852_v18, %v1859_v61  ;;  %v2436_v50 = vrot.slane %v2414_v52, %v14031_v10 }
 0x30f   :  { %v1358_v47 = vpop.permute.xlu0 %1357  ;;  %v14718_v61 = vcombine.low %v2302_v14, %v2309_v43  ;;  %v2452_v41 = vrot.slane %v2444_v39, %v14031_v10 }
 0x310   :  { %v2143_v45 = vrot.slane %v2115_v32, %v14031_v10  ;;  %1875 = vrot.lane.b32.xlu1 %v14666_v54, %s13910_s0 }
 0x311   :  { %v1324_v40 = vpop.permute.xlu1 %1323 }
 0x312   :  { %v2145_v37 = vcombine.low %v2136_v63, %v2143_v45  ;;  %v2167_v31 = vrot.slane %v1324_v40, %v14031_v10  ;;  %2027 = vrot.lane.b32.xlu0 %v14674_v19, %s13910_s0 }
 0x313   :  { %v1427_v60 = vpop.permute.xlu0 %1426 }
 0x314   :  { %v14694_v55 = vrot.slane %v2167_v31, %v14031_v10  ;;  %13279 = vmatprep.subr.msk.mxu1 %vm1428_vm3, %v1427_v60  ;;  %2025 = vrot.lane.b32.xlu1 %v14681_v44, %s13910_s0  ;;  %v2159_v0 = vrot.slane %v2145_v37, %v14031_v10 }
 0x315   :  { %13280 = vmatpush3.xpose.msk.msra.mxu1 %vm1428_vm3, %v1427_v60  ;;  %v1356_v57 = vpop.permute.xlu1 %1355 }
 0x316   :  { %v2415_v21 = vcombine.low %v1356_v57, %v1358_v47  ;;  %2177 = vrot.lane.b32.xlu0 %v14694_v55, %s13910_s0  ;;  %v14704_v34 = vcombine.low %v2152_v2, %v2159_v0 }
 0x317   :  { %v1578_v32 = vpop.permute.xlu0 %1577 }
 0x318   :  { %v2443_v13 = vrot.slane %v2415_v21, %v14031_v10  ;;  %2175 = vrot.lane.b32.xlu1 %v14704_v34, %s13910_s0 }
 0x319   :  { %v1360_v58 = vpop.permute.xlu1 %1359 }
 0x31a   :  { %v2445_v6 = vcombine.low %v2436_v50, %v2443_v13  ;;  %v2467_v18 = vrot.slane %v1360_v58, %v14031_v10  ;;  %2327 = vrot.lane.b32.xlu0 %v14709_v46, %s13910_s0 }
 0x31c   :  { %v14721_v53 = vrot.slane %v2467_v18, %v14031_v10  ;;  %2325 = vrot.lane.b32.xlu1 %v14718_v61, %s13910_s0  ;;  %v2459_v51 = vrot.slane %v2445_v6, %v14031_v10 }
 0x31d   :  { %v1425_v22 = vpop.permute.xlu1 %1424 }
 0x31e   :  { %2477 = vrot.lane.b32.xlu0 %v14721_v53, %s13910_s0  ;;  %13281 = vmatprep.subr.msk.mxu1 %vm1428_vm3, %v1425_v22  ;;  %v14730_v30 = vcombine.low %v2452_v41, %v2459_v51 }
 0x31f   :  { %13282 = vmatpush3.xpose.msk.msra.mxu1 %vm1428_vm3, %v1425_v22 }
 0x320   :  { %2475 = vrot.lane.b32.xlu1 %v14730_v30, %s13910_s0  ;;  %13286 = vmatprep.subr.msk.mxu1 %vm1428_vm3, %v1578_v32 }
 0x321   :  { %v1576_v35 = vpop.permute.xlu1 %1575 }
 0x322   :  { %2758 = vrot.lane.b32.xlu0 %v14555_v24, %s13911_s30  ;;  %13284 = vmatmul.mubr.msk.f32.vlgmr.msra.gmra.mxu1 %vm1428_vm3, %v14555_v24 }
 0x323   :  { %13287 = vmatpush3.xpose.msk.msra.mxu1 %vm1428_vm3, %v1578_v32  ;;  %13290 = vmatprep.mubr.msk.f32.mxu1 %vm1428_vm3, %v14575_v33 }
 0x324   :  { %2756 = vrot.lane.b32.xlu1 %v14495_v42, %s13911_s30  ;;  %13288 = vmatprep.subr.msk.mxu1 %vm1428_vm3, %v1576_v35 }
 0x326   :  { %2845 = vrot.lane.b32.xlu0 %v14575_v33, %s13911_s30 }
 0x327   :  { %13289 = vmatpush3.xpose.msk.msra.mxu1 %vm1428_vm3, %v1576_v35 }
 0x328   :  { %2847 = vrot.lane.b32.xlu1 %v14563_v23, %s13911_s30 }
 0x32a   :  { %3023 = vrot.lane.b32.xlu0 %v14655_v1, %s13911_s30  ;;  %13291 = vmatmul.mubr.msk.f32.vlgmr.msra.gmra.mxu1 %vm1428_vm3, %v14563_v23 }
 0x32b   :  { %13304 = vmatprep.mubr.msk.f32.mxu1 %vm1428_vm3, %v14666_v54 }
 0x32c   :  { %2935 = vrot.lane.b32.xlu1 %v14601_v25, %s13911_s30 }
 0x32e   :  { %3021 = vrot.lane.b32.xlu0 %v14666_v54, %s13911_s30 }
 0x330   :  { %2933 = vrot.lane.b32.xlu1 %v14615_v59, %s13911_s30 }
 0x334   :  { %3111 = vrot.lane.b32.xlu1 %v14674_v19, %s13911_s30 }
 0x338   :  { %3109 = vrot.lane.b32.xlu1 %v14681_v44, %s13911_s30 }
 0x346   :  { %v1728_v42 = vpop.permute.xlu0 %1727 }
 0x347   :  { %13293 = vmatprep.subr.msk.mxu0 %vm1428_vm3, %v1728_v42 }
 0x348   :  { %13294 = vmatpush3.xpose.msk.msra.mxu0 %vm1428_vm3, %v1728_v42 }
 0x352   :  { %v1726_v24 = vpop.permute.xlu1 %1725 }
 0x353   :  { %13295 = vmatprep.subr.msk.mxu0 %vm1428_vm3, %v1726_v24 }
 0x354   :  { %13296 = vmatpush3.xpose.msk.msra.mxu0 %vm1428_vm3, %v1726_v24 }
 0x357   :  { %13298 = vmatmul.mubr.msk.f32.vlgmr.msra.gmra.mxu0 %vm1428_vm3, %v14601_v25 }
 0x358   :  { %13311 = vmatprep.mubr.msk.f32.mxu0 %vm1428_vm3, %v14681_v44 }
 0x380   :  { %v1878_v23 = vpop.permute.xlu0 %1877 }
 0x381   :  { %13300 = vmatprep.subr.msk.mxu1 %vm1428_vm3, %v1878_v23 }
 0x382   :  { %13301 = vmatpush3.xpose.msk.msra.mxu1 %vm1428_vm3, %v1878_v23  ;;  %v1876_v33 = vpop.permute.xlu1 %1875 }
 0x383   :  { %13302 = vmatprep.subr.msk.mxu1 %vm1428_vm3, %v1876_v33 }
 0x384   :  { %v2028_v59 = vpop.permute.xlu0 %2027 }
 0x385   :  { %13307 = vmatprep.subr.msk.mxu0 %vm1428_vm3, %v2028_v59 }
 0x386   :  { %13303 = vmatpush3.xpose.msk.msra.mxu1 %vm1428_vm3, %v1876_v33  ;;  %13308 = vmatpush3.xpose.msk.msra.mxu0 %vm1428_vm3, %v2028_v59  ;;  %v2026_v54 = vpop.permute.xlu1 %2025 }
 0x387   :  { %13309 = vmatprep.subr.msk.mxu0 %vm1428_vm3, %v2026_v54 }
 0x388   :  { %v2178_v25 = vpop.permute.xlu0 %2177 }
 0x389   :  { %13305 = vmatmul.mubr.msk.f32.vlgmr.msra.gmra.mxu1 %vm1428_vm3, %v14655_v1  ;;  %13314 = vmatprep.subr.msk.mxu1 %vm1428_vm3, %v2178_v25 }
 0x38a   :  { %13310 = vmatpush3.xpose.msk.msra.mxu0 %vm1428_vm3, %v2026_v54  ;;  %13315 = vmatpush3.xpose.msk.msra.mxu1 %vm1428_vm3, %v2178_v25  ;;  %v2176_v29 = vpop.permute.xlu1 %2175 }
 0x38b   :  { %13318 = vmatprep.mubr.msk.f32.mxu1 %vm1428_vm3, %v14704_v34  ;;  %13316 = vmatprep.subr.msk.mxu1 %vm1428_vm3, %v2176_v29 }
 0x38c   :  { %v2328_v15 = vpop.permute.xlu0 %2327 }
 0x38d   :  { %13312 = vmatmul.mubr.msk.f32.vlgmr.msra.gmra.mxu0 %vm1428_vm3, %v14674_v19  ;;  %13321 = vmatprep.subr.msk.mxu0 %vm1428_vm3, %v2328_v15 }
 0x38e   :  { %13317 = vmatpush3.xpose.msk.msra.mxu1 %vm1428_vm3, %v2176_v29  ;;  %13322 = vmatpush3.xpose.msk.msra.mxu0 %vm1428_vm3, %v2328_v15  ;;  %v2326_v1 = vpop.permute.xlu1 %2325 }
 0x38f   :  { %13325 = vmatprep.mubr.msk.f32.mxu0 %vm1428_vm3, %v14718_v61  ;;  %13323 = vmatprep.subr.msk.mxu0 %vm1428_vm3, %v2326_v1 }
 0x390   :  { %v2478_v47 = vpop.permute.xlu0 %2477 }
 0x391   :  { %13319 = vmatmul.mubr.msk.f32.vlgmr.msra.gmra.mxu1 %vm1428_vm3, %v14694_v55  ;;  %13328 = vmatprep.subr.msk.mxu1 %vm1428_vm3, %v2478_v47 }
 0x392   :  { %13324 = vmatpush3.xpose.msk.msra.mxu0 %vm1428_vm3, %v2326_v1  ;;  %13329 = vmatpush3.xpose.msk.msra.mxu1 %vm1428_vm3, %v2478_v47  ;;  %v2476_v38 = vpop.permute.xlu1 %2475 }
 0x393   :  { %13332 = vmatprep.mubr.msk.f32.mxu1 %vm1428_vm3, %v14730_v30  ;;  %13330 = vmatprep.subr.msk.mxu1 %vm1428_vm3, %v2476_v38 }
 0x394   :  { %v2759_v27 = vpop.permute.xlu0 %2758 }
 0x395   :  { %13326 = vmatmul.mubr.msk.f32.vlgmr.msra.gmra.mxu0 %vm1428_vm3, %v14709_v46  ;;  %13335 = vmatprep.subr.msk.mxu0 %vm2767_vm4, %v2759_v27 }
 0x396   :  { %13331 = vmatpush3.xpose.msk.msra.mxu1 %vm1428_vm3, %v2476_v38  ;;  %13336 = vmatpush3.msk.msra.mxu0 %vm2767_vm4, %v2759_v27  ;;  %v2757_v19 = vpop.permute.xlu1 %2756 }
 0x397   :  { %13337 = vmatprep.subr.mxu0 %v2757_v19 }
 0x398   :  { %13338 = vmatpush3.msra.mxu0 %v2757_v19 }
 0x399   :  { %13333 = vmatmul.mubr.msk.f32.vlgmr.msra.gmra.mxu1 %vm1428_vm3, %v14721_v53 }
 0x39a   :  { %v14813_v63 = vpop.permute.xlu1 %2847 }
 0x39b   :  { %13342 = vmatprep.subr.msk.mxu0 %vm2767_vm4, %v14813_v63 }
 0x39e   :  { %v2936_v45 = vpop.permute.xlu1 %2935 }
 0x39f   :  { %13349 = vmatprep.subr.msk.mxu1 %vm2767_vm4, %v2936_v45 }
 0x3a0   :  { %13350 = vmatpush3.msk.msra.mxu1 %vm2767_vm4, %v2936_v45 }
 0x3a2   :  { %v2934_v16 = vpop.permute.xlu1 %2933 }
 0x3a3   :  { %13351 = vmatprep.subr.mxu1 %v2934_v16 }
 0x3a4   :  { %13352 = vmatpush3.msra.mxu1 %v2934_v16 }
 0x3a6   :  { %v14819_v40 = vpop.permute.xlu1 %3111 }
 0x3a7   :  { %13363 = vmatprep.subr.msk.mxu1 %vm2767_vm4, %v14819_v40 }
 0x3e2   :  { %v13285_v44 = vpop.f32.mrf.mxu1 }
 0x3e3   :  { %v14823_v56 = vmul.f32 0.35355338, %v13285_v44 }
 0x3e4   :  { %v1503_v49 = vpop.f32.mrf.mxu1 }
 0x3e5   :  { %v14825_v37 = vmul.f32 0.35355338, %v1503_v49  ;;  %v2583_v31 = vsel %vm2582_vm5, %v14823_v56, -inf }
 0x3e6   :  { %2584 = vmax.xlane.f32.xlu1 %v2583_v31 }
 0x3e7   :  { %v2579_v36 = vsel %vm2578_vm6, %v14825_v37, -inf }
 0x3e8   :  { %2580 = vmax.xlane.f32.xlu0 %v2579_v36 }
 0x3ea   :  { %v13292_v7 = vpop.f32.mrf.mxu1 }
 0x3eb   :  { %v14831_v48 = vmul.f32 0.35355338, %v13292_v7  ;;  %v14887_v7 = vpop.permute.xlu0 %2845 }
 0x3ec   :  { %v1653_v60 = vpop.f32.mrf.mxu1 }
 0x3ed   :  { %v14833_v2 = vmul.f32 0.35355338, %v1653_v60  ;;  %v2589_v52 = vsel %vm2582_vm5, %v14831_v48, -inf }
 0x3ee   :  { %2590 = vmax.xlane.f32.xlu0 %v2589_v52 }
 0x3ef   :  { %v2586_v0 = vsel %vm2578_vm6, %v14833_v2, -inf  ;;  %v14889_v60 = vpop.permute.xlu0 %3023 }
 0x3f2   :  { %2587 = vmax.xlane.f32.xlu0 %v2586_v0  ;;  %v14901_v0 = vpop.permute.xlu1 %3109 }
 0x3f3   :  { %v14895_v52 = vpop.permute.xlu0 %3021 }
 0x417   :  { %v13299_v57 = vpop.f32.mrf.mxu0 }
 0x418   :  { %v14839_v28 = vmul.f32 0.35355338, %v13299_v57 }
 0x419   :  { %v1803_v21 = vpop.f32.mrf.mxu0 }
 0x41a   :  { %v14841_v43 = vmul.f32 0.35355338, %v1803_v21  ;;  %v2595_v14 = vsel %vm2582_vm5, %v14839_v28, -inf }
 0x41b   :  { %2596 = vmax.xlane.f32.xlu1 %v2595_v14 }
 0x41c   :  { %v2592_v39 = vsel %vm2578_vm6, %v14841_v43, -inf }
 0x41d   :  { %2593 = vmax.xlane.f32.xlu0 %v2592_v39 }
 0x449   :  { %v13306_v50 = vpop.f32.mrf.mxu1 }
 0x44a   :  { %v14847_v13 = vmul.f32 0.35355338, %v13306_v50 }
 0x44b   :  { %v1953_v58 = vpop.f32.mrf.mxu1 }
 0x44c   :  { %v14849_v6 = vmul.f32 0.35355338, %v1953_v58  ;;  %v2601_v18 = vsel %vm2582_vm5, %v14847_v13, -inf }
 0x44d   :  { %2602 = vmax.xlane.f32.xlu0 %v2601_v18  ;;  %v13313_v41 = vpop.f32.mrf.mxu0 }
 0x44e   :  { %v14853_v51 = vmul.f32 0.35355338, %v13313_v41  ;;  %v2598_v35 = vsel %vm2578_vm6, %v14849_v6, -inf }
 0x44f   :  { %v2103_v22 = vpop.f32.mrf.mxu0 }
 0x450   :  { %v14855_v32 = vmul.f32 0.35355338, %v2103_v22  ;;  %v2607_v42 = vsel %vm2582_vm5, %v14853_v51, -inf }
 0x451   :  { %2599 = vmax.xlane.f32.xlu0 %v2598_v35  ;;  %2608 = vmax.xlane.f32.xlu1 %v2607_v42  ;;  %v13320_v24 = vpop.f32.mrf.mxu1 }
 0x452   :  { %v14861_v23 = vmul.f32 0.35355338, %v13320_v24  ;;  %v2604_v54 = vsel %vm2578_vm6, %v14855_v32, -inf }
 0x453   :  { %v2253_v33 = vpop.f32.mrf.mxu1 }
 0x454   :  { %v14863_v59 = vmul.f32 0.35355338, %v2253_v33  ;;  %v2613_v25 = vsel %vm2582_vm5, %v14861_v23, -inf }
 0x455   :  { %2605 = vmax.xlane.f32.xlu1 %v2604_v54  ;;  %2614 = vmax.xlane.f32.xlu0 %v2613_v25  ;;  %v13327_v29 = vpop.f32.mrf.mxu0 }
 0x456   :  { %v14869_v15 = vmul.f32 0.35355338, %v13327_v29  ;;  %v2610_v38 = vsel %vm2578_vm6, %v14863_v59, -inf }
 0x457   :  { %v2403_v1 = vpop.f32.mrf.mxu0 }
 0x458   :  { %v14871_v47 = vmul.f32 0.35355338, %v2403_v1  ;;  %v2619_v27 = vsel %vm2582_vm5, %v14869_v15, -inf }
 0x459   :  { %2611 = vmax.xlane.f32.xlu0 %v2610_v38  ;;  %2620 = vmax.xlane.f32.xlu1 %v2619_v27  ;;  %v13334_v19 = vpop.f32.mrf.mxu1 }
 0x45a   :  { %v14877_v16 = vmul.f32 0.35355338, %v13334_v19  ;;  %v2616_v49 = vsel %vm2578_vm6, %v14871_v47, -inf }
 0x45b   :  { %v2553_v45 = vpop.f32.mrf.mxu1 }
 0x45c   :  { %v14879_v44 = vmul.f32 0.35355338, %v2553_v45  ;;  %v2625_v36 = vsel %vm2582_vm5, %v14877_v16, -inf }
 0x45d   :  { %2617 = vmax.xlane.f32.xlu1 %v2616_v49 }
 0x45e   :  { %v2622_v31 = vsel %vm2578_vm6, %v14879_v44, -inf }
 0x45f   :  { %2623 = vmax.xlane.f32.xlu0 %v2622_v31 }
 0x461   :  { %2626 = vmax.xlane.f32.xlu1 %v2625_v36 }
 0x46f   :  { %v2585_v21 = vpop.xlane.xlu1 %2584 }
 0x471   :  { %v2581_v57 = vpop.xlane.xlu0 %2580 }
 0x472   :  { %3287 = vrot.lane.b32.xlu1 %v14709_v46, %s13911_s30  ;;  %v2628_v39 = vsub.f32 %v14825_v37, %v2581_v57  ;;  %v2629_v46 = vsub.f32 %v14823_v56, %v2585_v21 }
 0x474   :  { %v2644_v50 = vmul.f32 1.442695, %v2628_v39  ;;  %v2646_v18 = vmul.f32 1.442695, %v2629_v46 }
 0x475   :  { %3199 = vrot.lane.b32.xlu0 %v14694_v55, %s13911_s30 }
 0x476   :  { %3285 = vrot.lane.b32.xlu1 %v14718_v61, %s13911_s30  ;;  %13706 = vpow2.f32 %v2644_v50 }
 0x477   :  { %v2591_v14 = vpop.xlane.xlu0 %2590  ;;  %13708 = vpow2.f32 %v2646_v18 }
 0x478   :  { %v2631_v55 = vsub.f32 %v14831_v48, %v2591_v14 }
 0x479   :  { %3197 = vrot.lane.b32.xlu0 %v14704_v34, %s13911_s30 }
 0x47a   :  { %v2650_v41 = vmul.f32 1.442695, %v2631_v55 }
 0x47b   :  { %v2588_v58 = vpop.xlane.xlu0 %2587 }
 0x47c   :  { %v2630_v61 = vsub.f32 %v14833_v2, %v2588_v58  ;;  %13710 = vpow2.f32 %v2650_v41 }
 0x47e   :  { %v2648_v34 = vmul.f32 1.442695, %v2630_v61 }
 0x480   :  { %13712 = vpow2.f32 %v2648_v34 }
 0x483   :  { %v14907_v22 = vpop.eup %13706 }
 0x484   :  { %v14909_v35 = vpop.eup %13708  ;;  %v2676_v56 = vsel %vm2578_vm6, %v14907_v22, 0.0 }
 0x485   :  { %v2679_v48 = vsel %vm2582_vm5, %v14909_v35, 0.0 }
 0x489   :  { %v14913_v37 = vpop.eup %13710 }
 0x48a   :  { %v2685_v2 = vsel %vm2582_vm5, %v14913_v37, 0.0 }
 0x48d   :  { %v14919_v42 = vpop.eup %13712 }
 0x48e   :  { %v2682_v24 = vsel %vm2578_vm6, %v14919_v42, 0.0 }
 0x498   :  { %2677 = vadd.xlane.f32.xlu0 %v2676_v56 }
 0x49a   :  { %2680 = vadd.xlane.f32.xlu1 %v2679_v48 }
 0x49c   :  { %2686 = vadd.xlane.f32.xlu0 %v2685_v2 }
 0x4a0   :  { %2683 = vadd.xlane.f32.xlu0 %v2682_v24 }
 0x4a4   :  { %v2597_v33 = vpop.xlane.xlu1 %2596 }
 0x4a5   :  { %v2633_v54 = vsub.f32 %v14839_v28, %v2597_v33 }
 0x4a6   :  { %v2594_v25 = vpop.xlane.xlu0 %2593 }
 0x4a7   :  { %v2654_v29 = vmul.f32 1.442695, %v2633_v54  ;;  %v2632_v1 = vsub.f32 %v14841_v43, %v2594_v25 }
 0x4a9   :  { %13714 = vpow2.f32 %v2654_v29  ;;  %v2652_v38 = vmul.f32 1.442695, %v2632_v1 }
 0x4ab   :  { %13716 = vpow2.f32 %v2652_v38 }
 0x4b6   :  { %v14925_v27 = vpop.eup %13714 }
 0x4b7   :  { %v2691_v19 = vsel %vm2582_vm5, %v14925_v27, 0.0 }
 0x4b8   :  { %v14929_v45 = vpop.eup %13716  ;;  %2692 = vadd.xlane.f32.xlu1 %v2691_v19 }
 0x4b9   :  { %v2688_v49 = vsel %vm2578_vm6, %v14929_v45, 0.0 }
 0x4bc   :  { %2689 = vadd.xlane.f32.xlu1 %v2688_v49 }
 0x4d6   :  { %v2603_v28 = vpop.xlane.xlu0 %2602 }
 0x4d7   :  { %v2635_v31 = vsub.f32 %v14847_v13, %v2603_v28 }
 0x4d9   :  { %v2658_v36 = vmul.f32 1.442695, %v2635_v31 }
 0x4da   :  { %v2600_v43 = vpop.xlane.xlu0 %2599  ;;  %v2609_v57 = vpop.xlane.xlu1 %2608 }
 0x4db   :  { %13718 = vpow2.f32 %v2658_v36  ;;  %v2634_v21 = vsub.f32 %v14849_v6, %v2600_v43  ;;  %v2637_v14 = vsub.f32 %v14853_v51, %v2609_v57 }
 0x4dd   :  { %v2656_v39 = vmul.f32 1.442695, %v2634_v21  ;;  %v2662_v46 = vmul.f32 1.442695, %v2637_v14 }
 0x4de   :  { %v2615_v50 = vpop.xlane.xlu0 %2614  ;;  %v2606_v55 = vpop.xlane.xlu1 %2605 }
 0x4df   :  { %13720 = vpow2.f32 %v2656_v39  ;;  %v2639_v58 = vsub.f32 %v14861_v23, %v2615_v50  ;;  %v2636_v18 = vsub.f32 %v14855_v32, %v2606_v55 }
 0x4e0   :  { %13722 = vpow2.f32 %v2662_v46 }
 0x4e1   :  { %v2666_v41 = vmul.f32 1.442695, %v2639_v58  ;;  %v2660_v13 = vmul.f32 1.442695, %v2636_v18 }
 0x4e2   :  { %v2612_v61 = vpop.xlane.xlu0 %2611  ;;  %v2621_v34 = vpop.xlane.xlu1 %2620 }
 0x4e3   :  { %13724 = vpow2.f32 %v2666_v41  ;;  %v2638_v56 = vsub.f32 %v14863_v59, %v2612_v61  ;;  %v2641_v6 = vsub.f32 %v14869_v15, %v2621_v34 }
 0x4e4   :  { %13726 = vpow2.f32 %v2660_v13 }
 0x4e5   :  { %v2664_v51 = vmul.f32 1.442695, %v2638_v56  ;;  %v2670_v48 = vmul.f32 1.442695, %v2641_v6 }
 0x4e6   :  { %v2618_v2 = vpop.xlane.xlu1 %2617 }
 0x4e7   :  { %13728 = vpow2.f32 %v2664_v51  ;;  %v2640_v24 = vsub.f32 %v14871_v47, %v2618_v2 }
 0x4e8   :  { %v14941_v23 = vpop.eup %13718  ;;  %13730 = vpow2.f32 %v2670_v48  ;;  %v2624_v32 = vpop.xlane.xlu0 %2623 }
 0x4e9   :  { %v2668_v33 = vmul.f32 1.442695, %v2640_v24  ;;  %v2642_v54 = vsub.f32 %v14879_v44, %v2624_v32  ;;  %v2697_v25 = vsel %vm2582_vm5, %v14941_v23, 0.0 }
 0x4ea   :  { %2698 = vadd.xlane.f32.xlu0 %v2697_v25  ;;  %v2627_v59 = vpop.xlane.xlu1 %2626 }
 0x4eb   :  { %13732 = vpow2.f32 %v2668_v33  ;;  %v2672_v15 = vmul.f32 1.442695, %v2642_v54  ;;  %v2643_v29 = vsub.f32 %v14877_v16, %v2627_v59 }
 0x4ec   :  { %v14947_v1 = vpop.eup %13720  ;;  %v14987_v18 = vpop.permute.xlu0 %3199 }
 0x4ed   :  { %v14949_v38 = vpop.eup %13722  ;;  %13734 = vpow2.f32 %v2672_v15  ;;  %v2674_v47 = vmul.f32 1.442695, %v2643_v29  ;;  %v2694_v19 = vsel %vm2578_vm6, %v14947_v1, 0.0 }
 0x4ee   :  { %2695 = vadd.xlane.f32.xlu0 %v2694_v19  ;;  %v2703_v44 = vsel %vm2582_vm5, %v14949_v38, 0.0  ;;  %v14989_v41 = vpop.permute.xlu1 %3287 }
 0x4ef   :  { %13736 = vpow2.f32 %v2674_v47  ;;  %2704 = vadd.xlane.f32.xlu1 %v2703_v44 }
 0x4f0   :  { %v14955_v49 = vpop.eup %13724  ;;  %v14991_v13 = vpop.permute.xlu0 %3197 }
 0x4f1   :  { %v14957_v28 = vpop.eup %13726  ;;  %v2709_v16 = vsel %vm2582_vm5, %v14955_v49, 0.0 }
 0x4f2   :  { %2710 = vadd.xlane.f32.xlu0 %v2709_v16  ;;  %v2700_v31 = vsel %vm2578_vm6, %v14957_v28, 0.0  ;;  %v14993_v61 = vpop.permute.xlu1 %3285 }
 0x4f3   :  { %2701 = vadd.xlane.f32.xlu1 %v2700_v31 }
 0x4f4   :  { %v14963_v36 = vpop.eup %13728 }
 0x4f5   :  { %v14965_v43 = vpop.eup %13730  ;;  %v2706_v57 = vsel %vm2578_vm6, %v14963_v36, 0.0 }
 0x4f6   :  { %2707 = vadd.xlane.f32.xlu0 %v2706_v57  ;;  %v2715_v21 = vsel %vm2582_vm5, %v14965_v43, 0.0 }
 0x4f7   :  { %2716 = vadd.xlane.f32.xlu1 %v2715_v21 }
 0x4f8   :  { %v14971_v14 = vpop.eup %13732 }
 0x4f9   :  { %v2712_v39 = vsel %vm2578_vm6, %v14971_v14, 0.0 }
 0x4fa   :  { %v14975_v46 = vpop.eup %13734 }
 0x4fb   :  { %2713 = vadd.xlane.f32.xlu1 %v2712_v39  ;;  %v2718_v50 = vsel %vm2578_vm6, %v14975_v46, 0.0 }
 0x4fc   :  { %v14979_v55 = vpop.eup %13736  ;;  %2719 = vadd.xlane.f32.xlu0 %v2718_v50 }
 0x4fd   :  { %v2721_v58 = vsel %vm2582_vm5, %v14979_v55, 0.0 }
 0x4ff   :  { %2722 = vadd.xlane.f32.xlu1 %v2721_v58 }
 0x510   :  { %3373 = vrot.lane.b32.xlu1 %v14730_v30, %s13911_s30 }
 0x512   :  { %3375 = vrot.lane.b32.xlu0 %v14721_v53, %s13911_s30 }
 0x521   :  { %v2678_v34 = vpop.xlane.xlu0 %2677 }
 0x522   :  { %13738 = vrcp.f32 %v2678_v34 }
 0x523   :  { %v2681_v56 = vpop.xlane.xlu1 %2680 }
 0x524   :  { %13740 = vrcp.f32 %v2681_v56 }
 0x525   :  { %v2687_v6 = vpop.xlane.xlu0 %2686 }
 0x526   :  { %13742 = vrcp.f32 %v2687_v6 }
 0x529   :  { %v2684_v51 = vpop.xlane.xlu0 %2683 }
 0x52a   :  { %13744 = vrcp.f32 %v2684_v51 }
 0x52f   :  { %v13739_v30 = vpop.eup %13738 }
 0x530   :  { %v2740_v48 = vmul.f32 %v13739_v30, %v14907_v22 }
 0x531   :  { %v13741_v53 = vpop.eup %13740 }
 0x532   :  { %13339 = vmatprep.mubr.msk.f32.mxu0 %vm2578_vm6, %v2740_v48  ;;  %v2741_v2 = vmul.f32 %v13741_v53, %v14909_v35 }
 0x533   :  { %v13743_v24 = vpop.eup %13742 }
 0x534   :  { %13340 = vmatmul.mubr.msk.f32.vlgmr.msra.gmra.mxu0 %vm2578_vm6, %v2741_v2  ;;  %v2743_v33 = vmul.f32 %v13743_v24, %v14913_v37 }
 0x535   :  { %13343 = vmatpush3.msk.msra.mxu0 %vm2767_vm4, %v14813_v63 }
 0x536   :  { %13344 = vmatprep.subr.mxu0 %v14887_v7 }
 0x537   :  { %v13745_v32 = vpop.eup %13744  ;;  %13345 = vmatpush3.msra.mxu0 %v14887_v7 }
 0x538   :  { %13356 = vmatprep.subr.msk.mxu0 %vm2767_vm4, %v14889_v60  ;;  %v2742_v22 = vmul.f32 %v13745_v32, %v14919_v42 }
 0x53a   :  { %13346 = vmatprep.mubr.msk.f32.mxu0 %vm2578_vm6, %v2742_v22 }
 0x53b   :  { %13347 = vmatmul.mubr.msk.f32.vlgmr.msra.gmra.mxu0 %vm2578_vm6, %v2743_v33 }
 0x53c   :  { %13357 = vmatpush3.msk.msra.mxu0 %vm2767_vm4, %v14889_v60 }
 0x53d   :  { %13358 = vmatprep.subr.mxu0 %v14895_v52 }
 0x53e   :  { %13359 = vmatpush3.msra.mxu0 %v14895_v52 }
 0x53f   :  { %13370 = vmatprep.subr.msk.mxu0 %vm2767_vm4, %v14987_v18 }
 0x541   :  { %v2693_v63 = vpop.xlane.xlu1 %2692 }
 0x542   :  { %13746 = vrcp.f32 %v2693_v63 }
 0x545   :  { %v2690_v7 = vpop.xlane.xlu1 %2689 }
 0x546   :  { %13748 = vrcp.f32 %v2690_v7 }
 0x54f   :  { %v13747_v35 = vpop.eup %13746 }
 0x550   :  { %v2745_v54 = vmul.f32 %v13747_v35, %v14925_v27 }
 0x553   :  { %v13749_v37 = vpop.eup %13748 }
 0x554   :  { %v2744_v42 = vmul.f32 %v13749_v37, %v14929_v45 }
 0x556   :  { %13353 = vmatprep.mubr.msk.f32.mxu1 %vm2578_vm6, %v2744_v42 }
 0x557   :  { %13354 = vmatmul.mubr.msk.f32.vlgmr.msra.gmra.mxu1 %vm2578_vm6, %v2745_v54 }
 0x558   :  { %13364 = vmatpush3.msk.msra.mxu1 %vm2767_vm4, %v14819_v40 }
 0x559   :  { %13365 = vmatprep.subr.mxu1 %v14901_v0 }
 0x55a   :  { %13366 = vmatpush3.msra.mxu1 %v14901_v0 }
 0x55b   :  { %13377 = vmatprep.subr.msk.mxu1 %vm2767_vm4, %v14989_v41 }
 0x573   :  { %v2699_v60 = vpop.xlane.xlu0 %2698 }
 0x574   :  { %13750 = vrcp.f32 %v2699_v60 }
 0x577   :  { %v2696_v52 = vpop.xlane.xlu0 %2695 }
 0x578   :  { %13752 = vrcp.f32 %v2696_v52  ;;  %v2705_v45 = vpop.xlane.xlu1 %2704 }
 0x579   :  { %13754 = vrcp.f32 %v2705_v45 }
 0x57b   :  { %v2711_v27 = vpop.xlane.xlu0 %2710 }
 0x57c   :  { %v2702_v25 = vpop.xlane.xlu1 %2701 }
 0x57d   :  { %13756 = vrcp.f32 %v2702_v25 }
 0x57e   :  { %13758 = vrcp.f32 %v2711_v27 }
 0x57f   :  { %v2708_v59 = vpop.xlane.xlu0 %2707 }
 0x580   :  { %13760 = vrcp.f32 %v2708_v59  ;;  %v2717_v40 = vpop.xlane.xlu1 %2716 }
 0x581   :  { %v13751_v15 = vpop.eup %13750  ;;  %13762 = vrcp.f32 %v2717_v40 }
 0x582   :  { %v2747_v44 = vmul.f32 %v13751_v15, %v14941_v23 }
 0x584   :  { %v2714_v29 = vpop.xlane.xlu1 %2713 }
 0x585   :  { %v13753_v0 = vpop.eup %13752  ;;  %13764 = vrcp.f32 %v2714_v29  ;;  %v2720_v47 = vpop.xlane.xlu0 %2719 }
 0x586   :  { %13766 = vrcp.f32 %v2720_v47  ;;  %v2746_v19 = vmul.f32 %v13753_v0, %v14947_v1  ;;  %v13755_v31 = vpop.eup %13754 }
 0x587   :  { %v2749_v23 = vmul.f32 %v13755_v31, %v14949_v38 }
 0x588   :  { %v2723_v16 = vpop.xlane.xlu1 %2722  ;;  %13360 = vmatprep.mubr.msk.f32.mxu0 %vm2578_vm6, %v2746_v19 }
 0x589   :  { %13768 = vrcp.f32 %v2723_v16  ;;  %13361 = vmatmul.mubr.msk.f32.vlgmr.msra.gmra.mxu0 %vm2578_vm6, %v2747_v44  ;;  %v3376_v50 = vpop.permute.xlu0 %3375 }
 0x58a   :  { %v13757_v57 = vpop.eup %13756  ;;  %13371 = vmatpush3.msk.msra.mxu0 %vm2767_vm4, %v14987_v18 }
 0x58b   :  { %13372 = vmatprep.subr.mxu0 %v14991_v13  ;;  %v2748_v21 = vmul.f32 %v13757_v57, %v14957_v28  ;;  %v13759_v39 = vpop.eup %13758 }
 0x58c   :  { %13373 = vmatpush3.msra.mxu0 %v14991_v13  ;;  %v2751_v28 = vmul.f32 %v13759_v39, %v14955_v49  ;;  %v3374_v13 = vpop.permute.xlu1 %3373 }
 0x58d   :  { %v13761_v1 = vpop.eup %13760  ;;  %13367 = vmatprep.mubr.msk.f32.mxu1 %vm2578_vm6, %v2748_v21  ;;  %13384 = vmatprep.subr.msk.mxu0 %vm2767_vm4, %v3376_v50 }
 0x58e   :  { %13368 = vmatmul.mubr.msk.f32.vlgmr.msra.gmra.mxu1 %vm2578_vm6, %v2749_v23  ;;  %v2750_v58 = vmul.f32 %v13761_v1, %v14963_v36  ;;  %v13763_v18 = vpop.eup %13762 }
 0x58f   :  { %13378 = vmatpush3.msk.msra.mxu1 %vm2767_vm4, %v14989_v41  ;;  %v2753_v49 = vmul.f32 %v13763_v18, %v14965_v43 }
 0x590   :  { %13379 = vmatprep.subr.mxu1 %v14993_v61  ;;  %13374 = vmatprep.mubr.msk.f32.mxu0 %vm2578_vm6, %v2750_v58 }
 0x591   :  { %13380 = vmatpush3.msra.mxu1 %v14993_v61  ;;  %13375 = vmatmul.mubr.msk.f32.vlgmr.msra.gmra.mxu0 %vm2578_vm6, %v2751_v28 }
 0x592   :  { %v13765_v38 = vpop.eup %13764  ;;  %13385 = vmatpush3.msk.msra.mxu0 %vm2767_vm4, %v3376_v50  ;;  %13391 = vmatprep.subr.mxu1 %v18081_v62 }
 0x593   :  { %v13767_v36 = vpop.eup %13766  ;;  %13386 = vmatprep.subr.mxu0 %v3374_v13  ;;  %v2752_v41 = vmul.f32 %v13765_v38, %v14971_v14 }
 0x594   :  { %13387 = vmatpush3.msra.mxu0 %v3374_v13  ;;  %v2754_v34 = vmul.f32 %v13767_v36, %v14975_v46 }
 0x595   :  { %13381 = vmatprep.mubr.msk.f32.mxu1 %vm2578_vm6, %v2752_v41  ;;  %13408 = vmatprep.subr.mxu0 %v18081_v62 }
 0x596   :  { %v13769_v61 = vpop.eup %13768  ;;  %13382 = vmatmul.mubr.msk.f32.vlgmr.msra.gmra.mxu1 %vm2578_vm6, %v2753_v49  ;;  %13388 = vmatprep.mubr.msk.f32.mxu0 %vm2578_vm6, %v2754_v34 }
 0x597   :  { %v2755_v56 = vmul.f32 %v13769_v61, %v14979_v55  ;;  %13399 = vmatprep.mubr.msk.f32.mxu1 %vm13906_vm2, %v18081_v62 }
 0x599   :  { %13389 = vmatmul.mubr.msk.f32.vlgmr.msra.gmra.mxu0 %vm2578_vm6, %v2755_v56 }
 0x59a   :  { %13416 = vmatprep.mubr.msk.f32.mxu0 %vm13906_vm2, %v18081_v62 }
 0x5f4   :  { %v15074_v25 = vpop.f32.mrf.mxu0 }
 0x5f6   :  { %v15076_v59 = vpop.f32.mrf.mxu0 }
 0x5fb   :  { %v15078_v40 = vpop.f32.mrf.mxu0 }
 0x5fd   :  { %v15080_v15 = vpop.f32.mrf.mxu0 }
 0x617   :  { %v13355_v43 = vpop.f32.mrf.mxu1 }
 0x618   :  { %v3650_v0 = vrot.slane %v13355_v43, %v14031_v10 }
 0x619   :  { %v3012_v14 = vpop.f32.mrf.mxu1 }
 0x61a   :  { %v3595_v46 = vcombine.high %v3012_v14, %v3012_v14  ;;  %v3602_v6 = vrot.slane %v3012_v14, %v14031_v10  ;;  %v3657_v39 = vrot.slane %v3650_v0, %v14031_v10 }
 0x61c   :  { %v3609_v51 = vrot.slane %v3595_v46, %v14031_v10  ;;  %v3610_v30 = vcombine.high %v3602_v6, %v3602_v6  ;;  %v3618_v53 = vrot.slane %v3602_v6, %v14031_v10 }
 0x61e   :  { %v3611_v48 = vcombine.high %v3609_v51, %v3609_v51  ;;  %v3632_v55 = vrot.slane %v3610_v30, %v14031_v10  ;;  %v3625_v2 = vrot.slane %v3609_v51, %v14031_v10 }
 0x620   :  { %v3639_v24 = vrot.slane %v3611_v48, %v14031_v10  ;;  %v4097_v32 = vcombine.low %v3618_v53, %v3632_v55  ;;  %v12907_v22 = vcombine.high %v3618_v53, %v3632_v55 }
 0x622   :  { %v4099_v33 = vcombine.low %v3625_v2, %v3639_v24  ;;  %v12908_v63 = vcombine.high %v3625_v2, %v3639_v24  ;;  %v4107_v7 = vrot.slane %v4097_v32, %v14031_v10  ;;  %v4114_v35 = vrot.slane %v12907_v22, %v14031_v10 }
 0x624   :  { %v4121_v37 = vrot.slane %v4099_v33, %v14031_v10  ;;  %v4128_v42 = vrot.slane %v12908_v63, %v14031_v10  ;;  %v4129_v54 = vcombine.low %v4107_v7, %v4114_v35 }
 0x626   :  { %v4130_v60 = vcombine.low %v4121_v37, %v4128_v42  ;;  %v4137_v52 = vrot.slane %v4129_v54, %v14031_v10 }
 0x628   :  { %v4144_v45 = vrot.slane %v4130_v60, %v14031_v10 }
 0x62a   :  { %v4145_v27 = vcombine.low %v4137_v52, %v4144_v45 }
 0x62c   :  { %4210 = vrot.lane.b32.xlu0 %v4145_v27, %s18008_s20 }
 0x649   :  { %v13362_v29 = vpop.f32.mrf.mxu0 }
 0x64a   :  { %v3713_v50 = vrot.slane %v13362_v29, %v14031_v10 }
 0x64b   :  { %v3100_v47 = vpop.f32.mrf.mxu0 }
 0x64c   :  { %v3658_v19 = vcombine.high %v3100_v47, %v3100_v47  ;;  %v3665_v44 = vrot.slane %v3100_v47, %v14031_v10  ;;  %v15097_v51 = vrot.slane %v3713_v50, %v14031_v10 }
 0x64e   :  { %v3672_v16 = vrot.slane %v3658_v19, %v14031_v10  ;;  %v3673_v31 = vcombine.high %v3665_v44, %v3665_v44  ;;  %v3681_v57 = vrot.slane %v3665_v44, %v14031_v10  ;;  %v13369_v21 = vpop.f32.mrf.mxu1 }
 0x64f   :  { %v3780_v13 = vrot.slane %v13369_v21, %v14031_v10 }
 0x650   :  { %v3674_v23 = vcombine.high %v3672_v16, %v3672_v16  ;;  %v3688_v1 = vrot.slane %v3672_v16, %v14031_v10  ;;  %v3695_v58 = vrot.slane %v3673_v31, %v14031_v10  ;;  %v3703_v28 = vcombine.high %v3681_v57, %v3681_v57  ;;  %v3188_v18 = vpop.f32.mrf.mxu1 }
 0x651   :  { %v4146_v38 = vcombine.low %v3657_v39, %v3681_v57  ;;  %v3725_v36 = vcombine.high %v3188_v18, %v3188_v18  ;;  %v3732_v41 = vrot.slane %v3188_v18, %v14031_v10  ;;  %v13376_v49 = vpop.f32.mrf.mxu0  ;;  %v15105_v22 = vrot.slane %v3780_v13, %v14031_v10 }
 0x652   :  { %v15093_v34 = vrot.slane %v3674_v23, %v14031_v10  ;;  %v3704_v61 = vcombine.high %v3688_v1, %v3688_v1  ;;  %v3705_v56 = vcombine.high %v3695_v58, %v3695_v58  ;;  %v4147_v43 = vcombine.low %v3695_v58, %v3703_v28 }
 0x653   :  { %v3739_v14 = vrot.slane %v3725_v36, %v14031_v10  ;;  %v3740_v46 = vcombine.high %v3732_v41, %v3732_v41  ;;  %v3276_v6 = vpop.f32.mrf.mxu0  ;;  %v3748_v30 = vrot.slane %v3732_v41, %v14031_v10  ;;  %v4156_v24 = vrot.slane %v4146_v38, %v14031_v10 }
 0x654   :  { %v4148_v48 = vcombine.low %v3705_v56, %v3688_v1  ;;  %v4149_v53 = vcombine.low %v15093_v34, %v3704_v61  ;;  %v4163_v32 = vrot.slane %v4147_v43, %v14031_v10  ;;  %v3788_v33 = vcombine.high %v3276_v6, %v3276_v6 }
 0x655   :  { %v3741_v55 = vcombine.high %v3739_v14, %v3739_v14  ;;  %v3762_v2 = vrot.slane %v3740_v46, %v14031_v10  ;;  %v3755_v7 = vrot.slane %v3739_v14, %v14031_v10  ;;  %v3706_v54 = vcombine.high %v15093_v34, %v15093_v34 }
 0x656   :  { %v13383_v63 = vpop.f32.mrf.mxu1  ;;  %v3843_v60 = vrot.slane %v13376_v49, %v14031_v10  ;;  %v3795_v52 = vrot.slane %v3276_v6, %v14031_v10  ;;  %v3802_v45 = vrot.slane %v3788_v33, %v14031_v10  ;;  %v4170_v27 = vrot.slane %v4148_v48, %v14031_v10  ;;  %v4477_v6 = vld [vmem:[%s17961_s5 + $0x18] sm:$0xff] }
 0x657   :  { %v3769_v35 = vrot.slane %v3741_v55, %v14031_v10  ;;  %v4219_v37 = vcombine.low %v3748_v30, %v3762_v2  ;;  %v12909_v42 = vcombine.high %v3748_v30, %v3762_v2  ;;  %v4177_v29 = vrot.slane %v4149_v53, %v14031_v10  ;;  %13392 = vmatpush3.msra.mxu1 %v4477_v6 }
 0x658   :  { %v3803_v19 = vcombine.high %v3795_v52, %v3795_v52  ;;  %v3804_v44 = vcombine.high %v3802_v45, %v3802_v45  ;;  %v15117_v16 = vrot.slane %v3795_v52, %v14031_v10  ;;  %v3818_v31 = vrot.slane %v3802_v45, %v14031_v10  ;;  %v3364_v57 = vpop.f32.mrf.mxu1  ;;  %13393 = vmatprep.subr.mxu1 %v18081_v62 }
 0x659   :  { %v4221_v0 = vcombine.low %v3755_v7, %v3769_v35  ;;  %v12910_v47 = vcombine.high %v3755_v7, %v3769_v35  ;;  %v15120_v21 = vpop.f32.mrf.mxu0  ;;  %v15122_v39 = vcombine.low %v4156_v24, %v4163_v32  ;;  %v4229_v50 = vrot.slane %v4219_v37, %v14031_v10 }
 0x65a   :  { %v4236_v23 = vrot.slane %v12909_v42, %v14031_v10  ;;  %v3910_v1 = vrot.slane %v13383_v63, %v14031_v10  ;;  %v3825_v58 = vrot.slane %v3803_v19, %v14031_v10  ;;  %v15129_v28 = vrot.slane %v3804_v44, %v14031_v10 }
 0x65b   :  { %v3833_v18 = vcombine.high %v15117_v16, %v15117_v16  ;;  %v3834_v38 = vcombine.high %v3818_v31, %v3818_v31  ;;  %v15134_v13 = vrot.slane %v3843_v60, %v14031_v10  ;;  %v3855_v36 = vcombine.high %v3364_v57, %v3364_v57  ;;  %v3452_v46 = vpop.f32.mrf.mxu0 }
 0x65c   :  { %v3862_v41 = vrot.slane %v3364_v57, %v14031_v10  ;;  %v15137_v49 = vcombine.low %v4170_v27, %v4177_v29  ;;  %v4243_v61 = vrot.slane %v4221_v0, %v14031_v10  ;;  %v4250_v56 = vrot.slane %v12910_v47, %v14031_v10  ;;  %v4475_v27 = vld [vmem:[%s17961_s5 + $0x8] sm:$0xff] }
 0x65d   :  { %v3835_v43 = vcombine.high %v3825_v58, %v3825_v58  ;;  %v15142_v14 = vcombine.low %v15129_v28, %v3834_v38  ;;  %v4251_v30 = vcombine.low %v4229_v50, %v4236_v23  ;;  %v3917_v48 = vrot.slane %v3910_v1, %v14031_v10  ;;  %v4474_v50 = vld [vmem:[%s17961_s5] sm:$0xff] }
 0x65e   :  { %v3869_v53 = vrot.slane %v3855_v36, %v14031_v10  ;;  %v3870_v55 = vcombine.high %v3862_v41, %v3862_v41  ;;  %v3836_v2 = vcombine.high %v15129_v28, %v15129_v28  ;;  %v4268_v24 = vcombine.low %v15105_v22, %v15117_v16  ;;  %v4476_v22 = vld [vmem:[%s17961_s5 + $0x10] sm:$0xff] }
 0x65f   :  { %v15153_v32 = vcombine.low %v3825_v58, %v3833_v18  ;;  %v4270_v33 = vcombine.low %v3835_v43, %v3818_v31  ;;  %v3878_v7 = vrot.slane %v3862_v41, %v14031_v10  ;;  %v3918_v37 = vcombine.high %v3452_v46, %v3452_v46  ;;  %13394 = vmatpush3.msra.mxu1 %v4476_v22 }
 0x660   :  { %v3871_v63 = vcombine.high %v3869_v53, %v3869_v53  ;;  %v3892_v35 = vrot.slane %v3870_v55, %v14031_v10  ;;  %v4299_v42 = vrot.slane %v15142_v14, %v14031_v10  ;;  %v3885_v60 = vrot.slane %v3869_v53, %v14031_v10  ;;  %13395 = vmatprep.subr.mxu1 %v18081_v62 }
 0x661   :  { %v3925_v52 = vrot.slane %v3452_v46, %v14031_v10  ;;  %v4252_v45 = vcombine.low %v4243_v61, %v4250_v56  ;;  %v3932_v19 = vrot.slane %v3918_v37, %v14031_v10  ;;  %v4292_v44 = vrot.slane %v4270_v33, %v14031_v10  ;;  %13396 = vmatpush3.msra.mxu1 %v4475_v27 }
 0x662   :  { %v3899_v29 = vrot.slane %v3871_v63, %v14031_v10  ;;  %v4341_v0 = vcombine.low %v3878_v7, %v3892_v35  ;;  %v12911_v47 = vcombine.high %v3878_v7, %v3892_v35  ;;  %13397 = vmatprep.subr.mxu1 %v18081_v62  ;;  %v4259_v46 = vrot.slane %v4251_v30, %v14031_v10 }
 0x663   :  { %v3933_v16 = vcombine.high %v3925_v52, %v3925_v52  ;;  %v3941_v31 = vrot.slane %v3925_v52, %v14031_v10  ;;  %v4266_v57 = vrot.slane %v4252_v45, %v14031_v10  ;;  %v3934_v38 = vcombine.high %v3932_v19, %v3932_v19  ;;  %13398 = vmatpush3.msra.mxu1 %v4474_v50 }
 0x664   :  { %v4343_v23 = vcombine.low %v3885_v60, %v3899_v29  ;;  %v12912_v1 = vcombine.high %v3885_v60, %v3899_v29  ;;  %v4351_v58 = vrot.slane %v4341_v0, %v14031_v10  ;;  %v4358_v18 = vrot.slane %v12911_v47, %v14031_v10  ;;  %13425 = vmatprep.subr.mxu1 %v18081_v62 }
 0x665   :  { %v3948_v36 = vrot.slane %v3932_v19, %v14031_v10  ;;  %v3955_v41 = vrot.slane %v3933_v16, %v14031_v10  ;;  %v3963_v61 = vcombine.high %v3941_v31, %v3941_v31  ;;  %v4390_v14 = vcombine.low %v3917_v48, %v3941_v31 }
 0x666   :  { %v4365_v56 = vrot.slane %v4343_v23, %v14031_v10  ;;  %v4372_v43 = vrot.slane %v12912_v1, %v14031_v10  ;;  %v3962_v6 = vrot.slane %v3934_v38, %v14031_v10  ;;  %v4285_v63 = vrot.slane %v15153_v32, %v14031_v10 }
 0x667   :  { %v3964_v53 = vcombine.high %v3948_v36, %v3948_v36  ;;  %v3965_v55 = vcombine.high %v3955_v41, %v3955_v41  ;;  %v4391_v33 = vcombine.low %v3955_v41, %v3963_v61  ;;  %v4373_v7 = vcombine.low %v4351_v58, %v4358_v18 }
 0x668   :  { %v4267_v35 = vcombine.low %v4259_v46, %v4266_v57  ;;  %v4193_v37 = vrot.slane %v15137_v49, %v14031_v10  ;;  %v4400_v30 = vrot.slane %v4390_v14, %v14031_v10  ;;  %v4278_v45 = vrot.slane %v4268_v24, %v14031_v10 }
 0x669   :  { %v4392_v60 = vcombine.low %v3965_v55, %v3948_v36  ;;  %v4393_v48 = vcombine.low %v3962_v6, %v3964_v53  ;;  %v4407_v52 = vrot.slane %v4391_v33, %v14031_v10  ;;  %v4186_v22 = vrot.slane %v15122_v39, %v14031_v10 }
 0x66a   :  { %4332 = vrot.lane.b32.xlu1 %v4267_v35, %s18006_s1  ;;  %v4374_v32 = vcombine.low %v4365_v56, %v4372_v43  ;;  %v4301_v27 = vcombine.low %v4292_v44, %v4299_v42  ;;  %v3973_v29 = vrot.slane %v15120_v21, %v14031_v10  ;;  %v4300_v19 = vcombine.low %v4278_v45, %v4285_v63 }
 0x66b   :  { %v4414_v49 = vrot.slane %v4392_v60, %v14031_v10  ;;  %v4421_v0 = vrot.slane %v4393_v48, %v14031_v10  ;;  %v4422_v47 = vcombine.low %v4400_v30, %v4407_v52  ;;  %v4194_v16 = vcombine.low %v4186_v22, %v4193_v37 }
 0x66c   :  { %v4381_v24 = vrot.slane %v4373_v7, %v14031_v10  ;;  %v4388_v31 = vrot.slane %v4374_v32, %v14031_v10  ;;  %v4317_v39 = vcombine.low %v3836_v2, %v15134_v13  ;;  %v3966_v42 = vcombine.high %v3962_v6, %v3962_v6 }
 0x66d   :  { %v4423_v57 = vcombine.low %v4414_v49, %v4421_v0  ;;  %v4315_v44 = vrot.slane %v4301_v27, %v14031_v10  ;;  %v4195_v50 = vcombine.low %v3706_v54, %v15097_v51  ;;  %v4430_v23 = vrot.slane %v4422_v47, %v14031_v10 }
 0x66e   :  { %4212 = vrot.lane.b32.xlu1 %v4194_v16, %s18008_s20  ;;  %v4389_v21 = vcombine.low %v4381_v24, %v4388_v31  ;;  %v3980_v58 = vrot.slane %v3973_v29, %v14031_v10  ;;  %v4308_v28 = vrot.slane %v4300_v19, %v14031_v10  ;;  %v4324_v2 = vrot.slane %v4317_v39, %v14031_v10 }
 0x66f   :  { %v4437_v1 = vrot.slane %v4423_v57, %v14031_v10  ;;  %v4202_v38 = vrot.slane %v4195_v50, %v14031_v10  ;;  %v3465_v61 = vcombine.high %v15076_v59, %v15076_v59  ;;  %v3528_v43 = vcombine.high %v15080_v15, %v15080_v15 }
 0x670   :  { %4454 = vrot.lane.b32.xlu0 %v4389_v21, %s18004_s22  ;;  %v4316_v18 = vcombine.low %v4308_v28, %v4315_v44  ;;  %v4439_v36 = vcombine.low %v3966_v42, %v3980_v58  ;;  %v4331_v34 = vrot.slane %v4324_v2, %v14031_v10  ;;  %v3535_v14 = vrot.slane %v15080_v15, %v14031_v10 }
 0x671   :  { %v4438_v13 = vcombine.low %v4430_v23, %v4437_v1  ;;  %v4209_v51 = vrot.slane %v4202_v38, %v14031_v10  ;;  %v3479_v56 = vrot.slane %v3465_v61, %v14031_v10  ;;  %v3472_v46 = vrot.slane %v15076_v59, %v14031_v10 }
 0x672   :  { %v4446_v54 = vrot.slane %v4439_v36, %v14031_v10  ;;  %v3542_v53 = vrot.slane %v3528_v43, %v14031_v10  ;;  %v3543_v55 = vcombine.high %v3535_v14, %v3535_v14  ;;  %v3551_v15 = vrot.slane %v3535_v14, %v14031_v10 }
 0x673   :  { %4456 = vrot.lane.b32.xlu1 %v4438_v13, %s18004_s22  ;;  %v3481_v6 = vcombine.high %v3479_v56, %v3479_v56  ;;  %v3480_v33 = vcombine.high %v3472_v46, %v3472_v46  ;;  %v3495_v60 = vrot.slane %v3479_v56, %v14031_v10  ;;  %v3488_v59 = vrot.slane %v3472_v46, %v14031_v10 }
 0x674   :  { %4334 = vrot.lane.b32.xlu0 %v4316_v18, %s18006_s1  ;;  %v4453_v41 = vrot.slane %v4446_v54, %v14031_v10  ;;  %v3544_v7 = vcombine.high %v3542_v53, %v3542_v53  ;;  %v3558_v35 = vrot.slane %v3542_v53, %v14031_v10  ;;  %v3565_v37 = vrot.slane %v3543_v55, %v14031_v10 }
 0x675   :  { %v3509_v63 = vrot.slane %v3481_v6, %v14031_v10  ;;  %v3502_v48 = vrot.slane %v3480_v33, %v14031_v10  ;;  %v3520_v49 = vrot.slane %v15074_v25, %v14031_v10  ;;  %v3573_v0 = vcombine.high %v3551_v15, %v3551_v15 }
 0x676   :  { %v3572_v45 = vrot.slane %v3544_v7, %v14031_v10  ;;  %v3574_v22 = vcombine.high %v3558_v35, %v3558_v35  ;;  %v3575_v32 = vcombine.high %v3565_v37, %v3565_v37  ;;  %v3583_v58 = vrot.slane %v15078_v40, %v14031_v10 }
 0x677   :  { %4336 = vrot.lane.b32.xlu1 %v4331_v34, %s18006_s1  ;;  %v3983_v30 = vcombine.low %v3495_v60, %v3509_v63  ;;  %v12906_v52 = vcombine.high %v3495_v60, %v3509_v63  ;;  %v3981_v27 = vcombine.low %v3488_v59, %v3502_v48  ;;  %v12905_v29 = vcombine.high %v3488_v59, %v3502_v48 }
 0x678   :  { %4214 = vrot.lane.b32.xlu0 %v4209_v51, %s18008_s20  ;;  %v4032_v16 = vcombine.low %v3575_v32, %v3558_v35  ;;  %v4033_v24 = vcombine.low %v3572_v45, %v3574_v22  ;;  %v3527_v39 = vrot.slane %v3520_v49, %v14031_v10  ;;  %v4031_v42 = vcombine.low %v3565_v37, %v3573_v0  ;;  %v12913_v32 = vld [vmem:[%s17962_s6] ss:$0 sm:$0xff] }
 0x679   :  { %v4005_v47 = vrot.slane %v3983_v30, %v14031_v10  ;;  %v4012_v19 = vrot.slane %v12906_v52, %v14031_v10  ;;  %v3991_v31 = vrot.slane %v3981_v27, %v14031_v10  ;;  %v3998_v57 = vrot.slane %v12905_v29, %v14031_v10 }
 0x67a   :  { %v4030_v44 = vcombine.low %v3527_v39, %v3551_v15  ;;  %v4054_v50 = vrot.slane %v4032_v16, %v14031_v10  ;;  %v4061_v25 = vrot.slane %v4033_v24, %v14031_v10  ;;  %v4047_v1 = vrot.slane %v4031_v42, %v14031_v10 }
 0x67b   :  { %v4014_v21 = vcombine.low %v4005_v47, %v4012_v19  ;;  %v4013_v23 = vcombine.low %v3991_v31, %v3998_v57  ;;  %v3576_v18 = vcombine.high %v3572_v45, %v3572_v45  ;;  %v3590_v54 = vrot.slane %v3583_v58, %v14031_v10 }
 0x67c   :  { %4458 = vrot.lane.b32.xlu0 %v4453_v41, %s18004_s22  ;;  %v4040_v13 = vrot.slane %v4030_v44, %v14031_v10  ;;  %v4063_v2 = vcombine.low %v4054_v50, %v4061_v25 }
 0x67d   :  { %v4028_v28 = vrot.slane %v4014_v21, %v14031_v10  ;;  %v4021_v38 = vrot.slane %v4013_v23, %v14031_v10  ;;  %v4079_v56 = vcombine.low %v3576_v18, %v3590_v54  ;;  %v18086_v54 = vld [vmem:[#allocation20_spill] sm:$0xff] }
 0x67e   :  { %v4062_v34 = vcombine.low %v4040_v13, %v4047_v1  ;;  %v4077_v61 = vrot.slane %v4063_v2, %v14031_v10 }
 0x67f   :  { %v4029_v41 = vcombine.low %v4021_v38, %v4028_v28  ;;  %v4086_v33 = vrot.slane %v4079_v56, %v14031_v10  ;;  %v18084_v38 = vld [vmem:[#allocation7_spill] sm:$0xff] }
 0x680   :  { %v4070_v14 = vrot.slane %v4062_v34, %v14031_v10  ;;  %v18090_v56 = vld [vmem:[#allocation19_spill] sm:$0xff] }
 0x681   :  { %v4093_v48 = vrot.slane %v4086_v33, %v14031_v10 }
 0x682   :  { %v4078_v55 = vcombine.low %v4070_v14, %v4077_v61  ;;  %v18088_v61 = vld [vmem:[#allocation10_spill] sm:$0xff] }
 0x69e   :  { %v4211_v51 = vpop.permute.xlu0 %4210 }
 0x69f   :  { %v4463_v40 = vsel %vm1428_vm3, %v4029_v41, %v4211_v51 }
 0x6dc   :  { %v4333_v36 = vpop.permute.xlu1 %4332 }
 0x6dd   :  { %v4467_v43 = vsel %vm4466_vm7, %v4463_v40, %v4333_v36 }
 0x6e0   :  { %v4213_v6 = vpop.permute.xlu1 %4212 }
 0x6e1   :  { %v4464_v63 = vsel %vm1428_vm3, %v4078_v55, %v4213_v6 }
 0x6e2   :  { %v4455_v46 = vpop.permute.xlu0 %4454 }
 0x6e3   :  { %v4471_v53 = vsel %vm4470_vm8, %v4467_v43, %v4455_v46 }
 0x6e4   :  { %13400 = vmatmul.mubr.msk.f32.vlgmr.msra.gmra.mxu1 %vm335_vm0, %v4471_v53  ;;  %v18092_v53 = vld [vmem:[#allocation21_spill] sm:$0xff] }
 0x6e5   :  { %13402 = vmatprep.mubr.msk.f32.mxu1 %vm13906_vm2, %v18081_v62  ;;  %v4457_v35 = vpop.permute.xlu1 %4456 }
 0x6e6   :  { %v4335_v7 = vpop.permute.xlu0 %4334 }
 0x6e7   :  { %v4468_v37 = vsel %vm4466_vm7, %v4464_v63, %v4335_v7 }
 0x6e8   :  { %v4472_v60 = vsel %vm4470_vm8, %v4468_v37, %v4457_v35 }
 0x6e9   :  { %13403 = vmatmul.mubr.msk.f32.gmra.mxu1 %vm335_vm0, %v4472_v60  ;;  %v4337_v30 = vpop.permute.xlu1 %4336 }
 0x6ea   :  { %v4215_v15 = vpop.permute.xlu0 %4214  ;;  %13405 = vmatprep.mubr.msk.f32.mxu1 %vm13906_vm2, %v18081_v62 }
 0x6eb   :  { %v4465_v59 = vsel %vm1428_vm3, %v4093_v48, %v4215_v15  ;;  %v18094_v48 = vld [vmem:[#allocation6_spill] sm:$0xff] }
 0x6ec   :  { %v4469_v45 = vsel %vm4466_vm7, %v4465_v59, %v4337_v30 }
 0x6ee   :  { %v4459_v52 = vpop.permute.xlu0 %4458 }
 0x6ef   :  { %v4473_v22 = vsel %vm4470_vm8, %v4469_v45, %v4459_v52  ;;  %v18096_v52 = vld [vmem:[#allocation8_spill] sm:$0xff] }
 0x6f0   :  { %13406 = vmatmul.mubr.msk.f32.gmra.mxu1 %vm335_vm0, %v4473_v22  ;;  %v18098_v22 = vld [vmem:[#allocation16_spill] sm:$0xff] }
 0x6f1   :  { %13457 = vmatprep.mubr.msk.f32.mxu1 %vm13906_vm2, %v18081_v62 }
 0x7a4   :  { %v4560_v27 = vpop.f32.mrf.mxu1 }
 0x7a5   :  { %v4561_v29 = vadd.f32 %v12913_v32, %v4560_v27 }
 0x7a6   :  { %v13401_v49 = vpop.f32.mrf.mxu1 }
 0x7a7   :  { %v4577_v0 = vcombine.high %v4561_v29, %v4561_v29  ;;  %v4584_v47 = vrot.slane %v4561_v29, %v14031_v10  ;;  %v18100_v49 = vld [vmem:[#allocation12_spill] sm:$0xff] }
 0x7a9   :  { %v4591_v19 = vrot.slane %v4577_v0, %v14031_v10  ;;  %v4592_v16 = vcombine.high %v4584_v47, %v4584_v47  ;;  %v4600_v24 = vrot.slane %v4584_v47, %v14031_v10  ;;  %v4565_v31 = vpop.f32.mrf.mxu1  ;;  %v18102_v47 = vld [vmem:[#allocation9_spill] sm:$0xff] }
 0x7aa   :  { %v4566_v57 = vadd.f32 %v12913_v32, %v4565_v31  ;;  %v18106_v31 = vld [vmem:[#allocation14_spill] sm:$0xff] }
 0x7ab   :  { %v4593_v39 = vcombine.high %v4591_v19, %v4591_v19  ;;  %v4607_v42 = vrot.slane %v4591_v19, %v14031_v10  ;;  %v4614_v21 = vrot.slane %v4592_v16, %v14031_v10  ;;  %v4622_v44 = vcombine.high %v4600_v24, %v4600_v24  ;;  %v13404_v50 = vpop.f32.mrf.mxu1  ;;  %v18104_v16 = vld [vmem:[#allocation13_spill] sm:$0xff] }
 0x7ac   :  { %v15294_v25 = vadd.f32 %v4600_v24, %v14047_v20  ;;  %v4626_v23 = vcombine.high %v4566_v57, %v4566_v57  ;;  %v4633_v1 = vrot.slane %v4566_v57, %v14031_v10 }
 0x7ad   :  { %v4621_v58 = vrot.slane %v4593_v39, %v14031_v10  ;;  %v4623_v28 = vcombine.high %v4607_v42, %v4607_v42  ;;  %v4624_v13 = vcombine.high %v4614_v21, %v4614_v21  ;;  %v15299_v2 = vadd.f32 %v4614_v21, %v14059_v26 }
 0x7ae   :  { %18082 = vst [vmem:[#allocation22_spill] sm:$0xff] %v15294_v25  ;;  %v15302_v18 = vadd.f32 %v4622_v44, %v14150_v17  ;;  %v15305_v36 = vadd.f32 %v4607_v42, %v18084_v38  ;;  %v4640_v34 = vrot.slane %v4626_v23, %v14031_v10  ;;  %v4641_v20 = vcombine.high %v4633_v1, %v4633_v1  ;;  %v18108_v44 = vld [vmem:[#allocation15_spill] sm:$0xff] }
 0x7af   :  { %v4625_v51 = vcombine.high %v4621_v58, %v4621_v58  ;;  %v15309_v41 = vadd.f32 %v4624_v13, %v18086_v54  ;;  %v15312_v40 = vadd.f32 %v4621_v58, %v18088_v61  ;;  %v15315_v43 = vadd.f32 %v4623_v28, %v18090_v56  ;;  %v18110_v13 = vld [vmem:[#allocation17_spill] sm:$0xff] }
 0x7b0   :  { %18083 = vst [vmem:[#allocation23_spill] sm:$0xff] %v15302_v18  ;;  %18085 = vst [vmem:[#allocation7_spill] sm:$0xff] %v15305_v36  ;;  %v4753_v26 = vcombine.low %v15294_v25, %v15299_v2  ;;  %v4642_v17 = vcombine.high %v4640_v34, %v4640_v34  ;;  %v4649_v14 = vrot.slane %v4633_v1, %v14031_v10  ;;  %v4570_v6 = vpop.f32.mrf.mxu1 }
 0x7b1   :  { %18087 = vst [vmem:[#allocation20_spill] sm:$0xff] %v15309_v41  ;;  %18089 = vst [vmem:[#allocation10_spill] sm:$0xff] %v15312_v40  ;;  %v4656_v46 = vrot.slane %v4640_v34, %v14031_v10  ;;  %v15322_v55 = vadd.f32 %v4625_v51, %v18092_v53  ;;  %v4663_v33 = vrot.slane %v4641_v20, %v14031_v10 }
 0x7b2   :  { %18091 = vst [vmem:[#allocation19_spill] sm:$0xff] %v15315_v43  ;;  %v4571_v63 = vadd.f32 %v12913_v32, %v4570_v6  ;;  %v4754_v7 = vcombine.low %v15302_v18, %v15309_v41  ;;  %v4670_v35 = vrot.slane %v4642_v17, %v14031_v10  ;;  %v4671_v37 = vcombine.high %v4649_v14, %v4649_v14  ;;  %v13407_v59 = vpop.f32.mrf.mxu1 }
 0x7b3   :  { %18093 = vst [vmem:[#allocation21_spill] sm:$0xff] %v15322_v55  ;;  %v4672_v60 = vcombine.high %v4656_v46, %v4656_v46  ;;  %v15329_v15 = vadd.f32 %v4649_v14, %v18094_v48  ;;  %v4673_v30 = vcombine.high %v4663_v33, %v4663_v33  ;;  %v15332_v45 = vadd.f32 %v4663_v33, %v18096_v52 }
 0x7b4   :  { %v15335_v27 = vadd.f32 %v4656_v46, %v18098_v22  ;;  %v4681_v32 = vrot.slane %v4571_v63, %v14031_v10  ;;  %v4674_v29 = vcombine.high %v4670_v35, %v4670_v35  ;;  %v15339_v0 = vadd.f32 %v4671_v37, %v18100_v49 }
 0x7b5   :  { %18095 = vst [vmem:[#allocation6_spill] sm:$0xff] %v15329_v15  ;;  %18097 = vst [vmem:[#allocation8_spill] sm:$0xff] %v15332_v45  ;;  %v15342_v19 = vadd.f32 %v4670_v35, %v18102_v47  ;;  %v15345_v24 = vadd.f32 %v4672_v60, %v18104_v16  ;;  %v15348_v57 = vadd.f32 %v4673_v30, %v18106_v31 }
 0x7b6   :  { %18099 = vst [vmem:[#allocation16_spill] sm:$0xff] %v15335_v27  ;;  %18101 = vst [vmem:[#allocation12_spill] sm:$0xff] %v15339_v0  ;;  %v4802_v39 = vcombine.low %v15329_v15, %v15332_v45  ;;  %v4682_v42 = vcombine.high %v4681_v32, %v4681_v32  ;;  %v4689_v21 = vrot.slane %v4681_v32, %v14031_v10 }
 0x7b7   :  { %18103 = vst [vmem:[#allocation9_spill] sm:$0xff] %v15342_v19  ;;  %18105 = vst [vmem:[#allocation13_spill] sm:$0xff] %v15345_v24  ;;  %v15354_v50 = vadd.f32 %v4674_v29, %v18108_v44  ;;  %v4755_v23 = vcombine.low %v15305_v36, %v15312_v40  ;;  %v4756_v1 = vcombine.low %v15315_v43, %v15322_v55 }
 0x7b8   :  { %18107 = vst [vmem:[#allocation14_spill] sm:$0xff] %v15348_v57  ;;  %v4763_v58 = vrot.slane %v4753_v26, %v14031_v10  ;;  %v4696_v28 = vrot.slane %v4682_v42, %v14031_v10  ;;  %v15363_v38 = vadd.f32 %v4689_v21, %v18110_v13  ;;  %v4770_v34 = vrot.slane %v4754_v7, %v14031_v10  ;;  %v18112_v26 = vld [vmem:[#allocation11_spill] sm:$0xff] }
 0x7b9   :  { %18109 = vst [vmem:[#allocation15_spill] sm:$0xff] %v15354_v50  ;;  %v4803_v20 = vcombine.low %v15339_v0, %v15348_v57  ;;  %v4777_v51 = vrot.slane %v4755_v23, %v14031_v10  ;;  %v4784_v54 = vrot.slane %v4756_v1, %v14031_v10  ;;  %v4804_v61 = vcombine.low %v15335_v27, %v15342_v19 }
 0x7ba   :  { %18111 = vst [vmem:[#allocation17_spill] sm:$0xff] %v15363_v38  ;;  %v4805_v56 = vcombine.low %v15345_v24, %v15354_v50  ;;  %v15375_v17 = vadd.f32 %v4696_v28, %v18112_v26  ;;  %v4785_v14 = vcombine.low %v4763_v58, %v4770_v34  ;;  %v4812_v46 = vrot.slane %v4802_v39, %v14031_v10 }
 0x7bb   :  { %v4819_v6 = vrot.slane %v4803_v20, %v14031_v10  ;;  %v4786_v53 = vcombine.low %v4777_v51, %v4784_v54  ;;  %v4826_v33 = vrot.slane %v4804_v61, %v14031_v10  ;;  %v18114_v20 = vld [vmem:[#allocation18_spill] sm:$0xff] }
 0x7bc   :  { %18113 = vst [vmem:[#allocation11_spill] sm:$0xff] %v15375_v17  ;;  %v4833_v63 = vrot.slane %v4805_v56, %v14031_v10  ;;  %v4851_v35 = vcombine.low %v15363_v38, %v15375_v17  ;;  %v4793_v37 = vrot.slane %v4785_v14, %v14031_v10 }
 0x7bd   :  { %v4834_v7 = vcombine.low %v4812_v46, %v4819_v6  ;;  %v4800_v60 = vrot.slane %v4786_v53, %v14031_v10 }
 0x7be   :  { %v4835_v48 = vcombine.low %v4826_v33, %v4833_v63  ;;  %v4858_v22 = vrot.slane %v4851_v35, %v14031_v10 }
 0x7bf   :  { %v4801_v59 = vcombine.low %v4793_v37, %v4800_v60  ;;  %v4842_v30 = vrot.slane %v4834_v7, %v14031_v10 }
 0x7c0   :  { %v4849_v52 = vrot.slane %v4835_v48, %v14031_v10  ;;  %v4865_v47 = vrot.slane %v4858_v22, %v14031_v10 }
 0x7c1   :  { %v4869_v32 = vsel %vm335_vm0, %v4801_v59, 0.0 }
 0x7c2   :  { %v4850_v29 = vcombine.low %v4842_v30, %v4849_v52  ;;  %4870 = vadd.xlane.f32.xlu1 %v4869_v32  ;;  %v4875_v16 = vsel %vm342_vm1, %v4865_v47, 0.0 }
 0x7c4   :  { %v4872_v49 = vsel %vm335_vm0, %v4850_v29, 0.0 }
 0x7c5   :  { %4873 = vadd.xlane.f32.xlu0 %v4872_v49 }
 0x7c9   :  { %4876 = vadd.xlane.f32.xlu0 %v4875_v16 }
 0x84b   :  { %v4871_v31 = vpop.xlane.xlu1 %4870 }
 0x84c   :  { %v4878_v39 = vmul.f32 0.03125, %v4871_v31 }
 0x84e   :  { %v4874_v42 = vpop.xlane.xlu0 %4873  ;;  %v4887_v44 = vrot.slane %v4878_v39, %v14125_v3  ;;  %v4891_v23 = vrot.slane %v4878_v39, %v14128_v4  ;;  %v4895_v1 = vrot.slane %v4878_v39, %v14131_v5  ;;  %v4899_v58 = vrot.slane %v4878_v39, %v14134_v8 }
 0x84f   :  { %v4879_v21 = vmul.f32 0.03125, %v4874_v42  ;;  %v4903_v28 = vrot.slane %v4878_v39, %v14137_v9  ;;  %v4907_v13 = vrot.slane %v4878_v39, %v14140_v11  ;;  %v4911_v34 = vrot.slane %v4878_v39, %v14143_v12 }
 0x850   :  { %v4915_v51 = vrot.slane %v4878_v39, %v18114_v20  ;;  %v15401_v54 = vsub.f32 %v15294_v25, %v4887_v44  ;;  %v15404_v61 = vsub.f32 %v15299_v2, %v4891_v23  ;;  %v15407_v56 = vsub.f32 %v15302_v18, %v4895_v1 }
 0x851   :  { %v15410_v14 = vsub.f32 %v15309_v41, %v4899_v58  ;;  %v15413_v46 = vsub.f32 %v15305_v36, %v4903_v28  ;;  %v15416_v6 = vsub.f32 %v15312_v40, %v4907_v13  ;;  %v15419_v53 = vsub.f32 %v15315_v43, %v4911_v34 }
 0x852   :  { %v4877_v26 = vpop.xlane.xlu0 %4876  ;;  %v15422_v63 = vsub.f32 %v15322_v55, %v4915_v51  ;;  %v4992_v7 = vmul.f32 %v15401_v54, %v15401_v54  ;;  %v4993_v35 = vmul.f32 %v15404_v61, %v15404_v61  ;;  %v4994_v37 = vmul.f32 %v15407_v56, %v15407_v56 }
 0x853   :  { %v4880_v33 = vmul.f32 0.03125, %v4877_v26  ;;  %v4995_v60 = vmul.f32 %v15410_v14, %v15410_v14  ;;  %v4996_v48 = vmul.f32 %v15413_v46, %v15413_v46  ;;  %v4997_v59 = vmul.f32 %v15416_v6, %v15416_v6 }
 0x854   :  { %v4998_v22 = vmul.f32 %v15419_v53, %v15419_v53  ;;  %v4999_v32 = vmul.f32 %v15422_v63, %v15422_v63  ;;  %v5028_v29 = vcombine.low %v4992_v7, %v4993_v35  ;;  %v4919_v16 = vrot.slane %v4879_v21, %v14125_v3 }
 0x855   :  { %v4951_v30 = vrot.slane %v4880_v33, %v14125_v3  ;;  %v4955_v52 = vrot.slane %v4880_v33, %v14128_v4  ;;  %v5029_v49 = vcombine.low %v4994_v37, %v4995_v60  ;;  %v5030_v47 = vcombine.low %v4996_v48, %v4997_v59 }
 0x856   :  { %v5031_v42 = vcombine.low %v4998_v22, %v4999_v32  ;;  %v4923_v44 = vrot.slane %v4879_v21, %v14128_v4  ;;  %v5038_v23 = vrot.slane %v5028_v29, %v14031_v10  ;;  %v4927_v28 = vrot.slane %v4879_v21, %v14131_v5 }
 0x857   :  { %v15444_v31 = vsub.f32 %v15363_v38, %v4951_v30  ;;  %v15447_v39 = vsub.f32 %v15375_v17, %v4955_v52  ;;  %v5045_v1 = vrot.slane %v5029_v49, %v14031_v10  ;;  %v5052_v58 = vrot.slane %v5030_v47, %v14031_v10 }
 0x858   :  { %v5059_v51 = vrot.slane %v5031_v42, %v14031_v10  ;;  %v4931_v26 = vrot.slane %v4879_v21, %v14134_v8  ;;  %v4935_v7 = vrot.slane %v4879_v21, %v14137_v9  ;;  %v4939_v35 = vrot.slane %v4879_v21, %v14140_v11 }
 0x859   :  { %v5008_v13 = vmul.f32 %v15444_v31, %v15444_v31  ;;  %v5009_v34 = vmul.f32 %v15447_v39, %v15447_v39  ;;  %v5060_v33 = vcombine.low %v5038_v23, %v5045_v1  ;;  %v4943_v37 = vrot.slane %v4879_v21, %v14143_v12 }
 0x85a   :  { %v5061_v60 = vcombine.low %v5052_v58, %v5059_v51  ;;  %v4947_v48 = vrot.slane %v4879_v21, %v18114_v20  ;;  %v15465_v59 = vsub.f32 %v15329_v15, %v4919_v16  ;;  %v15468_v30 = vsub.f32 %v15332_v45, %v4923_v44 }
 0x85b   :  { %v5068_v52 = vrot.slane %v5060_v33, %v14031_v10  ;;  %v15472_v22 = vsub.f32 %v15339_v0, %v4927_v28  ;;  %v15475_v32 = vsub.f32 %v15348_v57, %v4931_v26  ;;  %v15478_v29 = vsub.f32 %v15335_v27, %v4935_v7 }
 0x85c   :  { %v5075_v49 = vrot.slane %v5061_v60, %v14031_v10  ;;  %v15482_v21 = vsub.f32 %v15342_v19, %v4939_v35  ;;  %v15485_v47 = vsub.f32 %v15345_v24, %v4943_v37  ;;  %v15488_v16 = vsub.f32 %v15354_v50, %v4947_v48 }
 0x85d   :  { %v5000_v42 = vmul.f32 %v15465_v59, %v15465_v59  ;;  %v5001_v44 = vmul.f32 %v15468_v30, %v15468_v30  ;;  %v5002_v23 = vmul.f32 %v15472_v22, %v15472_v22  ;;  %v5003_v1 = vmul.f32 %v15475_v32, %v15475_v32 }
 0x85e   :  { %v5076_v58 = vcombine.low %v5068_v52, %v5075_v49  ;;  %v5004_v28 = vmul.f32 %v15478_v29, %v15478_v29  ;;  %v5005_v51 = vmul.f32 %v15482_v21, %v15482_v21  ;;  %v5006_v26 = vmul.f32 %v15485_v47, %v15485_v47 }
 0x85f   :  { %v5007_v33 = vmul.f32 %v15488_v16, %v15488_v16  ;;  %v5077_v7 = vcombine.low %v5000_v42, %v5001_v44  ;;  %v5078_v35 = vcombine.low %v5002_v23, %v5003_v1  ;;  %v5126_v37 = vcombine.low %v5008_v13, %v5009_v34 }
 0x860   :  { %v5144_v60 = vsel %vm335_vm0, %v5076_v58, 0.0  ;;  %v5079_v48 = vcombine.low %v5004_v28, %v5005_v51  ;;  %v5436_v28 = vld [vmem:[%s17965_s9 + $0x18] sm:$0xff] }
 0x861   :  { %5145 = vadd.xlane.f32.xlu0 %v5144_v60  ;;  %v5080_v52 = vcombine.low %v5006_v26, %v5007_v33  ;;  %v5087_v49 = vrot.slane %v5077_v7, %v14031_v10  ;;  %v5094_v17 = vrot.slane %v5078_v35, %v14031_v10  ;;  %v5133_v38 = vrot.slane %v5126_v37, %v14031_v10 }
 0x862   :  { %v5101_v50 = vrot.slane %v5079_v48, %v14031_v10  ;;  %13409 = vmatpush3.msra.mxu0 %v5436_v28 }
 0x863   :  { %v5108_v24 = vrot.slane %v5080_v52, %v14031_v10  ;;  %v5109_v19 = vcombine.low %v5087_v49, %v5094_v17  ;;  %v5140_v42 = vrot.slane %v5133_v38, %v14031_v10  ;;  %v5435_v38 = vld [vmem:[%s17965_s9 + $0x10] sm:$0xff]  ;;  %13410 = vmatprep.subr.mxu0 %v18081_v62  ;;  %v12918_v17 = vld [vmem:[%s17964_s8] ss:$0 sm:$0xff] }
 0x864   :  { %13411 = vmatpush3.msra.mxu0 %v5435_v38  ;;  %v5358_v7 = vcombine.high %v12918_v17, %v12918_v17  ;;  %v5365_v49 = vrot.slane %v12918_v17, %v14031_v10 }
 0x865   :  { %v5110_v44 = vcombine.low %v5101_v50, %v5108_v24  ;;  %v5117_v13 = vrot.slane %v5109_v19, %v14031_v10  ;;  %v5150_v34 = vsel %vm342_vm1, %v5140_v42, 0.0  ;;  %v5434_v19 = vld [vmem:[%s17965_s9 + $0x8] sm:$0xff]  ;;  %13412 = vmatprep.subr.mxu0 %v18081_v62  ;;  %v5433_v24 = vld [vmem:[%s17965_s9] sm:$0xff] }
 0x866   :  { %5151 = vadd.xlane.f32.xlu0 %v5150_v34  ;;  %13413 = vmatpush3.msra.mxu0 %v5434_v19  ;;  %v12917_v50 = vld [vmem:[%s17963_s7] ss:$0 sm:$0xff]  ;;  %v5372_v42 = vrot.slane %v5358_v7, %v14031_v10  ;;  %v15556_v17 = vrot.slane %v5365_v49, %v14031_v10 }
 0x867   :  { %v5124_v23 = vrot.slane %v5110_v44, %v14031_v10  ;;  %13414 = vmatprep.subr.mxu0 %v18081_v62  ;;  %v5278_v33 = vcombine.high %v12917_v50, %v12917_v50  ;;  %v5285_v60 = vrot.slane %v12917_v50, %v14031_v10 }
 0x868   :  { %13415 = vmatpush3.msra.mxu0 %v5433_v24 }
 0x869   :  { %v5125_v1 = vcombine.low %v5117_v13, %v5124_v23  ;;  %13466 = vmatprep.subr.mxu0 %v18081_v62  ;;  %v5292_v48 = vrot.slane %v5278_v33, %v14031_v10  ;;  %v5293_v13 = vcombine.high %v5285_v60, %v5285_v60  ;;  %v5373_v23 = vcombine.high %v5365_v49, %v5365_v49 }
 0x86a   :  { %v15544_v38 = vrot.slane %v5285_v60, %v14031_v10 }
 0x86b   :  { %v5147_v58 = vsel %vm335_vm0, %v5125_v1, 0.0  ;;  %v5294_v34 = vcombine.high %v5292_v48, %v5292_v48  ;;  %v5374_v1 = vcombine.high %v5372_v42, %v5372_v42  ;;  %v15547_v19 = vrot.slane %v5292_v48, %v14031_v10 }
 0x86c   :  { %5148 = vadd.xlane.f32.xlu1 %v5147_v58  ;;  %v15550_v24 = vrot.slane %v5293_v13, %v14031_v10  ;;  %v15562_v33 = vrot.slane %v5373_v23, %v14031_v10  ;;  %v15581_v48 = vcombine.high %v15556_v17, %v15556_v17 }
 0x86d   :  { %v15553_v50 = vrot.slane %v5294_v34, %v14031_v10  ;;  %v15565_v7 = vrot.slane %v5374_v1, %v14031_v10 }
 0x86e   :  { %v15577_v60 = vcombine.high %v15550_v24, %v15550_v24 }
 0x86f   :  { %v15585_v49 = vcombine.high %v15553_v50, %v15553_v50  ;;  %v15597_v13 = vcombine.high %v15565_v7, %v15565_v7 }
 0x8ea   :  { %v5146_v51 = vpop.xlane.xlu0 %5145 }
 0x8eb   :  { %v5153_v26 = vmul.f32 0.03125, %v5146_v51 }
 0x8ed   :  { %v5156_v35 = vadd.f32 1e-05, %v5153_v26  ;;  %v15559_v26 = vrot.slane %v5372_v42, %v14031_v10 }
 0x8ef   :  { %13770 = vrsqrt.f32 %v5156_v35  ;;  %v5152_v37 = vpop.xlane.xlu0 %5151  ;;  %v15569_v35 = vcombine.high %v15544_v38, %v15544_v38  ;;  %v15589_v42 = vcombine.high %v15559_v26, %v15559_v26 }
 0x8f0   :  { %v5155_v52 = vmul.f32 0.03125, %v5152_v37  ;;  %v15573_v37 = vcombine.high %v15547_v19, %v15547_v19 }
 0x8f2   :  { %v5158_v44 = vadd.f32 1e-05, %v5155_v52 }
 0x8f4   :  { %13772 = vrsqrt.f32 %v5158_v44  ;;  %v15593_v44 = vcombine.high %v15562_v33, %v15562_v33 }
 0x8f5   :  { %v5149_v58 = vpop.xlane.xlu1 %5148 }
 0x8f6   :  { %v5154_v28 = vmul.f32 0.03125, %v5149_v58 }
 0x8f8   :  { %v5157_v51 = vadd.f32 1e-05, %v5154_v28 }
 0x8fa   :  { %13774 = vrsqrt.f32 %v5157_v51 }
 0x8fc   :  { %v13771_v52 = vpop.eup %13770 }
 0x8fd   :  { %v5168_v34 = vrot.slane %v13771_v52, %v14125_v3  ;;  %v5172_v23 = vrot.slane %v13771_v52, %v14128_v4  ;;  %v5176_v1 = vrot.slane %v13771_v52, %v14131_v5  ;;  %v5180_v58 = vrot.slane %v13771_v52, %v14134_v8 }
 0x8fe   :  { %v5184_v28 = vrot.slane %v13771_v52, %v14137_v9  ;;  %v5188_v51 = vrot.slane %v13771_v52, %v14140_v11  ;;  %v5192_v27 = vrot.slane %v13771_v52, %v14143_v12  ;;  %v5196_v57 = vrot.slane %v13771_v52, %v18114_v20 }
 0x8ff   :  { %v5255_v0 = vmul.f32 %v5168_v34, %v15401_v54  ;;  %v5256_v15 = vmul.f32 %v5172_v23, %v15404_v61  ;;  %v5257_v45 = vmul.f32 %v5176_v1, %v15407_v56  ;;  %v5258_v55 = vmul.f32 %v5180_v58, %v15410_v14 }
 0x900   :  { %v5259_v43 = vmul.f32 %v5184_v28, %v15413_v46  ;;  %v5260_v36 = vmul.f32 %v5188_v51, %v15416_v6  ;;  %v5261_v25 = vmul.f32 %v5192_v27, %v15419_v53  ;;  %v5262_v40 = vmul.f32 %v5196_v57, %v15422_v63 }
 0x901   :  { %v13773_v41 = vpop.eup %13772  ;;  %v5335_v18 = vmul.f32 %v15544_v38, %v5255_v0  ;;  %v5336_v52 = vmul.f32 %v15550_v24, %v5256_v15  ;;  %v5337_v54 = vmul.f32 %v15569_v35, %v5257_v45  ;;  %v5338_v61 = vmul.f32 %v15577_v60, %v5258_v55 }
 0x902   :  { %v5232_v56 = vrot.slane %v13773_v41, %v14125_v3  ;;  %v5236_v14 = vrot.slane %v13773_v41, %v14128_v4  ;;  %v5339_v46 = vmul.f32 %v15547_v19, %v5259_v43  ;;  %v5340_v6 = vmul.f32 %v15553_v50, %v5260_v36 }
 0x903   :  { %v5341_v27 = vmul.f32 %v15573_v37, %v5261_v25  ;;  %v5342_v57 = vmul.f32 %v15585_v49, %v5262_v40  ;;  %v5415_v0 = vadd.f32 %v15556_v17, %v5335_v18  ;;  %v5416_v15 = vadd.f32 %v15562_v33, %v5336_v52 }
 0x904   :  { %v5417_v45 = vadd.f32 %v15581_v48, %v5337_v54  ;;  %v5418_v55 = vadd.f32 %v15593_v44, %v5338_v61  ;;  %v5419_v53 = vadd.f32 %v15559_v26, %v5339_v46  ;;  %v5420_v41 = vadd.f32 %v15565_v7, %v5340_v6 }
 0x905   :  { %v5421_v43 = vadd.f32 %v15589_v42, %v5341_v27  ;;  %v5422_v36 = vadd.f32 %v15597_v13, %v5342_v57  ;;  %v5462_v63 = vcombine.low %v5415_v0, %v5416_v15  ;;  %v5271_v25 = vmul.f32 %v5232_v56, %v15444_v31 }
 0x906   :  { %v5463_v40 = vcombine.low %v5417_v45, %v5418_v55  ;;  %v5464_v34 = vcombine.low %v5419_v53, %v5420_v41  ;;  %v5272_v58 = vmul.f32 %v5236_v14, %v15447_v39 }
 0x907   :  { %v13775_v18 = vpop.eup %13774  ;;  %v5465_v23 = vcombine.low %v5421_v43, %v5422_v36  ;;  %v5472_v1 = vrot.slane %v5462_v63, %v14031_v10  ;;  %v5351_v28 = vmul.f32 %v15544_v38, %v5271_v25 }
 0x908   :  { %v5479_v51 = vrot.slane %v5463_v40, %v14031_v10  ;;  %v5486_v52 = vrot.slane %v5464_v34, %v14031_v10  ;;  %v5200_v54 = vrot.slane %v13775_v18, %v14125_v3  ;;  %v5204_v61 = vrot.slane %v13775_v18, %v14128_v4 }
 0x909   :  { %v5493_v31 = vrot.slane %v5465_v23, %v14031_v10  ;;  %v5208_v56 = vrot.slane %v13775_v18, %v14131_v5  ;;  %v5212_v46 = vrot.slane %v13775_v18, %v14134_v8  ;;  %v5216_v6 = vrot.slane %v13775_v18, %v14137_v9 }
 0x90a   :  { %v5494_v27 = vcombine.low %v5472_v1, %v5479_v51  ;;  %v5220_v39 = vrot.slane %v13775_v18, %v14140_v11  ;;  %v5224_v14 = vrot.slane %v13775_v18, %v14143_v12  ;;  %v5228_v57 = vrot.slane %v13775_v18, %v18114_v20 }
 0x90b   :  { %v5495_v0 = vcombine.low %v5486_v52, %v5493_v31  ;;  %v5263_v15 = vmul.f32 %v5200_v54, %v15465_v59  ;;  %v5264_v45 = vmul.f32 %v5204_v61, %v15468_v30  ;;  %v5265_v55 = vmul.f32 %v5208_v56, %v15472_v22 }
 0x90c   :  { %v5502_v53 = vrot.slane %v5494_v27, %v14031_v10  ;;  %v5266_v41 = vmul.f32 %v5212_v46, %v15475_v32  ;;  %v5267_v43 = vmul.f32 %v5216_v6, %v15478_v29  ;;  %v5268_v36 = vmul.f32 %v5220_v39, %v15482_v21  ;;  %v5753_v6 = vld [vmem:[%s17967_s11 + $0x70] sm:$0xff]  ;;  %v5752_v27 = vld [vmem:[%s17967_s11 + $0x68] sm:$0xff]  ;;  %v5751_v39 = vld [vmem:[%s17967_s11 + $0x60] sm:$0xff] }
 0x90d   :  { %v5509_v63 = vrot.slane %v5495_v0, %v14031_v10  ;;  %v5269_v25 = vmul.f32 %v5224_v14, %v15485_v47  ;;  %v5270_v40 = vmul.f32 %v5228_v57, %v15488_v16  ;;  %v5343_v59 = vmul.f32 %v15544_v38, %v5263_v15  ;;  %v5750_v14 = vld [vmem:[%s17967_s11 + $0x58] sm:$0xff]  ;;  %v5749_v57 = vld [vmem:[%s17967_s11 + $0x50] sm:$0xff]  ;;  %v5748_v0 = vld [vmem:[%s17967_s11 + $0x48] sm:$0xff] }
 0x90e   :  { %v5344_v30 = vmul.f32 %v15550_v24, %v5264_v45  ;;  %v5345_v22 = vmul.f32 %v15569_v35, %v5265_v55  ;;  %v5346_v34 = vmul.f32 %v15577_v60, %v5266_v41  ;;  %v5347_v32 = vmul.f32 %v15547_v19, %v5267_v43  ;;  %v5747_v15 = vld [vmem:[%s17967_s11 + $0x40] sm:$0xff]  ;;  %v5746_v45 = vld [vmem:[%s17967_s11 + $0x38] sm:$0xff]  ;;  %v5745_v55 = vld [vmem:[%s17967_s11 + $0x30] sm:$0xff] }
 0x90f   :  { %v5510_v18 = vcombine.low %v5502_v53, %v5509_v63  ;;  %v5348_v29 = vmul.f32 %v15553_v50, %v5268_v36  ;;  %v5349_v21 = vmul.f32 %v15573_v37, %v5269_v25  ;;  %v5350_v23 = vmul.f32 %v15585_v49, %v5270_v40  ;;  %v5744_v53 = vld [vmem:[%s17967_s11 + $0x28] sm:$0xff]  ;;  %v5743_v41 = vld [vmem:[%s17967_s11 + $0x20] sm:$0xff]  ;;  %v5742_v43 = vld [vmem:[%s17967_s11 + $0x18] sm:$0xff] }
 0x910   :  { %v5423_v47 = vadd.f32 %v15556_v17, %v5343_v59  ;;  %v5424_v16 = vadd.f32 %v15562_v33, %v5344_v30  ;;  %v5425_v38 = vadd.f32 %v15581_v48, %v5345_v22  ;;  %v5426_v1 = vadd.f32 %v15593_v44, %v5346_v34  ;;  %v5741_v36 = vld [vmem:[%s17967_s11 + $0x10] sm:$0xff]  ;;  %v5740_v63 = vld [vmem:[%s17967_s11 + $0x8] sm:$0xff]  ;;  %v5739_v25 = vld [vmem:[%s17967_s11] sm:$0xff] }
 0x911   :  { %13417 = vmatmul.mubr.msk.f32.vlgmr.msra.gmra.mxu0 %vm335_vm0, %v5510_v18  ;;  %v5427_v35 = vadd.f32 %v15559_v26, %v5347_v32  ;;  %v5428_v19 = vadd.f32 %v15565_v7, %v5348_v29  ;;  %v5429_v50 = vadd.f32 %v15589_v42, %v5349_v21  ;;  %v5430_v37 = vadd.f32 %v15597_v13, %v5350_v23  ;;  %v12919_v40 = vld [vmem:[%s17966_s10] ss:$0 sm:$0xff] }
 0x912   :  { %13419 = vmatprep.mubr.msk.f32.mxu0 %vm13906_vm2, %v18081_v62  ;;  %v5511_v60 = vcombine.low %v5423_v47, %v5424_v16  ;;  %v5512_v49 = vcombine.low %v5425_v38, %v5426_v1  ;;  %v5352_v51 = vmul.f32 %v15550_v24, %v5272_v58  ;;  %v5431_v44 = vadd.f32 %v15556_v17, %v5351_v28  ;;  %v5754_v28 = vld [vmem:[%s17967_s11 + $0x78] sm:$0xff] }
 0x913   :  { %v5513_v48 = vcombine.low %v5427_v35, %v5428_v19  ;;  %v5514_v52 = vcombine.low %v5429_v50, %v5430_v37  ;;  %13426 = vmatpush3.msra.mxu1 %v5754_v28 }
 0x914   :  { %v5521_v54 = vrot.slane %v5511_v60, %v14031_v10  ;;  %v5528_v26 = vrot.slane %v5512_v49, %v14031_v10  ;;  %v5432_v7 = vadd.f32 %v15562_v33, %v5352_v51  ;;  %13427 = vmatprep.subr.mxu1 %v18081_v62 }
 0x915   :  { %v5535_v42 = vrot.slane %v5513_v48, %v14031_v10  ;;  %v5542_v13 = vrot.slane %v5514_v52, %v14031_v10  ;;  %13428 = vmatpush3.msra.mxu1 %v5753_v6 }
 0x916   :  { %v5543_v61 = vcombine.low %v5521_v54, %v5528_v26  ;;  %v5560_v56 = vcombine.low %v5431_v44, %v5432_v7  ;;  %13429 = vmatprep.subr.mxu1 %v18081_v62 }
 0x917   :  { %v5544_v31 = vcombine.low %v5535_v42, %v5542_v13  ;;  %13430 = vmatpush3.msra.mxu1 %v5752_v27 }
 0x918   :  { %v5551_v46 = vrot.slane %v5543_v61, %v14031_v10  ;;  %v5567_v17 = vrot.slane %v5560_v56, %v14031_v10  ;;  %13431 = vmatprep.subr.mxu1 %v18081_v62 }
 0x919   :  { %v5558_v24 = vrot.slane %v5544_v31, %v14031_v10  ;;  %13432 = vmatpush3.msra.mxu1 %v5751_v39 }
 0x91a   :  { %v5574_v33 = vrot.slane %v5567_v17, %v14031_v10  ;;  %13433 = vmatprep.subr.mxu1 %v18081_v62 }
 0x91b   :  { %v5559_v58 = vcombine.low %v5551_v46, %v5558_v24  ;;  %13434 = vmatpush3.msra.mxu1 %v5750_v14 }
 0x91c   :  { %13435 = vmatprep.subr.mxu1 %v18081_v62 }
 0x91d   :  { %13420 = vmatmul.mubr.msk.f32.gmra.mxu0 %vm335_vm0, %v5559_v58  ;;  %13436 = vmatpush3.msra.mxu1 %v5749_v57 }
 0x91e   :  { %13422 = vmatprep.mubr.msk.f32.mxu0 %vm13906_vm2, %v18081_v62  ;;  %13437 = vmatprep.subr.mxu1 %v18081_v62 }
 0x91f   :  { %13438 = vmatpush3.msra.mxu1 %v5748_v0 }
 0x920   :  { %13439 = vmatprep.subr.mxu1 %v18081_v62 }
 0x921   :  { %13423 = vmatmul.mubr.msk.f32.gmra.mxu0 %vm335_vm0, %v5574_v33  ;;  %13440 = vmatpush3.msra.mxu1 %v5747_v15 }
 0x922   :  { %13474 = vmatprep.mubr.msk.f32.mxu0 %vm13906_vm2, %v18081_v62  ;;  %13441 = vmatprep.subr.mxu1 %v18081_v62 }
 0x923   :  { %13442 = vmatpush3.msra.mxu1 %v5746_v45 }
 0x924   :  { %13443 = vmatprep.subr.mxu1 %v18081_v62 }
 0x925   :  { %13444 = vmatpush3.msra.mxu1 %v5745_v55 }
 0x926   :  { %13445 = vmatprep.subr.mxu1 %v18081_v62 }
 0x927   :  { %13446 = vmatpush3.msra.mxu1 %v5744_v53 }
 0x928   :  { %13447 = vmatprep.subr.mxu1 %v18081_v62 }
 0x929   :  { %13448 = vmatpush3.msra.mxu1 %v5743_v41 }
 0x92a   :  { %13449 = vmatprep.subr.mxu1 %v18081_v62 }
 0x92b   :  { %13450 = vmatpush3.msra.mxu1 %v5742_v43 }
 0x92c   :  { %13451 = vmatprep.subr.mxu1 %v18081_v62 }
 0x92d   :  { %13452 = vmatpush3.msra.mxu1 %v5741_v36 }
 0x92e   :  { %13453 = vmatprep.subr.mxu1 %v18081_v62 }
 0x92f   :  { %13454 = vmatpush3.msra.mxu1 %v5740_v63 }
 0x930   :  { %13455 = vmatprep.subr.mxu1 %v18081_v62 }
 0x931   :  { %13456 = vmatpush3.msra.mxu1 %v5739_v25 }
 0x9d1   :  { %v5647_v59 = vpop.f32.mrf.mxu0 }
 0x9d2   :  { %v15760_v30 = vadd.f32 %v12919_v40, %v5647_v59  ;;  %v18022_v59 = vmov -1.0  }
 0x9d3   :  { %v13418_v22 = vpop.f32.mrf.mxu0 }
 0x9d4   :  { %v5664_v34 = vmul.f32 0.70710677, %v15760_v30 }
 0x9d6   :  { %v5673_v32 = vand.u32 2147483647, %v5664_v34  ;;  %vm5667_vm9 = vcmp.ge.f32.partialorder %v5664_v34, 0.0 }
 0x9d7   :  { %v5670_v22 = vsel %vm5667_vm9, 1.0, %v18022_v59 }
 0x9d8   :  { %v5676_v18 = vmul.f32 0.3275911, %v5673_v32  ;;  %v5712_v1 = vsub.f32 0.0, %v5673_v32 }
 0x9da   :  { %v5679_v29 = vadd.f32 1.0, %v5676_v18  ;;  %v5715_v49 = vmul.f32 %v5712_v1, %v5673_v32 }
 0x9dc   :  { %13776 = vrcp.f32 %v5679_v29  ;;  %v5718_v26 = vmul.f32 1.442695, %v5715_v49 }
 0x9dd   :  { %v5652_v21 = vpop.f32.mrf.mxu0 }
 0x9de   :  { %v15763_v23 = vadd.f32 %v12919_v40, %v5652_v21  ;;  %v5661_v21 = vmul.f32 0.5, %v15760_v30 }
 0x9df   :  { %v13421_v47 = vpop.f32.mrf.mxu0 }
 0x9e0   :  { %v15766_v16 = vmul.f32 0.70710677, %v15763_v23 }
 0x9e1   :  { %v5657_v38 = vpop.f32.mrf.mxu0 }
 0x9e2   :  { %v5674_v35 = vand.u32 2147483647, %v15766_v16  ;;  %v15769_v19 = vadd.f32 %v12919_v40, %v5657_v38  ;;  %vm5668_vm10 = vcmp.ge.f32.partialorder %v15766_v16, 0.0 }
 0x9e3   :  { %v13424_v50 = vpop.f32.mrf.mxu0 }
 0x9e4   :  { %v5677_v37 = vmul.f32 0.3275911, %v5674_v35  ;;  %v15772_v60 = vmul.f32 0.70710677, %v15769_v19  ;;  %v5713_v13 = vsub.f32 0.0, %v5674_v35  ;;  %v5663_v16 = vmul.f32 0.5, %v15769_v19 }
 0x9e6   :  { %v5680_v51 = vadd.f32 1.0, %v5677_v37  ;;  %v5675_v48 = vand.u32 2147483647, %v15772_v60  ;;  %v5716_v56 = vmul.f32 %v5713_v13, %v5674_v35  ;;  %vm5669_vm11 = vcmp.ge.f32.partialorder %v15772_v60, 0.0  ;;  %v12923_v60 = vld [vmem:[%s17968_s12] ss:$0 sm:$0xff] }
 0x9e7   :  { %v5662_v13 = vmul.f32 0.5, %v15763_v23 }
 0x9e8   :  { %13778 = vrcp.f32 %v5680_v51  ;;  %v5678_v52 = vmul.f32 0.3275911, %v5675_v48  ;;  %v5714_v24 = vsub.f32 0.0, %v5675_v48  ;;  %v5720_v33 = vmul.f32 1.442695, %v5716_v56 }
 0x9e9   :  { %v13777_v44 = vpop.eup %13776  ;;  %v5672_v56 = vsel %vm5669_vm11, 1.0, %v18022_v59 }
 0x9ea   :  { %v5685_v54 = vmul.f32 1.0614054, %v13777_v44  ;;  %v5681_v7 = vadd.f32 1.0, %v5678_v52  ;;  %v5717_v6 = vmul.f32 %v5714_v24, %v5675_v48 }
 0x9ec   :  { %v5688_v42 = vadd.f32 -1.4531521, %v5685_v54  ;;  %13780 = vrcp.f32 %v5681_v7  ;;  %v5722_v15 = vmul.f32 1.442695, %v5717_v6 }
 0x9ed   :  { %13782 = vpow2.f32 %v5718_v26  ;;  %v5671_v26 = vsel %vm5668_vm10, 1.0, %v18022_v59 }
 0x9ee   :  { %v5691_v61 = vmul.f32 %v13777_v44, %v5688_v42  ;;  %13784 = vpow2.f32 %v5720_v33 }
 0x9ef   :  { %13786 = vpow2.f32 %v5722_v15 }
 0x9f0   :  { %v5694_v31 = vadd.f32 1.4214138, %v5691_v61 }
 0x9f2   :  { %v5697_v46 = vmul.f32 %v13777_v44, %v5694_v31 }
 0x9f4   :  { %v5700_v58 = vadd.f32 -0.28449672, %v5697_v46 }
 0x9f5   :  { %v13779_v17 = vpop.eup %13778 }
 0x9f6   :  { %v5703_v28 = vmul.f32 %v13777_v44, %v5700_v58  ;;  %v5686_v27 = vmul.f32 1.0614054, %v13779_v17 }
 0x9f8   :  { %v5706_v39 = vadd.f32 0.2548296, %v5703_v28  ;;  %v5689_v14 = vadd.f32 -1.4531521, %v5686_v27 }
 0x9f9   :  { %v13781_v57 = vpop.eup %13780 }
 0x9fa   :  { %v5709_v0 = vmul.f32 %v13777_v44, %v5706_v39  ;;  %v5692_v45 = vmul.f32 %v13779_v17, %v5689_v14  ;;  %v5687_v55 = vmul.f32 1.0614054, %v13781_v57  ;;  %v13783_v53 = vpop.eup %13782 }
 0x9fb   :  { %v13785_v37 = vpop.eup %13784 }
 0x9fc   :  { %v5724_v41 = vmul.f32 %v13783_v53, %v5709_v0  ;;  %v5695_v43 = vadd.f32 1.4214138, %v5692_v45  ;;  %v5690_v36 = vadd.f32 -1.4531521, %v5687_v55  ;;  %v13787_v30 = vpop.eup %13786 }
 0x9fe   :  { %v5727_v63 = vsub.f32 1.0, %v5724_v41  ;;  %v5698_v25 = vmul.f32 %v13779_v17, %v5695_v43  ;;  %v5693_v40 = vmul.f32 %v13781_v57, %v5690_v36 }
 0xa00   :  { %v5730_v32 = vmul.f32 %v5727_v63, %v5670_v22  ;;  %v5701_v18 = vadd.f32 -0.28449672, %v5698_v25  ;;  %v5696_v29 = vadd.f32 1.4214138, %v5693_v40  ;;  %v18116_v63 = vld [vmem:[#allocation23_spill] sm:$0xff]  ;;  %v18118_v40 = vld [vmem:[#allocation20_spill] sm:$0xff] }
 0xa02   :  { %v5733_v47 = vadd.f32 1.0, %v5730_v32  ;;  %v5704_v38 = vmul.f32 %v13779_v17, %v5701_v18  ;;  %v5699_v1 = vmul.f32 %v13781_v57, %v5696_v29  ;;  %v18120_v32 = vld [vmem:[#allocation10_spill] sm:$0xff] }
 0xa03   :  { %v18122_v29 = vld [vmem:[#allocation22_spill] sm:$0xff] }
 0xa04   :  { %v5736_v35 = vmul.f32 %v5733_v47, %v5661_v21  ;;  %v5707_v34 = vadd.f32 0.2548296, %v5704_v38  ;;  %v5702_v50 = vadd.f32 -0.28449672, %v5699_v1  ;;  %v18123_v47 = vld [vmem:[#allocation7_spill] sm:$0xff] }
 0xa06   :  { %13458 = vmatmul.mubr.f32.vlgmr.msra.gmra.mxu1 %v5736_v35  ;;  %v5710_v49 = vmul.f32 %v13779_v17, %v5707_v34  ;;  %v5705_v51 = vmul.f32 %v13781_v57, %v5702_v50  ;;  %v18125_v35 = vld [vmem:[#allocation19_spill] sm:$0xff]  ;;  %v18127_v34 = vld [vmem:[#allocation21_spill] sm:$0xff] }
 0xa07   :  { %13460 = vmatprep.mubr.msk.f32.mxu1 %vm13906_vm2, %v18081_v62 }
 0xa08   :  { %v5725_v48 = vmul.f32 %v13785_v37, %v5710_v49  ;;  %v5708_v52 = vadd.f32 0.2548296, %v5705_v51 }
 0xa0a   :  { %v5728_v44 = vsub.f32 1.0, %v5725_v48  ;;  %v5711_v54 = vmul.f32 %v13781_v57, %v5708_v52 }
 0xa0c   :  { %v5731_v7 = vmul.f32 %v5728_v44, %v5671_v26  ;;  %v5726_v42 = vmul.f32 %v13787_v30, %v5711_v54 }
 0xa0e   :  { %v5734_v61 = vadd.f32 1.0, %v5731_v7  ;;  %v5729_v31 = vsub.f32 1.0, %v5726_v42 }
 0xa10   :  { %v5737_v46 = vmul.f32 %v5734_v61, %v5662_v13  ;;  %v5732_v24 = vmul.f32 %v5729_v31, %v5672_v56 }
 0xa12   :  { %13461 = vmatmul.mubr.f32.gmra.mxu1 %v5737_v46  ;;  %v5735_v58 = vadd.f32 1.0, %v5732_v24 }
 0xa13   :  { %13463 = vmatprep.mubr.msk.f32.mxu1 %vm13906_vm2, %v18081_v62 }
 0xa14   :  { %v5738_v17 = vmul.f32 %v5735_v58, %v5663_v16 }
 0xa16   :  { %13464 = vmatmul.mubr.f32.gmra.mxu1 %v5738_v17 }
 0xac6   :  { %v5828_v23 = vpop.f32.mrf.mxu1 }
 0xac7   :  { %v5829_v33 = vadd.f32 %v12923_v60, %v5828_v23 }
 0xac8   :  { %v13459_v28 = vpop.f32.mrf.mxu1 }
 0xac9   :  { %v5845_v6 = vcombine.high %v5829_v33, %v5829_v33  ;;  %v5852_v27 = vrot.slane %v5829_v33, %v14031_v10 }
 0xacb   :  { %v5859_v39 = vrot.slane %v5845_v6, %v14031_v10  ;;  %v5860_v19 = vcombine.high %v5852_v27, %v5852_v27  ;;  %v5868_v14 = vrot.slane %v5852_v27, %v14031_v10 }
 0xacd   :  { %v5861_v57 = vcombine.high %v5859_v39, %v5859_v39  ;;  %v5875_v0 = vrot.slane %v5859_v39, %v14031_v10  ;;  %v5882_v15 = vrot.slane %v5860_v19, %v14031_v10  ;;  %v5890_v45 = vcombine.high %v5868_v14, %v5868_v14 }
 0xace   :  { %v15809_v21 = vadd.f32 %v5868_v14, %v18122_v29  ;;  %v18129_v14 = vld [vmem:[#allocation8_spill] sm:$0xff] }
 0xacf   :  { %v5889_v55 = vrot.slane %v5861_v57, %v14031_v10  ;;  %v5891_v53 = vcombine.high %v5875_v0, %v5875_v0  ;;  %v5892_v41 = vcombine.high %v5882_v15, %v5882_v15  ;;  %v15797_v43 = vadd.f32 %v5882_v15, %v15299_v2 }
 0xad0   :  { %v15800_v25 = vadd.f32 %v5890_v45, %v18116_v63  ;;  %v15812_v38 = vadd.f32 %v5875_v0, %v18123_v47  ;;  %v18131_v0 = vld [vmem:[#allocation6_spill] sm:$0xff]  ;;  %v18133_v45 = vld [vmem:[#allocation12_spill] sm:$0xff]  ;;  %v18139_v47 = vld [vmem:[#allocation9_spill] sm:$0xff] }
 0xad1   :  { %18115 = vst [vmem:[#allocation18_spill] sm:$0xff] %v15797_v43  ;;  %v5893_v36 = vcombine.high %v5889_v55, %v5889_v55  ;;  %v15803_v22 = vadd.f32 %v5892_v41, %v18118_v40  ;;  %v15806_v18 = vadd.f32 %v5889_v55, %v18120_v32  ;;  %v15815_v2 = vadd.f32 %v5891_v53, %v18125_v35  ;;  %v18135_v63 = vld [vmem:[#allocation14_spill] sm:$0xff]  ;;  %v18137_v32 = vld [vmem:[#allocation16_spill] sm:$0xff] }
 0xad2   :  { %18117 = vst [vmem:[#allocation23_spill] sm:$0xff] %v15800_v25  ;;  %18124 = vst [vmem:[#allocation22_spill] sm:$0xff] %v15812_v38  ;;  %v5833_v1 = vpop.f32.mrf.mxu1  ;;  %v6023_v51 = vcombine.low %v15809_v21, %v15797_v43 }
 0xad3   :  { %18119 = vst [vmem:[#allocation20_spill] sm:$0xff] %v15803_v22  ;;  %18121 = vst [vmem:[#allocation10_spill] sm:$0xff] %v15806_v18  ;;  %v15818_v50 = vadd.f32 %v5893_v36, %v18127_v34  ;;  %v5834_v37 = vadd.f32 %v12923_v60, %v5833_v1  ;;  %v6024_v49 = vcombine.low %v15800_v25, %v15803_v22 }
 0xad4   :  { %18126 = vst [vmem:[#allocation7_spill] sm:$0xff] %v15815_v2  ;;  %v13462_v48 = vpop.f32.mrf.mxu1  ;;  %v6025_v52 = vcombine.low %v15812_v38, %v15806_v18  ;;  %v6033_v46 = vrot.slane %v6023_v51, %v14031_v10  ;;  %v18141_v51 = vld [vmem:[#allocation13_spill] sm:$0xff] }
 0xad5   :  { %18128 = vst [vmem:[#allocation19_spill] sm:$0xff] %v15818_v50  ;;  %v5894_v44 = vcombine.high %v5834_v37, %v5834_v37  ;;  %v5901_v54 = vrot.slane %v5834_v37, %v14031_v10  ;;  %v6026_v30 = vcombine.low %v15815_v2, %v15818_v50  ;;  %v6040_v7 = vrot.slane %v6024_v49, %v14031_v10 }
 0xad6   :  { %v5838_v26 = vpop.f32.mrf.mxu1  ;;  %v6047_v24 = vrot.slane %v6025_v52, %v14031_v10  ;;  %v18143_v52 = vld [vmem:[#allocation15_spill] sm:$0xff] }
 0xad7   :  { %v5908_v42 = vrot.slane %v5894_v44, %v14031_v10  ;;  %v5909_v13 = vcombine.high %v5901_v54, %v5901_v54  ;;  %v5917_v61 = vrot.slane %v5901_v54, %v14031_v10  ;;  %v5839_v31 = vadd.f32 %v12923_v60, %v5838_v26  ;;  %v18145_v26 = vld [vmem:[#allocation17_spill] sm:$0xff] }
 0xad8   :  { %v13465_v56 = vpop.f32.mrf.mxu1  ;;  %v6054_v16 = vrot.slane %v6026_v30, %v14031_v10  ;;  %v6055_v6 = vcombine.low %v6033_v46, %v6040_v7 }
 0xad9   :  { %v5910_v58 = vcombine.high %v5908_v42, %v5908_v42  ;;  %v5924_v17 = vrot.slane %v5908_v42, %v14031_v10  ;;  %v5931_v23 = vrot.slane %v5909_v13, %v14031_v10  ;;  %v5939_v33 = vcombine.high %v5917_v61, %v5917_v61  ;;  %v18147_v42 = vld [vmem:[#allocation11_spill] sm:$0xff] }
 0xada   :  { %v5949_v28 = vrot.slane %v5839_v31, %v14031_v10  ;;  %v6056_v27 = vcombine.low %v6047_v24, %v6054_v16  ;;  %v15843_v15 = vadd.f32 %v5917_v61, %v18131_v0  ;;  %v6063_v37 = vrot.slane %v6055_v6, %v14031_v10 }
 0xadb   :  { %v5938_v39 = vrot.slane %v5910_v58, %v14031_v10  ;;  %v5940_v60 = vcombine.high %v5924_v17, %v5924_v17  ;;  %v5941_v19 = vcombine.high %v5931_v23, %v5931_v23  ;;  %v15840_v57 = vadd.f32 %v5931_v23, %v18129_v14 }
 0xadc   :  { %18132 = vst [vmem:[#allocation8_spill] sm:$0xff] %v15843_v15  ;;  %v15846_v55 = vadd.f32 %v5939_v33, %v18133_v45  ;;  %v5950_v53 = vcombine.high %v5949_v28, %v5949_v28  ;;  %v5957_v41 = vrot.slane %v5949_v28, %v14031_v10  ;;  %v15853_v29 = vadd.f32 %v5924_v17, %v18137_v32 }
 0xadd   :  { %18130 = vst [vmem:[#allocation21_spill] sm:$0xff] %v15840_v57  ;;  %v5942_v36 = vcombine.high %v5938_v39, %v5938_v39  ;;  %v15850_v40 = vadd.f32 %v5941_v19, %v18135_v63  ;;  %v15856_v1 = vadd.f32 %v5938_v39, %v18139_v47  ;;  %v6072_v35 = vcombine.low %v15843_v15, %v15840_v57 }
 0xade   :  { %18134 = vst [vmem:[#allocation6_spill] sm:$0xff] %v15846_v55  ;;  %18138 = vst [vmem:[#allocation14_spill] sm:$0xff] %v15853_v29  ;;  %v5964_v34 = vrot.slane %v5950_v53, %v14031_v10  ;;  %v6070_v49 = vrot.slane %v6056_v27, %v14031_v10  ;;  %v15864_v48 = vadd.f32 %v5940_v60, %v18141_v51 }
 0xadf   :  { %18136 = vst [vmem:[#allocation12_spill] sm:$0xff] %v15850_v40  ;;  %18140 = vst [vmem:[#allocation16_spill] sm:$0xff] %v15856_v1  ;;  %v15867_v44 = vadd.f32 %v5942_v36, %v18143_v52  ;;  %v6073_v54 = vcombine.low %v15846_v55, %v15850_v40  ;;  %v6074_v30 = vcombine.low %v15853_v29, %v15856_v1 }
 0xae0   :  { %18142 = vst [vmem:[#allocation9_spill] sm:$0xff] %v15864_v48  ;;  %v15874_v7 = vadd.f32 %v5957_v41, %v18145_v26  ;;  %v15877_v13 = vadd.f32 %v5964_v34, %v18147_v42  ;;  %v6071_v61 = vcombine.low %v6063_v37, %v6070_v49  ;;  %v6082_v56 = vrot.slane %v6072_v35, %v14031_v10 }
 0xae1   :  { %18144 = vst [vmem:[#allocation13_spill] sm:$0xff] %v15867_v44  ;;  %v6075_v31 = vcombine.low %v15864_v48, %v15867_v44  ;;  %v6089_v46 = vrot.slane %v6073_v54, %v14031_v10  ;;  %v6096_v58 = vrot.slane %v6074_v30, %v14031_v10 }
 0xae2   :  { %18146 = vst [vmem:[#allocation15_spill] sm:$0xff] %v15874_v7  ;;  %18148 = vst [vmem:[#allocation17_spill] sm:$0xff] %v15877_v13  ;;  %v6139_v24 = vsel %vm335_vm0, %v6071_v61, 0.0  ;;  %v6121_v16 = vcombine.low %v15874_v7, %v15877_v13 }
 0xae3   :  { %6140 = vadd.xlane.f32.xlu1 %v6139_v24  ;;  %v6103_v17 = vrot.slane %v6075_v31, %v14031_v10  ;;  %v6104_v23 = vcombine.low %v6082_v56, %v6089_v46 }
 0xae4   :  { %v6128_v33 = vrot.slane %v6121_v16, %v14031_v10 }
 0xae5   :  { %v6105_v28 = vcombine.low %v6096_v58, %v6103_v17  ;;  %v6112_v27 = vrot.slane %v6104_v23, %v14031_v10 }
 0xae6   :  { %v6135_v6 = vrot.slane %v6128_v33, %v14031_v10 }
 0xae7   :  { %v6119_v39 = vrot.slane %v6105_v28, %v14031_v10 }
 0xae8   :  { %v6145_v60 = vsel %vm342_vm1, %v6135_v6, 0.0 }
 0xae9   :  { %6146 = vadd.xlane.f32.xlu1 %v6145_v60  ;;  %v6120_v19 = vcombine.low %v6112_v27, %v6119_v39 }
 0xaeb   :  { %v6142_v14 = vsel %vm335_vm0, %v6120_v19, 0.0 }
 0xaec   :  { %6143 = vadd.xlane.f32.xlu0 %v6142_v14 }
 0xb6c   :  { %v6141_v0 = vpop.xlane.xlu1 %6140 }
 0xb6d   :  { %v6148_v45 = vmul.f32 0.03125, %v6141_v0 }
 0xb6f   :  { %v6157_v53 = vrot.slane %v6148_v45, %v14125_v3  ;;  %v6161_v41 = vrot.slane %v6148_v45, %v14128_v4  ;;  %v6165_v36 = vrot.slane %v6148_v45, %v14131_v5  ;;  %v6169_v63 = vrot.slane %v6148_v45, %v14134_v8 }
 0xb70   :  { %v6173_v32 = vrot.slane %v6148_v45, %v14137_v9  ;;  %v6177_v47 = vrot.slane %v6148_v45, %v14140_v11  ;;  %v6181_v35 = vrot.slane %v6148_v45, %v14143_v12  ;;  %v6185_v34 = vrot.slane %v6148_v45, %v18114_v20 }
 0xb71   :  { %v15903_v37 = vsub.f32 %v15809_v21, %v6157_v53  ;;  %v15906_v49 = vsub.f32 %v15797_v43, %v6161_v41  ;;  %v15909_v51 = vsub.f32 %v15800_v25, %v6165_v36  ;;  %v15912_v52 = vsub.f32 %v15803_v22, %v6169_v63 }
 0xb72   :  { %v6147_v54 = vpop.xlane.xlu1 %6146  ;;  %v15915_v30 = vsub.f32 %v15812_v38, %v6173_v32  ;;  %v15918_v26 = vsub.f32 %v15806_v18, %v6177_v47  ;;  %v15921_v42 = vsub.f32 %v15815_v2, %v6181_v35  ;;  %v15924_v61 = vsub.f32 %v15818_v50, %v6185_v34 }
 0xb73   :  { %v6150_v31 = vmul.f32 0.03125, %v6147_v54  ;;  %v6262_v56 = vmul.f32 %v15903_v37, %v15903_v37  ;;  %v6263_v46 = vmul.f32 %v15906_v49, %v15906_v49  ;;  %v6264_v24 = vmul.f32 %v15909_v51, %v15909_v51 }
 0xb74   :  { %v6265_v16 = vmul.f32 %v15912_v52, %v15912_v52  ;;  %v6266_v58 = vmul.f32 %v15915_v30, %v15915_v30  ;;  %v6267_v17 = vmul.f32 %v15918_v26, %v15918_v26  ;;  %v6268_v23 = vmul.f32 %v15921_v42, %v15921_v42 }
 0xb75   :  { %v6221_v33 = vrot.slane %v6150_v31, %v14125_v3  ;;  %v6225_v28 = vrot.slane %v6150_v31, %v14128_v4  ;;  %v6144_v6 = vpop.xlane.xlu0 %6143  ;;  %v6269_v27 = vmul.f32 %v15924_v61, %v15924_v61  ;;  %v6298_v39 = vcombine.low %v6262_v56, %v6263_v46 }
 0xb76   :  { %v6149_v60 = vmul.f32 0.03125, %v6144_v6  ;;  %v6299_v19 = vcombine.low %v6264_v24, %v6265_v16  ;;  %v6300_v14 = vcombine.low %v6266_v58, %v6267_v17 }
 0xb77   :  { %v15945_v0 = vsub.f32 %v15874_v7, %v6221_v33  ;;  %v15948_v45 = vsub.f32 %v15877_v13, %v6225_v28  ;;  %v6301_v53 = vcombine.low %v6268_v23, %v6269_v27  ;;  %v6308_v41 = vrot.slane %v6298_v39, %v14031_v10 }
 0xb78   :  { %v6315_v36 = vrot.slane %v6299_v19, %v14031_v10  ;;  %v6322_v63 = vrot.slane %v6300_v14, %v14031_v10  ;;  %v6189_v32 = vrot.slane %v6149_v60, %v14125_v3  ;;  %v6193_v47 = vrot.slane %v6149_v60, %v14128_v4 }
 0xb79   :  { %v6278_v35 = vmul.f32 %v15945_v0, %v15945_v0  ;;  %v6279_v34 = vmul.f32 %v15948_v45, %v15948_v45  ;;  %v6329_v54 = vrot.slane %v6301_v53, %v14031_v10  ;;  %v6197_v31 = vrot.slane %v6149_v60, %v14131_v5 }
 0xb7a   :  { %v6330_v56 = vcombine.low %v6308_v41, %v6315_v36  ;;  %v6201_v46 = vrot.slane %v6149_v60, %v14134_v8  ;;  %v6205_v24 = vrot.slane %v6149_v60, %v14137_v9  ;;  %v6209_v16 = vrot.slane %v6149_v60, %v14140_v11 }
 0xb7b   :  { %v6331_v58 = vcombine.low %v6322_v63, %v6329_v54  ;;  %v6396_v17 = vcombine.low %v6278_v35, %v6279_v34  ;;  %v6213_v23 = vrot.slane %v6149_v60, %v14143_v12  ;;  %v6217_v33 = vrot.slane %v6149_v60, %v18114_v20 }
 0xb7c   :  { %v6338_v28 = vrot.slane %v6330_v56, %v14031_v10  ;;  %v15968_v6 = vsub.f32 %v15843_v15, %v6189_v32  ;;  %v15971_v27 = vsub.f32 %v15840_v57, %v6193_v47  ;;  %v15974_v39 = vsub.f32 %v15846_v55, %v6197_v31 }
 0xb7d   :  { %v6345_v19 = vrot.slane %v6331_v58, %v14031_v10  ;;  %v6403_v14 = vrot.slane %v6396_v17, %v14031_v10  ;;  %v15979_v53 = vsub.f32 %v15850_v40, %v6201_v46  ;;  %v15982_v60 = vsub.f32 %v15853_v29, %v6205_v24 }
 0xb7e   :  { %v15985_v41 = vsub.f32 %v15856_v1, %v6209_v16  ;;  %v15988_v36 = vsub.f32 %v15864_v48, %v6213_v23  ;;  %v15991_v63 = vsub.f32 %v15867_v44, %v6217_v33  ;;  %v6270_v32 = vmul.f32 %v15968_v6, %v15968_v6 }
 0xb7f   :  { %v6346_v47 = vcombine.low %v6338_v28, %v6345_v19  ;;  %v6271_v35 = vmul.f32 %v15971_v27, %v15971_v27  ;;  %v6272_v34 = vmul.f32 %v15974_v39, %v15974_v39  ;;  %v6273_v54 = vmul.f32 %v15979_v53, %v15979_v53 }
 0xb80   :  { %v6274_v31 = vmul.f32 %v15982_v60, %v15982_v60  ;;  %v6275_v56 = vmul.f32 %v15985_v41, %v15985_v41  ;;  %v6276_v46 = vmul.f32 %v15988_v36, %v15988_v36  ;;  %v6410_v16 = vrot.slane %v6403_v14, %v14031_v10 }
 0xb81   :  { %v6414_v24 = vsel %vm335_vm0, %v6346_v47, 0.0  ;;  %v6277_v58 = vmul.f32 %v15991_v63, %v15991_v63  ;;  %v6347_v17 = vcombine.low %v6270_v32, %v6271_v35  ;;  %v6348_v23 = vcombine.low %v6272_v34, %v6273_v54  ;;  %v12931_v54 = vld [vmem:[%s18078_s27 + $0x38] sm:$0xff] }
 0xb82   :  { %6415 = vadd.xlane.f32.xlu0 %v6414_v24  ;;  %v6349_v33 = vcombine.low %v6274_v31, %v6275_v56  ;;  %v6420_v7 = vsel %vm342_vm1, %v6410_v16, 0.0  ;;  %v12930_v31 = vld [vmem:[%s18078_s27 + $0x30] sm:$0xff]  ;;  %13467 = vmatpush3.msra.mxu0 %v12931_v54 }
 0xb83   :  { %v6350_v28 = vcombine.low %v6276_v46, %v6277_v58  ;;  %v6357_v19 = vrot.slane %v6347_v17, %v14031_v10  ;;  %v6364_v59 = vrot.slane %v6348_v23, %v14031_v10  ;;  %13468 = vmatprep.subr.mxu0 %v18081_v62 }
 0xb84   :  { %v6371_v13 = vrot.slane %v6349_v33, %v14031_v10  ;;  %13469 = vmatpush3.msra.mxu0 %v12930_v31 }
 0xb85   :  { %v6378_v47 = vrot.slane %v6350_v28, %v14031_v10  ;;  %v6379_v14 = vcombine.low %v6357_v19, %v6364_v59  ;;  %v12929_v59 = vld [vmem:[%s18078_s27 + $0x28] sm:$0xff]  ;;  %13470 = vmatprep.subr.mxu0 %v18081_v62 }
 0xb86   :  { %6421 = vadd.xlane.f32.xlu0 %v6420_v7  ;;  %13471 = vmatpush3.msra.mxu0 %v12929_v59  ;;  %v12927_v7 = vld [vmem:[%s18080_s24 + $0x1] ss:$0 sm:$0xff] }
 0xb87   :  { %v6380_v44 = vcombine.low %v6371_v13, %v6378_v47  ;;  %v6387_v40 = vrot.slane %v6379_v14, %v14031_v10  ;;  %13472 = vmatprep.subr.mxu0 %v18081_v62  ;;  %v6628_v24 = vcombine.high %v12927_v7, %v12927_v7  ;;  %v6635_v28 = vrot.slane %v12927_v7, %v14031_v10 }
 0xb89   :  { %v6394_v32 = vrot.slane %v6380_v44, %v14031_v10  ;;  %v12926_v44 = vld [vmem:[%s18079_s2 + $0x1] ss:$0 sm:$0xff]  ;;  %v6642_v19 = vrot.slane %v6628_v24, %v14031_v10 }
 0xb8a   :  { %v6548_v46 = vcombine.high %v12926_v44, %v12926_v44  ;;  %v6555_v23 = vrot.slane %v12926_v44, %v14031_v10 }
 0xb8b   :  { %v6395_v35 = vcombine.low %v6387_v40, %v6394_v32  ;;  %v12928_v40 = vld [vmem:[%s18078_s27 + $0x20] sm:$0xff] }
 0xb8c   :  { %13473 = vmatpush3.msra.mxu0 %v12928_v40  ;;  %v6562_v33 = vrot.slane %v6548_v46, %v14031_v10  ;;  %v6563_v14 = vcombine.high %v6555_v23, %v6555_v23  ;;  %v16045_v31 = vrot.slane %v6555_v23, %v14031_v10 }
 0xb8d   :  { %v6417_v34 = vsel %vm335_vm0, %v6395_v35, 0.0  ;;  %v6643_v35 = vcombine.high %v6635_v28, %v6635_v28 }
 0xb8e   :  { %6418 = vadd.xlane.f32.xlu1 %v6417_v34  ;;  %v6564_v32 = vcombine.high %v6562_v33, %v6562_v33  ;;  %v6644_v34 = vcombine.high %v6642_v19, %v6642_v19  ;;  %v16048_v40 = vrot.slane %v6562_v33, %v14031_v10  ;;  %v16051_v44 = vrot.slane %v6563_v14, %v14031_v10 }
 0xb8f   :  { %v16063_v46 = vrot.slane %v6643_v35, %v14031_v10 }
 0xb90   :  { %v16054_v7 = vrot.slane %v6564_v32, %v14031_v10  ;;  %v16066_v24 = vrot.slane %v6644_v34, %v14031_v10  ;;  %v16078_v23 = vcombine.high %v16051_v44, %v16051_v44 }
 0xb91   :  { %v16094_v14 = vcombine.high %v16063_v46, %v16063_v46 }
 0xb92   :  { %v16082_v33 = vcombine.high %v16054_v7, %v16054_v7  ;;  %v16098_v32 = vcombine.high %v16066_v24, %v16066_v24 }
 0xc0b   :  { %v6416_v13 = vpop.xlane.xlu0 %6415 }
 0xc0c   :  { %v6423_v56 = vmul.f32 0.03125, %v6416_v13  ;;  %v16057_v13 = vrot.slane %v6635_v28, %v14031_v10 }
 0xc0e   :  { %v6426_v16 = vadd.f32 1e-05, %v6423_v56  ;;  %v16060_v56 = vrot.slane %v6642_v19, %v14031_v10  ;;  %v16086_v19 = vcombine.high %v16057_v13, %v16057_v13 }
 0xc0f   :  { %v6422_v58 = vpop.xlane.xlu0 %6421 }
 0xc10   :  { %13788 = vrsqrt.f32 %v6426_v16  ;;  %v6425_v17 = vmul.f32 0.03125, %v6422_v58  ;;  %v16070_v58 = vcombine.high %v16045_v31, %v16045_v31 }
 0xc12   :  { %v6428_v47 = vadd.f32 1e-05, %v6425_v17  ;;  %v16074_v17 = vcombine.high %v16048_v40, %v16048_v40 }
 0xc14   :  { %13790 = vrsqrt.f32 %v6428_v47  ;;  %v16090_v47 = vcombine.high %v16060_v56, %v16060_v56 }
 0xc17   :  { %v6419_v54 = vpop.xlane.xlu1 %6418 }
 0xc18   :  { %v6424_v59 = vmul.f32 0.03125, %v6419_v54 }
 0xc1a   :  { %v6427_v16 = vadd.f32 1e-05, %v6424_v59 }
 0xc1c   :  { %13792 = vrsqrt.f32 %v6427_v16 }
 0xc1d   :  { %v13789_v28 = vpop.eup %13788 }
 0xc1e   :  { %v6438_v35 = vrot.slane %v13789_v28, %v14125_v3  ;;  %v6442_v34 = vrot.slane %v13789_v28, %v14128_v4  ;;  %v6446_v54 = vrot.slane %v13789_v28, %v14131_v5  ;;  %v6450_v59 = vrot.slane %v13789_v28, %v14134_v8 }
 0xc1f   :  { %v6454_v16 = vrot.slane %v13789_v28, %v14137_v9  ;;  %v6458_v48 = vrot.slane %v13789_v28, %v14140_v11  ;;  %v6462_v1 = vrot.slane %v13789_v28, %v14143_v12  ;;  %v6466_v55 = vrot.slane %v13789_v28, %v18114_v20 }
 0xc20   :  { %v6525_v29 = vmul.f32 %v6438_v35, %v15903_v37  ;;  %v6526_v57 = vmul.f32 %v6442_v34, %v15906_v49  ;;  %v6527_v15 = vmul.f32 %v6446_v54, %v15909_v51  ;;  %v6528_v50 = vmul.f32 %v6450_v59, %v15912_v52 }
 0xc21   :  { %v13791_v2 = vpop.eup %13790  ;;  %v6529_v18 = vmul.f32 %v6454_v16, %v15915_v30  ;;  %v6530_v22 = vmul.f32 %v6458_v48, %v15918_v26  ;;  %v6531_v38 = vmul.f32 %v6462_v1, %v15921_v42  ;;  %v6532_v25 = vmul.f32 %v6466_v55, %v15924_v61 }
 0xc22   :  { %v6502_v43 = vrot.slane %v13791_v2, %v14125_v3  ;;  %v6506_v28 = vrot.slane %v13791_v2, %v14128_v4  ;;  %v6605_v37 = vmul.f32 %v16045_v31, %v6525_v29  ;;  %v6606_v49 = vmul.f32 %v16051_v44, %v6526_v57 }
 0xc23   :  { %v6607_v51 = vmul.f32 %v16070_v58, %v6527_v15  ;;  %v6608_v52 = vmul.f32 %v16078_v23, %v6528_v50  ;;  %v6609_v30 = vmul.f32 %v16048_v40, %v6529_v18  ;;  %v6610_v48 = vmul.f32 %v16054_v7, %v6530_v22 }
 0xc24   :  { %v6611_v1 = vmul.f32 %v16074_v17, %v6531_v38  ;;  %v6612_v55 = vmul.f32 %v16082_v33, %v6532_v25  ;;  %v6685_v26 = vadd.f32 %v16057_v13, %v6605_v37  ;;  %v6686_v2 = vadd.f32 %v16063_v46, %v6606_v49 }
 0xc25   :  { %v6687_v29 = vadd.f32 %v16086_v19, %v6607_v51  ;;  %v6688_v57 = vadd.f32 %v16094_v14, %v6608_v52  ;;  %v6689_v15 = vadd.f32 %v16060_v56, %v6609_v30  ;;  %v6690_v50 = vadd.f32 %v16066_v24, %v6610_v48 }
 0xc26   :  { %v6691_v18 = vadd.f32 %v16090_v47, %v6611_v1  ;;  %v6692_v22 = vadd.f32 %v16098_v32, %v6612_v55  ;;  %v6734_v42 = vcombine.low %v6685_v26, %v6686_v2  ;;  %v6541_v38 = vmul.f32 %v6502_v43, %v15945_v0 }
 0xc27   :  { %v6735_v25 = vcombine.low %v6687_v29, %v6688_v57  ;;  %v6736_v61 = vcombine.low %v6689_v15, %v6690_v50  ;;  %v6542_v35 = vmul.f32 %v6506_v28, %v15948_v45 }
 0xc28   :  { %v6737_v34 = vcombine.low %v6691_v18, %v6692_v22  ;;  %v6744_v54 = vrot.slane %v6734_v42, %v14031_v10  ;;  %v6621_v49 = vmul.f32 %v16045_v31, %v6541_v38 }
 0xc29   :  { %v13793_v59 = vpop.eup %13792  ;;  %v6751_v16 = vrot.slane %v6735_v25, %v14031_v10  ;;  %v6758_v37 = vrot.slane %v6736_v61, %v14031_v10  ;;  %v6622_v51 = vmul.f32 %v16051_v44, %v6542_v35 }
 0xc2a   :  { %v6765_v52 = vrot.slane %v6737_v34, %v14031_v10  ;;  %v6470_v43 = vrot.slane %v13793_v59, %v14125_v3  ;;  %v6474_v0 = vrot.slane %v13793_v59, %v14128_v4  ;;  %v6478_v45 = vrot.slane %v13793_v59, %v14131_v5 }
 0xc2b   :  { %v6766_v28 = vcombine.low %v6744_v54, %v6751_v16  ;;  %v6482_v30 = vrot.slane %v13793_v59, %v14134_v8  ;;  %v6486_v48 = vrot.slane %v13793_v59, %v14137_v9  ;;  %v6490_v1 = vrot.slane %v13793_v59, %v14140_v11 }
 0xc2c   :  { %v6767_v55 = vcombine.low %v6758_v37, %v6765_v52  ;;  %v6494_v26 = vrot.slane %v13793_v59, %v14143_v12  ;;  %v6498_v2 = vrot.slane %v13793_v59, %v18114_v20  ;;  %v6533_v29 = vmul.f32 %v6470_v43, %v15968_v6 }
 0xc2d   :  { %v6774_v57 = vrot.slane %v6766_v28, %v14031_v10  ;;  %v6534_v15 = vmul.f32 %v6474_v0, %v15971_v27  ;;  %v6535_v50 = vmul.f32 %v6478_v45, %v15974_v39  ;;  %v6536_v18 = vmul.f32 %v6482_v30, %v15979_v53 }
 0xc2e   :  { %v6781_v22 = vrot.slane %v6767_v55, %v14031_v10  ;;  %v6537_v42 = vmul.f32 %v6486_v48, %v15982_v60  ;;  %v6538_v38 = vmul.f32 %v6490_v1, %v15985_v41  ;;  %v6539_v25 = vmul.f32 %v6494_v26, %v15988_v36 }
 0xc2f   :  { %v6540_v61 = vmul.f32 %v6498_v2, %v15991_v63  ;;  %v6613_v6 = vmul.f32 %v16045_v31, %v6533_v29  ;;  %v6614_v35 = vmul.f32 %v16051_v44, %v6534_v15  ;;  %v6615_v27 = vmul.f32 %v16070_v58, %v6535_v50 }
 0xc30   :  { %v6782_v34 = vcombine.low %v6774_v57, %v6781_v22  ;;  %v6616_v39 = vmul.f32 %v16078_v23, %v6536_v18  ;;  %v6617_v53 = vmul.f32 %v16048_v40, %v6537_v42  ;;  %v6618_v54 = vmul.f32 %v16054_v7, %v6538_v38 }
 0xc31   :  { %v6619_v60 = vmul.f32 %v16074_v17, %v6539_v25  ;;  %v6620_v41 = vmul.f32 %v16082_v33, %v6540_v61  ;;  %v6693_v36 = vadd.f32 %v16057_v13, %v6613_v6  ;;  %v6694_v63 = vadd.f32 %v16063_v46, %v6614_v35 }
 0xc32   :  { %13475 = vmatmul.mubr.msk.f32.vlgmr.msra.gmra.mxu0 %vm335_vm0, %v6782_v34  ;;  %v6695_v31 = vadd.f32 %v16086_v19, %v6615_v27  ;;  %v6696_v44 = vadd.f32 %v16094_v14, %v6616_v39  ;;  %v6697_v58 = vadd.f32 %v16060_v56, %v6617_v53  ;;  %v6698_v40 = vadd.f32 %v16066_v24, %v6618_v54 }
 0xc33   :  { %13477 = vmatprep.mubr.msk.f32.mxu0 %vm13906_vm2, %v18081_v62  ;;  %v6699_v7 = vadd.f32 %v16090_v47, %v6619_v60  ;;  %v6700_v17 = vadd.f32 %v16098_v32, %v6620_v41  ;;  %v6783_v23 = vcombine.low %v6693_v36, %v6694_v63  ;;  %v6701_v19 = vadd.f32 %v16057_v13, %v6621_v49 }
 0xc34   :  { %v6784_v33 = vcombine.low %v6695_v31, %v6696_v44  ;;  %v6785_v59 = vcombine.low %v6697_v58, %v6698_v40  ;;  %v6702_v14 = vadd.f32 %v16063_v46, %v6622_v51  ;;  %v12933_v46 = vld [vmem:[%s17960_s4 + $0x1] ss:$0 sm:$0xff]  ;;  %s18149_s4 = smov 8  }
 0xc35   :  { %v6786_v16 = vcombine.low %v6699_v7, %v6700_v17  ;;  %v6793_v37 = vrot.slane %v6783_v23, %v14031_v10 }
 0xc36   :  { %v6800_v56 = vrot.slane %v6784_v33, %v14031_v10  ;;  %v6807_v24 = vrot.slane %v6785_v59, %v14031_v10  ;;  %v6832_v0 = vcombine.low %v6701_v19, %v6702_v14 }
 0xc37   :  { %v6814_v52 = vrot.slane %v6786_v16, %v14031_v10 }
 0xc38   :  { %v6815_v43 = vcombine.low %v6793_v37, %v6800_v56  ;;  %v6839_v30 = vrot.slane %v6832_v0, %v14031_v10 }
 0xc39   :  { %v6816_v47 = vcombine.low %v6807_v24, %v6814_v52 }
 0xc3a   :  { %v6823_v32 = vrot.slane %v6815_v43, %v14031_v10  ;;  %v6846_v13 = vrot.slane %v6839_v30, %v14031_v10 }
 0xc3b   :  { %v6830_v45 = vrot.slane %v6816_v47, %v14031_v10 }
 0xc3d   :  { %v6831_v28 = vcombine.low %v6823_v32, %v6830_v45 }
 0xc3f   :  { %13478 = vmatmul.mubr.msk.f32.gmra.mxu0 %vm335_vm0, %v6831_v28 }
 0xc40   :  { %13480 = vmatprep.mubr.msk.f32.mxu0 %vm13906_vm2, %v18081_v62 }
 0xc43   :  { %13481 = vmatmul.mubr.msk.f32.gmra.mxu0 %vm335_vm0, %v6846_v13 }
 0xcf2   :  { %v6919_v49 = vpop.f32.mrf.mxu0 }
 0xcf3   :  { %v6920_v51 = vadd.f32 %v12933_v46, %v6919_v49 }
 0xcf4   :  { %v13476_v48 = vpop.f32.mrf.mxu0 }
 0xcf5   :  { %v6936_v1 = vcombine.high %v6920_v51, %v6920_v51  ;;  %v6943_v55 = vrot.slane %v6920_v51, %v14031_v10 }
 0xcf7   :  { %v6950_v26 = vrot.slane %v6936_v1, %v14031_v10  ;;  %v6951_v2 = vcombine.high %v6943_v55, %v6943_v55  ;;  %v6959_v29 = vrot.slane %v6943_v55, %v14031_v10 }
 0xcf9   :  { %v6952_v57 = vcombine.high %v6950_v26, %v6950_v26  ;;  %v6973_v15 = vrot.slane %v6951_v2, %v14031_v10  ;;  %7056 = vrot.lane.b32.xlu1 %v6959_v29, %s13907_s26  ;;  %v6966_v50 = vrot.slane %v6950_v26, %v14031_v10  ;;  %v6981_v41 = vcombine.high %v6959_v29, %v6959_v29 }
 0xcfb   :  { %v6980_v18 = vrot.slane %v6952_v57, %v14031_v10  ;;  %7058 = vrot.lane.b32.xlu0 %v6973_v15, %s13907_s26  ;;  %v7164_v22 = vcombine.low %v6959_v29, %v6973_v15  ;;  %v12937_v42 = vcombine.high %v6959_v29, %v6973_v15  ;;  %v6983_v40 = vcombine.high %v6973_v15, %v6973_v15 }
 0xcfc   :  { %v6982_v16 = vcombine.high %v6966_v50, %v6966_v50 }
 0xcfd   :  { %7092 = vrot.lane.b32.xlu1 %v6959_v29, %s13908_s28  ;;  %v7166_v38 = vcombine.low %v6966_v50, %v6980_v18  ;;  %v12938_v25 = vcombine.high %v6966_v50, %v6980_v18  ;;  %v7174_v61 = vrot.slane %v7164_v22, %v14031_v10  ;;  %v7181_v6 = vrot.slane %v12937_v42, %v14031_v10 }
 0xcfe   :  { %v6984_v33 = vcombine.high %v6980_v18, %v6980_v18 }
 0xcff   :  { %v6924_v35 = vpop.f32.mrf.mxu0  ;;  %7094 = vrot.lane.b32.xlu0 %v6973_v15, %s13908_s28  ;;  %v7188_v27 = vrot.slane %v7166_v38, %v14031_v10  ;;  %v7195_v34 = vrot.slane %v12938_v25, %v14031_v10  ;;  %v7196_v39 = vcombine.low %v7174_v61, %v7181_v6 }
 0xd00   :  { %v6925_v7 = vadd.f32 %v12933_v46, %v6924_v35 }
 0xd01   :  { %v13479_v53 = vpop.f32.mrf.mxu0  ;;  %7128 = vrot.lane.b32.xlu1 %v6959_v29, %s13909_s29  ;;  %v7197_v54 = vcombine.low %v7188_v27, %v7195_v34  ;;  %v7204_v36 = vrot.slane %v7196_v39, %v14031_v10 }
 0xd02   :  { %v6992_v17 = vrot.slane %v6925_v7, %v14031_v10  ;;  %v6985_v19 = vcombine.high %v6925_v7, %v6925_v7 }
 0xd03   :  { %v6929_v60 = vpop.f32.mrf.mxu0  ;;  %7130 = vrot.lane.b32.xlu0 %v6973_v15, %s13909_s29  ;;  %v7211_v63 = vrot.slane %v7197_v54, %v14031_v10 }
 0xd04   :  { %v6930_v31 = vadd.f32 %v12933_v46, %v6929_v60  ;;  %v7000_v23 = vcombine.high %v6992_v17, %v6992_v17  ;;  %v16236_v37 = vrot.slane %v6992_v17, %v14031_v10  ;;  %v6999_v14 = vrot.slane %v6985_v19, %v14031_v10 }
 0xd05   :  { %v13482_v44 = vpop.f32.mrf.mxu0  ;;  %7060 = vrot.lane.b32.xlu1 %v6981_v41, %s13907_s26  ;;  %v16215_v58 = vcombine.low %v7204_v36, %v7211_v63 }
 0xd06   :  { %v7022_v59 = vrot.slane %v7000_v23, %v14031_v10  ;;  %v7001_v56 = vcombine.high %v6999_v14, %v6999_v14  ;;  %v7030_v43 = vcombine.high %v16236_v37, %v16236_v37  ;;  %v7015_v47 = vrot.slane %v6999_v14, %v14031_v10 }
 0xd07   :  { %7066 = vrot.lane.b32.xlu0 %v6980_v18, %s13907_s26  ;;  %13487 = vmatprep.mubr.msk.f32.mxu0 %vm1428_vm3, %v16215_v58  ;;  %v7040_v0 = vrot.slane %v6930_v31, %v14031_v10 }
 0xd08   :  { %v7032_v24 = vcombine.high %v7022_v59, %v7022_v59  ;;  %v7029_v52 = vrot.slane %v7001_v56, %v14031_v10  ;;  %v7031_v30 = vcombine.high %v7015_v47, %v7015_v47  ;;  %v7314_v48 = vcombine.low %v7022_v59, %v7030_v43 }
 0xd09   :  { %7064 = vrot.lane.b32.xlu1 %v6966_v50, %s13907_s26  ;;  %v7041_v32 = vcombine.high %v7040_v0, %v7040_v0  ;;  %v7048_v13 = vrot.slane %v7040_v0, %v14031_v10 }
 0xd0a   :  { %v7033_v45 = vcombine.high %v7029_v52, %v7029_v52  ;;  %v7315_v49 = vcombine.low %v7032_v24, %v7015_v47  ;;  %v7316_v51 = vcombine.low %v7029_v52, %v7031_v30  ;;  %v7324_v2 = vrot.slane %v7314_v48, %v14031_v10 }
 0xd0b   :  { %7098 = vrot.lane.b32.xlu0 %v6983_v40, %s13908_s28  ;;  %v7055_v28 = vrot.slane %v7041_v32, %v14031_v10 }
 0xd0c   :  { %v7317_v46 = vcombine.low %v7033_v45, %v7048_v13  ;;  %v7331_v55 = vrot.slane %v7315_v49, %v14031_v10  ;;  %v7338_v26 = vrot.slane %v7316_v51, %v14031_v10 }
 0xd0d   :  { %7096 = vrot.lane.b32.xlu1 %v6981_v41, %s13908_s28  ;;  %v7369_v38 = vrot.slane %v7055_v28, %v14031_v10 }
 0xd0e   :  { %v7345_v1 = vrot.slane %v7317_v46, %v14031_v10  ;;  %v7346_v57 = vcombine.low %v7324_v2, %v7331_v55 }
 0xd0f   :  { %7102 = vrot.lane.b32.xlu0 %v6980_v18, %s13908_s28  ;;  %v16303_v61 = vrot.slane %v7369_v38, %v14031_v10 }
 0xd10   :  { %v7347_v29 = vcombine.low %v7338_v26, %v7345_v1 }
 0xd11   :  { %7100 = vrot.lane.b32.xlu1 %v6966_v50, %s13908_s28 }
 0xd12   :  { %v7361_v15 = vrot.slane %v7347_v29, %v14031_v10 }
 0xd13   :  { %7134 = vrot.lane.b32.xlu0 %v6983_v40, %s13909_s29 }
 0xd15   :  { %7132 = vrot.lane.b32.xlu1 %v6981_v41, %s13909_s29 }
 0xd17   :  { %7138 = vrot.lane.b32.xlu0 %v6980_v18, %s13909_s29  ;;  %v7219_v18 = vrot.slane %v16236_v37, %v14031_v10 }
 0xd19   :  { %7136 = vrot.lane.b32.xlu1 %v6966_v50, %s13909_s29  ;;  %v7354_v50 = vrot.slane %v7346_v57, %v14031_v10  ;;  %v16297_v42 = vrot.slane %v7219_v18, %v14031_v10 }
 0xd1b   :  { %7070 = vrot.lane.b32.xlu0 %v6984_v33, %s13907_s26  ;;  %v16292_v22 = vcombine.low %v7354_v50, %v7361_v15 }
 0xd1d   :  { %7062 = vrot.lane.b32.xlu1 %v6983_v40, %s13907_s26 }
 0xd1f   :  { %7074 = vrot.lane.b32.xlu0 %v7022_v59, %s13907_s26 }
 0xd21   :  { %7068 = vrot.lane.b32.xlu1 %v6982_v16, %s13907_s26 }
 0xd23   :  { %7106 = vrot.lane.b32.xlu0 %v6984_v33, %s13908_s28 }
 0xd25   :  { %7072 = vrot.lane.b32.xlu1 %v16236_v37, %s13907_s26 }
 0xd27   :  { %7110 = vrot.lane.b32.xlu0 %v7022_v59, %s13908_s28 }
 0xd29   :  { %7104 = vrot.lane.b32.xlu1 %v6982_v16, %s13908_s28 }
 0xd2b   :  { %7142 = vrot.lane.b32.xlu0 %v6984_v33, %s13909_s29 }
 0xd2d   :  { %7108 = vrot.lane.b32.xlu1 %v16236_v37, %s13908_s28 }
 0xd2f   :  { %7146 = vrot.lane.b32.xlu0 %v7022_v59, %s13909_s29 }
 0xd31   :  { %7140 = vrot.lane.b32.xlu1 %v6982_v16, %s13909_s29 }
 0xd33   :  { %7078 = vrot.lane.b32.xlu0 %v7032_v24, %s13907_s26 }
 0xd35   :  { %7144 = vrot.lane.b32.xlu1 %v16236_v37, %s13909_s29 }
 0xd37   :  { %7082 = vrot.lane.b32.xlu0 %v7029_v52, %s13907_s26 }
 0xd39   :  { %7076 = vrot.lane.b32.xlu1 %v7030_v43, %s13907_s26 }
 0xd3b   :  { %7114 = vrot.lane.b32.xlu0 %v7032_v24, %s13908_s28 }
 0xd3d   :  { %7080 = vrot.lane.b32.xlu1 %v7015_v47, %s13907_s26 }
 0xd3f   :  { %7118 = vrot.lane.b32.xlu0 %v7029_v52, %s13908_s28 }
 0xd41   :  { %7112 = vrot.lane.b32.xlu1 %v7030_v43, %s13908_s28 }
 0xd43   :  { %7150 = vrot.lane.b32.xlu0 %v7032_v24, %s13909_s29 }
 0xd45   :  { %7116 = vrot.lane.b32.xlu1 %v7015_v47, %s13908_s28 }
 0xd47   :  { %7154 = vrot.lane.b32.xlu0 %v7029_v52, %s13909_s29 }
 0xd49   :  { %7148 = vrot.lane.b32.xlu1 %v7030_v43, %s13909_s29 }
 0xd4b   :  { %7086 = vrot.lane.b32.xlu0 %v7033_v45, %s13907_s26 }
 0xd4d   :  { %7152 = vrot.lane.b32.xlu1 %v7015_v47, %s13909_s29 }
 0xd4f   :  { %7090 = vrot.lane.b32.xlu0 %v7055_v28, %s13907_s26 }
 0xd51   :  { %7084 = vrot.lane.b32.xlu1 %v7031_v30, %s13907_s26 }
 0xd53   :  { %7122 = vrot.lane.b32.xlu0 %v7033_v45, %s13908_s28 }
 0xd55   :  { %7088 = vrot.lane.b32.xlu1 %v7048_v13, %s13907_s26 }
 0xd57   :  { %7126 = vrot.lane.b32.xlu0 %v7055_v28, %s13908_s28 }
 0xd59   :  { %7120 = vrot.lane.b32.xlu1 %v7031_v30, %s13908_s28 }
 0xd5b   :  { %7158 = vrot.lane.b32.xlu0 %v7033_v45, %s13909_s29 }
 0xd5d   :  { %7124 = vrot.lane.b32.xlu1 %v7048_v13, %s13908_s28 }
 0xd5f   :  { %7162 = vrot.lane.b32.xlu0 %v7055_v28, %s13909_s29 }
 0xd61   :  { %7156 = vrot.lane.b32.xlu1 %v7031_v30, %s13909_s29 }
 0xd63   :  { %7227 = vrot.lane.b32.xlu0 %v16215_v58, %s13910_s0 }
 0xd65   :  { %7160 = vrot.lane.b32.xlu1 %v7048_v13, %s13909_s29 }
 0xd67   :  { %7377 = vrot.lane.b32.xlu0 %v16292_v22, %s13910_s0 }
 0xd69   :  { %7229 = vrot.lane.b32.xlu1 %v16297_v42, %s13910_s0 }
 0xd6b   :  { %v7057_v25 = vpop.permute.xlu1 %7056 }
 0xd6d   :  { %v7059_v6 = vpop.permute.xlu0 %7058  ;;  %7379 = vrot.lane.b32.xlu1 %v16303_v61, %s13910_s0 }
 0xd6e   :  { %v7464_v59 = vcombine.low %v7057_v25, %v7059_v6 }
 0xd6f   :  { %v16307_v35 = vpop.permute.xlu1 %7092 }
 0xd70   :  { %v7474_v24 = vrot.slane %v7464_v59, %v14031_v10 }
 0xd71   :  { %v16309_v27 = vpop.permute.xlu0 %7094 }
 0xd73   :  { %v16311_v34 = vpop.permute.xlu1 %7128 }
 0xd75   :  { %v16313_v39 = vpop.permute.xlu0 %7130 }
 0xd77   :  { %v7061_v53 = vpop.permute.xlu1 %7060 }
 0xd79   :  { %v7067_v54 = vpop.permute.xlu0 %7066 }
 0xd7b   :  { %v7065_v60 = vpop.permute.xlu1 %7064 }
 0xd7c   :  { %v7466_v19 = vcombine.low %v7065_v60, %v7067_v54 }
 0xd7d   :  { %v16315_v41 = vpop.permute.xlu0 %7098 }
 0xd7e   :  { %v7488_v47 = vrot.slane %v7466_v19, %v14031_v10 }
 0xd7f   :  { %v16317_v36 = vpop.permute.xlu1 %7096 }
 0xd81   :  { %v16319_v63 = vpop.permute.xlu0 %7102 }
 0xd83   :  { %v16321_v31 = vpop.permute.xlu1 %7100 }
 0xd85   :  { %v16323_v44 = vpop.permute.xlu0 %7134 }
 0xd87   :  { %v16325_v40 = vpop.permute.xlu1 %7132 }
 0xd89   :  { %v16327_v7 = vpop.permute.xlu0 %7138 }
 0xd8b   :  { %v16329_v17 = vpop.permute.xlu1 %7136 }
 0xd8d   :  { %v7071_v23 = vpop.permute.xlu0 %7070 }
 0xd8f   :  { %v7063_v33 = vpop.permute.xlu1 %7062 }
 0xd90   :  { %v7465_v16 = vcombine.low %v7061_v53, %v7063_v33 }
 0xd91   :  { %v7075_v37 = vpop.permute.xlu0 %7074 }
 0xd92   :  { %v7481_v14 = vrot.slane %v7465_v16, %v14031_v10 }
 0xd93   :  { %v7069_v56 = vpop.permute.xlu1 %7068 }
 0xd94   :  { %v7467_v52 = vcombine.low %v7069_v56, %v7071_v23  ;;  %v7496_v0 = vcombine.low %v7474_v24, %v7481_v14  ;;  %v7765_v24 = vcombine.low %v16317_v36, %v16315_v41 }
 0xd95   :  { %v7107_v43 = vpop.permute.xlu0 %7106 }
 0xd96   :  { %v7495_v32 = vrot.slane %v7467_v52, %v14031_v10  ;;  %v7504_v46 = vrot.slane %v7496_v0, %v14031_v10  ;;  %v7781_v41 = vrot.slane %v7765_v24, %v14031_v10 }
 0xd97   :  { %v7073_v45 = vpop.permute.xlu1 %7072 }
 0xd98   :  { %v7497_v28 = vcombine.low %v7488_v47, %v7495_v32  ;;  %v7519_v30 = vrot.slane %v7073_v45, %v14031_v10 }
 0xd99   :  { %v16336_v13 = vpop.permute.xlu0 %7110 }
 0xd9a   :  { %v7511_v49 = vrot.slane %v7497_v28, %v14031_v10  ;;  %v16341_v51 = vrot.slane %v7519_v30, %v14031_v10  ;;  %v7764_v28 = vcombine.low %v16307_v35, %v16309_v27  ;;  %v7766_v30 = vcombine.low %v16321_v31, %v16319_v63 }
 0xd9b   :  { %v7105_v48 = vpop.permute.xlu1 %7104 }
 0xd9c   :  { %7529 = vrot.lane.b32.xlu1 %v16341_v51, %s13910_s0  ;;  %v16345_v1 = vcombine.low %v7504_v46, %v7511_v49  ;;  %v7767_v52 = vcombine.low %v7105_v48, %v7107_v43  ;;  %v7774_v63 = vrot.slane %v7764_v28, %v14031_v10  ;;  %v7788_v31 = vrot.slane %v7766_v30, %v14031_v10 }
 0xd9d   :  { %v16347_v55 = vpop.permute.xlu0 %7142 }
 0xd9e   :  { %7527 = vrot.lane.b32.xlu0 %v16345_v1, %s13910_s0  ;;  %v7795_v36 = vrot.slane %v7767_v52, %v14031_v10 }
 0xd9f   :  { %v7109_v26 = vpop.permute.xlu1 %7108 }
 0xda0   :  { %v7819_v0 = vrot.slane %v7109_v26, %v14031_v10 }
 0xda1   :  { %v16351_v2 = vpop.permute.xlu0 %7146 }
 0xda2   :  { %v16384_v43 = vrot.slane %v7819_v0, %v14031_v10  ;;  %v8065_v0 = vcombine.low %v16325_v40, %v16323_v44 }
 0xda3   :  { %v16353_v29 = vpop.permute.xlu1 %7140 }
 0xda4   :  { %v8067_v52 = vcombine.low %v16353_v29, %v16347_v55 }
 0xda5   :  { %v7079_v57 = vpop.permute.xlu0 %7078 }
 0xda6   :  { %v8095_v30 = vrot.slane %v8067_v52, %v14031_v10 }
 0xda7   :  { %v16355_v15 = vpop.permute.xlu1 %7144 }
 0xda9   :  { %v7083_v50 = vpop.permute.xlu0 %7082 }
 0xdab   :  { %v7077_v18 = vpop.permute.xlu1 %7076 }
 0xdac   :  { %v7614_v32 = vcombine.low %v7075_v37, %v7077_v18 }
 0xdad   :  { %v7115_v38 = vpop.permute.xlu0 %7114 }
 0xdae   :  { %v7624_v35 = vrot.slane %v7614_v32, %v14031_v10  ;;  %v8066_v32 = vcombine.low %v16329_v17, %v16327_v7 }
 0xdaf   :  { %v7081_v25 = vpop.permute.xlu1 %7080 }
 0xdb0   :  { %v7615_v14 = vcombine.low %v7079_v57, %v7081_v25 }
 0xdb1   :  { %v16357_v6 = vpop.permute.xlu0 %7118 }
 0xdb2   :  { %v7631_v49 = vrot.slane %v7615_v14, %v14031_v10  ;;  %v7796_v14 = vcombine.low %v7774_v63, %v7781_v41  ;;  %v8081_v41 = vrot.slane %v8065_v0, %v14031_v10 }
 0xdb3   :  { %v7113_v53 = vpop.permute.xlu1 %7112 }
 0xdb4   :  { %v7804_v44 = vrot.slane %v7796_v14, %v14031_v10 }
 0xdb5   :  { %v16359_v54 = vpop.permute.xlu0 %7150 }
 0xdb7   :  { %v7117_v60 = vpop.permute.xlu1 %7116 }
 0xdb8   :  { %v7915_v48 = vcombine.low %v7115_v38, %v7117_v60  ;;  %v8119_v38 = vrot.slane %v16355_v15, %v14031_v10  ;;  %v8064_v15 = vcombine.low %v16311_v34, %v16313_v39 }
 0xdb9   :  { %v16361_v23 = vpop.permute.xlu0 %7154 }
 0xdba   :  { %v7931_v28 = vrot.slane %v7915_v48, %v14031_v10 }
 0xdbb   :  { %v16363_v33 = vpop.permute.xlu1 %7148 }
 0xdbc   :  { %v8214_v48 = vcombine.low %v16351_v2, %v16363_v33 }
 0xdbd   :  { %v7087_v59 = vpop.permute.xlu0 %7086 }
 0xdbf   :  { %v16365_v16 = vpop.permute.xlu1 %7152 }
 0xdc0   :  { %v8215_v39 = vcombine.low %v16359_v54, %v16365_v16 }
 0xdc1   :  { %v7091_v19 = vpop.permute.xlu0 %7090 }
 0xdc2   :  { %v7669_v56 = vrot.slane %v7091_v19, %v14031_v10 }
 0xdc3   :  { %v7085_v47 = vpop.permute.xlu1 %7084 }
 0xdc4   :  { %v16372_v45 = vrot.slane %v7669_v56, %v14031_v10  ;;  %v7616_v57 = vcombine.low %v7083_v50, %v7085_v47  ;;  %v7646_v50 = vcombine.low %v7624_v35, %v7631_v49  ;;  %v7797_v56 = vcombine.low %v7788_v31, %v7795_v36 }
 0xdc5   :  { %v7123_v46 = vpop.permute.xlu0 %7122  ;;  %v16419_v49 = vrot.slane %v8119_v38, %v14031_v10  ;;  %v8088_v36 = vrot.slane %v8066_v32, %v14031_v10 }
 0xdc6   :  { %7679 = vrot.lane.b32.xlu1 %v16372_v45, %s13910_s0  ;;  %v7638_v18 = vrot.slane %v7616_v57, %v14031_v10  ;;  %v7811_v40 = vrot.slane %v7797_v56, %v14031_v10 }
 0xdc7   :  { %v7089_v37 = vpop.permute.xlu1 %7088  ;;  %v8097_v16 = vcombine.low %v8088_v36, %v8095_v30 }
 0xdc8   :  { %v7617_v27 = vcombine.low %v7087_v59, %v7089_v37  ;;  %v7914_v59 = vcombine.low %v16336_v13, %v7113_v53  ;;  %v7654_v53 = vrot.slane %v7646_v50, %v14031_v10  ;;  %v16437_v54 = vcombine.low %v7804_v44, %v7811_v40 }
 0xdc9   :  { %v7127_v26 = vpop.permute.xlu0 %7126  ;;  %v8111_v33 = vrot.slane %v8097_v16, %v14031_v10 }
 0xdca   :  { %v7645_v25 = vrot.slane %v7617_v27, %v14031_v10  ;;  %v7969_v19 = vrot.slane %v7127_v26, %v14031_v10  ;;  %7829 = vrot.lane.b32.xlu1 %v16384_v43, %s13910_s0  ;;  %v7924_v7 = vrot.slane %v7914_v59, %v14031_v10  ;;  %v8224_v59 = vrot.slane %v8214_v48, %v14031_v10 }
 0xdcb   :  { %v7121_v24 = vpop.permute.xlu1 %7120 }
 0xdcc   :  { %v7647_v60 = vcombine.low %v7638_v18, %v7645_v25  ;;  %v16400_v47 = vrot.slane %v7969_v19, %v14031_v10  ;;  %v7916_v29 = vcombine.low %v16357_v6, %v7121_v24  ;;  %v7946_v34 = vcombine.low %v7924_v7, %v7931_v28 }
 0xdcd   :  { %v7159_v13 = vpop.permute.xlu0 %7158  ;;  %v8231_v19 = vrot.slane %v8215_v39, %v14031_v10 }
 0xdce   :  { %v7661_v55 = vrot.slane %v7647_v60, %v14031_v10  ;;  %7979 = vrot.lane.b32.xlu1 %v16400_v47, %s13910_s0  ;;  %v7938_v35 = vrot.slane %v7916_v29, %v14031_v10  ;;  %v7954_v25 = vrot.slane %v7946_v34, %v14031_v10 }
 0xdcf   :  { %v7125_v17 = vpop.permute.xlu1 %7124  ;;  %v8246_v60 = vcombine.low %v8224_v59, %v8231_v19 }
 0xdd0   :  { %v7917_v57 = vcombine.low %v7123_v46, %v7125_v17  ;;  %v16421_v6 = vcombine.low %v7654_v53, %v7661_v55  ;;  %v8074_v46 = vrot.slane %v8064_v15, %v14031_v10 }
 0xdd1   :  { %v7163_v37 = vpop.permute.xlu0 %7162  ;;  %v8254_v53 = vrot.slane %v8246_v60, %v14031_v10 }
 0xdd2   :  { %v7945_v27 = vrot.slane %v7917_v57, %v14031_v10  ;;  %v8269_v63 = vrot.slane %v7163_v37, %v14031_v10  ;;  %8129 = vrot.lane.b32.xlu1 %v16419_v49, %s13910_s0  ;;  %7677 = vrot.lane.b32.xlu0 %v16421_v6, %s13910_s0  ;;  %v8096_v18 = vcombine.low %v8074_v46, %v8081_v41 }
 0xdd3   :  { %13508 = vmatprep.mubr.msk.f32.mxu1 %vm1428_vm3, %v16421_v6  ;;  %v7157_v31 = vpop.permute.xlu1 %7156 }
 0xdd4   :  { %v7947_v26 = vcombine.low %v7938_v35, %v7945_v27  ;;  %v16442_v50 = vrot.slane %v8269_v63, %v14031_v10  ;;  %v8216_v56 = vcombine.low %v16361_v23, %v7157_v31  ;;  %v8104_v38 = vrot.slane %v8096_v18, %v14031_v10 }
 0xdd5   :  { %v7228_v55 = vpop.permute.xlu0 %7227 }
 0xdd6   :  { %v7961_v14 = vrot.slane %v7947_v26, %v14031_v10  ;;  %8279 = vrot.lane.b32.xlu1 %v16442_v50, %s13910_s0  ;;  %7827 = vrot.lane.b32.xlu0 %v16437_v54, %s13910_s0  ;;  %v8238_v0 = vrot.slane %v8216_v56, %v14031_v10 }
 0xdd7   :  { %v7161_v2 = vpop.permute.xlu1 %7160 }
 0xdd8   :  { %v8217_v24 = vcombine.low %v7159_v13, %v7161_v2  ;;  %v16454_v52 = vcombine.low %v7954_v25, %v7961_v14  ;;  %v16464_v13 = vcombine.low %v8104_v38, %v8111_v33 }
 0xdd9   :  { %v7378_v40 = vpop.permute.xlu0 %7377 }
 0xdda   :  { %v8245_v23 = vrot.slane %v8217_v24, %v14031_v10  ;;  %8558 = vrot.lane.b32.xlu1 %v16297_v42, %s13911_s30  ;;  %7977 = vrot.lane.b32.xlu0 %v16454_v52, %s13910_s0 }
 0xddb   :  { %v7230_v32 = vpop.permute.xlu1 %7229 }
 0xddc   :  { %v8247_v28 = vcombine.low %v8238_v0, %v8245_v23  ;;  %13483 = vmatprep.subr.msk.mxu0 %vm1428_vm3, %v7230_v32 }
 0xddd   :  { %13484 = vmatpush3.xpose.msk.msra.mxu0 %vm1428_vm3, %v7230_v32 }
 0xdde   :  { %v8261_v29 = vrot.slane %v8247_v28, %v14031_v10  ;;  %8646 = vrot.lane.b32.xlu1 %v16303_v61, %s13911_s30  ;;  %8127 = vrot.lane.b32.xlu0 %v16464_v13, %s13910_s0 }
 0xddf   :  { %13485 = vmatprep.subr.msk.mxu0 %vm1428_vm3, %v7228_v55  ;;  %v7380_v44 = vpop.permute.xlu1 %7379 }
 0xde0   :  { %v16474_v15 = vcombine.low %v8254_v53, %v8261_v29 }
 0xde1   :  { %13486 = vmatpush3.xpose.msk.msra.mxu0 %vm1428_vm3, %v7228_v55 }
 0xde2   :  { %8734 = vrot.lane.b32.xlu1 %v16341_v51, %s13911_s30  ;;  %8277 = vrot.lane.b32.xlu0 %v16474_v15, %s13910_s0 }
 0xde3   :  { %13490 = vmatprep.subr.msk.mxu0 %vm1428_vm3, %v7380_v44 }
 0xde4   :  { %13488 = vmatmul.mubr.msk.f32.vlgmr.msra.gmra.mxu0 %vm1428_vm3, %v16297_v42 }
 0xde5   :  { %13491 = vmatpush3.xpose.msk.msra.mxu0 %vm1428_vm3, %v7380_v44  ;;  %13494 = vmatprep.mubr.msk.f32.mxu0 %vm1428_vm3, %v16292_v22 }
 0xde6   :  { %8644 = vrot.lane.b32.xlu1 %v16292_v22, %s13911_s30  ;;  %8556 = vrot.lane.b32.xlu0 %v16215_v58, %s13911_s30 }
 0xde7   :  { %13492 = vmatprep.subr.msk.mxu0 %vm1428_vm3, %v7378_v40 }
 0xde9   :  { %13493 = vmatpush3.xpose.msk.msra.mxu0 %vm1428_vm3, %v7378_v40 }
 0xdea   :  { %8822 = vrot.lane.b32.xlu1 %v16372_v45, %s13911_s30  ;;  %8732 = vrot.lane.b32.xlu0 %v16345_v1, %s13911_s30 }
 0xdec   :  { %13495 = vmatmul.mubr.msk.f32.vlgmr.msra.gmra.mxu0 %vm1428_vm3, %v16303_v61 }
 0xded   :  { %13501 = vmatprep.mubr.msk.f32.mxu0 %vm1428_vm3, %v16345_v1 }
 0xdee   :  { %8998 = vrot.lane.b32.xlu1 %v16400_v47, %s13911_s30  ;;  %8910 = vrot.lane.b32.xlu0 %v16384_v43, %s13911_s30 }
 0xdf2   :  { %8820 = vrot.lane.b32.xlu1 %v16421_v6, %s13911_s30  ;;  %8908 = vrot.lane.b32.xlu0 %v16437_v54, %s13911_s30 }
 0xe0e   :  { %v7530_v58 = vpop.permute.xlu1 %7529 }
 0xe0f   :  { %13497 = vmatprep.subr.msk.mxu0 %vm1428_vm3, %v7530_v58 }
 0xe10   :  { %v7528_v22 = vpop.permute.xlu0 %7527  ;;  %13498 = vmatpush3.xpose.msk.msra.mxu0 %vm1428_vm3, %v7530_v58 }
 0xe11   :  { %13499 = vmatprep.subr.msk.mxu0 %vm1428_vm3, %v7528_v22 }
 0xe14   :  { %13500 = vmatpush3.xpose.msk.msra.mxu0 %vm1428_vm3, %v7528_v22 }
 0xe17   :  { %13502 = vmatmul.mubr.msk.f32.vlgmr.msra.gmra.mxu0 %vm1428_vm3, %v16341_v51 }
 0xe18   :  { %13515 = vmatprep.mubr.msk.f32.mxu0 %vm1428_vm3, %v16437_v54 }
 0xe38   :  { %v7680_v42 = vpop.permute.xlu1 %7679 }
 0xe39   :  { %13504 = vmatprep.subr.msk.mxu1 %vm1428_vm3, %v7680_v42 }
 0xe3a   :  { %13505 = vmatpush3.xpose.msk.msra.mxu1 %vm1428_vm3, %v7680_v42 }
 0xe3c   :  { %v7830_v61 = vpop.permute.xlu1 %7829 }
 0xe3d   :  { %13511 = vmatprep.subr.msk.mxu0 %vm1428_vm3, %v7830_v61 }
 0xe3e   :  { %13512 = vmatpush3.xpose.msk.msra.mxu0 %vm1428_vm3, %v7830_v61 }
 0xe40   :  { %v7980_v1 = vpop.permute.xlu1 %7979 }
 0xe44   :  { %v7678_v7 = vpop.permute.xlu0 %7677  ;;  %v8130_v17 = vpop.permute.xlu1 %8129 }
 0xe45   :  { %13506 = vmatprep.subr.msk.mxu1 %vm1428_vm3, %v7678_v7 }
 0xe46   :  { %13507 = vmatpush3.xpose.msk.msra.mxu1 %vm1428_vm3, %v7678_v7 }
 0xe47   :  { %13518 = vmatprep.subr.msk.mxu1 %vm1428_vm3, %v7980_v1 }
 0xe48   :  { %v7828_v51 = vpop.permute.xlu0 %7827  ;;  %v8280_v30 = vpop.permute.xlu1 %8279 }
 0xe49   :  { %13509 = vmatmul.mubr.msk.f32.vlgmr.msra.gmra.mxu1 %vm1428_vm3, %v16372_v45  ;;  %13513 = vmatprep.subr.msk.mxu0 %vm1428_vm3, %v7828_v51 }
 0xe4a   :  { %13514 = vmatpush3.xpose.msk.msra.mxu0 %vm1428_vm3, %v7828_v51  ;;  %13519 = vmatpush3.xpose.msk.msra.mxu1 %vm1428_vm3, %v7980_v1 }
 0xe4b   :  { %13522 = vmatprep.mubr.msk.f32.mxu1 %vm1428_vm3, %v16454_v52  ;;  %13525 = vmatprep.subr.msk.mxu0 %vm1428_vm3, %v8130_v17 }
 0xe4c   :  { %v7978_v57 = vpop.permute.xlu0 %7977  ;;  %v8559_v6 = vpop.permute.xlu1 %8558 }
 0xe4d   :  { %13516 = vmatmul.mubr.msk.f32.vlgmr.msra.gmra.mxu0 %vm1428_vm3, %v16384_v43  ;;  %13520 = vmatprep.subr.msk.mxu1 %vm1428_vm3, %v7978_v57 }
 0xe4e   :  { %13521 = vmatpush3.xpose.msk.msra.mxu1 %vm1428_vm3, %v7978_v57  ;;  %13526 = vmatpush3.xpose.msk.msra.mxu0 %vm1428_vm3, %v8130_v17 }
 0xe4f   :  { %13529 = vmatprep.mubr.msk.f32.mxu0 %vm1428_vm3, %v16464_v13  ;;  %13532 = vmatprep.subr.msk.mxu1 %vm1428_vm3, %v8280_v30 }
 0xe50   :  { %v8128_v45 = vpop.permute.xlu0 %8127  ;;  %v8647_v41 = vpop.permute.xlu1 %8646 }
 0xe51   :  { %13523 = vmatmul.mubr.msk.f32.vlgmr.msra.gmra.mxu1 %vm1428_vm3, %v16400_v47  ;;  %13527 = vmatprep.subr.msk.mxu0 %vm1428_vm3, %v8128_v45 }
 0xe52   :  { %13528 = vmatpush3.xpose.msk.msra.mxu0 %vm1428_vm3, %v8128_v45  ;;  %13533 = vmatpush3.xpose.msk.msra.mxu1 %vm1428_vm3, %v8280_v30 }
 0xe53   :  { %13536 = vmatprep.mubr.msk.f32.mxu1 %vm1428_vm3, %v16474_v15  ;;  %13539 = vmatprep.subr.msk.mxu0 %vm2767_vm4, %v8559_v6 }
 0xe54   :  { %v8278_v43 = vpop.permute.xlu0 %8277  ;;  %v16548_v36 = vpop.permute.xlu1 %8734 }
 0xe55   :  { %13530 = vmatmul.mubr.msk.f32.vlgmr.msra.gmra.mxu0 %vm1428_vm3, %v16419_v49  ;;  %13534 = vmatprep.subr.msk.mxu1 %vm1428_vm3, %v8278_v43 }
 0xe56   :  { %13535 = vmatpush3.xpose.msk.msra.mxu1 %vm1428_vm3, %v8278_v43  ;;  %13540 = vmatpush3.msk.msra.mxu0 %vm2767_vm4, %v8559_v6 }
 0xe57   :  { %13546 = vmatprep.subr.msk.mxu1 %vm2767_vm4, %v8647_v41 }
 0xe58   :  { %v8557_v47 = vpop.permute.xlu0 %8556  ;;  %v8645_v34 = vpop.permute.xlu1 %8644 }
 0xe59   :  { %13537 = vmatmul.mubr.msk.f32.vlgmr.msra.gmra.mxu1 %vm1428_vm3, %v16442_v50  ;;  %13541 = vmatprep.subr.mxu0 %v8557_v47 }
 0xe5a   :  { %13542 = vmatpush3.msra.mxu0 %v8557_v47  ;;  %13547 = vmatpush3.msk.msra.mxu1 %vm2767_vm4, %v8647_v41 }
 0xe5b   :  { %13548 = vmatprep.subr.mxu1 %v8645_v34  ;;  %13553 = vmatprep.subr.msk.mxu0 %vm2767_vm4, %v16548_v36 }
 0xe5c   :  { %13549 = vmatpush3.msra.mxu1 %v8645_v34  ;;  %v16561_v39 = vpop.permute.xlu1 %8822 }
 0xe5d   :  { %13560 = vmatprep.subr.msk.mxu1 %vm2767_vm4, %v16561_v39 }
 0xea4   :  { %v13489_v37 = vpop.f32.mrf.mxu0 }
 0xea5   :  { %v16565_v35 = vmul.f32 0.35355338, %v13489_v37 }
 0xea6   :  { %v7305_v27 = vpop.f32.mrf.mxu0 }
 0xea7   :  { %v16567_v63 = vmul.f32 0.35355338, %v7305_v27  ;;  %v8383_v46 = vsel %vm2582_vm5, %v16565_v35, -inf }
 0xea8   :  { %8384 = vmax.xlane.f32.xlu0 %v8383_v46  ;;  %v16629_v46 = vpop.permute.xlu0 %8732 }
 0xea9   :  { %v8380_v31 = vsel %vm2578_vm6, %v16567_v63, -inf }
 0xeaa   :  { %8381 = vmax.xlane.f32.xlu1 %v8380_v31  ;;  %v16631_v31 = vpop.permute.xlu1 %8998 }
 0xeac   :  { %v13496_v54 = vpop.f32.mrf.mxu0 }
 0xead   :  { %v16573_v16 = vmul.f32 0.35355338, %v13496_v54  ;;  %v16635_v54 = vpop.permute.xlu0 %8910 }
 0xeae   :  { %v7455_v48 = vpop.f32.mrf.mxu0 }
 0xeaf   :  { %v16575_v26 = vmul.f32 0.35355338, %v7455_v48  ;;  %v8389_v18 = vsel %vm2582_vm5, %v16573_v16, -inf  ;;  %v16637_v48 = vpop.permute.xlu1 %8820 }
 0xeb0   :  { %8390 = vmax.xlane.f32.xlu1 %v8389_v18 }
 0xeb1   :  { %v8386_v25 = vsel %vm2578_vm6, %v16575_v26, -inf  ;;  %v16641_v18 = vpop.permute.xlu0 %8908 }
 0xeb2   :  { %8387 = vmax.xlane.f32.xlu0 %v8386_v25 }
 0xed7   :  { %v13503_v19 = vpop.f32.mrf.mxu0 }
 0xed8   :  { %v16581_v14 = vmul.f32 0.35355338, %v13503_v19 }
 0xed9   :  { %v7605_v56 = vpop.f32.mrf.mxu0 }
 0xeda   :  { %v16583_v2 = vmul.f32 0.35355338, %v7605_v56  ;;  %v8395_v33 = vsel %vm2582_vm5, %v16581_v14, -inf }
 0xedb   :  { %8396 = vmax.xlane.f32.xlu0 %v8395_v33 }
 0xedc   :  { %v8392_v59 = vsel %vm2578_vm6, %v16583_v2, -inf }
 0xedf   :  { %8393 = vmax.xlane.f32.xlu0 %v8392_v59 }
 0xf09   :  { %v13510_v24 = vpop.f32.mrf.mxu1 }
 0xf0a   :  { %v16589_v38 = vmul.f32 0.35355338, %v13510_v24 }
 0xf0b   :  { %v7755_v60 = vpop.f32.mrf.mxu1 }
 0xf0c   :  { %v16591_v0 = vmul.f32 0.35355338, %v7755_v60  ;;  %v8401_v23 = vsel %vm2582_vm5, %v16589_v38, -inf }
 0xf0d   :  { %8402 = vmax.xlane.f32.xlu1 %v8401_v23  ;;  %v13517_v32 = vpop.f32.mrf.mxu0 }
 0xf0e   :  { %v16595_v28 = vmul.f32 0.35355338, %v13517_v32  ;;  %v8398_v29 = vsel %vm2578_vm6, %v16591_v0, -inf }
 0xf0f   :  { %v7905_v53 = vpop.f32.mrf.mxu0 }
 0xf10   :  { %v16597_v55 = vmul.f32 0.35355338, %v7905_v53  ;;  %v8407_v44 = vsel %vm2582_vm5, %v16595_v28, -inf }
 0xf11   :  { %8399 = vmax.xlane.f32.xlu1 %v8398_v29  ;;  %8408 = vmax.xlane.f32.xlu0 %v8407_v44  ;;  %v13524_v40 = vpop.f32.mrf.mxu1 }
 0xf12   :  { %v16603_v58 = vmul.f32 0.35355338, %v13524_v40  ;;  %v8404_v61 = vsel %vm2578_vm6, %v16597_v55, -inf }
 0xf13   :  { %v8055_v22 = vpop.f32.mrf.mxu1 }
 0xf14   :  { %v16605_v42 = vmul.f32 0.35355338, %v8055_v22  ;;  %v8413_v1 = vsel %vm2582_vm5, %v16603_v58, -inf }
 0xf15   :  { %8405 = vmax.xlane.f32.xlu0 %v8404_v61  ;;  %8414 = vmax.xlane.f32.xlu1 %v8413_v1  ;;  %v13531_v7 = vpop.f32.mrf.mxu0 }
 0xf16   :  { %v16611_v17 = vmul.f32 0.35355338, %v13531_v7  ;;  %v8410_v57 = vsel %vm2578_vm6, %v16605_v42, -inf }
 0xf17   :  { %v8205_v51 = vpop.f32.mrf.mxu0 }
 0xf18   :  { %v16613_v30 = vmul.f32 0.35355338, %v8205_v51  ;;  %v8419_v6 = vsel %vm2582_vm5, %v16611_v17, -inf }
 0xf19   :  { %8411 = vmax.xlane.f32.xlu1 %v8410_v57  ;;  %8420 = vmax.xlane.f32.xlu0 %v8419_v6  ;;  %v13538_v45 = vpop.f32.mrf.mxu1 }
 0xf1a   :  { %v16619_v43 = vmul.f32 0.35355338, %v13538_v45  ;;  %v8416_v34 = vsel %vm2578_vm6, %v16613_v30, -inf }
 0xf1b   :  { %v8355_v41 = vpop.f32.mrf.mxu1 }
 0xf1c   :  { %v16621_v47 = vmul.f32 0.35355338, %v8355_v41  ;;  %v8425_v27 = vsel %vm2582_vm5, %v16619_v43, -inf }
 0xf1d   :  { %8417 = vmax.xlane.f32.xlu0 %v8416_v34 }
 0xf1e   :  { %v8422_v37 = vsel %vm2578_vm6, %v16621_v47, -inf }
 0xf1f   :  { %8423 = vmax.xlane.f32.xlu1 %v8422_v37 }
 0xf21   :  { %8426 = vmax.xlane.f32.xlu0 %v8425_v27 }
 0xf30   :  { %8996 = vrot.lane.b32.xlu1 %v16454_v52, %s13911_s30 }
 0xf31   :  { %v8385_v56 = vpop.xlane.xlu0 %8384 }
 0xf32   :  { %v8429_v60 = vsub.f32 %v16565_v35, %v8385_v56 }
 0xf33   :  { %v8382_v25 = vpop.xlane.xlu1 %8381 }
 0xf34   :  { %v8428_v19 = vsub.f32 %v16567_v63, %v8382_v25  ;;  %v8446_v32 = vmul.f32 1.442695, %v8429_v60 }
 0xf36   :  { %v8444_v59 = vmul.f32 1.442695, %v8428_v19 }
 0xf37   :  { %9086 = vrot.lane.b32.xlu0 %v16419_v49, %s13911_s30 }
 0xf38   :  { %13794 = vpow2.f32 %v8444_v59 }
 0xf39   :  { %v8391_v33 = vpop.xlane.xlu1 %8390 }
 0xf3a   :  { %v8431_v52 = vsub.f32 %v16573_v16, %v8391_v33 }
 0xf3b   :  { %9084 = vrot.lane.b32.xlu0 %v16464_v13, %s13911_s30  ;;  %v8388_v24 = vpop.xlane.xlu0 %8387 }
 0xf3c   :  { %v8450_v23 = vmul.f32 1.442695, %v8431_v52  ;;  %v8430_v49 = vsub.f32 %v16575_v26, %v8388_v24 }
 0xf3e   :  { %13796 = vpow2.f32 %v8450_v23  ;;  %v8448_v53 = vmul.f32 1.442695, %v8430_v49 }
 0xf3f   :  { %13798 = vpow2.f32 %v8446_v32 }
 0xf40   :  { %13800 = vpow2.f32 %v8448_v53 }
 0xf45   :  { %v16649_v63 = vpop.eup %13794 }
 0xf46   :  { %v8476_v13 = vsel %vm2578_vm6, %v16649_v63, 0.0 }
 0xf4b   :  { %v16653_v29 = vpop.eup %13796 }
 0xf4c   :  { %v16655_v16 = vpop.eup %13798  ;;  %v8485_v35 = vsel %vm2582_vm5, %v16653_v29, 0.0 }
 0xf4d   :  { %v16659_v44 = vpop.eup %13800  ;;  %v8479_v26 = vsel %vm2582_vm5, %v16655_v16, 0.0 }
 0xf4e   :  { %v8482_v40 = vsel %vm2578_vm6, %v16659_v44, 0.0 }
 0xf54   :  { %8477 = vadd.xlane.f32.xlu1 %v8476_v13 }
 0xf58   :  { %8486 = vadd.xlane.f32.xlu1 %v8485_v35 }
 0xf5a   :  { %8480 = vadd.xlane.f32.xlu0 %v8479_v26 }
 0xf5c   :  { %8483 = vadd.xlane.f32.xlu1 %v8482_v40 }
 0xf64   :  { %v8397_v22 = vpop.xlane.xlu0 %8396 }
 0xf65   :  { %v8433_v61 = vsub.f32 %v16581_v14, %v8397_v22 }
 0xf67   :  { %v8454_v1 = vmul.f32 1.442695, %v8433_v61 }
 0xf68   :  { %v8394_v7 = vpop.xlane.xlu0 %8393 }
 0xf69   :  { %13802 = vpow2.f32 %v8454_v1  ;;  %v8432_v51 = vsub.f32 %v16583_v2, %v8394_v7 }
 0xf6b   :  { %v8452_v57 = vmul.f32 1.442695, %v8432_v51 }
 0xf6d   :  { %13804 = vpow2.f32 %v8452_v57 }
 0xf76   :  { %v16667_v6 = vpop.eup %13802 }
 0xf77   :  { %v8491_v45 = vsel %vm2582_vm5, %v16667_v6, 0.0 }
 0xf78   :  { %8492 = vadd.xlane.f32.xlu0 %v8491_v45 }
 0xf7a   :  { %v16671_v41 = vpop.eup %13804 }
 0xf7b   :  { %v8488_v34 = vsel %vm2578_vm6, %v16671_v41, 0.0 }
 0xf7c   :  { %8489 = vadd.xlane.f32.xlu0 %v8488_v34 }
 0xf96   :  { %v8403_v14 = vpop.xlane.xlu1 %8402 }
 0xf97   :  { %v8435_v37 = vsub.f32 %v16589_v38, %v8403_v14 }
 0xf99   :  { %v8458_v27 = vmul.f32 1.442695, %v8435_v37 }
 0xf9a   :  { %v8409_v25 = vpop.xlane.xlu0 %8408  ;;  %v8400_v2 = vpop.xlane.xlu1 %8399 }
 0xf9b   :  { %13806 = vpow2.f32 %v8458_v27  ;;  %v8437_v19 = vsub.f32 %v16595_v28, %v8409_v25  ;;  %v8434_v56 = vsub.f32 %v16591_v0, %v8400_v2 }
 0xf9d   :  { %v8462_v33 = vmul.f32 1.442695, %v8437_v19  ;;  %v8456_v59 = vmul.f32 1.442695, %v8434_v56 }
 0xf9e   :  { %v8406_v52 = vpop.xlane.xlu0 %8405  ;;  %v8415_v24 = vpop.xlane.xlu1 %8414 }
 0xf9f   :  { %13808 = vpow2.f32 %v8462_v33  ;;  %v8436_v60 = vsub.f32 %v16597_v55, %v8406_v52  ;;  %v8439_v23 = vsub.f32 %v16603_v58, %v8415_v24 }
 0xfa0   :  { %13810 = vpow2.f32 %v8456_v59 }
 0xfa1   :  { %v8460_v49 = vmul.f32 1.442695, %v8436_v60  ;;  %v8466_v38 = vmul.f32 1.442695, %v8439_v23 }
 0xfa2   :  { %v8421_v32 = vpop.xlane.xlu0 %8420  ;;  %v8412_v53 = vpop.xlane.xlu1 %8411 }
 0xfa3   :  { %13812 = vpow2.f32 %v8460_v49  ;;  %v8441_v13 = vsub.f32 %v16611_v17, %v8421_v32  ;;  %v8438_v28 = vsub.f32 %v16605_v42, %v8412_v53 }
 0xfa4   :  { %13814 = vpow2.f32 %v8466_v38 }
 0xfa5   :  { %v8470_v0 = vmul.f32 1.442695, %v8441_v13  ;;  %v8464_v35 = vmul.f32 1.442695, %v8438_v28 }
 0xfa6   :  { %v8418_v26 = vpop.xlane.xlu0 %8417 }
 0xfa7   :  { %13816 = vpow2.f32 %v8470_v0  ;;  %v8440_v40 = vsub.f32 %v16613_v30, %v8418_v26 }
 0xfa8   :  { %v16683_v55 = vpop.eup %13806  ;;  %13818 = vpow2.f32 %v8464_v35  ;;  %v8424_v58 = vpop.xlane.xlu1 %8423 }
 0xfa9   :  { %v8468_v22 = vmul.f32 1.442695, %v8440_v40  ;;  %v8442_v61 = vsub.f32 %v16621_v47, %v8424_v58  ;;  %v8497_v1 = vsel %vm2582_vm5, %v16683_v55, 0.0 }
 0xfaa   :  { %v8427_v17 = vpop.xlane.xlu0 %8426  ;;  %8498 = vadd.xlane.f32.xlu1 %v8497_v1 }
 0xfab   :  { %13820 = vpow2.f32 %v8468_v22  ;;  %v8472_v42 = vmul.f32 1.442695, %v8442_v61  ;;  %v8443_v7 = vsub.f32 %v16619_v43, %v8427_v17 }
 0xfac   :  { %v16689_v51 = vpop.eup %13808  ;;  %v16729_v23 = vpop.permute.xlu1 %8996 }
 0xfad   :  { %v16691_v57 = vpop.eup %13810  ;;  %13822 = vpow2.f32 %v8472_v42  ;;  %v8474_v30 = vmul.f32 1.442695, %v8443_v7  ;;  %v8503_v45 = vsel %vm2582_vm5, %v16689_v51, 0.0 }
 0xfae   :  { %8504 = vadd.xlane.f32.xlu0 %v8503_v45  ;;  %v8494_v47 = vsel %vm2578_vm6, %v16691_v57, 0.0  ;;  %v16731_v49 = vpop.permute.xlu0 %9086 }
 0xfaf   :  { %13824 = vpow2.f32 %v8474_v30  ;;  %8495 = vadd.xlane.f32.xlu1 %v8494_v47 }
 0xfb0   :  { %v16697_v34 = vpop.eup %13812 }
 0xfb1   :  { %v16699_v14 = vpop.eup %13814  ;;  %v8500_v43 = vsel %vm2578_vm6, %v16697_v34, 0.0 }
 0xfb2   :  { %8501 = vadd.xlane.f32.xlu0 %v8500_v43  ;;  %v8509_v37 = vsel %vm2582_vm5, %v16699_v14, 0.0  ;;  %v16733_v32 = vpop.permute.xlu0 %9084 }
 0xfb3   :  { %8510 = vadd.xlane.f32.xlu1 %v8509_v37 }
 0xfb4   :  { %v16705_v27 = vpop.eup %13816 }
 0xfb5   :  { %v16707_v25 = vpop.eup %13818  ;;  %v8515_v2 = vsel %vm2582_vm5, %v16705_v27, 0.0 }
 0xfb6   :  { %8516 = vadd.xlane.f32.xlu0 %v8515_v2  ;;  %v8506_v19 = vsel %vm2578_vm6, %v16707_v25, 0.0 }
 0xfb7   :  { %8507 = vadd.xlane.f32.xlu1 %v8506_v19 }
 0xfb8   :  { %v16713_v56 = vpop.eup %13820 }
 0xfb9   :  { %v8512_v33 = vsel %vm2578_vm6, %v16713_v56, 0.0 }
 0xfba   :  { %v16717_v59 = vpop.eup %13822  ;;  %8513 = vadd.xlane.f32.xlu0 %v8512_v33 }
 0xfbb   :  { %v8518_v52 = vsel %vm2578_vm6, %v16717_v59, 0.0 }
 0xfbc   :  { %v16721_v24 = vpop.eup %13824  ;;  %8519 = vadd.xlane.f32.xlu1 %v8518_v52 }
 0xfbd   :  { %v8521_v60 = vsel %vm2582_vm5, %v16721_v24, 0.0 }
 0xfbe   :  { %8522 = vadd.xlane.f32.xlu0 %v8521_v60 }
 0xfcd   :  { %9174 = vrot.lane.b32.xlu1 %v16442_v50, %s13911_s30 }
 0xfd4   :  { %9172 = vrot.lane.b32.xlu0 %v16474_v15, %s13911_s30 }
 0xfdd   :  { %v8478_v38 = vpop.xlane.xlu1 %8477 }
 0xfde   :  { %13826 = vrcp.f32 %v8478_v38 }
 0xfe1   :  { %v8487_v53 = vpop.xlane.xlu1 %8486 }
 0xfe3   :  { %v8481_v13 = vpop.xlane.xlu0 %8480 }
 0xfe4   :  { %13828 = vrcp.f32 %v8481_v13 }
 0xfe5   :  { %13830 = vrcp.f32 %v8487_v53  ;;  %v8484_v28 = vpop.xlane.xlu1 %8483 }
 0xfe6   :  { %13832 = vrcp.f32 %v8484_v28 }
 0xfeb   :  { %v13827_v0 = vpop.eup %13826 }
 0xfec   :  { %v8540_v50 = vmul.f32 %v13827_v0, %v16649_v63 }
 0xfee   :  { %13543 = vmatprep.mubr.msk.f32.mxu0 %vm2578_vm6, %v8540_v50 }
 0xff1   :  { %v13829_v15 = vpop.eup %13828 }
 0xff2   :  { %v13831_v35 = vpop.eup %13830  ;;  %v8541_v26 = vmul.f32 %v13829_v15, %v16655_v16 }
 0xff3   :  { %v13833_v40 = vpop.eup %13832  ;;  %v8543_v22 = vmul.f32 %v13831_v35, %v16653_v29 }
 0xff4   :  { %13544 = vmatmul.mubr.msk.f32.vlgmr.msra.gmra.mxu0 %vm2578_vm6, %v8541_v26  ;;  %v8542_v58 = vmul.f32 %v13833_v40, %v16659_v44 }
 0xff5   :  { %13554 = vmatpush3.msk.msra.mxu0 %vm2767_vm4, %v16548_v36 }
 0xff6   :  { %13555 = vmatprep.subr.mxu0 %v16629_v46  ;;  %13550 = vmatprep.mubr.msk.f32.mxu1 %vm2578_vm6, %v8542_v58 }
 0xff7   :  { %13556 = vmatpush3.msra.mxu0 %v16629_v46  ;;  %13551 = vmatmul.mubr.msk.f32.vlgmr.msra.gmra.mxu1 %vm2578_vm6, %v8543_v22 }
 0xff8   :  { %13561 = vmatpush3.msk.msra.mxu1 %vm2767_vm4, %v16561_v39  ;;  %13567 = vmatprep.subr.msk.mxu0 %vm2767_vm4, %v16635_v54 }
 0xff9   :  { %13562 = vmatprep.subr.mxu1 %v16637_v48 }
 0xffa   :  { %13563 = vmatpush3.msra.mxu1 %v16637_v48 }
 0xffb   :  { %13574 = vmatprep.subr.msk.mxu1 %vm2767_vm4, %v16631_v31 }
0x1001   :  { %v8493_v36 = vpop.xlane.xlu0 %8492 }
0x1002   :  { %13834 = vrcp.f32 %v8493_v36 }
0x1005   :  { %v8490_v63 = vpop.xlane.xlu0 %8489 }
0x1006   :  { %13836 = vrcp.f32 %v8490_v63 }
0x100f   :  { %v13835_v46 = vpop.eup %13834 }
0x1010   :  { %v8545_v39 = vmul.f32 %v13835_v46, %v16667_v6 }
0x1013   :  { %v13837_v29 = vpop.eup %13836 }
0x1014   :  { %v8544_v16 = vmul.f32 %v13837_v29, %v16671_v41 }
0x1016   :  { %13557 = vmatprep.mubr.msk.f32.mxu0 %vm2578_vm6, %v8544_v16 }
0x1017   :  { %13558 = vmatmul.mubr.msk.f32.vlgmr.msra.gmra.mxu0 %vm2578_vm6, %v8545_v39 }
0x1018   :  { %13568 = vmatpush3.msk.msra.mxu0 %vm2767_vm4, %v16635_v54 }
0x1019   :  { %13569 = vmatprep.subr.mxu0 %v16641_v18 }
0x101a   :  { %13570 = vmatpush3.msra.mxu0 %v16641_v18 }
0x101b   :  { %13581 = vmatprep.subr.msk.mxu0 %vm2767_vm4, %v16731_v49 }
0x1033   :  { %v8499_v48 = vpop.xlane.xlu1 %8498 }
0x1034   :  { %13838 = vrcp.f32 %v8499_v48 }
0x1037   :  { %v8505_v44 = vpop.xlane.xlu0 %8504 }
0x1038   :  { %v8496_v41 = vpop.xlane.xlu1 %8495 }
0x1039   :  { %13840 = vrcp.f32 %v8496_v41 }
0x103a   :  { %13842 = vrcp.f32 %v8505_v44 }
0x103b   :  { %v8502_v6 = vpop.xlane.xlu0 %8501 }
0x103c   :  { %13844 = vrcp.f32 %v8502_v6  ;;  %v8511_v61 = vpop.xlane.xlu1 %8510 }
0x103d   :  { %13846 = vrcp.f32 %v8511_v61 }
0x103f   :  { %v8517_v1 = vpop.xlane.xlu0 %8516 }
0x1040   :  { %v8508_v17 = vpop.xlane.xlu1 %8507 }
0x1041   :  { %13848 = vrcp.f32 %v8508_v17  ;;  %v13839_v18 = vpop.eup %13838 }
0x1042   :  { %13850 = vrcp.f32 %v8517_v1  ;;  %v8547_v43 = vmul.f32 %v13839_v18, %v16683_v55 }
0x1043   :  { %v8514_v54 = vpop.xlane.xlu0 %8513 }
0x1044   :  { %13852 = vrcp.f32 %v8514_v54 }
0x1045   :  { %v8520_v42 = vpop.xlane.xlu1 %8519 }
0x1046   :  { %v13841_v7 = vpop.eup %13840  ;;  %13854 = vrcp.f32 %v8520_v42 }
0x1047   :  { %v8523_v30 = vpop.xlane.xlu0 %8522  ;;  %v8546_v45 = vmul.f32 %v13841_v7, %v16691_v57  ;;  %v13843_v47 = vpop.eup %13842 }
0x1048   :  { %13856 = vrcp.f32 %v8523_v30  ;;  %v8549_v19 = vmul.f32 %v13843_v47, %v16689_v51 }
0x1049   :  { %v13845_v37 = vpop.eup %13844  ;;  %13564 = vmatprep.mubr.msk.f32.mxu1 %vm2578_vm6, %v8546_v45  ;;  %v9175_v33 = vpop.permute.xlu1 %9174 }
0x104a   :  { %13565 = vmatmul.mubr.msk.f32.vlgmr.msra.gmra.mxu1 %vm2578_vm6, %v8547_v43  ;;  %v8548_v2 = vmul.f32 %v13845_v37, %v16697_v34  ;;  %v13847_v57 = vpop.eup %13846 }
0x104b   :  { %13575 = vmatpush3.msk.msra.mxu1 %vm2767_vm4, %v16631_v31  ;;  %v8551_v34 = vmul.f32 %v13847_v57, %v16699_v14 }
0x104c   :  { %13576 = vmatprep.subr.mxu1 %v16729_v23  ;;  %13571 = vmatprep.mubr.msk.f32.mxu0 %vm2578_vm6, %v8548_v2 }
0x104d   :  { %13577 = vmatpush3.msra.mxu1 %v16729_v23  ;;  %13572 = vmatmul.mubr.msk.f32.vlgmr.msra.gmra.mxu0 %vm2578_vm6, %v8549_v19 }
0x104e   :  { %v13849_v55 = vpop.eup %13848  ;;  %13588 = vmatprep.subr.msk.mxu1 %vm2767_vm4, %v9175_v33  ;;  %13582 = vmatpush3.msk.msra.mxu0 %vm2767_vm4, %v16731_v49  ;;  %v9173_v49 = vpop.permute.xlu0 %9172 }
0x104f   :  { %13583 = vmatprep.subr.mxu0 %v16733_v32  ;;  %v8550_v31 = vmul.f32 %v13849_v55, %v16707_v25  ;;  %v13851_v51 = vpop.eup %13850 }
0x1050   :  { %13584 = vmatpush3.msra.mxu0 %v16733_v32  ;;  %v8553_v25 = vmul.f32 %v13851_v51, %v16705_v27 }
0x1051   :  { %v13853_v52 = vpop.eup %13852  ;;  %13578 = vmatprep.mubr.msk.f32.mxu1 %vm2578_vm6, %v8550_v31  ;;  %13595 = vmatprep.subr.mxu0 %v18081_v62 }
0x1052   :  { %13579 = vmatmul.mubr.msk.f32.vlgmr.msra.gmra.mxu1 %vm2578_vm6, %v8551_v34  ;;  %v8552_v60 = vmul.f32 %v13853_v52, %v16713_v56 }
0x1053   :  { %v13855_v23 = vpop.eup %13854  ;;  %13589 = vmatpush3.msk.msra.mxu1 %vm2767_vm4, %v9175_v33 }
0x1054   :  { %13590 = vmatprep.subr.mxu1 %v9173_v49  ;;  %13585 = vmatprep.mubr.msk.f32.mxu0 %vm2578_vm6, %v8552_v60  ;;  %v8554_v14 = vmul.f32 %v13855_v23, %v16717_v59 }
0x1055   :  { %v13857_v38 = vpop.eup %13856  ;;  %13591 = vmatpush3.msra.mxu1 %v9173_v49  ;;  %13586 = vmatmul.mubr.msk.f32.vlgmr.msra.gmra.mxu0 %vm2578_vm6, %v8553_v25 }
0x1056   :  { %13592 = vmatprep.mubr.msk.f32.mxu1 %vm2578_vm6, %v8554_v14  ;;  %v8555_v32 = vmul.f32 %v13857_v38, %v16721_v24  ;;  %13603 = vmatprep.mubr.msk.f32.mxu0 %vm13906_vm2, %v18081_v62 }
0x1057   :  { %13612 = vmatprep.subr.mxu1 %v18081_v62 }
0x1058   :  { %13593 = vmatmul.mubr.msk.f32.vlgmr.msra.gmra.mxu1 %vm2578_vm6, %v8555_v32 }
0x1059   :  { %13620 = vmatprep.mubr.msk.f32.mxu1 %vm13906_vm2, %v18081_v62 }
0x10b4   :  { %v16801_v27 = vpop.f32.mrf.mxu0 }
0x10b6   :  { %v16803_v56 = vpop.f32.mrf.mxu0 }
0x10b7   :  { %v16818_v1 = vpop.f32.mrf.mxu1 }
0x10b9   :  { %v16820_v17 = vpop.f32.mrf.mxu1 }
0x10d7   :  { %v13559_v59 = vpop.f32.mrf.mxu0 }
0x10d8   :  { %v9449_v18 = vrot.slane %v13559_v59, %v14031_v10 }
0x10d9   :  { %v8811_v53 = vpop.f32.mrf.mxu0 }
0x10da   :  { %v9394_v13 = vcombine.high %v8811_v53, %v8811_v53  ;;  %v9401_v28 = vrot.slane %v8811_v53, %v14031_v10  ;;  %v9456_v19 = vrot.slane %v9449_v18, %v14031_v10 }
0x10dc   :  { %v9408_v24 = vrot.slane %v9394_v13, %v14031_v10  ;;  %v9409_v0 = vcombine.high %v9401_v28, %v9401_v28  ;;  %v9417_v15 = vrot.slane %v9401_v28, %v14031_v10 }
0x10de   :  { %v9410_v50 = vcombine.high %v9408_v24, %v9408_v24  ;;  %v9431_v35 = vrot.slane %v9409_v0, %v14031_v10  ;;  %v9424_v26 = vrot.slane %v9408_v24, %v14031_v10 }
0x10e0   :  { %v9438_v40 = vrot.slane %v9410_v50, %v14031_v10  ;;  %v9896_v58 = vcombine.low %v9417_v15, %v9431_v35  ;;  %v12997_v22 = vcombine.high %v9417_v15, %v9431_v35 }
0x10e2   :  { %v9898_v36 = vcombine.low %v9424_v26, %v9438_v40  ;;  %v12998_v63 = vcombine.high %v9424_v26, %v9438_v40  ;;  %v9906_v46 = vrot.slane %v9896_v58, %v14031_v10  ;;  %v9913_v29 = vrot.slane %v12997_v22, %v14031_v10 }
0x10e4   :  { %v9920_v16 = vrot.slane %v9898_v36, %v14031_v10  ;;  %v9927_v39 = vrot.slane %v12998_v63, %v14031_v10  ;;  %v9928_v48 = vcombine.low %v9906_v46, %v9913_v29 }
0x10e6   :  { %v9929_v44 = vcombine.low %v9920_v16, %v9927_v39  ;;  %v9936_v41 = vrot.slane %v9928_v48, %v14031_v10 }
0x10e8   :  { %v9943_v6 = vrot.slane %v9929_v44, %v14031_v10 }
0x10ea   :  { %v9944_v61 = vcombine.low %v9936_v41, %v9943_v6 }
0x10ec   :  { %10009 = vrot.lane.b32.xlu1 %v9944_v61, %s18149_s4 }
0x110a   :  { %v13566_v54 = vpop.f32.mrf.mxu1 }
0x110b   :  { %v9512_v57 = vrot.slane %v13566_v54, %v14031_v10 }
0x110c   :  { %v8899_v42 = vpop.f32.mrf.mxu1 }
0x110d   :  { %v9457_v7 = vcombine.high %v8899_v42, %v8899_v42  ;;  %v9464_v30 = vrot.slane %v8899_v42, %v14031_v10  ;;  %v13573_v45 = vpop.f32.mrf.mxu0  ;;  %v16845_v40 = vrot.slane %v9512_v57, %v14031_v10 }
0x110e   :  { %v9579_v23 = vrot.slane %v13573_v45, %v14031_v10 }
0x110f   :  { %v9471_v47 = vrot.slane %v9457_v7, %v14031_v10  ;;  %v9472_v43 = vcombine.high %v9464_v30, %v9464_v30  ;;  %v9480_v37 = vrot.slane %v9464_v30, %v14031_v10  ;;  %v8987_v2 = vpop.f32.mrf.mxu0 }
0x1110   :  { %v9524_v33 = vcombine.high %v8987_v2, %v8987_v2  ;;  %v9531_v55 = vrot.slane %v8987_v2, %v14031_v10  ;;  %v16850_v46 = vrot.slane %v9579_v23, %v14031_v10 }
0x1111   :  { %v9473_v31 = vcombine.high %v9471_v47, %v9471_v47  ;;  %v9487_v51 = vrot.slane %v9471_v47, %v14031_v10  ;;  %v9494_v34 = vrot.slane %v9472_v43, %v14031_v10  ;;  %v9502_v52 = vcombine.high %v9480_v37, %v9480_v37 }
0x1112   :  { %v9945_v60 = vcombine.low %v9456_v19, %v9480_v37  ;;  %v9538_v49 = vrot.slane %v9524_v33, %v14031_v10  ;;  %v9539_v25 = vcombine.high %v9531_v55, %v9531_v55  ;;  %v13580_v14 = vpop.f32.mrf.mxu1  ;;  %v9547_v28 = vrot.slane %v9531_v55, %v14031_v10 }
0x1113   :  { %v16834_v38 = vrot.slane %v9473_v31, %v14031_v10  ;;  %v9503_v32 = vcombine.high %v9487_v51, %v9487_v51  ;;  %v9504_v59 = vcombine.high %v9494_v34, %v9494_v34  ;;  %v9946_v53 = vcombine.low %v9494_v34, %v9502_v52 }
0x1114   :  { %v9540_v13 = vcombine.high %v9538_v49, %v9538_v49  ;;  %v9561_v24 = vrot.slane %v9539_v25, %v14031_v10  ;;  %v9075_v0 = vpop.f32.mrf.mxu1  ;;  %v9955_v63 = vrot.slane %v9945_v60, %v14031_v10  ;;  %v9554_v29 = vrot.slane %v9538_v49, %v14031_v10 }
0x1115   :  { %v16838_v50 = vcombine.low %v9504_v59, %v9487_v51  ;;  %v16841_v15 = vcombine.low %v16834_v38, %v9503_v32  ;;  %v9962_v35 = vrot.slane %v9946_v53, %v14031_v10  ;;  %v13587_v26 = vpop.f32.mrf.mxu0  ;;  %v9587_v16 = vcombine.high %v9075_v0, %v9075_v0 }
0x1116   :  { %v9568_v58 = vrot.slane %v9540_v13, %v14031_v10  ;;  %v10018_v22 = vcombine.low %v9547_v28, %v9561_v24  ;;  %v12999_v36 = vcombine.high %v9547_v28, %v9561_v24  ;;  %v9505_v48 = vcombine.high %v16834_v38, %v16834_v38  ;;  %v13006_v24 = vld [vmem:[%s17961_s5 + $0x38] sm:$0xff] }
0x1117   :  { %v9163_v39 = vpop.f32.mrf.mxu0  ;;  %v9969_v44 = vrot.slane %v16838_v50, %v14031_v10  ;;  %v9976_v41 = vrot.slane %v16841_v15, %v14031_v10  ;;  %v9642_v6 = vrot.slane %v13580_v14, %v14031_v10  ;;  %v16860_v61 = vcombine.low %v9955_v63, %v9962_v35  ;;  %13596 = vmatpush3.msra.mxu0 %v13006_v24 }
0x1118   :  { %v10020_v54 = vcombine.low %v9554_v29, %v9568_v58  ;;  %v9594_v18 = vrot.slane %v9075_v0, %v14031_v10  ;;  %v9601_v42 = vrot.slane %v9587_v16, %v14031_v10  ;;  %v13000_v7 = vcombine.high %v9554_v29, %v9568_v58  ;;  %v16876_v51 = vpop.f32.mrf.mxu1  ;;  %13597 = vmatprep.subr.mxu0 %v18081_v62 }
0x1119   :  { %v10028_v30 = vrot.slane %v10018_v22, %v14031_v10  ;;  %v10035_v45 = vrot.slane %v12999_v36, %v14031_v10  ;;  %v9654_v47 = vcombine.high %v9163_v39, %v9163_v39  ;;  %v16871_v57 = vrot.slane %v9642_v6, %v14031_v10 }
0x111a   :  { %v9602_v43 = vcombine.high %v9594_v18, %v9594_v18  ;;  %v9603_v37 = vcombine.high %v9601_v42, %v9601_v42  ;;  %v16867_v2 = vrot.slane %v9594_v18, %v14031_v10  ;;  %v9617_v19 = vrot.slane %v9601_v42, %v14031_v10  ;;  %v9251_v22 = vpop.f32.mrf.mxu1 }
0x111b   :  { %v9709_v33 = vrot.slane %v13587_v26, %v14031_v10  ;;  %v9661_v55 = vrot.slane %v9163_v39, %v14031_v10  ;;  %v9668_v31 = vrot.slane %v9654_v47, %v14031_v10  ;;  %v10042_v49 = vrot.slane %v10020_v54, %v14031_v10  ;;  %v13004_v47 = vld [vmem:[%s17961_s5 + $0x28] sm:$0xff] }
0x111c   :  { %v9624_v34 = vrot.slane %v9602_v43, %v14031_v10  ;;  %v16880_v52 = vrot.slane %v9603_v37, %v14031_v10  ;;  %v9632_v60 = vcombine.high %v16867_v2, %v16867_v2  ;;  %v9633_v23 = vcombine.high %v9617_v19, %v9617_v19 }
0x111d   :  { %v10049_v25 = vrot.slane %v13000_v7, %v14031_v10  ;;  %v9669_v14 = vcombine.high %v9661_v55, %v9661_v55  ;;  %v9670_v32 = vcombine.high %v9668_v31, %v9668_v31  ;;  %v10050_v59 = vcombine.low %v10028_v30, %v10035_v45  ;;  %v13005_v45 = vld [vmem:[%s17961_s5 + $0x30] sm:$0xff] }
0x111e   :  { %v9634_v53 = vcombine.high %v9624_v34, %v9624_v34  ;;  %v16886_v13 = vcombine.low %v9624_v34, %v9632_v60  ;;  %v16889_v28 = vcombine.low %v16880_v52, %v9633_v23  ;;  %v9677_v0 = vrot.slane %v9661_v55, %v14031_v10  ;;  %13598 = vmatpush3.msra.mxu0 %v13005_v45  ;;  %v13003_v60 = vld [vmem:[%s17961_s5 + $0x20] sm:$0xff]  ;;  %s18150_s5 = smov 16  }
0x111f   :  { %v9684_v35 = vrot.slane %v9668_v31, %v14031_v10  ;;  %v9691_v26 = vrot.slane %v9669_v14, %v14031_v10  ;;  %v9698_v58 = vrot.slane %v9670_v32, %v14031_v10  ;;  %v10067_v36 = vcombine.low %v16850_v46, %v16867_v2  ;;  %13599 = vmatprep.subr.mxu0 %v18081_v62 }
0x1120   :  { %v10069_v63 = vcombine.low %v9634_v53, %v9617_v19  ;;  %v9716_v29 = vrot.slane %v9709_v33, %v14031_v10  ;;  %v9772_v16 = vrot.slane %v16876_v51, %v14031_v10  ;;  %v10084_v42 = vrot.slane %v16886_v13, %v14031_v10  ;;  %13600 = vmatpush3.msra.mxu0 %v13004_v47 }
0x1121   :  { %v10140_v39 = vcombine.low %v9677_v0, %v9691_v26  ;;  %v13001_v6 = vcombine.high %v9677_v0, %v9691_v26  ;;  %v10142_v54 = vcombine.low %v9684_v35, %v9698_v58  ;;  %v13002_v18 = vcombine.high %v9684_v35, %v9698_v58  ;;  %13601 = vmatprep.subr.mxu0 %v18081_v62 }
0x1122   :  { %v10098_v7 = vrot.slane %v16889_v28, %v14031_v10  ;;  %v9717_v30 = vcombine.high %v9251_v22, %v9251_v22  ;;  %v9724_v46 = vrot.slane %v9251_v22, %v14031_v10  ;;  %v10051_v34 = vcombine.low %v10042_v49, %v10049_v25  ;;  %13602 = vmatpush3.msra.mxu0 %v13003_v60 }
0x1123   :  { %v10150_v43 = vrot.slane %v10140_v39, %v14031_v10  ;;  %v10157_v37 = vrot.slane %v13001_v6, %v14031_v10  ;;  %v10164_v2 = vrot.slane %v10142_v54, %v14031_v10  ;;  %v10171_v19 = vrot.slane %v13002_v18, %v14031_v10  ;;  %13629 = vmatprep.subr.mxu0 %v18081_v62 }
0x1124   :  { %v9731_v33 = vrot.slane %v9717_v30, %v14031_v10  ;;  %v9732_v55 = vcombine.high %v9724_v46, %v9724_v46  ;;  %v9740_v31 = vrot.slane %v9724_v46, %v14031_v10  ;;  %v10091_v23 = vrot.slane %v10069_v63, %v14031_v10 }
0x1125   :  { %v10172_v14 = vcombine.low %v10150_v43, %v10157_v37  ;;  %v10058_v32 = vrot.slane %v10050_v59, %v14031_v10  ;;  %v9978_v53 = vcombine.low %v9969_v44, %v9976_v41  ;;  %v10065_v0 = vrot.slane %v10051_v34, %v14031_v10 }
0x1126   :  { %v9733_v49 = vcombine.high %v9731_v33, %v9731_v33  ;;  %v9747_v25 = vrot.slane %v9731_v33, %v14031_v10  ;;  %v9754_v13 = vrot.slane %v9732_v55, %v14031_v10  ;;  %v9762_v28 = vcombine.high %v9740_v31, %v9740_v31 }
0x1127   :  { %v10189_v24 = vcombine.low %v9716_v29, %v9740_v31  ;;  %v9992_v59 = vrot.slane %v9978_v53, %v14031_v10  ;;  %v10173_v35 = vcombine.low %v10164_v2, %v10171_v19  ;;  %v9635_v26 = vcombine.high %v16880_v52, %v16880_v52 }
0x1128   :  { %v9761_v15 = vrot.slane %v9733_v49, %v14031_v10  ;;  %v9763_v50 = vcombine.high %v9747_v25, %v9747_v25  ;;  %v9764_v44 = vcombine.high %v9754_v13, %v9754_v13  ;;  %v10190_v41 = vcombine.low %v9754_v13, %v9762_v28 }
0x1129   :  { %v10077_v58 = vrot.slane %v10067_v36, %v14031_v10  ;;  %v10066_v22 = vcombine.low %v10058_v32, %v10065_v0  ;;  %v9985_v63 = vrot.slane %v16860_v61, %v14031_v10  ;;  %v10199_v6 = vrot.slane %v10189_v24, %v14031_v10 }
0x112a   :  { %v10191_v29 = vcombine.low %v9764_v44, %v9747_v25  ;;  %v10192_v39 = vcombine.low %v9761_v15, %v9763_v50  ;;  %v10206_v54 = vrot.slane %v10190_v41, %v14031_v10  ;;  %v10180_v30 = vrot.slane %v10172_v14, %v14031_v10 }
0x112b   :  { %v10099_v18 = vcombine.low %v10077_v58, %v10084_v42  ;;  %10131 = vrot.lane.b32.xlu0 %v10066_v22, %s18150_s5  ;;  %v10187_v46 = vrot.slane %v10173_v35, %v14031_v10  ;;  %v10100_v52 = vcombine.low %v10091_v23, %v10098_v7  ;;  %v9993_v61 = vcombine.low %v9985_v63, %v9992_v59 }
0x112c   :  { %v10213_v36 = vrot.slane %v10191_v29, %v14031_v10  ;;  %v10220_v45 = vrot.slane %v10192_v39, %v14031_v10  ;;  %v10221_v47 = vcombine.low %v10199_v6, %v10206_v54  ;;  %v9765_v43 = vcombine.high %v9761_v15, %v9761_v15 }
0x112d   :  { %v10188_v37 = vcombine.low %v10180_v30, %v10187_v46  ;;  %v10114_v2 = vrot.slane %v10100_v52, %v14031_v10  ;;  %v9994_v42 = vcombine.low %v9505_v48, %v16845_v40  ;;  %v10116_v33 = vcombine.low %v9635_v26, %v16871_v57 }
0x112e   :  { %v10222_v19 = vcombine.low %v10213_v36, %v10220_v45  ;;  %v9779_v7 = vrot.slane %v9772_v16, %v14031_v10  ;;  %v10107_v55 = vrot.slane %v10099_v18, %v14031_v10  ;;  %v10229_v31 = vrot.slane %v10221_v47, %v14031_v10 }
0x112f   :  { %10011 = vrot.lane.b32.xlu0 %v9993_v61, %s18149_s4  ;;  %10253 = vrot.lane.b32.xlu1 %v10188_v37, %s18151_s18  ;;  %v10001_v40 = vrot.slane %v9994_v42, %v14031_v10  ;;  %v10123_v60 = vrot.slane %v10116_v33, %v14031_v10  ;;  %v9264_v32 = vcombine.high %v16803_v56, %v16803_v56 }
0x1130   :  { %v10236_v34 = vrot.slane %v10222_v19, %v14031_v10  ;;  %v10115_v38 = vcombine.low %v10107_v55, %v10114_v2  ;;  %v10238_v48 = vcombine.low %v9765_v43, %v9779_v7  ;;  %v9327_v49 = vcombine.high %v16820_v17, %v16820_v17 }
0x1131   :  { %v10008_v51 = vrot.slane %v10001_v40, %v14031_v10  ;;  %v10130_v23 = vrot.slane %v10123_v60, %v14031_v10  ;;  %v9278_v53 = vrot.slane %v9264_v32, %v14031_v10  ;;  %v9334_v25 = vrot.slane %v16820_v17, %v14031_v10 }
0x1132   :  { %v10237_v57 = vcombine.low %v10229_v31, %v10236_v34  ;;  %v10245_v16 = vrot.slane %v10238_v48, %v14031_v10  ;;  %v9271_v13 = vrot.slane %v16803_v56, %v14031_v10  ;;  %v9341_v24 = vrot.slane %v9327_v49, %v14031_v10 }
0x1133   :  { %10133 = vrot.lane.b32.xlu1 %v10115_v38, %s18150_s5  ;;  %v9280_v28 = vcombine.high %v9278_v53, %v9278_v53  ;;  %v9342_v0 = vcombine.high %v9334_v25, %v9334_v25  ;;  %v9294_v41 = vrot.slane %v9278_v53, %v14031_v10  ;;  %v9350_v17 = vrot.slane %v9334_v25, %v14031_v10 }
0x1134   :  { %10255 = vrot.lane.b32.xlu0 %v10237_v57, %s18151_s18  ;;  %v10252_v14 = vrot.slane %v10245_v16, %v14031_v10  ;;  %v9279_v59 = vcombine.high %v9271_v13, %v9271_v13  ;;  %v9343_v15 = vcombine.high %v9341_v24, %v9341_v24  ;;  %v9357_v50 = vrot.slane %v9341_v24, %v14031_v10 }
0x1135   :  { %v9308_v35 = vrot.slane %v9280_v28, %v14031_v10  ;;  %v9364_v44 = vrot.slane %v9342_v0, %v14031_v10  ;;  %v9287_v56 = vrot.slane %v9271_v13, %v14031_v10  ;;  %v9319_v18 = vrot.slane %v16801_v27, %v14031_v10 }
0x1136   :  { %v9301_v26 = vrot.slane %v9279_v59, %v14031_v10  ;;  %v9371_v63 = vrot.slane %v9343_v15, %v14031_v10  ;;  %v9373_v29 = vcombine.high %v9357_v50, %v9357_v50  ;;  %v9372_v30 = vcombine.high %v9350_v17, %v9350_v17 }
0x1137   :  { %10013 = vrot.lane.b32.xlu1 %v10008_v51, %s18149_s4  ;;  %v9782_v58 = vcombine.low %v9294_v41, %v9308_v35  ;;  %v12996_v22 = vcombine.high %v9294_v41, %v9308_v35  ;;  %v9374_v39 = vcombine.high %v9364_v44, %v9364_v44  ;;  %v9326_v43 = vrot.slane %v9319_v18, %v14031_v10 }
0x1138   :  { %10135 = vrot.lane.b32.xlu0 %v10130_v23, %s18150_s5  ;;  %v9780_v6 = vcombine.low %v9287_v56, %v9301_v26  ;;  %v12995_v54 = vcombine.high %v9287_v56, %v9301_v26  ;;  %v9832_v45 = vcombine.low %v9371_v63, %v9373_v29  ;;  %v9830_v37 = vcombine.low %v9364_v44, %v9372_v30  ;;  %v13008_v29 = vld [vmem:[%s17962_s6 + $0x1] ss:$0 sm:$0xff] }
0x1139   :  { %v9804_v46 = vrot.slane %v9782_v58, %v14031_v10  ;;  %v9811_v52 = vrot.slane %v12996_v22, %v14031_v10  ;;  %v9831_v36 = vcombine.low %v9374_v39, %v9357_v50  ;;  %v9829_v42 = vcombine.low %v9326_v43, %v9350_v17 }
0x113a   :  { %v9790_v47 = vrot.slane %v9780_v6, %v14031_v10  ;;  %v9797_v61 = vrot.slane %v12995_v54, %v14031_v10  ;;  %v9860_v27 = vrot.slane %v9832_v45, %v14031_v10  ;;  %v9846_v7 = vrot.slane %v9830_v37, %v14031_v10 }
0x113b   :  { %10257 = vrot.lane.b32.xlu1 %v10252_v14, %s18151_s18  ;;  %v9813_v2 = vcombine.low %v9804_v46, %v9811_v52  ;;  %v9853_v19 = vrot.slane %v9831_v36, %v14031_v10  ;;  %v9382_v55 = vrot.slane %v16818_v1, %v14031_v10  ;;  %v9839_v34 = vrot.slane %v9829_v42, %v14031_v10 }
0x113c   :  { %v9812_v33 = vcombine.low %v9790_v47, %v9797_v61  ;;  %v9375_v40 = vcombine.high %v9371_v63, %v9371_v63 }
0x113d   :  { %v9827_v31 = vrot.slane %v9813_v2, %v14031_v10  ;;  %v9862_v38 = vcombine.low %v9853_v19, %v9860_v27  ;;  %v9861_v57 = vcombine.low %v9839_v34, %v9846_v7  ;;  %v9389_v16 = vrot.slane %v9382_v55, %v14031_v10  ;;  %v18152_v34 = vld [vmem:[#allocation18_spill] sm:$0xff] }
0x113e   :  { %v9820_v48 = vrot.slane %v9812_v33, %v14031_v10 }
0x113f   :  { %v9876_v14 = vrot.slane %v9862_v38, %v14031_v10  ;;  %v9878_v53 = vcombine.low %v9375_v40, %v9389_v16  ;;  %v9869_v49 = vrot.slane %v9861_v57, %v14031_v10  ;;  %v18153_v40 = vld [vmem:[#allocation23_spill] sm:$0xff]  ;;  %v18155_v57 = vld [vmem:[#allocation22_spill] sm:$0xff] }
0x1140   :  { %v9828_v23 = vcombine.low %v9820_v48, %v9827_v31 }
0x1141   :  { %v9877_v24 = vcombine.low %v9869_v49, %v9876_v14  ;;  %v9885_v0 = vrot.slane %v9878_v53, %v14031_v10 }
0x1143   :  { %v9892_v41 = vrot.slane %v9885_v0, %v14031_v10 }
0x115e   :  { %v10010_v60 = vpop.permute.xlu1 %10009 }
0x115f   :  { %v10262_v32 = vsel %vm1428_vm3, %v9828_v23, %v10010_v60  ;;  %v18157_v23 = vld [vmem:[#allocation20_spill] sm:$0xff] }
0x119d   :  { %v10132_v51 = vpop.permute.xlu0 %10131 }
0x119e   :  { %v10265_v1 = vsel %vm4466_vm7, %v10262_v32, %v10132_v51  ;;  %v18159_v32 = vld [vmem:[#allocation10_spill] sm:$0xff] }
0x11a1   :  { %v10254_v25 = vpop.permute.xlu1 %10253  ;;  %v10012_v13 = vpop.permute.xlu0 %10011 }
0x11a2   :  { %v10268_v28 = vsel %vm4470_vm8, %v10265_v1, %v10254_v25  ;;  %v10263_v59 = vsel %vm1428_vm3, %v9877_v24, %v10012_v13  ;;  %v18161_v1 = vld [vmem:[#allocation7_spill] sm:$0xff] }
0x11a3   :  { %13604 = vmatmul.mubr.msk.f32.vlgmr.msra.gmra.mxu0 %vm335_vm0, %v10268_v28 }
0x11a4   :  { %13606 = vmatprep.mubr.msk.f32.mxu0 %vm13906_vm2, %v18081_v62 }
0x11a5   :  { %v10134_v35 = vpop.permute.xlu1 %10133 }
0x11a6   :  { %v10256_v15 = vpop.permute.xlu0 %10255  ;;  %v10266_v50 = vsel %vm4466_vm7, %v10263_v59, %v10134_v35  ;;  %v18163_v59 = vld [vmem:[#allocation19_spill] sm:$0xff] }
0x11a7   :  { %v10269_v44 = vsel %vm4470_vm8, %v10266_v50, %v10256_v15 }
0x11a8   :  { %13607 = vmatmul.mubr.msk.f32.gmra.mxu0 %vm335_vm0, %v10269_v44 }
0x11a9   :  { %v10014_v26 = vpop.permute.xlu1 %10013  ;;  %13609 = vmatprep.mubr.msk.f32.mxu0 %vm13906_vm2, %v18081_v62 }
0x11aa   :  { %v10264_v17 = vsel %vm1428_vm3, %v9892_v41, %v10014_v26  ;;  %v10136_v56 = vpop.permute.xlu0 %10135 }
0x11ab   :  { %v10267_v58 = vsel %vm4466_vm7, %v10264_v17, %v10136_v56  ;;  %v18165_v56 = vld [vmem:[#allocation8_spill] sm:$0xff] }
0x11ad   :  { %v10258_v22 = vpop.permute.xlu1 %10257 }
0x11ae   :  { %v10270_v63 = vsel %vm4470_vm8, %v10267_v58, %v10258_v22 }
0x11af   :  { %13610 = vmatmul.mubr.msk.f32.gmra.mxu0 %vm335_vm0, %v10270_v63 }
0x11b0   :  { %13661 = vmatprep.mubr.msk.f32.mxu0 %vm13906_vm2, %v18081_v62 }
0x1263   :  { %v10359_v39 = vpop.f32.mrf.mxu0 }
0x1264   :  { %v10360_v6 = vadd.f32 %v13008_v29, %v10359_v39  ;;  %v18167_v39 = vld [vmem:[#allocation21_spill] sm:$0xff] }
0x1265   :  { %v13605_v54 = vpop.f32.mrf.mxu0 }
0x1266   :  { %v10376_v18 = vcombine.high %v10360_v6, %v10360_v6  ;;  %v10383_v30 = vrot.slane %v10360_v6, %v14031_v10  ;;  %v18169_v54 = vld [vmem:[#allocation14_spill] sm:$0xff] }
0x1268   :  { %v10390_v46 = vrot.slane %v10376_v18, %v14031_v10  ;;  %v10391_v52 = vcombine.high %v10383_v30, %v10383_v30  ;;  %v10399_v36 = vrot.slane %v10383_v30, %v14031_v10  ;;  %v10364_v45 = vpop.f32.mrf.mxu0 }
0x1269   :  { %v10365_v47 = vadd.f32 %v13008_v29, %v10364_v45 }
0x126a   :  { %v10392_v61 = vcombine.high %v10390_v46, %v10390_v46  ;;  %v10406_v43 = vrot.slane %v10390_v46, %v14031_v10  ;;  %v10413_v37 = vrot.slane %v10391_v52, %v14031_v10  ;;  %v10421_v2 = vcombine.high %v10399_v36, %v10399_v36  ;;  %v13608_v42 = vpop.f32.mrf.mxu0  ;;  %v18171_v46 = vld [vmem:[#allocation6_spill] sm:$0xff] }
0x126b   :  { %v17043_v19 = vadd.f32 %v10399_v36, %v15809_v21  ;;  %v10425_v27 = vcombine.high %v10365_v47, %v10365_v47  ;;  %v10432_v33 = vrot.slane %v10365_v47, %v14031_v10  ;;  %v18173_v36 = vld [vmem:[#allocation16_spill] sm:$0xff]  ;;  %v18175_v47 = vld [vmem:[#allocation9_spill] sm:$0xff] }
0x126c   :  { %v10420_v7 = vrot.slane %v10392_v61, %v14031_v10  ;;  %v10422_v55 = vcombine.high %v10406_v43, %v10406_v43  ;;  %v10423_v31 = vcombine.high %v10413_v37, %v10413_v37  ;;  %v17048_v38 = vadd.f32 %v10413_v37, %v18152_v34 }
0x126d   :  { %v17051_v48 = vadd.f32 %v10421_v2, %v18153_v40  ;;  %v17054_v60 = vadd.f32 %v10406_v43, %v18155_v57  ;;  %v10439_v51 = vrot.slane %v10425_v27, %v14031_v10  ;;  %v10440_v21 = vcombine.high %v10432_v33, %v10432_v33  ;;  %v18177_v43 = vld [vmem:[#allocation12_spill] sm:$0xff]  ;;  %v18181_v57 = vld [vmem:[#allocation15_spill] sm:$0xff] }
0x126e   :  { %v10424_v16 = vcombine.high %v10420_v7, %v10420_v7  ;;  %v17058_v14 = vadd.f32 %v10423_v31, %v18157_v23  ;;  %v17061_v53 = vadd.f32 %v10420_v7, %v18159_v32  ;;  %v17064_v49 = vadd.f32 %v10422_v55, %v18161_v1 }
0x126f   :  { %18154 = vst [vmem:[#allocation11_spill] sm:$0xff] %v17051_v48  ;;  %18156 = vst [vmem:[#allocation18_spill] sm:$0xff] %v17054_v60  ;;  %v10554_v25 = vcombine.low %v17043_v19, %v17048_v38  ;;  %v10441_v13 = vcombine.high %v10439_v51, %v10439_v51  ;;  %v10448_v28 = vrot.slane %v10432_v33, %v14031_v10  ;;  %v10369_v0 = vpop.f32.mrf.mxu0  ;;  %v18179_v33 = vld [vmem:[#allocation13_spill] sm:$0xff] }
0x1270   :  { %18158 = vst [vmem:[#allocation23_spill] sm:$0xff] %v17058_v14  ;;  %18160 = vst [vmem:[#allocation22_spill] sm:$0xff] %v17061_v53  ;;  %v10455_v24 = vrot.slane %v10439_v51, %v14031_v10  ;;  %v17071_v35 = vadd.f32 %v10424_v16, %v18163_v59  ;;  %v10462_v15 = vrot.slane %v10440_v21, %v14031_v10 }
0x1271   :  { %18162 = vst [vmem:[#allocation20_spill] sm:$0xff] %v17064_v49  ;;  %v10370_v50 = vadd.f32 %v13008_v29, %v10369_v0  ;;  %v10555_v44 = vcombine.low %v17051_v48, %v17058_v14  ;;  %v10469_v41 = vrot.slane %v10441_v13, %v14031_v10  ;;  %v10470_v26 = vcombine.high %v10448_v28, %v10448_v28  ;;  %v13611_v22 = vpop.f32.mrf.mxu0  ;;  %v18183_v13 = vld [vmem:[#allocation17_spill] sm:$0xff] }
0x1272   :  { %18164 = vst [vmem:[#allocation10_spill] sm:$0xff] %v17071_v35  ;;  %v10471_v17 = vcombine.high %v10455_v24, %v10455_v24  ;;  %v17078_v58 = vadd.f32 %v10448_v28, %v18165_v56  ;;  %v10472_v63 = vcombine.high %v10462_v15, %v10462_v15  ;;  %v17081_v6 = vadd.f32 %v10462_v15, %v18167_v39 }
0x1273   :  { %v17084_v18 = vadd.f32 %v10455_v24, %v18169_v54  ;;  %v10480_v29 = vrot.slane %v10370_v50, %v14031_v10  ;;  %v10473_v30 = vcombine.high %v10469_v41, %v10469_v41  ;;  %v17088_v52 = vadd.f32 %v10470_v26, %v18171_v46 }
0x1274   :  { %18166 = vst [vmem:[#allocation7_spill] sm:$0xff] %v17078_v58  ;;  %18168 = vst [vmem:[#allocation19_spill] sm:$0xff] %v17081_v6  ;;  %v17091_v45 = vadd.f32 %v10469_v41, %v18173_v36  ;;  %v17094_v61 = vadd.f32 %v10471_v17, %v18175_v47  ;;  %v17097_v37 = vadd.f32 %v10472_v63, %v18177_v43 }
0x1275   :  { %18170 = vst [vmem:[#allocation8_spill] sm:$0xff] %v17084_v18  ;;  %18172 = vst [vmem:[#allocation21_spill] sm:$0xff] %v17088_v52  ;;  %v10603_v2 = vcombine.low %v17078_v58, %v17081_v6  ;;  %v10481_v42 = vcombine.high %v10480_v29, %v10480_v29  ;;  %v10488_v27 = vrot.slane %v10480_v29, %v14031_v10 }
0x1276   :  { %18174 = vst [vmem:[#allocation14_spill] sm:$0xff] %v17091_v45  ;;  %18176 = vst [vmem:[#allocation6_spill] sm:$0xff] %v17094_v61  ;;  %v17103_v7 = vadd.f32 %v10473_v30, %v18179_v33  ;;  %v10556_v55 = vcombine.low %v17054_v60, %v17061_v53  ;;  %v10557_v31 = vcombine.low %v17064_v49, %v17071_v35 }
0x1277   :  { %18178 = vst [vmem:[#allocation16_spill] sm:$0xff] %v17097_v37  ;;  %v10564_v34 = vrot.slane %v10554_v25, %v14031_v10  ;;  %v10495_v40 = vrot.slane %v10481_v42, %v14031_v10  ;;  %v17112_v51 = vadd.f32 %v10488_v27, %v18181_v57  ;;  %v10571_v21 = vrot.slane %v10555_v44, %v14031_v10 }
0x1278   :  { %18180 = vst [vmem:[#allocation9_spill] sm:$0xff] %v17103_v7  ;;  %v10604_v16 = vcombine.low %v17088_v52, %v17097_v37  ;;  %v10578_v23 = vrot.slane %v10556_v55, %v14031_v10  ;;  %v10585_v32 = vrot.slane %v10557_v31, %v14031_v10  ;;  %v10605_v1 = vcombine.low %v17084_v18, %v17091_v45 }
0x1279   :  { %18182 = vst [vmem:[#allocation12_spill] sm:$0xff] %v17112_v51  ;;  %v10606_v25 = vcombine.low %v17094_v61, %v17103_v7  ;;  %v17124_v28 = vadd.f32 %v10495_v40, %v18183_v13  ;;  %v10586_v24 = vcombine.low %v10564_v34, %v10571_v21  ;;  %v10613_v0 = vrot.slane %v10603_v2, %v14031_v10 }
0x127a   :  { %v10620_v59 = vrot.slane %v10604_v16, %v14031_v10  ;;  %v10587_v15 = vcombine.low %v10578_v23, %v10585_v32  ;;  %v10627_v50 = vrot.slane %v10605_v1, %v14031_v10 }
0x127b   :  { %18184 = vst [vmem:[#allocation13_spill] sm:$0xff] %v17124_v28  ;;  %v10634_v44 = vrot.slane %v10606_v25, %v14031_v10  ;;  %v10652_v41 = vcombine.low %v17112_v51, %v17124_v28  ;;  %v10594_v17 = vrot.slane %v10586_v24, %v14031_v10 }
0x127c   :  { %v10635_v26 = vcombine.low %v10613_v0, %v10620_v59  ;;  %v10601_v56 = vrot.slane %v10587_v15, %v14031_v10 }
0x127d   :  { %v10636_v22 = vcombine.low %v10627_v50, %v10634_v44  ;;  %v10659_v63 = vrot.slane %v10652_v41, %v14031_v10 }
0x127e   :  { %v10602_v39 = vcombine.low %v10594_v17, %v10601_v56  ;;  %v10643_v54 = vrot.slane %v10635_v26, %v14031_v10 }
0x127f   :  { %v10650_v29 = vrot.slane %v10636_v22, %v14031_v10  ;;  %v10666_v30 = vrot.slane %v10659_v63, %v14031_v10 }
0x1280   :  { %v10670_v46 = vsel %vm335_vm0, %v10602_v39, 0.0 }
0x1281   :  { %v10651_v36 = vcombine.low %v10643_v54, %v10650_v29  ;;  %10671 = vadd.xlane.f32.xlu0 %v10670_v46  ;;  %v10676_v47 = vsel %vm342_vm1, %v10666_v30, 0.0 }
0x1283   :  { %v10673_v43 = vsel %vm335_vm0, %v10651_v36, 0.0 }
0x1284   :  { %10674 = vadd.xlane.f32.xlu1 %v10673_v43 }
0x1285   :  { %10677 = vadd.xlane.f32.xlu0 %v10676_v47 }
0x130a   :  { %v10672_v2 = vpop.xlane.xlu0 %10671 }
0x130b   :  { %v10679_v42 = vmul.f32 0.03125, %v10672_v2 }
0x130d   :  { %v10675_v27 = vpop.xlane.xlu1 %10674  ;;  %v10688_v55 = vrot.slane %v10679_v42, %v14125_v3  ;;  %v10692_v31 = vrot.slane %v10679_v42, %v14128_v4  ;;  %v10696_v34 = vrot.slane %v10679_v42, %v14131_v5  ;;  %v10700_v57 = vrot.slane %v10679_v42, %v14134_v8 }
0x130e   :  { %v17141_v33 = vmul.f32 0.03125, %v10675_v27  ;;  %v10678_v40 = vpop.xlane.xlu0 %10677  ;;  %v10704_v21 = vrot.slane %v10679_v42, %v14137_v9  ;;  %v10708_v16 = vrot.slane %v10679_v42, %v14140_v11  ;;  %v10712_v23 = vrot.slane %v10679_v42, %v14143_v12 }
0x130f   :  { %v10681_v32 = vmul.f32 0.03125, %v10678_v40  ;;  %v10716_v1 = vrot.slane %v10679_v42, %v18114_v20  ;;  %v17152_v25 = vsub.f32 %v17043_v19, %v10688_v55  ;;  %v17155_v13 = vsub.f32 %v17048_v38, %v10692_v31 }
0x1310   :  { %v17158_v24 = vsub.f32 %v17051_v48, %v10696_v34  ;;  %v17161_v0 = vsub.f32 %v17058_v14, %v10700_v57  ;;  %v17164_v59 = vsub.f32 %v17054_v60, %v10704_v21  ;;  %v17167_v15 = vsub.f32 %v17061_v53, %v10708_v16 }
0x1311   :  { %v10752_v50 = vrot.slane %v10681_v32, %v14125_v3  ;;  %v10756_v44 = vrot.slane %v10681_v32, %v14128_v4  ;;  %v17172_v41 = vsub.f32 %v17064_v49, %v10712_v23  ;;  %v17175_v26 = vsub.f32 %v17071_v35, %v10716_v1 }
0x1312   :  { %v10793_v17 = vmul.f32 %v17152_v25, %v17152_v25  ;;  %v10794_v56 = vmul.f32 %v17155_v13, %v17155_v13  ;;  %v10795_v22 = vmul.f32 %v17158_v24, %v17158_v24  ;;  %v10796_v63 = vmul.f32 %v17161_v0, %v17161_v0 }
0x1313   :  { %v17186_v39 = vsub.f32 %v17112_v51, %v10752_v50  ;;  %v17189_v54 = vsub.f32 %v17124_v28, %v10756_v44  ;;  %v10797_v29 = vmul.f32 %v17164_v59, %v17164_v59  ;;  %v10798_v30 = vmul.f32 %v17167_v15, %v17167_v15 }
0x1314   :  { %v10799_v46 = vmul.f32 %v17172_v41, %v17172_v41  ;;  %v10800_v36 = vmul.f32 %v17175_v26, %v17175_v26  ;;  %v10829_v47 = vcombine.low %v10793_v17, %v10794_v56  ;;  %v10830_v43 = vcombine.low %v10795_v22, %v10796_v63 }
0x1315   :  { %v10809_v2 = vmul.f32 %v17186_v39, %v17186_v39  ;;  %v10810_v42 = vmul.f32 %v17189_v54, %v17189_v54  ;;  %v10831_v27 = vcombine.low %v10797_v29, %v10798_v30  ;;  %v10720_v55 = vrot.slane %v17141_v33, %v14125_v3 }
0x1316   :  { %v10832_v31 = vcombine.low %v10799_v46, %v10800_v36  ;;  %v10839_v34 = vrot.slane %v10829_v47, %v14031_v10  ;;  %v10846_v40 = vrot.slane %v10830_v43, %v14031_v10  ;;  %v10724_v57 = vrot.slane %v17141_v33, %v14128_v4 }
0x1317   :  { %v10853_v21 = vrot.slane %v10831_v27, %v14031_v10  ;;  %v10927_v16 = vcombine.low %v10809_v2, %v10810_v42  ;;  %v10728_v23 = vrot.slane %v17141_v33, %v14131_v5  ;;  %v10732_v32 = vrot.slane %v17141_v33, %v14134_v8 }
0x1318   :  { %v10860_v1 = vrot.slane %v10832_v31, %v14031_v10  ;;  %v10861_v50 = vcombine.low %v10839_v34, %v10846_v40  ;;  %v10736_v44 = vrot.slane %v17141_v33, %v14137_v9  ;;  %v10740_v17 = vrot.slane %v17141_v33, %v14140_v11 }
0x1319   :  { %v10934_v56 = vrot.slane %v10927_v16, %v14031_v10  ;;  %v10744_v22 = vrot.slane %v17141_v33, %v14143_v12  ;;  %v10748_v63 = vrot.slane %v17141_v33, %v18114_v20  ;;  %v17225_v29 = vsub.f32 %v17078_v58, %v10720_v55 }
0x131a   :  { %v10862_v30 = vcombine.low %v10853_v21, %v10860_v1  ;;  %v10869_v46 = vrot.slane %v10861_v50, %v14031_v10  ;;  %v17229_v36 = vsub.f32 %v17081_v6, %v10724_v57  ;;  %v17232_v47 = vsub.f32 %v17088_v52, %v10728_v23 }
0x131b   :  { %v10941_v43 = vrot.slane %v10934_v56, %v14031_v10  ;;  %v17236_v2 = vsub.f32 %v17097_v37, %v10732_v32  ;;  %v17239_v42 = vsub.f32 %v17084_v18, %v10736_v44  ;;  %v17242_v33 = vsub.f32 %v17091_v45, %v10740_v17 }
0x131c   :  { %v10876_v27 = vrot.slane %v10862_v30, %v14031_v10  ;;  %v17246_v55 = vsub.f32 %v17094_v61, %v10744_v22  ;;  %v17249_v31 = vsub.f32 %v17103_v7, %v10748_v63  ;;  %v10801_v34 = vmul.f32 %v17225_v29, %v17225_v29 }
0x131d   :  { %v10951_v40 = vsel %vm342_vm1, %v10941_v43, 0.0  ;;  %v10802_v57 = vmul.f32 %v17229_v36, %v17229_v36  ;;  %v10803_v21 = vmul.f32 %v17232_v47, %v17232_v47  ;;  %v10804_v16 = vmul.f32 %v17236_v2, %v17236_v2 }
0x131e   :  { %v10877_v23 = vcombine.low %v10869_v46, %v10876_v27  ;;  %10952 = vadd.xlane.f32.xlu1 %v10951_v40  ;;  %v10805_v32 = vmul.f32 %v17239_v42, %v17239_v42  ;;  %v10806_v1 = vmul.f32 %v17242_v33, %v17242_v33  ;;  %v10807_v50 = vmul.f32 %v17246_v55, %v17246_v55 }
0x131f   :  { %v10808_v44 = vmul.f32 %v17249_v31, %v17249_v31  ;;  %v10878_v17 = vcombine.low %v10801_v34, %v10802_v57  ;;  %v10879_v56 = vcombine.low %v10803_v21, %v10804_v16  ;;  %v13019_v16 = vld [vmem:[%s17965_s9 + $0x38] sm:$0xff] }
0x1320   :  { %v10945_v22 = vsel %vm335_vm0, %v10877_v23, 0.0  ;;  %v10880_v63 = vcombine.low %v10805_v32, %v10806_v1  ;;  %v13018_v23 = vld [vmem:[%s17965_s9 + $0x30] sm:$0xff]  ;;  %13613 = vmatpush3.msra.mxu1 %v13019_v16  ;;  %v13014_v1 = vld [vmem:[%s17963_s7 + $0x1] ss:$0 sm:$0xff] }
0x1321   :  { %10946 = vadd.xlane.f32.xlu0 %v10945_v22  ;;  %v10881_v30 = vcombine.low %v10807_v50, %v10808_v44  ;;  %v10888_v46 = vrot.slane %v10878_v17, %v14031_v10  ;;  %v10895_v43 = vrot.slane %v10879_v56, %v14031_v10  ;;  %13614 = vmatprep.subr.mxu1 %v18081_v62  ;;  %v13015_v50 = vld [vmem:[%s17964_s8 + $0x1] ss:$0 sm:$0xff] }
0x1322   :  { %v10902_v27 = vrot.slane %v10880_v63, %v14031_v10  ;;  %13615 = vmatpush3.msra.mxu1 %v13018_v23  ;;  %v11079_v22 = vcombine.high %v13014_v1, %v13014_v1  ;;  %v11159_v63 = vcombine.high %v13015_v50, %v13015_v50 }
0x1323   :  { %v10909_v40 = vrot.slane %v10881_v30, %v14031_v10  ;;  %v10910_v28 = vcombine.low %v10888_v46, %v10895_v43  ;;  %13616 = vmatprep.subr.mxu1 %v18081_v62  ;;  %v11086_v46 = vrot.slane %v13014_v1, %v14031_v10 }
0x1324   :  { %v11093_v43 = vrot.slane %v11079_v22, %v14031_v10 }
0x1325   :  { %v10911_v51 = vcombine.low %v10902_v27, %v10909_v40  ;;  %v10918_v7 = vrot.slane %v10910_v28, %v14031_v10  ;;  %v13017_v28 = vld [vmem:[%s17965_s9 + $0x28] sm:$0xff]  ;;  %v11166_v27 = vrot.slane %v13015_v50, %v14031_v10  ;;  %v11173_v40 = vrot.slane %v11159_v63, %v14031_v10 }
0x1326   :  { %13617 = vmatpush3.msra.mxu1 %v13017_v28  ;;  %v17303_v28 = vrot.slane %v11086_v46, %v14031_v10 }
0x1327   :  { %v10925_v34 = vrot.slane %v10911_v51, %v14031_v10  ;;  %13618 = vmatprep.subr.mxu1 %v18081_v62  ;;  %v11175_v16 = vcombine.high %v11173_v40, %v11173_v40  ;;  %v17315_v50 = vrot.slane %v11166_v27, %v14031_v10 }
0x1329   :  { %v10926_v57 = vcombine.low %v10918_v7, %v10925_v34  ;;  %v13016_v7 = vld [vmem:[%s17965_s9 + $0x20] sm:$0xff]  ;;  %v11094_v34 = vcombine.high %v11086_v46, %v11086_v46  ;;  %v17324_v22 = vrot.slane %v11175_v16, %v14031_v10 }
0x132a   :  { %13619 = vmatpush3.msra.mxu1 %v13016_v7 }
0x132b   :  { %v10948_v21 = vsel %vm335_vm0, %v10926_v57, 0.0  ;;  %13670 = vmatprep.subr.mxu1 %v18081_v62  ;;  %v11095_v57 = vcombine.high %v11093_v43, %v11093_v43 }
0x132c   :  { %10949 = vadd.xlane.f32.xlu0 %v10948_v21  ;;  %v11174_v21 = vcombine.high %v11166_v27, %v11166_v27 }
0x132d   :  { %v17312_v1 = vrot.slane %v11095_v57, %v14031_v10  ;;  %v17346_v57 = vcombine.high %v17315_v50, %v17315_v50 }
0x13a7   :  { %v10953_v51 = vpop.xlane.xlu1 %10952 }
0x13a8   :  { %v10956_v32 = vmul.f32 0.03125, %v10953_v51  ;;  %v17306_v51 = vrot.slane %v11093_v43, %v14031_v10 }
0x13aa   :  { %v10947_v44 = vpop.xlane.xlu0 %10946  ;;  %v10959_v17 = vadd.f32 1e-05, %v10956_v32  ;;  %v17309_v32 = vrot.slane %v11094_v34, %v14031_v10  ;;  %v17334_v27 = vcombine.high %v17306_v51, %v17306_v51  ;;  %v17342_v34 = vcombine.high %v17312_v1, %v17312_v1 }
0x13ab   :  { %v10954_v56 = vmul.f32 0.03125, %v10947_v44  ;;  %v17318_v44 = vrot.slane %v11173_v40, %v14031_v10 }
0x13ac   :  { %13858 = vrsqrt.f32 %v10959_v17  ;;  %v17338_v40 = vcombine.high %v17309_v32, %v17309_v32 }
0x13ad   :  { %v10957_v30 = vadd.f32 1e-05, %v10954_v56  ;;  %v17321_v56 = vrot.slane %v11174_v21, %v14031_v10  ;;  %v17350_v21 = vcombine.high %v17318_v44, %v17318_v44 }
0x13af   :  { %13860 = vrsqrt.f32 %v10957_v30  ;;  %v17328_v30 = vcombine.high %v17303_v28, %v17303_v28 }
0x13b5   :  { %v10950_v23 = vpop.xlane.xlu0 %10949 }
0x13b6   :  { %v10955_v7 = vmul.f32 0.03125, %v10950_v23  ;;  %v17354_v23 = vcombine.high %v17321_v56, %v17321_v56 }
0x13b8   :  { %v10958_v17 = vadd.f32 1e-05, %v10955_v7  ;;  %v17358_v7 = vcombine.high %v17324_v22, %v17324_v22 }
0x13b9   :  { %v13859_v63 = vpop.eup %13858 }
0x13ba   :  { %v11033_v46 = vrot.slane %v13859_v63, %v14125_v3  ;;  %v11037_v43 = vrot.slane %v13859_v63, %v14128_v4  ;;  %13862 = vrsqrt.f32 %v10958_v17 }
0x13bc   :  { %v13861_v16 = vpop.eup %13860  ;;  %v11072_v17 = vmul.f32 %v11033_v46, %v17186_v39  ;;  %v11073_v63 = vmul.f32 %v11037_v43, %v17189_v54 }
0x13bd   :  { %v10969_v61 = vrot.slane %v13861_v16, %v14125_v3  ;;  %v10973_v45 = vrot.slane %v13861_v16, %v14128_v4  ;;  %v10977_v18 = vrot.slane %v13861_v16, %v14131_v5  ;;  %v10981_v37 = vrot.slane %v13861_v16, %v14134_v8 }
0x13be   :  { %v10985_v52 = vrot.slane %v13861_v16, %v14137_v9  ;;  %v10989_v58 = vrot.slane %v13861_v16, %v14140_v11  ;;  %v10993_v6 = vrot.slane %v13861_v16, %v14143_v12  ;;  %v10997_v35 = vrot.slane %v13861_v16, %v18114_v20 }
0x13bf   :  { %v11056_v39 = vmul.f32 %v10969_v61, %v17152_v25  ;;  %v11057_v54 = vmul.f32 %v10973_v45, %v17155_v13  ;;  %v11058_v46 = vmul.f32 %v10977_v18, %v17158_v24  ;;  %v11059_v43 = vmul.f32 %v10981_v37, %v17161_v0 }
0x13c0   :  { %v11060_v49 = vmul.f32 %v10985_v52, %v17164_v59  ;;  %v11061_v53 = vmul.f32 %v10989_v58, %v17167_v15  ;;  %v11062_v60 = vmul.f32 %v10993_v6, %v17172_v41  ;;  %v11063_v14 = vmul.f32 %v10997_v35, %v17175_v26 }
0x13c1   :  { %v11136_v48 = vmul.f32 %v17303_v28, %v11056_v39  ;;  %v11137_v16 = vmul.f32 %v17309_v32, %v11057_v54  ;;  %v11138_v61 = vmul.f32 %v17328_v30, %v11058_v46  ;;  %v11139_v45 = vmul.f32 %v17338_v40, %v11059_v43 }
0x13c2   :  { %v11140_v18 = vmul.f32 %v17306_v51, %v11060_v49  ;;  %v11141_v37 = vmul.f32 %v17312_v1, %v11061_v53  ;;  %v11142_v52 = vmul.f32 %v17334_v27, %v11062_v60  ;;  %v11143_v58 = vmul.f32 %v17342_v34, %v11063_v14 }
0x13c3   :  { %v11216_v6 = vadd.f32 %v17315_v50, %v11136_v48  ;;  %v11217_v35 = vadd.f32 %v17321_v56, %v11137_v16  ;;  %v11218_v25 = vadd.f32 %v17346_v57, %v11138_v61  ;;  %v11219_v13 = vadd.f32 %v17354_v23, %v11139_v45 }
0x13c4   :  { %v11220_v24 = vadd.f32 %v17318_v44, %v11140_v18  ;;  %v11221_v0 = vadd.f32 %v17324_v22, %v11141_v37  ;;  %v11222_v49 = vadd.f32 %v17350_v21, %v11142_v52  ;;  %v11223_v53 = vadd.f32 %v17358_v7, %v11143_v58 }
0x13c5   :  { %v11265_v59 = vcombine.low %v11216_v6, %v11217_v35  ;;  %v11266_v60 = vcombine.low %v11218_v25, %v11219_v13  ;;  %v11152_v39 = vmul.f32 %v17303_v28, %v11072_v17  ;;  %v11153_v54 = vmul.f32 %v17309_v32, %v11073_v63 }
0x13c6   :  { %v11267_v15 = vcombine.low %v11220_v24, %v11221_v0  ;;  %v11268_v14 = vcombine.low %v11222_v49, %v11223_v53 }
0x13c7   :  { %v13863_v41 = vpop.eup %13862  ;;  %v11275_v48 = vrot.slane %v11265_v59, %v14031_v10  ;;  %v11282_v26 = vrot.slane %v11266_v60, %v14031_v10 }
0x13c8   :  { %v11289_v46 = vrot.slane %v11267_v15, %v14031_v10  ;;  %v11296_v43 = vrot.slane %v11268_v14, %v14031_v10  ;;  %v11001_v16 = vrot.slane %v13863_v41, %v14125_v3  ;;  %v11005_v61 = vrot.slane %v13863_v41, %v14128_v4 }
0x13c9   :  { %v11297_v45 = vcombine.low %v11275_v48, %v11282_v26  ;;  %v11009_v18 = vrot.slane %v13863_v41, %v14131_v5  ;;  %v11013_v37 = vrot.slane %v13863_v41, %v14134_v8  ;;  %v11017_v52 = vrot.slane %v13863_v41, %v14137_v9 }
0x13ca   :  { %v11298_v58 = vcombine.low %v11289_v46, %v11296_v43  ;;  %v11021_v17 = vrot.slane %v13863_v41, %v14140_v11  ;;  %v11025_v63 = vrot.slane %v13863_v41, %v14143_v12  ;;  %v11029_v6 = vrot.slane %v13863_v41, %v18114_v20 }
0x13cb   :  { %v11305_v35 = vrot.slane %v11297_v45, %v14031_v10  ;;  %v11064_v25 = vmul.f32 %v11001_v16, %v17225_v29  ;;  %v11065_v13 = vmul.f32 %v11005_v61, %v17229_v36  ;;  %v11066_v24 = vmul.f32 %v11009_v18, %v17232_v47 }
0x13cc   :  { %v11312_v0 = vrot.slane %v11298_v58, %v14031_v10  ;;  %v11067_v49 = vmul.f32 %v11013_v37, %v17236_v2  ;;  %v11068_v53 = vmul.f32 %v11017_v52, %v17239_v42  ;;  %v11069_v59 = vmul.f32 %v11021_v17, %v17242_v33  ;;  %v13038_v52 = vld [vmem:[%s17967_s11 + $0xe8] sm:$0xff]  ;;  %v13037_v58 = vld [vmem:[%s17967_s11 + $0xe0] sm:$0xff]  ;;  %v13036_v17 = vld [vmem:[%s17967_s11 + $0xd8] sm:$0xff] }
0x13cd   :  { %v11070_v60 = vmul.f32 %v11025_v63, %v17246_v55  ;;  %v11071_v15 = vmul.f32 %v11029_v6, %v17249_v31  ;;  %v11144_v14 = vmul.f32 %v17303_v28, %v11064_v25  ;;  %v11145_v29 = vmul.f32 %v17309_v32, %v11065_v13  ;;  %v13035_v63 = vld [vmem:[%s17967_s11 + $0xd0] sm:$0xff]  ;;  %v13034_v6 = vld [vmem:[%s17967_s11 + $0xc8] sm:$0xff]  ;;  %v13032_v25 = vld [vmem:[%s17967_s11 + $0xb8] sm:$0xff] }
0x13ce   :  { %v11313_v41 = vcombine.low %v11305_v35, %v11312_v0  ;;  %v11146_v36 = vmul.f32 %v17328_v30, %v11066_v24  ;;  %v11147_v47 = vmul.f32 %v17338_v40, %v11067_v49  ;;  %v11148_v48 = vmul.f32 %v17306_v51, %v11068_v53  ;;  %v13033_v35 = vld [vmem:[%s17967_s11 + $0xc0] sm:$0xff]  ;;  %v13031_v13 = vld [vmem:[%s17967_s11 + $0xb0] sm:$0xff]  ;;  %v13030_v24 = vld [vmem:[%s17967_s11 + $0xa8] sm:$0xff] }
0x13cf   :  { %v11149_v2 = vmul.f32 %v17312_v1, %v11069_v59  ;;  %v11150_v42 = vmul.f32 %v17334_v27, %v11070_v60  ;;  %v11151_v33 = vmul.f32 %v17342_v34, %v11071_v15  ;;  %v11224_v55 = vadd.f32 %v17315_v50, %v11144_v14  ;;  %v13029_v0 = vld [vmem:[%s17967_s11 + $0xa0] sm:$0xff]  ;;  %v13028_v49 = vld [vmem:[%s17967_s11 + $0x98] sm:$0xff]  ;;  %v13027_v53 = vld [vmem:[%s17967_s11 + $0x90] sm:$0xff] }
0x13d0   :  { %13621 = vmatmul.mubr.msk.f32.vlgmr.msra.gmra.mxu1 %vm335_vm0, %v11313_v41  ;;  %v11225_v31 = vadd.f32 %v17321_v56, %v11145_v29  ;;  %v11226_v28 = vadd.f32 %v17346_v57, %v11146_v36  ;;  %v11227_v32 = vadd.f32 %v17354_v23, %v11147_v47  ;;  %v11228_v30 = vadd.f32 %v17318_v44, %v11148_v48  ;;  %v13026_v59 = vld [vmem:[%s17967_s11 + $0x88] sm:$0xff]  ;;  %v13025_v60 = vld [vmem:[%s17967_s11 + $0x80] sm:$0xff] }
0x13d1   :  { %13623 = vmatprep.mubr.msk.f32.mxu1 %vm13906_vm2, %v18081_v62  ;;  %v11229_v51 = vadd.f32 %v17324_v22, %v11149_v2  ;;  %v11230_v1 = vadd.f32 %v17350_v21, %v11150_v42  ;;  %v11231_v27 = vadd.f32 %v17358_v7, %v11151_v33  ;;  %v11232_v43 = vadd.f32 %v17315_v50, %v11152_v39  ;;  %v13040_v39 = vld [vmem:[%s17967_s11 + $0xf8] sm:$0xff]  ;;  %v13021_v15 = vld [vmem:[%s17966_s10 + $0x1] ss:$0 sm:$0xff] }
0x13d2   :  { %v11314_v40 = vcombine.low %v11224_v55, %v11225_v31  ;;  %v11315_v34 = vcombine.low %v11226_v28, %v11227_v32  ;;  %v11233_v57 = vadd.f32 %v17321_v56, %v11153_v54  ;;  %13630 = vmatpush3.msra.mxu0 %v13040_v39  ;;  %v13039_v54 = vld [vmem:[%s17967_s11 + $0xf0] sm:$0xff] }
0x13d3   :  { %v11316_v26 = vcombine.low %v11228_v30, %v11229_v51  ;;  %v11317_v46 = vcombine.low %v11230_v1, %v11231_v27  ;;  %13631 = vmatprep.subr.mxu0 %v18081_v62 }
0x13d4   :  { %v11324_v23 = vrot.slane %v11314_v40, %v14031_v10  ;;  %v11331_v44 = vrot.slane %v11315_v34, %v14031_v10  ;;  %v11363_v45 = vcombine.low %v11232_v43, %v11233_v57  ;;  %13632 = vmatpush3.msra.mxu0 %v13039_v54 }
0x13d5   :  { %v11338_v16 = vrot.slane %v11316_v26, %v14031_v10  ;;  %v11345_v22 = vrot.slane %v11317_v46, %v14031_v10  ;;  %13633 = vmatprep.subr.mxu0 %v18081_v62 }
0x13d6   :  { %v11346_v61 = vcombine.low %v11324_v23, %v11331_v44  ;;  %v11370_v50 = vrot.slane %v11363_v45, %v14031_v10  ;;  %13634 = vmatpush3.msra.mxu0 %v13038_v52 }
0x13d7   :  { %v11347_v21 = vcombine.low %v11338_v16, %v11345_v22  ;;  %13635 = vmatprep.subr.mxu0 %v18081_v62 }
0x13d8   :  { %v11354_v7 = vrot.slane %v11346_v61, %v14031_v10  ;;  %v11377_v56 = vrot.slane %v11370_v50, %v14031_v10  ;;  %13636 = vmatpush3.msra.mxu0 %v13037_v58 }
0x13d9   :  { %v11361_v18 = vrot.slane %v11347_v21, %v14031_v10  ;;  %13637 = vmatprep.subr.mxu0 %v18081_v62 }
0x13da   :  { %13638 = vmatpush3.msra.mxu0 %v13036_v17 }
0x13db   :  { %v11362_v37 = vcombine.low %v11354_v7, %v11361_v18  ;;  %13639 = vmatprep.subr.mxu0 %v18081_v62 }
0x13dc   :  { %13640 = vmatpush3.msra.mxu0 %v13035_v63 }
0x13dd   :  { %13624 = vmatmul.mubr.msk.f32.gmra.mxu1 %vm335_vm0, %v11362_v37  ;;  %13641 = vmatprep.subr.mxu0 %v18081_v62 }
0x13de   :  { %13626 = vmatprep.mubr.msk.f32.mxu1 %vm13906_vm2, %v18081_v62  ;;  %13642 = vmatpush3.msra.mxu0 %v13034_v6 }
0x13df   :  { %13643 = vmatprep.subr.mxu0 %v18081_v62 }
0x13e0   :  { %13644 = vmatpush3.msra.mxu0 %v13033_v35 }
0x13e1   :  { %13627 = vmatmul.mubr.msk.f32.gmra.mxu1 %vm335_vm0, %v11377_v56  ;;  %13645 = vmatprep.subr.mxu0 %v18081_v62 }
0x13e2   :  { %13678 = vmatprep.mubr.msk.f32.mxu1 %vm13906_vm2, %v18081_v62  ;;  %13646 = vmatpush3.msra.mxu0 %v13032_v25 }
0x13e3   :  { %13647 = vmatprep.subr.mxu0 %v18081_v62 }
0x13e4   :  { %13648 = vmatpush3.msra.mxu0 %v13031_v13 }
0x13e5   :  { %13649 = vmatprep.subr.mxu0 %v18081_v62 }
0x13e6   :  { %13650 = vmatpush3.msra.mxu0 %v13030_v24 }
0x13e7   :  { %13651 = vmatprep.subr.mxu0 %v18081_v62 }
0x13e8   :  { %13652 = vmatpush3.msra.mxu0 %v13029_v0 }
0x13e9   :  { %13653 = vmatprep.subr.mxu0 %v18081_v62 }
0x13ea   :  { %13654 = vmatpush3.msra.mxu0 %v13028_v49 }
0x13eb   :  { %13655 = vmatprep.subr.mxu0 %v18081_v62 }
0x13ec   :  { %13656 = vmatpush3.msra.mxu0 %v13027_v53 }
0x13ed   :  { %13657 = vmatprep.subr.mxu0 %v18081_v62 }
0x13ee   :  { %13658 = vmatpush3.msra.mxu0 %v13026_v59 }
0x13ef   :  { %13659 = vmatprep.subr.mxu0 %v18081_v62 }
0x13f0   :  { %13660 = vmatpush3.msra.mxu0 %v13025_v60 }
0x1490   :  { %v11450_v14 = vpop.f32.mrf.mxu1 }
0x1491   :  { %v11451_v29 = vadd.f32 %v13021_v15, %v11450_v14 }
0x1492   :  { %v13622_v41 = vpop.f32.mrf.mxu1 }
0x1493   :  { %v11467_v36 = vmul.f32 0.70710677, %v11451_v29 }
0x1495   :  { %v11476_v47 = vand.u32 2147483647, %v11467_v36  ;;  %vm11470_vm12 = vcmp.ge.f32.partialorder %v11467_v36, 0.0 }
0x1497   :  { %v11479_v48 = vmul.f32 0.3275911, %v11476_v47  ;;  %v11515_v28 = vsub.f32 0.0, %v11476_v47 }
0x1499   :  { %v11482_v2 = vadd.f32 1.0, %v11479_v48  ;;  %v11518_v34 = vmul.f32 %v11515_v28, %v11476_v47 }
0x149b   :  { %13864 = vrcp.f32 %v11482_v2  ;;  %v11521_v44 = vmul.f32 1.442695, %v11518_v34 }
0x149d   :  { %v11455_v42 = vpop.f32.mrf.mxu1 }
0x149e   :  { %v17519_v33 = vadd.f32 %v13021_v15, %v11455_v42 }
0x149f   :  { %v13625_v55 = vpop.f32.mrf.mxu1 }
0x14a0   :  { %v17522_v31 = vmul.f32 0.70710677, %v17519_v33  ;;  %v11464_v55 = vmul.f32 0.5, %v11451_v29 }
0x14a1   :  { %v11460_v32 = vpop.f32.mrf.mxu1 }
0x14a2   :  { %v11477_v30 = vand.u32 2147483647, %v17522_v31  ;;  %v17525_v51 = vadd.f32 %v13021_v15, %v11460_v32  ;;  %v18185_v15 = vmov -1.0   ;;  %vm11471_vm13 = vcmp.ge.f32.partialorder %v17522_v31, 0.0 }
0x14a3   :  { %v13628_v1 = vpop.f32.mrf.mxu1  ;;  %v11473_v14 = vsel %vm11470_vm12, 1.0, %v18185_v15 }
0x14a4   :  { %v11480_v27 = vmul.f32 0.3275911, %v11477_v30  ;;  %v17528_v40 = vmul.f32 0.70710677, %v17525_v51  ;;  %v11516_v21 = vsub.f32 0.0, %v11477_v30  ;;  %v11466_v31 = vmul.f32 0.5, %v17525_v51 }
0x14a6   :  { %v11483_v26 = vadd.f32 1.0, %v11480_v27  ;;  %v11478_v46 = vand.u32 2147483647, %v17528_v40  ;;  %v11519_v18 = vmul.f32 %v11516_v21, %v11477_v30  ;;  %vm11472_vm14 = vcmp.ge.f32.partialorder %v17528_v40, 0.0  ;;  %v13042_v40 = vld [vmem:[%s17968_s12 + $0x1] ss:$0 sm:$0xff] }
0x14a7   :  { %v11465_v21 = vmul.f32 0.5, %v17519_v33 }
0x14a8   :  { %v13865_v43 = vpop.eup %13864  ;;  %13866 = vrcp.f32 %v11483_v26  ;;  %v11481_v57 = vmul.f32 0.3275911, %v11478_v46  ;;  %v11517_v37 = vsub.f32 0.0, %v11478_v46  ;;  %v11523_v54 = vmul.f32 1.442695, %v11519_v18 }
0x14a9   :  { %v11488_v23 = vmul.f32 1.0614054, %v13865_v43  ;;  %v11475_v18 = vsel %vm11472_vm14, 1.0, %v18185_v15 }
0x14aa   :  { %v11484_v16 = vadd.f32 1.0, %v11481_v57  ;;  %v11520_v52 = vmul.f32 %v11517_v37, %v11478_v46 }
0x14ab   :  { %v11491_v22 = vadd.f32 -1.4531521, %v11488_v23 }
0x14ac   :  { %13868 = vrcp.f32 %v11484_v16  ;;  %v11525_v13 = vmul.f32 1.442695, %v11520_v52  ;;  %v11474_v16 = vsel %vm11471_vm13, 1.0, %v18185_v15  ;;  %v18186_v15 = vld [vmem:[#allocation11_spill] sm:$0xff] }
0x14ad   :  { %v11494_v61 = vmul.f32 %v13865_v43, %v11491_v22  ;;  %13870 = vpow2.f32 %v11521_v44 }
0x14ae   :  { %13872 = vpow2.f32 %v11523_v54 }
0x14af   :  { %v11497_v45 = vadd.f32 1.4214138, %v11494_v61  ;;  %13874 = vpow2.f32 %v11525_v13 }
0x14b1   :  { %v11500_v7 = vmul.f32 %v13865_v43, %v11497_v45 }
0x14b3   :  { %v11503_v50 = vadd.f32 -0.28449672, %v11500_v7 }
0x14b5   :  { %v13867_v56 = vpop.eup %13866  ;;  %v11506_v39 = vmul.f32 %v13865_v43, %v11503_v50 }
0x14b6   :  { %v11489_v58 = vmul.f32 1.0614054, %v13867_v56 }
0x14b7   :  { %v11509_v17 = vadd.f32 0.2548296, %v11506_v39 }
0x14b8   :  { %v11492_v63 = vadd.f32 -1.4531521, %v11489_v58 }
0x14b9   :  { %v13869_v6 = vpop.eup %13868  ;;  %v11512_v35 = vmul.f32 %v13865_v43, %v11509_v17 }
0x14ba   :  { %v13871_v25 = vpop.eup %13870  ;;  %v11495_v24 = vmul.f32 %v13867_v56, %v11492_v63  ;;  %v11490_v0 = vmul.f32 1.0614054, %v13869_v6 }
0x14bb   :  { %v11527_v49 = vmul.f32 %v13871_v25, %v11512_v35  ;;  %v13873_v46 = vpop.eup %13872 }
0x14bc   :  { %v11498_v53 = vadd.f32 1.4214138, %v11495_v24  ;;  %v11493_v59 = vadd.f32 -1.4531521, %v11490_v0  ;;  %v13875_v29 = vpop.eup %13874 }
0x14bd   :  { %v11530_v60 = vsub.f32 1.0, %v11527_v49 }
0x14be   :  { %v11501_v41 = vmul.f32 %v13867_v56, %v11498_v53  ;;  %v11496_v47 = vmul.f32 %v13869_v6, %v11493_v59 }
0x14bf   :  { %v11533_v48 = vmul.f32 %v11530_v60, %v11473_v14 }
0x14c0   :  { %v11504_v2 = vadd.f32 -0.28449672, %v11501_v41  ;;  %v11499_v42 = vadd.f32 1.4214138, %v11496_v47  ;;  %v18187_v47 = vld [vmem:[#allocation23_spill] sm:$0xff] }
0x14c1   :  { %v11536_v28 = vadd.f32 1.0, %v11533_v48 }
0x14c2   :  { %v11507_v32 = vmul.f32 %v13867_v56, %v11504_v2  ;;  %v11502_v30 = vmul.f32 %v13869_v6, %v11499_v42  ;;  %v18188_v2 = vld [vmem:[#allocation18_spill] sm:$0xff] }
0x14c3   :  { %v11539_v1 = vmul.f32 %v11536_v28, %v11464_v55  ;;  %v18189_v55 = vld [vmem:[#allocation22_spill] sm:$0xff] }
0x14c4   :  { %v11510_v27 = vadd.f32 0.2548296, %v11507_v32  ;;  %v11505_v34 = vadd.f32 -0.28449672, %v11502_v30  ;;  %v18190_v32 = vld [vmem:[#allocation20_spill] sm:$0xff] }
0x14c5   :  { %13662 = vmatmul.mubr.f32.vlgmr.msra.gmra.mxu0 %v11539_v1 }
0x14c6   :  { %13664 = vmatprep.mubr.msk.f32.mxu0 %vm13906_vm2, %v18081_v62  ;;  %v11513_v36 = vmul.f32 %v13867_v56, %v11510_v27  ;;  %v11508_v26 = vmul.f32 %v13869_v6, %v11505_v34 }
0x14c8   :  { %v11528_v43 = vmul.f32 %v13873_v46, %v11513_v36  ;;  %v11511_v57 = vadd.f32 0.2548296, %v11508_v26 }
0x14ca   :  { %v11531_v23 = vsub.f32 1.0, %v11528_v43  ;;  %v11514_v44 = vmul.f32 %v13869_v6, %v11511_v57 }
0x14cc   :  { %v11534_v22 = vmul.f32 %v11531_v23, %v11474_v16  ;;  %v11529_v61 = vmul.f32 %v13875_v29, %v11514_v44 }
0x14ce   :  { %v11537_v45 = vadd.f32 1.0, %v11534_v22  ;;  %v11532_v7 = vsub.f32 1.0, %v11529_v61 }
0x14d0   :  { %v11540_v37 = vmul.f32 %v11537_v45, %v11465_v21  ;;  %v11535_v50 = vmul.f32 %v11532_v7, %v11475_v18 }
0x14d2   :  { %13665 = vmatmul.mubr.f32.gmra.mxu0 %v11540_v37  ;;  %v11538_v56 = vadd.f32 1.0, %v11535_v50 }
0x14d3   :  { %13667 = vmatprep.mubr.msk.f32.mxu0 %vm13906_vm2, %v18081_v62  ;;  %vm12686_vm2 = vcmask 1041409  }
0x14d4   :  { %v11541_v39 = vmul.f32 %v11538_v56, %v11466_v31 }
0x14d6   :  { %13668 = vmatmul.mubr.f32.gmra.mxu0 %v11541_v39 }
0x1585   :  { %v11633_v33 = vpop.f32.mrf.mxu0 }
0x1586   :  { %v11634_v54 = vadd.f32 %v13042_v40, %v11633_v33 }
0x1587   :  { %v13663_v52 = vpop.f32.mrf.mxu0 }
0x1588   :  { %v11650_v58 = vcombine.high %v11634_v54, %v11634_v54  ;;  %v11657_v17 = vrot.slane %v11634_v54, %v14031_v10 }
0x158a   :  { %v11664_v63 = vrot.slane %v11650_v58, %v14031_v10  ;;  %v11665_v51 = vcombine.high %v11657_v17, %v11657_v17  ;;  %v11673_v6 = vrot.slane %v11657_v17, %v14031_v10 }
0x158c   :  { %v11666_v35 = vcombine.high %v11664_v63, %v11664_v63  ;;  %v11680_v25 = vrot.slane %v11664_v63, %v14031_v10  ;;  %v11687_v13 = vrot.slane %v11665_v51, %v14031_v10  ;;  %v11695_v24 = vcombine.high %v11673_v6, %v11673_v6 }
0x158d   :  { %v17555_v60 = vadd.f32 %v11673_v6, %v17043_v19  ;;  %v18191_v19 = vld [vmem:[#allocation10_spill] sm:$0xff] }
0x158e   :  { %v11694_v0 = vrot.slane %v11666_v35, %v14031_v10  ;;  %v11696_v49 = vcombine.high %v11680_v25, %v11680_v25  ;;  %v11697_v53 = vcombine.high %v11687_v13, %v11687_v13  ;;  %v17552_v59 = vadd.f32 %v11687_v13, %v17048_v38  ;;  %v18192_v35 = vld [vmem:[#allocation19_spill] sm:$0xff] }
0x158f   :  { %v17558_v14 = vadd.f32 %v11695_v24, %v18186_v15  ;;  %v17564_v42 = vadd.f32 %v11680_v25, %v18188_v2  ;;  %v18193_v25 = vld [vmem:[#allocation7_spill] sm:$0xff]  ;;  %v18194_v24 = vld [vmem:[#allocation21_spill] sm:$0xff]  ;;  %v18196_v2 = vld [vmem:[#allocation8_spill] sm:$0xff] }
0x1590   :  { %v11698_v41 = vcombine.high %v11694_v0, %v11694_v0  ;;  %v17561_v48 = vadd.f32 %v11697_v53, %v18187_v47  ;;  %v17567_v28 = vadd.f32 %v11694_v0, %v18189_v55  ;;  %v11826_v38 = vcombine.low %v17555_v60, %v17552_v59 }
0x1591   :  { %v17572_v30 = vadd.f32 %v11696_v49, %v18190_v32 }
0x1592   :  { %v17575_v1 = vadd.f32 %v11698_v41, %v18191_v19  ;;  %v11827_v27 = vcombine.low %v17558_v14, %v17561_v48  ;;  %v11828_v34 = vcombine.low %v17564_v42, %v17567_v28  ;;  %v11638_v36 = vpop.f32.mrf.mxu0  ;;  %v11836_v57 = vrot.slane %v11826_v38, %v14031_v10  ;;  %v18195_v41 = vld [vmem:[#allocation16_spill] sm:$0xff]  ;;  %v18197_v38 = vld [vmem:[#allocation14_spill] sm:$0xff] }
0x1593   :  { %v11639_v26 = vadd.f32 %v13042_v40, %v11638_v36  ;;  %v18198_v36 = vld [vmem:[#allocation6_spill] sm:$0xff] }
0x1594   :  { %v13666_v46 = vpop.f32.mrf.mxu0  ;;  %v11829_v43 = vcombine.low %v17572_v30, %v17575_v1  ;;  %v11843_v23 = vrot.slane %v11827_v27, %v14031_v10  ;;  %v11850_v22 = vrot.slane %v11828_v34, %v14031_v10 }
0x1595   :  { %v11699_v44 = vcombine.high %v11639_v26, %v11639_v26  ;;  %v11706_v29 = vrot.slane %v11639_v26, %v14031_v10  ;;  %v18199_v46 = vld [vmem:[#allocation9_spill] sm:$0xff] }
0x1596   :  { %v11643_v16 = vpop.f32.mrf.mxu0  ;;  %v11857_v61 = vrot.slane %v11829_v43, %v14031_v10  ;;  %v11858_v21 = vcombine.low %v11836_v57, %v11843_v23 }
0x1597   :  { %v11713_v45 = vrot.slane %v11699_v44, %v14031_v10  ;;  %v11714_v7 = vcombine.high %v11706_v29, %v11706_v29  ;;  %v11722_v18 = vrot.slane %v11706_v29, %v14031_v10  ;;  %v11644_v37 = vadd.f32 %v13042_v40, %v11643_v16  ;;  %v18200_v44 = vld [vmem:[#allocation12_spill] sm:$0xff]  ;;  %v18201_v16 = vld [vmem:[#allocation13_spill] sm:$0xff] }
0x1598   :  { %v13669_v50 = vpop.f32.mrf.mxu0  ;;  %v11859_v31 = vcombine.low %v11850_v22, %v11857_v61  ;;  %v11866_v58 = vrot.slane %v11858_v21, %v14031_v10 }
0x1599   :  { %v11715_v56 = vcombine.high %v11713_v45, %v11713_v45  ;;  %v11729_v39 = vrot.slane %v11713_v45, %v14031_v10  ;;  %v11736_v33 = vrot.slane %v11714_v7, %v14031_v10  ;;  %v11744_v54 = vcombine.high %v11722_v18, %v11722_v18 }
0x159a   :  { %v11754_v52 = vrot.slane %v11644_v37, %v14031_v10  ;;  %v11873_v17 = vrot.slane %v11859_v31, %v14031_v10  ;;  %v17600_v13 = vadd.f32 %v11722_v18, %v18193_v25 }
0x159b   :  { %v11743_v63 = vrot.slane %v11715_v56, %v14031_v10  ;;  %v11745_v51 = vcombine.high %v11729_v39, %v11729_v39  ;;  %v11746_v6 = vcombine.high %v11736_v33, %v11736_v33  ;;  %v17597_v40 = vadd.f32 %v11736_v33, %v18192_v35 }
0x159c   :  { %v17603_v0 = vadd.f32 %v11744_v54, %v18194_v24  ;;  %v11755_v49 = vcombine.high %v11754_v52, %v11754_v52  ;;  %v11762_v53 = vrot.slane %v11754_v52, %v14031_v10  ;;  %v17610_v55 = vadd.f32 %v11729_v39, %v18196_v2 }
0x159d   :  { %v11747_v15 = vcombine.high %v11743_v63, %v11743_v63  ;;  %v17607_v47 = vadd.f32 %v11746_v6, %v18195_v41  ;;  %v17613_v32 = vadd.f32 %v11743_v63, %v18197_v38  ;;  %v11875_v19 = vcombine.low %v17600_v13, %v17597_v40 }
0x159e   :  { %v11769_v27 = vrot.slane %v11755_v49, %v14031_v10  ;;  %v11874_v34 = vcombine.low %v11866_v58, %v11873_v17  ;;  %v17619_v26 = vadd.f32 %v11745_v51, %v18198_v36  ;;  %v11804_v29 = vadd.f32 %v11762_v53, %v18200_v44 }
0x159f   :  { %v17622_v43 = vadd.f32 %v11747_v15, %v18199_v46  ;;  %v11876_v57 = vcombine.low %v17603_v0, %v17607_v47  ;;  %v11877_v23 = vcombine.low %v17610_v55, %v17613_v32  ;;  %v11885_v45 = vrot.slane %v11875_v19, %v14031_v10 }
0x15a0   :  { %v11805_v22 = vadd.f32 %v11769_v27, %v18201_v16  ;;  %v11942_v61 = vsel %vm335_vm0, %v11874_v34, 0.0 }
0x15a1   :  { %11943 = vadd.xlane.f32.xlu0 %v11942_v61  ;;  %v11878_v21 = vcombine.low %v17619_v26, %v17622_v43  ;;  %v11892_v7 = vrot.slane %v11876_v57, %v14031_v10  ;;  %v11899_v37 = vrot.slane %v11877_v23, %v14031_v10 }
0x15a2   :  { %v11924_v18 = vcombine.low %v11804_v29, %v11805_v22 }
0x15a3   :  { %v11906_v50 = vrot.slane %v11878_v21, %v14031_v10  ;;  %v11907_v31 = vcombine.low %v11885_v45, %v11892_v7 }
0x15a4   :  { %v11931_v56 = vrot.slane %v11924_v18, %v14031_v10 }
0x15a5   :  { %v11908_v39 = vcombine.low %v11899_v37, %v11906_v50  ;;  %v11915_v54 = vrot.slane %v11907_v31, %v14031_v10 }
0x15a6   :  { %v11938_v33 = vrot.slane %v11931_v56, %v14031_v10 }
0x15a7   :  { %v11922_v52 = vrot.slane %v11908_v39, %v14031_v10 }
0x15a8   :  { %v11948_v58 = vsel %vm342_vm1, %v11938_v33, 0.0 }
0x15a9   :  { %11949 = vadd.xlane.f32.xlu0 %v11948_v58  ;;  %v11923_v17 = vcombine.low %v11915_v54, %v11922_v52 }
0x15ab   :  { %v11945_v63 = vsel %vm335_vm0, %v11923_v17, 0.0 }
0x15ac   :  { %11946 = vadd.xlane.f32.xlu1 %v11945_v63 }
0x162a   :  { %v11944_v51 = vpop.xlane.xlu0 %11943 }
0x162b   :  { %v11951_v6 = vmul.f32 0.03125, %v11944_v51 }
0x162d   :  { %v11960_v35 = vrot.slane %v11951_v6, %v14125_v3  ;;  %v11964_v25 = vrot.slane %v11951_v6, %v14128_v4  ;;  %v11968_v24 = vrot.slane %v11951_v6, %v14131_v5  ;;  %v11972_v49 = vrot.slane %v11951_v6, %v14134_v8 }
0x162e   :  { %v11976_v53 = vrot.slane %v11951_v6, %v14137_v9  ;;  %v11980_v15 = vrot.slane %v11951_v6, %v14140_v11  ;;  %v11984_v41 = vrot.slane %v11951_v6, %v14143_v12  ;;  %v11988_v2 = vrot.slane %v11951_v6, %v18114_v20 }
0x162f   :  { %v17652_v38 = vsub.f32 %v17555_v60, %v11960_v35  ;;  %v17655_v19 = vsub.f32 %v17552_v59, %v11964_v25  ;;  %v17658_v27 = vsub.f32 %v17558_v14, %v11968_v24  ;;  %v17661_v34 = vsub.f32 %v17561_v48, %v11972_v49 }
0x1630   :  { %v17664_v36 = vsub.f32 %v17564_v42, %v11976_v53  ;;  %v17667_v46 = vsub.f32 %v17567_v28, %v11980_v15  ;;  %v17670_v57 = vsub.f32 %v17572_v30, %v11984_v41  ;;  %v17673_v60 = vsub.f32 %v17575_v1, %v11988_v2 }
0x1631   :  { %v12065_v59 = vmul.f32 %v17652_v38, %v17652_v38  ;;  %v12066_v14 = vmul.f32 %v17655_v19, %v17655_v19  ;;  %v12067_v48 = vmul.f32 %v17658_v27, %v17658_v27  ;;  %v12068_v42 = vmul.f32 %v17661_v34, %v17661_v34 }
0x1632   :  { %v11950_v28 = vpop.xlane.xlu0 %11949  ;;  %v12069_v30 = vmul.f32 %v17664_v36, %v17664_v36  ;;  %v12070_v1 = vmul.f32 %v17667_v46, %v17667_v46  ;;  %v12071_v23 = vmul.f32 %v17670_v57, %v17670_v57  ;;  %v12072_v44 = vmul.f32 %v17673_v60, %v17673_v60 }
0x1633   :  { %v11953_v16 = vmul.f32 0.03125, %v11950_v28  ;;  %v12101_v61 = vcombine.low %v12065_v59, %v12066_v14  ;;  %v12102_v21 = vcombine.low %v12067_v48, %v12068_v42 }
0x1634   :  { %v12103_v45 = vcombine.low %v12069_v30, %v12070_v1  ;;  %v12104_v7 = vcombine.low %v12071_v23, %v12072_v44 }
0x1635   :  { %v12024_v18 = vrot.slane %v11953_v16, %v14125_v3  ;;  %v12028_v37 = vrot.slane %v11953_v16, %v14128_v4  ;;  %v11947_v50 = vpop.xlane.xlu1 %11946  ;;  %v12111_v31 = vrot.slane %v12101_v61, %v14031_v10  ;;  %v12118_v56 = vrot.slane %v12102_v21, %v14031_v10 }
0x1636   :  { %v11952_v39 = vmul.f32 0.03125, %v11947_v50  ;;  %v12125_v33 = vrot.slane %v12103_v45, %v14031_v10  ;;  %v12132_v54 = vrot.slane %v12104_v7, %v14031_v10 }
0x1637   :  { %v17697_v52 = vsub.f32 %v11804_v29, %v12024_v18  ;;  %v17699_v58 = vsub.f32 %v11805_v22, %v12028_v37  ;;  %v12133_v17 = vcombine.low %v12111_v31, %v12118_v56 }
0x1638   :  { %v12134_v63 = vcombine.low %v12125_v33, %v12132_v54  ;;  %v11992_v51 = vrot.slane %v11952_v39, %v14125_v3  ;;  %v11996_v6 = vrot.slane %v11952_v39, %v14128_v4  ;;  %v12000_v35 = vrot.slane %v11952_v39, %v14131_v5 }
0x1639   :  { %v12081_v25 = vmul.f32 %v17697_v52, %v17697_v52  ;;  %v12082_v24 = vmul.f32 %v17699_v58, %v17699_v58  ;;  %v12141_v49 = vrot.slane %v12133_v17, %v14031_v10  ;;  %v12004_v29 = vrot.slane %v11952_v39, %v14134_v8 }
0x163a   :  { %v12148_v22 = vrot.slane %v12134_v63, %v14031_v10  ;;  %v12008_v53 = vrot.slane %v11952_v39, %v14137_v9  ;;  %v12012_v15 = vrot.slane %v11952_v39, %v14140_v11  ;;  %v12016_v41 = vrot.slane %v11952_v39, %v14143_v12 }
0x163b   :  { %v12199_v2 = vcombine.low %v12081_v25, %v12082_v24  ;;  %v12020_v59 = vrot.slane %v11952_v39, %v18114_v20  ;;  %v17716_v14 = vsub.f32 %v17600_v13, %v11992_v51  ;;  %v17719_v48 = vsub.f32 %v17597_v40, %v11996_v6  ;;  %v12676_v24 = vld [vmem:[%s17971_s15 + $0x18] sm:$0xff] }
0x163c   :  { %v12149_v42 = vcombine.low %v12141_v49, %v12148_v22  ;;  %v17722_v28 = vsub.f32 %v17603_v0, %v12000_v35  ;;  %v17725_v30 = vsub.f32 %v17607_v47, %v12004_v29  ;;  %v17728_v1 = vsub.f32 %v17610_v55, %v12008_v53  ;;  %v12675_v49 = vld [vmem:[%s17971_s15 + $0x10] sm:$0xff]  ;;  %13671 = vmatpush3.msra.mxu1 %v12676_v24  ;;  %v12674_v29 = vld [vmem:[%s17971_s15 + $0x8] sm:$0xff]  ;;  %v12673_v22 = vld [vmem:[%s17971_s15] sm:$0xff] }
0x163d   :  { %v12206_v23 = vrot.slane %v12199_v2, %v14031_v10  ;;  %v17732_v44 = vsub.f32 %v17613_v32, %v12012_v15  ;;  %v17735_v13 = vsub.f32 %v17619_v26, %v12016_v41  ;;  %v17738_v40 = vsub.f32 %v17622_v43, %v12020_v59  ;;  %13672 = vmatprep.subr.mxu1 %v18081_v62  ;;  %v13043_v53 = vld [vmem:[%s17969_s13] ss:$0 sm:$0xff] }
0x163e   :  { %v12217_v0 = vsel %vm335_vm0, %v12149_v42, 0.0  ;;  %v12073_v47 = vmul.f32 %v17716_v14, %v17716_v14  ;;  %v12074_v55 = vmul.f32 %v17719_v48, %v17719_v48  ;;  %v12075_v16 = vmul.f32 %v17722_v28, %v17722_v28  ;;  %13673 = vmatpush3.msra.mxu1 %v12675_v49  ;;  %v13044_v15 = vld [vmem:[%s17970_s14] ss:$0 sm:$0xff] }
0x163f   :  { %12218 = vadd.xlane.f32.xlu1 %v12217_v0  ;;  %v12213_v32 = vrot.slane %v12206_v23, %v14031_v10  ;;  %v12076_v26 = vmul.f32 %v17725_v30, %v17725_v30  ;;  %v12077_v43 = vmul.f32 %v17728_v1, %v17728_v1  ;;  %v12078_v61 = vmul.f32 %v17732_v44, %v17732_v44 }
0x1640   :  { %v12079_v21 = vmul.f32 %v17735_v13, %v17735_v13  ;;  %v12080_v45 = vmul.f32 %v17738_v40, %v17738_v40  ;;  %v12150_v7 = vcombine.low %v12073_v47, %v12074_v55  ;;  %13674 = vmatprep.subr.mxu1 %v18081_v62  ;;  %v12351_v59 = vcombine.high %v13043_v53, %v13043_v53 }
0x1641   :  { %v12151_v18 = vcombine.low %v12075_v16, %v12076_v26  ;;  %v12152_v37 = vcombine.low %v12077_v43, %v12078_v61  ;;  %v12223_v50 = vsel %vm342_vm1, %v12213_v32, 0.0  ;;  %13675 = vmatpush3.msra.mxu1 %v12674_v29  ;;  %v12431_v42 = vcombine.high %v13044_v15, %v13044_v15 }
0x1642   :  { %v12153_v31 = vcombine.low %v12079_v21, %v12080_v45  ;;  %v12160_v56 = vrot.slane %v12150_v7, %v14031_v10  ;;  %13676 = vmatprep.subr.mxu1 %v18081_v62  ;;  %v12358_v47 = vrot.slane %v13043_v53, %v14031_v10  ;;  %v12365_v62 = vrot.slane %v12351_v59, %v14031_v10 }
0x1643   :  { %12224 = vadd.xlane.f32.xlu1 %v12223_v50  ;;  %v12167_v39 = vrot.slane %v12151_v18, %v14031_v10  ;;  %v12174_v33 = vrot.slane %v12152_v37, %v14031_v10  ;;  %13677 = vmatpush3.msra.mxu1 %v12673_v22  ;;  %v12438_v16 = vrot.slane %v13044_v15, %v14031_v10 }
0x1644   :  { %v12181_v54 = vrot.slane %v12153_v31, %v14031_v10  ;;  %v12445_v32 = vrot.slane %v12431_v42, %v14031_v10  ;;  %v12366_v43 = vcombine.high %v12358_v47, %v12358_v47  ;;  %v12367_v61 = vcombine.high %v12365_v62, %v12365_v62 }
0x1645   :  { %v12182_v17 = vcombine.low %v12160_v56, %v12167_v39  ;;  %v12446_v21 = vcombine.high %v12438_v16, %v12438_v16  ;;  %v17792_v7 = vrot.slane %v12358_v47, %v14031_v10  ;;  %v17795_v18 = vrot.slane %v12365_v62, %v14031_v10 }
0x1646   :  { %v12183_v63 = vcombine.low %v12174_v33, %v12181_v54  ;;  %v12447_v45 = vcombine.high %v12445_v32, %v12445_v32  ;;  %v17798_v37 = vrot.slane %v12366_v43, %v14031_v10  ;;  %v17801_v50 = vrot.slane %v12367_v61, %v14031_v10 }
0x1647   :  { %v12190_v51 = vrot.slane %v12182_v17, %v14031_v10  ;;  %v17804_v31 = vrot.slane %v12438_v16, %v14031_v10  ;;  %v17807_v56 = vrot.slane %v12446_v21, %v14031_v10  ;;  %v17810_v33 = vrot.slane %v12445_v32, %v14031_v10 }
0x1648   :  { %v12197_v6 = vrot.slane %v12183_v63, %v14031_v10  ;;  %v17813_v54 = vrot.slane %v12447_v45, %v14031_v10  ;;  %v17817_v63 = vcombine.high %v17792_v7, %v17792_v7 }
0x1649   :  { %v17833_v49 = vcombine.high %v17804_v31, %v17804_v31  ;;  %v17837_v29 = vcombine.high %v17810_v33, %v17810_v33  ;;  %v17841_v22 = vcombine.high %v17807_v56, %v17807_v56 }
0x164a   :  { %v12198_v35 = vcombine.low %v12190_v51, %v12197_v6  ;;  %v17821_v51 = vcombine.high %v17798_v37, %v17798_v37  ;;  %v17845_v53 = vcombine.high %v17813_v54, %v17813_v54 }
0x164c   :  { %v12220_v25 = vsel %vm335_vm0, %v12198_v35, 0.0  ;;  %v17825_v35 = vcombine.high %v17795_v18, %v17795_v18 }
0x164d   :  { %12221 = vadd.xlane.f32.xlu0 %v12220_v25  ;;  %v17829_v25 = vcombine.high %v17801_v50, %v17801_v50 }
0x16c8   :  { %v12219_v41 = vpop.xlane.xlu1 %12218 }
0x16c9   :  { %v12226_v2 = vmul.f32 0.03125, %v12219_v41 }
0x16cb   :  { %v12229_v23 = vadd.f32 1e-05, %v12226_v2 }
0x16cc   :  { %v12225_v0 = vpop.xlane.xlu1 %12224 }
0x16cd   :  { %13876 = vrsqrt.f32 %v12229_v23  ;;  %v12228_v55 = vmul.f32 0.03125, %v12225_v0 }
0x16cf   :  { %v12231_v26 = vadd.f32 1e-05, %v12228_v55 }
0x16d1   :  { %13878 = vrsqrt.f32 %v12231_v26 }
0x16d6   :  { %v12222_v39 = vpop.xlane.xlu0 %12221 }
0x16d7   :  { %v12227_v17 = vmul.f32 0.03125, %v12222_v39 }
0x16d9   :  { %v12230_v6 = vadd.f32 1e-05, %v12227_v17 }
0x16da   :  { %v13877_v24 = vpop.eup %13876 }
0x16db   :  { %13880 = vrsqrt.f32 %v12230_v6  ;;  %v12241_v15 = vrot.slane %v13877_v24, %v14125_v3  ;;  %v12245_v41 = vrot.slane %v13877_v24, %v14128_v4  ;;  %v12249_v2 = vrot.slane %v13877_v24, %v14131_v5 }
0x16dc   :  { %v12253_v59 = vrot.slane %v13877_v24, %v14134_v8  ;;  %v12257_v42 = vrot.slane %v13877_v24, %v14137_v9  ;;  %v12261_v23 = vrot.slane %v13877_v24, %v14140_v11  ;;  %v12265_v0 = vrot.slane %v13877_v24, %v14143_v12 }
0x16dd   :  { %v12269_v47 = vrot.slane %v13877_v24, %v18114_v20  ;;  %v12328_v62 = vmul.f32 %v12241_v15, %v17652_v38  ;;  %v12329_v55 = vmul.f32 %v12245_v41, %v17655_v19  ;;  %v12330_v16 = vmul.f32 %v12249_v2, %v17658_v27 }
0x16de   :  { %v13879_v32 = vpop.eup %13878  ;;  %v12331_v26 = vmul.f32 %v12253_v59, %v17661_v34  ;;  %v12332_v43 = vmul.f32 %v12257_v42, %v17664_v36  ;;  %v12333_v61 = vmul.f32 %v12261_v23, %v17667_v46  ;;  %v12334_v21 = vmul.f32 %v12265_v0, %v17670_v57 }
0x16df   :  { %v12305_v45 = vrot.slane %v13879_v32, %v14125_v3  ;;  %v12309_v39 = vrot.slane %v13879_v32, %v14128_v4  ;;  %v12335_v17 = vmul.f32 %v12269_v47, %v17673_v60  ;;  %v12408_v38 = vmul.f32 %v17792_v7, %v12328_v62 }
0x16e0   :  { %v12409_v19 = vmul.f32 %v17798_v37, %v12329_v55  ;;  %v12410_v27 = vmul.f32 %v17817_v63, %v12330_v16  ;;  %v12411_v34 = vmul.f32 %v17821_v51, %v12331_v26  ;;  %v12412_v36 = vmul.f32 %v17795_v18, %v12332_v43 }
0x16e1   :  { %v12344_v46 = vmul.f32 %v12305_v45, %v17697_v52  ;;  %v12345_v57 = vmul.f32 %v12309_v39, %v17699_v58  ;;  %v12413_v6 = vmul.f32 %v17801_v50, %v12333_v61  ;;  %v12414_v24 = vmul.f32 %v17825_v35, %v12334_v21 }
0x16e2   :  { %v12415_v60 = vmul.f32 %v17829_v25, %v12335_v17  ;;  %v12488_v15 = vadd.f32 %v17804_v31, %v12408_v38  ;;  %v12489_v41 = vadd.f32 %v17807_v56, %v12409_v19  ;;  %v12490_v2 = vadd.f32 %v17833_v49, %v12410_v27 }
0x16e3   :  { %v12424_v59 = vmul.f32 %v17792_v7, %v12344_v46  ;;  %v12425_v42 = vmul.f32 %v17798_v37, %v12345_v57  ;;  %v12491_v52 = vadd.f32 %v17841_v22, %v12411_v34  ;;  %v12492_v58 = vadd.f32 %v17810_v33, %v12412_v36 }
0x16e4   :  { %v12493_v23 = vadd.f32 %v17813_v54, %v12413_v6  ;;  %v12494_v0 = vadd.f32 %v17837_v29, %v12414_v24  ;;  %v12495_v47 = vadd.f32 %v17845_v53, %v12415_v60  ;;  %v12524_v62 = vcombine.low %v12488_v15, %v12489_v41 }
0x16e5   :  { %v12525_v55 = vcombine.low %v12490_v2, %v12491_v52  ;;  %v12504_v26 = vadd.f32 %v17804_v31, %v12424_v59  ;;  %v12505_v43 = vadd.f32 %v17807_v56, %v12425_v42 }
0x16e6   :  { %v12526_v16 = vcombine.low %v12492_v58, %v12493_v23  ;;  %v12527_v32 = vcombine.low %v12494_v0, %v12495_v47  ;;  %v12534_v21 = vrot.slane %v12524_v62, %v14031_v10 }
0x16e7   :  { %v12541_v45 = vrot.slane %v12525_v55, %v14031_v10 }
0x16e8   :  { %v13881_v61 = vpop.eup %13880  ;;  %v12548_v39 = vrot.slane %v12526_v16, %v14031_v10  ;;  %v12555_v17 = vrot.slane %v12527_v32, %v14031_v10 }
0x16e9   :  { %v12273_v38 = vrot.slane %v13881_v61, %v14125_v3  ;;  %v12277_v19 = vrot.slane %v13881_v61, %v14128_v4  ;;  %v12281_v27 = vrot.slane %v13881_v61, %v14131_v5  ;;  %v12285_v34 = vrot.slane %v13881_v61, %v14134_v8 }
0x16ea   :  { %v12289_v36 = vrot.slane %v13881_v61, %v14137_v9  ;;  %v12293_v46 = vrot.slane %v13881_v61, %v14140_v11  ;;  %v12297_v57 = vrot.slane %v13881_v61, %v14143_v12  ;;  %v12301_v6 = vrot.slane %v13881_v61, %v18114_v20 }
0x16eb   :  { %v12336_v24 = vmul.f32 %v12273_v38, %v17716_v14  ;;  %v12337_v60 = vmul.f32 %v12277_v19, %v17719_v48  ;;  %v12338_v15 = vmul.f32 %v12281_v27, %v17722_v28  ;;  %v12339_v4 = vmul.f32 %v12285_v34, %v17725_v30 }
0x16ec   :  { %v12340_v5 = vmul.f32 %v12289_v36, %v17728_v1  ;;  %v12341_v8 = vmul.f32 %v12293_v46, %v17732_v44  ;;  %v12342_v9 = vmul.f32 %v12297_v57, %v17735_v13  ;;  %v12343_v11 = vmul.f32 %v12301_v6, %v17738_v40 }
0x16ed   :  { %v12416_v12 = vmul.f32 %v17792_v7, %v12336_v24  ;;  %v12417_v20 = vmul.f32 %v17798_v37, %v12337_v60  ;;  %v12418_v14 = vmul.f32 %v17817_v63, %v12338_v15  ;;  %v12419_v48 = vmul.f32 %v17821_v51, %v12339_v4  ;;  %v13045_v4 = vld [vmem:[%s17972_s16] ss:$0 sm:$0xff]  ;;  %s13917_s16 = smov [#allocation3]  }
0x16ee   :  { %v12420_v28 = vmul.f32 %v17795_v18, %v12340_v5  ;;  %v12421_v30 = vmul.f32 %v17801_v50, %v12341_v8  ;;  %v12422_v1 = vmul.f32 %v17825_v35, %v12342_v9  ;;  %v12423_v44 = vmul.f32 %v17829_v25, %v12343_v11  ;;  %v13047_v9 = vld [vmem:[%s17973_s17] ss:$0 sm:$0xff]  ;;  %s12826_s17 = sshll.u32 %s13917_s16, 4  ;;  %s12827_s17 = int_to_ptr.vmem [resolvable:$true] %s12826_s17 }
0x16ef   :  { %v12496_v13 = vadd.f32 %v17804_v31, %v12416_v12  ;;  %v12497_v40 = vadd.f32 %v17807_v56, %v12417_v20  ;;  %v12498_v7 = vadd.f32 %v17833_v49, %v12418_v14  ;;  %v12499_v37 = vadd.f32 %v17841_v22, %v12419_v48  ;;  %s13882_s1 = scalar_lea.vmem %s12827_s17, 256  ;;  %p13887_p1 = scmp.lt.s32.totalorder %s12827_s17, %s12827_s17 }
0x16f0   :  { %v12500_v63 = vadd.f32 %v17810_v33, %v12420_v28  ;;  %v12501_v51 = vadd.f32 %v17813_v54, %v12421_v30  ;;  %v12502_v18 = vadd.f32 %v17837_v29, %v12422_v1  ;;  %v12503_v50 = vadd.f32 %v17845_v53, %v12423_v44  ;;  %v13048_v28 = vld [vmem:[#allocation2] ss:$0 sm:$0xff]  ;;  %p13883_p0 = scmp.ne.s32.totalorder %s12827_s17, %s13882_s1  ;;  %p13888_p2 = scmp.lt.s32.totalorder %s13882_s1, %s13882_s1 }
0x16f1   :  { %v12556_v41 = vcombine.low %v12534_v21, %v12541_v45  ;;  %v12557_v35 = vcombine.low %v12548_v39, %v12555_v17  ;;  %v12579_v25 = vrot.slane %v12496_v13, %v14031_v10  ;;  %v12587_v2 = vcombine.low %v12497_v40, %v12498_v7 }
0x16f2   :  { %v12588_v31 = vcombine.low %v12499_v37, %v12500_v63  ;;  %v12589_v59 = vcombine.low %v12501_v51, %v12502_v18  ;;  %v12590_v56 = vcombine.low %v12503_v50, %v12504_v26  ;;  %v12642_v29 = vrot.slane %v12505_v43, %v14031_v10  ;;  %p13889_p3 = por %p13888_p2, %p13887_p1 }
0x16f3   :  { %v12564_v49 = vrot.slane %v12556_v41, %v14031_v10  ;;  %v12571_v22 = vrot.slane %v12557_v35, %v14031_v10  ;;  %v12586_v33 = vrot.slane %v12579_v25, %v14031_v10  ;;  %v12597_v54 = vrot.slane %v12587_v2, %v14031_v10 }
0x16f4   :  { %v12604_v53 = vrot.slane %v12588_v31, %v14031_v10  ;;  %v12611_v42 = vrot.slane %v12589_v59, %v14031_v10  ;;  %v12618_v52 = vrot.slane %v12590_v56, %v14031_v10  ;;  %v12649_v32 = vrot.slane %v12642_v29, %v14031_v10  ;;  %p13890_p4 = pnand %p13889_p3, %p13883_p0 }
0x16f5   :  { %v12572_v58 = vcombine.low %v12564_v49, %v12571_v22  ;;  %v12656_v23 = vsel %vm12655_vm15, %v12586_v33, -inf  ;;  %v13916_v48 = vmov 0  }
0x16f6   :  { %v12619_v0 = vcombine.low %v12597_v54, %v12604_v53  ;;  %v12620_v47 = vcombine.low %v12611_v42, %v12618_v52  ;;  %v12665_v39 = vsel %vm12655_vm15, %v12649_v32, -inf  ;;  %13696 = vset.pattern.permute.xlu1 %v13916_v48  ;;  %13697 = vset.pattern.permute.xlu0 %v13916_v48 }
0x16f7   :  { %v12654_v62 = vsel %vm335_vm0, %v12572_v58, -inf }
0x16f8   :  { %v12627_v55 = vrot.slane %v12619_v0, %v14031_v10  ;;  %v12634_v16 = vrot.slane %v12620_v47, %v14031_v10  ;;  %v12657_v26 = vmax.f32 %v12654_v62, %v12656_v23 }
0x16fa   :  { %v12635_v43 = vcombine.low %v12627_v55, %v12634_v16  ;;  %v12658_v61 = vrot.slane %v12657_v26, 4 }
0x16fc   :  { %v12659_v21 = vmax.f32 %v12657_v26, %v12658_v61  ;;  %v12664_v45 = vsel %vm335_vm0, %v12635_v43, -inf }
0x16fd   :  { %v12666_v17 = vmax.f32 %v12664_v45, %v12665_v39 }
0x16fe   :  { %v12660_v38 = vrot.slane %v12659_v21, 2 }
0x16ff   :  { %v12667_v19 = vrot.slane %v12666_v17, 4 }
0x1700   :  { %v12661_v27 = vmax.f32 %v12659_v21, %v12660_v38 }
0x1701   :  { %v12668_v34 = vmax.f32 %v12666_v17, %v12667_v19 }
0x1702   :  { %v12662_v46 = vrot.slane %v12661_v27, 1 }
0x1703   :  { %v12669_v36 = vrot.slane %v12668_v34, 2 }
0x1704   :  { %v12663_v24 = vmax.f32 %v12661_v27, %v12662_v46 }
0x1705   :  { %v12670_v57 = vmax.f32 %v12668_v34, %v12669_v36 }
0x1707   :  { %v12671_v6 = vrot.slane %v12670_v57, 1 }
0x1709   :  { %v12672_v60 = vmax.f32 %v12670_v57, %v12671_v6 }
0x170b   :  { %v12687_v15 = vsel %vm12686_vm2, %v12672_v60, %v12663_v24 }
0x170c   :  { %13679 = vmatmul.mubr.msk.f32.vlgmr.msra.gmra.mxu1 %vm335_vm0, %v12687_v15 }
0x17cc   :  { %v12756_v5 = vpop.f32.mrf.mxu1 }
0x17cd   :  { %v12757_v8 = vadd.f32 %v13045_v4, %v12756_v5 }
0x17ce   :  { %v13680_v11 = vpop.f32.mrf.mxu1 }
0x17cf   :  { %v12760_v12 = vmax.f32 %v12757_v8, 0.0 }
0x17d1   :  { %v12768_v20 = vmul.f32 %v13047_v9, %v12760_v12 }
0x17d3   :  { %v12769_v14 = vsel %vm342_vm1, %v12768_v20, 0.0 }
0x17d4   :  { %12770 = vadd.xlane.f32.xlu0 %v12769_v14 }
0x185d   :  { %v12771_v30 = vpop.xlane.xlu0 %12770 }
0x185e   :  { %v12779_v1 = vadd.f32 %v13048_v28, %v12771_v30 }
0x1860   :  { %v12787_v44 = vrot.slane %v12779_v1, %v14031_v10 }
0x1862   :  { %v12788_v13 = vcombine.high %v12787_v44, %v12787_v44  ;;  %v12795_v40 = vrot.slane %v12787_v44, %v14031_v10 }
0x1864   :  { %v12802_v7 = vrot.slane %v12788_v13, %v14031_v10  ;;  %v12806_v37 = vrot.slane %v12795_v40, %v14125_v3 }
0x1866   :  { %12812 = vperm.xlu1 %13696, %v12806_v37   ;;  %v12810_v63 = vrot.slane %v12802_v7, %v14125_v3 }
0x1868   :  { %12816 = vperm.xlu0 %13697, %v12810_v63  }
0x18e1   :  { %v12813_v51 = vpop.permute.xlu1 %12812 }
0x18e2   :  { %12819 = vst [vmem:[#allocation3] sm:$0xff] %v12813_v51 }
0x18e3   :  { %v12817_v18 = vpop.permute.xlu0 %12816 }
0x18e4   :  { %12820 = vst [vmem:[#allocation3 + $0x8] sm:$0xff] %v12817_v18 }
0x18e5   :  { %13893 = shalt.err (!%p13890_p4)
}
0x18e6   :  { %s13918_s5 = smov 128  }
0x18e7   :  { %12832 = dma.vmem_to_hbm [thread:$0]  %s12827_s17, 256, %s17975_s19, [#allocation4], %s13918_s5, %s13918_s5, %s18149_s4  }
0x18e8   :  { %13902 = dma.done.wait [#allocation4], 256  }
0x18e9   :  { %13903 = vsyncadd [#allocation4], 4294967040 }
0x18ea   :  { %12836 = vsyncpa [#allocation4], 1 }

</bundles_post_ra>
